<compile_context>
chip_gen: v7x
topology: tpu7x:2x2x1
jax: 0.10.0
libtpu: 0.0.40
codegen_flags: <defaults>
</compile_context>

<pallas_src>
import functools

import jax
import jax.numpy as jnp
from jax import lax
from jax.experimental import pallas as pl
from jax.experimental.pallas import tpu as pltpu


# ----------------------------------------------------------------------------
# Fused Pallas kernel: q/k/v proj -> blocked two-pass softmax attn -> MLP -> +res
# ----------------------------------------------------------------------------
def _fused_attn_mlp_kernel(xq_ref, xkv0_ref, xkv1_ref,
                           wq_ref, bq_ref, wk_ref, bk_ref, wkv_ref, bkv_ref,
                           hm_ref, hmt_ref, w1_ref, b1_ref, w2_ref, b2_ref,
                           o_ref, *, out_c, n_side, n_b):
    f32 = jnp.float32
    bf16 = jnp.bfloat16
    d_blk = xq_ref.shape[-1]            # spatial positions in this lane block
    lanes = n_b * d_blk                 # fused lane axis: batch-major
    n_s = 2 * n_side                    # total deformable samples (both frames)

    def lane_cat(parts):
        # Batch-major concatenation along the lane axis.  Done on f32 values
        # (safe lowering); packed to bf16 only for the MXU operands.
        if len(parts) == 1:
            return parts[0]
        return jnp.concatenate(parts, axis=1)

    # ---- Q projection (attention scale pre-folded into wq/bq) ---------------
    xq = lane_cat([xq_ref[i] for i in range(n_b)]).astype(bf16)     # (in_c, L)
    qp = jnp.dot(wq_ref[...], xq, preferred_element_type=f32) + bq_ref[...]

    def kv_block(s):
        ref = xkv0_ref if s < n_side else xkv1_ref
        si = s if s < n_side else s - n_side
        return lane_cat([ref[i, :, si, :] for i in range(n_b)]).astype(bf16)

    hm = hm_ref[...]                    # (n_heads, out_c) 0/1 head membership
    hmt = hmt_ref[...]                  # (out_c, n_heads)
    bk = bk_ref[...]

    # ---- pass 1: running max of the per-head logits over the S samples ------
    m = None
    for s in range(n_s):
        k_s = jnp.dot(wk_ref[...], kv_block(s), preferred_element_type=f32) + bk
        l_s = jnp.dot(hm, qp * k_s, preferred_element_type=f32)     # (n_heads, L)
        m = l_s if m is None else jnp.maximum(m, l_s)

    # ---- pass 2: exp / denom / weighted-V accumulation (blocked; K/V recomputed
    #      per block via the stacked wkv matmul — MXU is idle anyway) ---------
    denom = jnp.zeros_like(m)
    acc = jnp.zeros((out_c, lanes), f32)
    for s in range(n_s):
        kvp_s = (jnp.dot(wkv_ref[...], kv_block(s), preferred_element_type=f32)
                 + bkv_ref[...])                                     # (2*out_c, L)
        k_s = kvp_s[:out_c, :]
        v_s = kvp_s[out_c:, :]
        l_s = jnp.dot(hm, qp * k_s, preferred_element_type=f32)     # (n_heads, L)
        p_s = jnp.exp(l_s - m)
        denom = denom + p_s
        acc = acc + jnp.dot(hmt, p_s, preferred_element_type=f32) * v_s

    # Softmax denominator reciprocal on the EUP (off the VALU).  hmt is a pure
    # 0/1 broadcast, so hmt @ (1/denom) == 1 / (hmt @ denom) exactly.
    inv = pl.reciprocal(denom, approx=True)                          # (n_heads, L)
    attend = acc * jnp.dot(hmt, inv, preferred_element_type=f32)     # (out_c, L)

    # ---- FeadForward (1x1 -> GELU -> 1x1) + residual -------------------------
    # TODO(synk): FeadForward is not defined in the reference; assumed
    #             conv1x1 -> GELU(tanh approx) -> conv1x1.  PyTorch nn.GELU()
    #             defaults to exact erf — swap in an erf GELU if needed.
    h = (jnp.dot(w1_ref[...], attend.astype(bf16), preferred_element_type=f32)
         + b1_ref[...])
    h = jax.nn.gelu(h)
    mlp = (jnp.dot(w2_ref[...], h.astype(bf16), preferred_element_type=f32)
           + b2_ref[...])
    res = attend + mlp                                               # (out_c, L)

    # ---- store directly in the caller's (b, out_c, d) layout ----------------
    for i in range(n_b):
        o_ref[i] = res[:, i * d_blk:(i + 1) * d_blk].astype(o_ref.dtype)


def prepare_fused_params(p, n_heads):
    """Fold / stack the attention + MLP weights once (item: hoist per-call prep)."""
    out_c, _ = p['q_w'].shape
    hc = out_c // n_heads
    scale = hc ** (-0.5)
    f32, bf16 = jnp.float32, jnp.bfloat16
    fp = {
        'wq': (p['q_w'] * scale).astype(bf16),
        'bq': (p['q_b'] * scale).reshape(out_c, 1).astype(f32),
        'wk': p['k_w'].astype(bf16),
        'bk': p['k_b'].reshape(out_c, 1).astype(f32),
        'wkv': jnp.concatenate([p['k_w'], p['v_w']], axis=0).astype(bf16),
        'bkv': jnp.concatenate([p['k_b'], p['v_b']], axis=0).reshape(2 * out_c, 1).astype(f32),
        'hm': (jnp.arange(out_c)[None, :] // hc
               == jnp.arange(n_heads)[:, None]).astype(f32),
        'w1': p['mlp_w1'].astype(bf16),
        'b1': p['mlp_b1'].reshape(-1, 1).astype(f32),
        'w2': p['mlp_w2'].astype(bf16),
        'b2': p['mlp_b2'].reshape(-1, 1).astype(f32),
    }
    fp['hmt'] = fp['hm'].T
    return fp


def fused_attn_mlp(fp, q4, kv0, kv1):
    """Fused Attn + FeadForward + residual.

    q4:  (b, c, fh, fw) f32 — natural NCHW layout (no host-side transpose).
    kv0/kv1: (b, c, ns, fh*fw) f32 — natural ref_feats layout (no concat).
    returns (b, out_c, fh, fw).
    """
    b, c, fh, fw = q4.shape
    ns = kv0.shape[2]
    D = fh * fw
    L = b * D
    out_c = fp['wq'].shape[0]
    hidden = fp['w1'].shape[0]
    n_heads = fp['hm'].shape[0]
    S = 2 * ns

    xq = q4.reshape(b, c, D)                      # layout-preserving (free)

    # Lane-block grid over the spatial axis: one block at test shapes; at
    # production fh*fw it bounds the VMEM working set (v7x: 64 MiB physical)
    # and shards across the two v7x TensorCores.
    bd = D
    if L > 1024 and D % 512 == 0:
        bd = 512
    grid = (D // bd,)
    # TODO(synk): for very large production L, also pass
    #             vmem_limit_bytes sized to the per-block working set, and
    #             feed kv in bf16 straight from ref_feats to halve its HBM read.

    weights = ('wq', 'bq', 'wk', 'bk', 'wkv', 'bkv', 'hm', 'hmt',
               'w1', 'b1', 'w2', 'b2')
    in_specs = ([pl.BlockSpec((b, c, bd), lambda i: (0, 0, i)),
                 pl.BlockSpec((b, c, ns, bd), lambda i: (0, 0, 0, i)),
                 pl.BlockSpec((b, c, ns, bd), lambda i: (0, 0, 0, i))]
                + [pl.BlockSpec(fp[k].shape, lambda i: (0, 0)) for k in weights])
    out_specs = pl.BlockSpec((b, out_c, bd), lambda i: (0, 0, i))

    flops = (2 * L * out_c * (c * (1 + 3 * S) + 2 * hidden)
             + 2 * L * n_heads * out_c * (3 * S + 1))
    transcendentals = L * (n_heads * (S + 1) + hidden)
    bytes_accessed = (4 * (b * c * D * (1 + 2 * ns) + b * out_c * D)
                      + sum(int(fp[k].size) * fp[k].dtype.itemsize for k in weights))

    kern = functools.partial(_fused_attn_mlp_kernel, out_c=out_c,
                             n_side=ns, n_b=b)
    out = pl.pallas_call(
        kern,
        grid=grid,
        in_specs=in_specs,
        out_specs=out_specs,
        out_shape=jax.ShapeDtypeStruct((b, out_c, D), q4.dtype),
        compiler_params=pltpu.CompilerParams(
            dimension_semantics=("parallel",)),
        cost_estimate=pl.CostEstimate(flops=flops,
                                      transcendentals=transcendentals,
                                      bytes_accessed=bytes_accessed),
    )(xq, kv0, kv1, *[fp[k] for k in weights])

    return out.reshape(b, out_c, fh, fw)          # layout-preserving (free)


# ----------------------------------------------------------------------------
# Plain-JAX glue (spatial convs, warping via one-hot matmul, resize)
# ----------------------------------------------------------------------------
def conv2d(x, w, b, padding):
    out = lax.conv_general_dilated(
        x, w, window_strides=(1, 1),
        padding=((padding, padding), (padding, padding)),
        dimension_numbers=('NCHW', 'OIHW', 'NCHW'))
    return out + b[None, :, None, None]


def prelu(x, alpha):
    return jnp.where(x >= 0, x, alpha[None, :, None, None] * x)


def conv_transpose2d_k4s2p1(x, w, b):
    # PyTorch ConvTranspose2d(k=4, s=2, p=1); w: (Cin, Cout, 4, 4)
    w_flip = w[:, :, ::-1, ::-1]
    w_oihw = jnp.transpose(w_flip, (1, 0, 2, 3))
    out = lax.conv_general_dilated(
        x, w_oihw, window_strides=(1, 1), padding=((2, 2), (2, 2)),
        lhs_dilation=(2, 2), dimension_numbers=('NCHW', 'OIHW', 'NCHW'))
    return out + b[None, :, None, None]


def grid_sample_bilinear(feat, grid):
    """F.grid_sample(mode='bilinear', padding_mode='zeros', align_corners=True),
    implemented as a one-hot matmul (P on the output lane axis, no serialized
    gather).
    feat: (N, C, H, W); grid: (N, ..., 2) with normalized (x, y) in [-1, 1]."""
    # TODO(synk): for production shapes consider pulling this gather into the
    #             fused Pallas kernel (one-hot matmul in VMEM) — the glue here
    #             likely dominates end-to-end time at large fh*fw.
    N, C, H, W = feat.shape
    out_dims = grid.shape[1:-1]
    P = 1
    for d in out_dims:
        P *= int(d)
    g = grid.reshape(N, P, 2).astype(feat.dtype)
    x = (g[..., 0] + 1.0) * 0.5 * (W - 1)
    y = (g[..., 1] + 1.0) * 0.5 * (H - 1)
    x0, y0 = jnp.floor(x), jnp.floor(y)
    x1, y1 = x0 + 1.0, y0 + 1.0
    wx1, wy1 = x - x0, y - y0
    wx0, wy0 = 1.0 - wx1, 1.0 - wy1

    src = jnp.arange(H * W, dtype=jnp.int32)                       # (HW,)

    def corner_mat(ix, iy, w):
        valid = (ix >= 0) & (ix <= W - 1) & (iy >= 0) & (iy <= H - 1)
        idx = (jnp.clip(iy, 0, H - 1) * W + jnp.clip(ix, 0, W - 1)).astype(jnp.int32)
        onehot = (idx[..., None] == src).astype(feat.dtype)        # (N, P, HW)
        return onehot * jnp.where(valid, w, 0.0)[..., None]

    wmat = (corner_mat(x0, y0, wx0 * wy0) + corner_mat(x1, y0, wx1 * wy0)
            + corner_mat(x0, y1, wx0 * wy1) + corner_mat(x1, y1, wx1 * wy1))
    out = jnp.einsum('nch,nph->ncp', feat.reshape(N, C, H * W), wmat)
    return out.reshape(N, C, *out_dims)


def bwarp(x, flow):
    """Backward warp x (B,C,H,W) by pixel-space flow (B,2,H,W).
    TODO(synk): reference `bwarp` is external; assumed standard backward warp
    with align_corners=True normalization and zero padding."""
    B, C, H, W = x.shape
    gx, gy = jnp.meshgrid(jnp.arange(W, dtype=x.dtype),
                          jnp.arange(H, dtype=x.dtype), indexing='xy')
    vx = gx[None] + flow[:, 0]
    vy = gy[None] + flow[:, 1]
    nx = 2.0 * vx / (W - 1) - 1.0
    ny = 2.0 * vy / (H - 1) - 1.0
    return grid_sample_bilinear(x, jnp.stack([nx, ny], axis=-1))


def resize_x2(x):
    # TODO(synk): BaseModel.resize undefined; assumed bilinear, align_corners=False.
    b, c, h, w = x.shape
    return jax.image.resize(x, (b, c, 2 * h, 2 * w), method='bilinear')


# ----------------------------------------------------------------------------
# Module: parameters + forward
# ----------------------------------------------------------------------------
def init_params(key, in_c, out_c, n_samples, n_groups, n_heads, mlp_ratio):
    hidden = int(out_c * mlp_ratio)
    keys = jax.random.split(key, 16)
    n = lambda k, shp: (0.05 * jax.random.normal(k, shp, jnp.float32))
    p = {}
    # movement_extractor
    # TODO(synk): conv_prelu / HalfChannelConv5ResBlock definitions are not given;
    #             assumed conv3x3+PReLU and a conv5x5 half-channel residual block.
    p['me1_w'] = n(keys[0], (2 * in_c, 2 * in_c + 2, 3, 3)); p['me1_b'] = n(keys[1], (2 * in_c,))
    p['me1_a'] = jnp.full((2 * in_c,), 0.25, jnp.float32)
    p['me2_w'] = n(keys[2], (in_c, 2 * in_c, 3, 3));          p['me2_b'] = n(keys[3], (in_c,))
    p['me2_a'] = jnp.full((in_c,), 0.25, jnp.float32)
    p['res_w1'] = n(keys[4], (in_c // 2, in_c, 5, 5));        p['res_b1'] = n(keys[5], (in_c // 2,))
    p['res_a'] = jnp.full((in_c // 2,), 0.25, jnp.float32)
    p['res_w2'] = n(keys[6], (in_c, in_c // 2, 5, 5));        p['res_b2'] = n(keys[7], (in_c,))
    # conv_res_offset (zero-initialized per _init_zero)
    p['off_w'] = jnp.zeros((n_groups * n_samples * 2, in_c, 3, 3), jnp.float32)
    p['off_b'] = jnp.zeros((n_groups * n_samples * 2,), jnp.float32)
    # conv_res_flow (ConvTranspose2d(in_c, 2, 4, 2, 1))
    p['flow_w'] = n(keys[8], (in_c, 2, 4, 4));                p['flow_b'] = n(keys[9], (2,))
    # Attn 1x1 projections (stored as (Cout, Cin))
    p['q_w'] = n(keys[10], (out_c, in_c)); p['q_b'] = n(keys[11], (out_c,))
    p['k_w'] = n(keys[12], (out_c, in_c)); p['k_b'] = n(keys[13], (out_c,))
    p['v_w'] = n(keys[14], (out_c, in_c)); p['v_b'] = n(keys[15], (out_c,))
    # FeadForward
    # TODO(synk): FeadForward definition not given; assumed 1x1 -> GELU -> 1x1.
    k2 = jax.random.split(keys[0], 4)
    p['mlp_w1'] = n(k2[0], (hidden, out_c)); p['mlp_b1'] = n(k2[1], (hidden,))
    p['mlp_w2'] = n(k2[2], (out_c, hidden)); p['mlp_b2'] = n(k2[3], (out_c,))
    # Folded / stacked weights for the fused Pallas kernel (computed once).
    p['fused'] = prepare_fused_params(p, n_heads)
    return p


def movement_feats(p, feat_t, feat_x, ftx):
    warped = bwarp(feat_x, ftx)
    x = jnp.concatenate([feat_t, warped, ftx], axis=1)
    x = prelu(conv2d(x, p['me1_w'], p['me1_b'], padding=1), p['me1_a'])
    x = prelu(conv2d(x, p['me2_w'], p['me2_b'], padding=1), p['me2_a'])
    h = prelu(conv2d(x, p['res_w1'], p['res_b1'], padding=2), p['res_a'])
    return x + conv2d(h, p['res_w2'], p['res_b2'], padding=2)


def ref_coords(p, ftx, movement, offset_scale, n_groups, n_samples):
    b, _, fh, fw = movement.shape
    off = offset_scale * jnp.tanh(conv2d(movement, p['off_w'], p['off_b'], padding=1))
    off = off.reshape(b, n_groups * n_samples, 2, fh, fw)
    return off + ftx[:, None]


def ref_feats(feat, flow, n_groups, n_samples):
    b, c, fh, fw = feat.shape
    ngc = c // n_groups
    featg = feat.reshape(b * n_groups, ngc, fh, fw)
    xx = jnp.broadcast_to(jnp.linspace(-1.0, 1.0, fw).reshape(1, 1, 1, fw), (b, 1, fh, fw))
    yy = jnp.broadcast_to(jnp.linspace(-1.0, 1.0, fh).reshape(1, 1, fh, 1), (b, 1, fh, fw))
    grid = jnp.concatenate([xx, yy], axis=1)[:, None]              # (b, 1, 2, fh, fw)
    # NOTE: reproduces the reference normalization exactly (x and y differ).
    flow_ = jnp.concatenate([flow[:, :, 0:1] / (fw - 1.0) / 2.0,
                             flow[:, :, 1:2] / ((fh - 1.0) / 2.0)], axis=2)
    grid_ = (grid + flow_).reshape(b * n_groups, n_samples, 2, fh * fw)
    grid_ = jnp.transpose(grid_, (0, 1, 3, 2))                     # (b*ng, ns, fh*fw, 2)
    samples = grid_sample_bilinear(featg, grid_)                   # (b*ng, ngc, ns, fh*fw)
    # (b*ng, ngc, ns, D) -> (b, c, ns, D): layout-preserving (free) reshape.
    return samples.reshape(b, c, n_samples, fh * fw)


def cross_deformable_attention_forward(p, feat_t, feat0, feat1, ft0, ft1, *,
                                       n_samples, n_groups, n_heads,
                                       offset_scale, pred_res_flow):
    mv0 = movement_feats(p, feat_t, feat0, ft0)
    rc0 = ref_coords(p, ft0, mv0, offset_scale, n_groups, n_samples)
    kv0 = ref_feats(feat0, rc0, n_groups, n_samples)
    mv1 = movement_feats(p, feat_t, feat1, ft1)
    rc1 = ref_coords(p, ft1, mv1, offset_scale, n_groups, n_samples)
    kv1 = ref_feats(feat1, rc1, n_groups, n_samples)

    # Fused: q/k/v projections + blocked-softmax attention + FeadForward + residual.
    out = fused_attn_mlp(p['fused'], feat_t, kv0, kv1)             # (b, out_c, fh, fw)

    if pred_res_flow:
        res_ft0 = conv_transpose2d_k4s2p1(mv0, p['flow_w'], p['flow_b'])
        up_ft0 = res_ft0 + 2.0 * resize_x2(ft0)
        res_ft1 = conv_transpose2d_k4s2p1(mv1, p['flow_w'], p['flow_b'])
        up_ft1 = res_ft1 + 2.0 * resize_x2(ft1)
        return out, up_ft0, up_ft1
    return out


# ----------------------------------------------------------------------------
# Pure-JAX reference of the fused attention + MLP path (for self-checking)
# ----------------------------------------------------------------------------
def _attn_mlp_reference(p, q4, kv, n_heads):
    b, c, fh, fw = q4.shape
    S = kv.shape[2]
    D = fh * fw
    out_c = p['q_w'].shape[0]
    hc = out_c // n_heads
    scale = hc ** (-0.5)
    q = jnp.einsum('oc,bcd->bod', p['q_w'], q4.reshape(b, c, D)) + p['q_b'][None, :, None]
    k = jnp.einsum('oc,bcsd->bosd', p['k_w'], kv) + p['k_b'][None, :, None, None]
    v = jnp.einsum('oc,bcsd->bosd', p['v_w'], kv) + p['v_b'][None, :, None, None]
    q = q.reshape(b * n_heads, hc, D)
    k = k.reshape(b * n_heads, hc, S, D)
    v = v.reshape(b * n_heads, hc, S, D)
    attn = jnp.einsum('bcd,bcsd->bsd', q, k) * scale
    attn = jax.nn.softmax(attn, axis=1)
    attend = jnp.einsum('bsd,bcsd->bcd', attn, v).reshape(b, out_c, D)
    h = jnp.einsum('hc,bcd->bhd', p['mlp_w1'], attend) + p['mlp_b1'][None, :, None]
    h = jax.nn.gelu(h)
    mlp = jnp.einsum('oh,bhd->bod', p['mlp_w2'], h) + p['mlp_b2'][None, :, None]
    return (attend + mlp).reshape(b, out_c, fh, fw)


# ----------------------------------------------------------------------------
if __name__ == "__main__":
    # Small shapes consistent with the module defaults (n_groups = n_heads = 12).
    b, in_c, out_c = 2, 24, 24
    fh = fw = 8
    n_samples, n_groups, n_heads = 9, 12, 12
    mlp_ratio, offset_scale = 2.0, 2.0

    key = jax.random.PRNGKey(0)
    kp_, kt, k0, k1, kf0, kf1 = jax.random.split(key, 6)
    params = init_params(kp_, in_c, out_c, n_samples, n_groups, n_heads, mlp_ratio)

    feat_t = jax.random.normal(kt, (b, in_c, fh, fw), jnp.float32)
    feat0 = jax.random.normal(k0, (b, in_c, fh, fw), jnp.float32)
    feat1 = jax.random.normal(k1, (b, in_c, fh, fw), jnp.float32)
    ft0 = 2.0 * jax.random.normal(kf0, (b, 2, fh, fw), jnp.float32)
    ft1 = 2.0 * jax.random.normal(kf1, (b, 2, fh, fw), jnp.float32)

    fwd = jax.jit(functools.partial(
        cross_deformable_attention_forward,
        n_samples=n_samples, n_groups=n_groups, n_heads=n_heads,
        offset_scale=offset_scale, pred_res_flow=True))

    out, up_ft0, up_ft1 = fwd(params, feat_t, feat0, feat1, ft0, ft1)
    jax.block_until_ready((out, up_ft0, up_ft1))
    assert out.shape == (b, out_c, fh, fw)
    assert up_ft0.shape == (b, 2, 2 * fh, 2 * fw)
    assert up_ft1.shape == (b, 2, 2 * fh, 2 * fw)

    # Numerical self-check of the fused Pallas attention+MLP vs. a pure-JAX ref.
    mv0 = movement_feats(params, feat_t, feat0, ft0)
    rc0 = ref_coords(params, ft0, mv0, offset_scale, n_groups, n_samples)
    kv0 = ref_feats(feat0, rc0, n_groups, n_samples)
    mv1 = movement_feats(params, feat_t, feat1, ft1)
    rc1 = ref_coords(params, ft1, mv1, offset_scale, n_groups, n_samples)
    kv1 = ref_feats(feat1, rc1, n_groups, n_samples)

    out_pallas = fused_attn_mlp(params['fused'], feat_t, kv0, kv1)
    out_ref = _attn_mlp_reference(params, feat_t,
                                  jnp.concatenate([kv0, kv1], axis=2), n_heads)
    jax.block_until_ready((out_pallas, out_ref))
    max_err = jnp.max(jnp.abs(out_pallas - out_ref))
    rel_err = max_err / (jnp.max(jnp.abs(out_ref)) + 1e-6)
    # bf16 MXU operands vs. an all-f32 reference -> slightly looser tolerance.
    assert rel_err < 3e-2, f"fused attn+MLP mismatch: abs {max_err}, rel {rel_err}"

    print("KERNEL_OK")
</pallas_src>

<mosaic_0001>
module attributes {stable_mosaic.version = 11 : i64} {
  func.func @_fused_attn_mlp_kernel(%arg0: i32, %arg1: memref<2x24x64xf32, #tpu.memory_space<vmem>>, %arg2: memref<2x24x9x64xf32, #tpu.memory_space<vmem>>, %arg3: memref<2x24x9x64xf32, #tpu.memory_space<vmem>>, %arg4: memref<24x24xbf16, #tpu.memory_space<vmem>>, %arg5: memref<24x1xf32, #tpu.memory_space<vmem>>, %arg6: memref<24x24xbf16, #tpu.memory_space<vmem>>, %arg7: memref<24x1xf32, #tpu.memory_space<vmem>>, %arg8: memref<48x24xbf16, #tpu.memory_space<vmem>>, %arg9: memref<48x1xf32, #tpu.memory_space<vmem>>, %arg10: memref<12x24xf32, #tpu.memory_space<vmem>>, %arg11: memref<24x12xf32, #tpu.memory_space<vmem>>, %arg12: memref<48x24xbf16, #tpu.memory_space<vmem>>, %arg13: memref<48x1xf32, #tpu.memory_space<vmem>>, %arg14: memref<24x48xbf16, #tpu.memory_space<vmem>>, %arg15: memref<24x1xf32, #tpu.memory_space<vmem>>, %arg16: memref<2x24x64xf32, #tpu.memory_space<vmem>>) attributes {dimension_semantics = [#tpu.dimension_semantics<parallel>], iteration_bounds = array<i64: 1>, scalar_prefetch = 0 : i64, scratch_operands = 0 : i64, tpu.core_type = #tpu.core_type<tc>, window_params = [{transform_indices = @transform_0, window_bounds = array<i64: 2, 24, 64>}, {transform_indices = @transform_1, window_bounds = array<i64: 2, 24, 9, 64>}, {transform_indices = @transform_2, window_bounds = array<i64: 2, 24, 9, 64>}, {pipeline_mode = #tpu.pipeline_mode<synchronous>, transform_indices = @transform_3, window_bounds = array<i64: 24, 24>}, {pipeline_mode = #tpu.pipeline_mode<synchronous>, transform_indices = @transform_4, window_bounds = array<i64: 24, 1>}, {pipeline_mode = #tpu.pipeline_mode<synchronous>, transform_indices = @transform_5, window_bounds = array<i64: 24, 24>}, {pipeline_mode = #tpu.pipeline_mode<synchronous>, transform_indices = @transform_6, window_bounds = array<i64: 24, 1>}, {pipeline_mode = #tpu.pipeline_mode<synchronous>, transform_indices = @transform_7, window_bounds = array<i64: 48, 24>}, {pipeline_mode = #tpu.pipeline_mode<synchronous>, transform_indices = @transform_8, window_bounds = array<i64: 48, 1>}, {pipeline_mode = #tpu.pipeline_mode<synchronous>, transform_indices = @transform_9, window_bounds = array<i64: 12, 24>}, {pipeline_mode = #tpu.pipeline_mode<synchronous>, transform_indices = @transform_10, window_bounds = array<i64: 24, 12>}, {pipeline_mode = #tpu.pipeline_mode<synchronous>, transform_indices = @transform_11, window_bounds = array<i64: 48, 24>}, {pipeline_mode = #tpu.pipeline_mode<synchronous>, transform_indices = @transform_12, window_bounds = array<i64: 48, 1>}, {pipeline_mode = #tpu.pipeline_mode<synchronous>, transform_indices = @transform_13, window_bounds = array<i64: 24, 48>}, {pipeline_mode = #tpu.pipeline_mode<synchronous>, transform_indices = @transform_14, window_bounds = array<i64: 24, 1>}, {transform_indices = @transform_15, window_bounds = array<i64: 2, 24, 64>}]} {
    %c0 = arith.constant 0 : index
    %c0_0 = arith.constant 0 : index
    %c0_1 = arith.constant 0 : index
    %0 = vector.load %arg1[%c0, %c0_0, %c0_1] : memref<2x24x64xf32, #tpu.memory_space<vmem>>, vector<1x24x64xf32>
    %1 = vector.shape_cast %0 : vector<1x24x64xf32> to vector<24x64xf32>
    %c1 = arith.constant 1 : index
    %c0_2 = arith.constant 0 : index
    %c0_3 = arith.constant 0 : index
    %2 = vector.load %arg1[%c1, %c0_2, %c0_3] : memref<2x24x64xf32, #tpu.memory_space<vmem>>, vector<1x24x64xf32>
    %3 = vector.shape_cast %2 : vector<1x24x64xf32> to vector<24x64xf32>
    %4 = tpu.concatenate %1, %3 in 1 : vector<24x64xf32>, vector<24x64xf32> -> vector<24x128xf32>
    %5 = arith.truncf %4 : vector<24x128xf32> to vector<24x128xbf16>
    %c0_4 = arith.constant 0 : index
    %c0_5 = arith.constant 0 : index
    %6 = vector.load %arg4[%c0_4, %c0_5] : memref<24x24xbf16, #tpu.memory_space<vmem>>, vector<24x24xbf16>
    %cst = arith.constant dense<0.000000e+00> : vector<24x128xf32>
    %7 = tpu.matmul %6, %5, %cst {dimension_numbers = #tpu.dot_dimension_numbers<[1], [0], [0], [1], [0, 0, 1, 1], [], []>} : vector<24x24xbf16>, vector<24x128xbf16>, vector<24x128xf32> -> vector<24x128xf32>
    %c0_6 = arith.constant 0 : index
    %c0_7 = arith.constant 0 : index
    %8 = vector.load %arg5[%c0_6, %c0_7] : memref<24x1xf32, #tpu.memory_space<vmem>>, vector<24x1xf32>
    %9 = vector.broadcast %8 : vector<24x1xf32> to vector<24x128xf32>
    %10 = arith.addf %7, %9 : vector<24x128xf32>
    %c0_8 = arith.constant 0 : index
    %c0_9 = arith.constant 0 : index
    %11 = vector.load %arg10[%c0_8, %c0_9] : memref<12x24xf32, #tpu.memory_space<vmem>>, vector<12x24xf32>
    %c0_10 = arith.constant 0 : index
    %c0_11 = arith.constant 0 : index
    %12 = vector.load %arg11[%c0_10, %c0_11] : memref<24x12xf32, #tpu.memory_space<vmem>>, vector<24x12xf32>
    %c0_12 = arith.constant 0 : index
    %c0_13 = arith.constant 0 : index
    %13 = vector.load %arg7[%c0_12, %c0_13] : memref<24x1xf32, #tpu.memory_space<vmem>>, vector<24x1xf32>
    %c0_14 = arith.constant 0 : index
    %c0_15 = arith.constant 0 : index
    %14 = vector.load %arg6[%c0_14, %c0_15] : memref<24x24xbf16, #tpu.memory_space<vmem>>, vector<24x24xbf16>
    %c0_16 = arith.constant 0 : index
    %c0_17 = arith.constant 0 : index
    %c0_18 = arith.constant 0 : index
    %c0_19 = arith.constant 0 : index
    %15 = vector.load %arg2[%c0_16, %c0_17, %c0_18, %c0_19] : memref<2x24x9x64xf32, #tpu.memory_space<vmem>>, vector<1x24x1x64xf32>
    %16 = vector.shape_cast %15 : vector<1x24x1x64xf32> to vector<24x64xf32>
    %c1_20 = arith.constant 1 : index
    %c0_21 = arith.constant 0 : index
    %c0_22 = arith.constant 0 : index
    %c0_23 = arith.constant 0 : index
    %17 = vector.load %arg2[%c1_20, %c0_21, %c0_22, %c0_23] : memref<2x24x9x64xf32, #tpu.memory_space<vmem>>, vector<1x24x1x64xf32>
    %18 = vector.shape_cast %17 : vector<1x24x1x64xf32> to vector<24x64xf32>
    %19 = tpu.concatenate %16, %18 in 1 : vector<24x64xf32>, vector<24x64xf32> -> vector<24x128xf32>
    %20 = arith.truncf %19 : vector<24x128xf32> to vector<24x128xbf16>
    %cst_24 = arith.constant dense<0.000000e+00> : vector<24x128xf32>
    %21 = tpu.matmul %14, %20, %cst_24 {dimension_numbers = #tpu.dot_dimension_numbers<[1], [0], [0], [1], [0, 0, 1, 1], [], []>} : vector<24x24xbf16>, vector<24x128xbf16>, vector<24x128xf32> -> vector<24x128xf32>
    %22 = vector.broadcast %13 : vector<24x1xf32> to vector<24x128xf32>
    %23 = arith.addf %21, %22 : vector<24x128xf32>
    %24 = arith.mulf %10, %23 : vector<24x128xf32>
    %cst_25 = arith.constant dense<0.000000e+00> : vector<12x128xf32>
    %25 = tpu.matmul %11, %24, %cst_25 {dimension_numbers = #tpu.dot_dimension_numbers<[1], [0], [0], [1], [0, 0, 1, 1], [], []>} : vector<12x24xf32>, vector<24x128xf32>, vector<12x128xf32> -> vector<12x128xf32>
    %c0_26 = arith.constant 0 : index
    %c0_27 = arith.constant 0 : index
    %26 = vector.load %arg6[%c0_26, %c0_27] : memref<24x24xbf16, #tpu.memory_space<vmem>>, vector<24x24xbf16>
    %c0_28 = arith.constant 0 : index
    %c0_29 = arith.constant 0 : index
    %c1_30 = arith.constant 1 : index
    %c0_31 = arith.constant 0 : index
    %27 = vector.load %arg2[%c0_28, %c0_29, %c1_30, %c0_31] : memref<2x24x9x64xf32, #tpu.memory_space<vmem>>, vector<1x24x1x64xf32>
    %28 = vector.shape_cast %27 : vector<1x24x1x64xf32> to vector<24x64xf32>
    %c1_32 = arith.constant 1 : index
    %c0_33 = arith.constant 0 : index
    %c1_34 = arith.constant 1 : index
    %c0_35 = arith.constant 0 : index
    %29 = vector.load %arg2[%c1_32, %c0_33, %c1_34, %c0_35] : memref<2x24x9x64xf32, #tpu.memory_space<vmem>>, vector<1x24x1x64xf32>
    %30 = vector.shape_cast %29 : vector<1x24x1x64xf32> to vector<24x64xf32>
    %31 = tpu.concatenate %28, %30 in 1 : vector<24x64xf32>, vector<24x64xf32> -> vector<24x128xf32>
    %32 = arith.truncf %31 : vector<24x128xf32> to vector<24x128xbf16>
    %cst_36 = arith.constant dense<0.000000e+00> : vector<24x128xf32>
    %33 = tpu.matmul %26, %32, %cst_36 {dimension_numbers = #tpu.dot_dimension_numbers<[1], [0], [0], [1], [0, 0, 1, 1], [], []>} : vector<24x24xbf16>, vector<24x128xbf16>, vector<24x128xf32> -> vector<24x128xf32>
    %34 = vector.broadcast %13 : vector<24x1xf32> to vector<24x128xf32>
    %35 = arith.addf %33, %34 : vector<24x128xf32>
    %36 = arith.mulf %10, %35 : vector<24x128xf32>
    %cst_37 = arith.constant dense<0.000000e+00> : vector<12x128xf32>
    %37 = tpu.matmul %11, %36, %cst_37 {dimension_numbers = #tpu.dot_dimension_numbers<[1], [0], [0], [1], [0, 0, 1, 1], [], []>} : vector<12x24xf32>, vector<24x128xf32>, vector<12x128xf32> -> vector<12x128xf32>
    %38 = arith.maximumf %25, %37 : vector<12x128xf32>
    %c0_38 = arith.constant 0 : index
    %c0_39 = arith.constant 0 : index
    %39 = vector.load %arg6[%c0_38, %c0_39] : memref<24x24xbf16, #tpu.memory_space<vmem>>, vector<24x24xbf16>
    %c0_40 = arith.constant 0 : index
    %c0_41 = arith.constant 0 : index
    %c2 = arith.constant 2 : index
    %c0_42 = arith.constant 0 : index
    %40 = vector.load %arg2[%c0_40, %c0_41, %c2, %c0_42] : memref<2x24x9x64xf32, #tpu.memory_space<vmem>>, vector<1x24x1x64xf32>
    %41 = vector.shape_cast %40 : vector<1x24x1x64xf32> to vector<24x64xf32>
    %c1_43 = arith.constant 1 : index
    %c0_44 = arith.constant 0 : index
    %c2_45 = arith.constant 2 : index
    %c0_46 = arith.constant 0 : index
    %42 = vector.load %arg2[%c1_43, %c0_44, %c2_45, %c0_46] : memref<2x24x9x64xf32, #tpu.memory_space<vmem>>, vector<1x24x1x64xf32>
    %43 = vector.shape_cast %42 : vector<1x24x1x64xf32> to vector<24x64xf32>
    %44 = tpu.concatenate %41, %43 in 1 : vector<24x64xf32>, vector<24x64xf32> -> vector<24x128xf32>
    %45 = arith.truncf %44 : vector<24x128xf32> to vector<24x128xbf16>
    %cst_47 = arith.constant dense<0.000000e+00> : vector<24x128xf32>
    %46 = tpu.matmul %39, %45, %cst_47 {dimension_numbers = #tpu.dot_dimension_numbers<[1], [0], [0], [1], [0, 0, 1, 1], [], []>} : vector<24x24xbf16>, vector<24x128xbf16>, vector<24x128xf32> -> vector<24x128xf32>
    %47 = vector.broadcast %13 : vector<24x1xf32> to vector<24x128xf32>
    %48 = arith.addf %46, %47 : vector<24x128xf32>
    %49 = arith.mulf %10, %48 : vector<24x128xf32>
    %cst_48 = arith.constant dense<0.000000e+00> : vector<12x128xf32>
    %50 = tpu.matmul %11, %49, %cst_48 {dimension_numbers = #tpu.dot_dimension_numbers<[1], [0], [0], [1], [0, 0, 1, 1], [], []>} : vector<12x24xf32>, vector<24x128xf32>, vector<12x128xf32> -> vector<12x128xf32>
    %51 = arith.maximumf %38, %50 : vector<12x128xf32>
    %c0_49 = arith.constant 0 : index
    %c0_50 = arith.constant 0 : index
    %52 = vector.load %arg6[%c0_49, %c0_50] : memref<24x24xbf16, #tpu.memory_space<vmem>>, vector<24x24xbf16>
    %c0_51 = arith.constant 0 : index
    %c0_52 = arith.constant 0 : index
    %c3 = arith.constant 3 : index
    %c0_53 = arith.constant 0 : index
    %53 = vector.load %arg2[%c0_51, %c0_52, %c3, %c0_53] : memref<2x24x9x64xf32, #tpu.memory_space<vmem>>, vector<1x24x1x64xf32>
    %54 = vector.shape_cast %53 : vector<1x24x1x64xf32> to vector<24x64xf32>
    %c1_54 = arith.constant 1 : index
    %c0_55 = arith.constant 0 : index
    %c3_56 = arith.constant 3 : index
    %c0_57 = arith.constant 0 : index
    %55 = vector.load %arg2[%c1_54, %c0_55, %c3_56, %c0_57] : memref<2x24x9x64xf32, #tpu.memory_space<vmem>>, vector<1x24x1x64xf32>
    %56 = vector.shape_cast %55 : vector<1x24x1x64xf32> to vector<24x64xf32>
    %57 = tpu.concatenate %54, %56 in 1 : vector<24x64xf32>, vector<24x64xf32> -> vector<24x128xf32>
    %58 = arith.truncf %57 : vector<24x128xf32> to vector<24x128xbf16>
    %cst_58 = arith.constant dense<0.000000e+00> : vector<24x128xf32>
    %59 = tpu.matmul %52, %58, %cst_58 {dimension_numbers = #tpu.dot_dimension_numbers<[1], [0], [0], [1], [0, 0, 1, 1], [], []>} : vector<24x24xbf16>, vector<24x128xbf16>, vector<24x128xf32> -> vector<24x128xf32>
    %60 = vector.broadcast %13 : vector<24x1xf32> to vector<24x128xf32>
    %61 = arith.addf %59, %60 : vector<24x128xf32>
    %62 = arith.mulf %10, %61 : vector<24x128xf32>
    %cst_59 = arith.constant dense<0.000000e+00> : vector<12x128xf32>
    %63 = tpu.matmul %11, %62, %cst_59 {dimension_numbers = #tpu.dot_dimension_numbers<[1], [0], [0], [1], [0, 0, 1, 1], [], []>} : vector<12x24xf32>, vector<24x128xf32>, vector<12x128xf32> -> vector<12x128xf32>
    %64 = arith.maximumf %51, %63 : vector<12x128xf32>
    %c0_60 = arith.constant 0 : index
    %c0_61 = arith.constant 0 : index
    %65 = vector.load %arg6[%c0_60, %c0_61] : memref<24x24xbf16, #tpu.memory_space<vmem>>, vector<24x24xbf16>
    %c0_62 = arith.constant 0 : index
    %c0_63 = arith.constant 0 : index
    %c4 = arith.constant 4 : index
    %c0_64 = arith.constant 0 : index
    %66 = vector.load %arg2[%c0_62, %c0_63, %c4, %c0_64] : memref<2x24x9x64xf32, #tpu.memory_space<vmem>>, vector<1x24x1x64xf32>
    %67 = vector.shape_cast %66 : vector<1x24x1x64xf32> to vector<24x64xf32>
    %c1_65 = arith.constant 1 : index
    %c0_66 = arith.constant 0 : index
    %c4_67 = arith.constant 4 : index
    %c0_68 = arith.constant 0 : index
    %68 = vector.load %arg2[%c1_65, %c0_66, %c4_67, %c0_68] : memref<2x24x9x64xf32, #tpu.memory_space<vmem>>, vector<1x24x1x64xf32>
    %69 = vector.shape_cast %68 : vector<1x24x1x64xf32> to vector<24x64xf32>
    %70 = tpu.concatenate %67, %69 in 1 : vector<24x64xf32>, vector<24x64xf32> -> vector<24x128xf32>
    %71 = arith.truncf %70 : vector<24x128xf32> to vector<24x128xbf16>
    %cst_69 = arith.constant dense<0.000000e+00> : vector<24x128xf32>
    %72 = tpu.matmul %65, %71, %cst_69 {dimension_numbers = #tpu.dot_dimension_numbers<[1], [0], [0], [1], [0, 0, 1, 1], [], []>} : vector<24x24xbf16>, vector<24x128xbf16>, vector<24x128xf32> -> vector<24x128xf32>
    %73 = vector.broadcast %13 : vector<24x1xf32> to vector<24x128xf32>
    %74 = arith.addf %72, %73 : vector<24x128xf32>
    %75 = arith.mulf %10, %74 : vector<24x128xf32>
    %cst_70 = arith.constant dense<0.000000e+00> : vector<12x128xf32>
    %76 = tpu.matmul %11, %75, %cst_70 {dimension_numbers = #tpu.dot_dimension_numbers<[1], [0], [0], [1], [0, 0, 1, 1], [], []>} : vector<12x24xf32>, vector<24x128xf32>, vector<12x128xf32> -> vector<12x128xf32>
    %77 = arith.maximumf %64, %76 : vector<12x128xf32>
    %c0_71 = arith.constant 0 : index
    %c0_72 = arith.constant 0 : index
    %78 = vector.load %arg6[%c0_71, %c0_72] : memref<24x24xbf16, #tpu.memory_space<vmem>>, vector<24x24xbf16>
    %c0_73 = arith.constant 0 : index
    %c0_74 = arith.constant 0 : index
    %c5 = arith.constant 5 : index
    %c0_75 = arith.constant 0 : index
    %79 = vector.load %arg2[%c0_73, %c0_74, %c5, %c0_75] : memref<2x24x9x64xf32, #tpu.memory_space<vmem>>, vector<1x24x1x64xf32>
    %80 = vector.shape_cast %79 : vector<1x24x1x64xf32> to vector<24x64xf32>
    %c1_76 = arith.constant 1 : index
    %c0_77 = arith.constant 0 : index
    %c5_78 = arith.constant 5 : index
    %c0_79 = arith.constant 0 : index
    %81 = vector.load %arg2[%c1_76, %c0_77, %c5_78, %c0_79] : memref<2x24x9x64xf32, #tpu.memory_space<vmem>>, vector<1x24x1x64xf32>
    %82 = vector.shape_cast %81 : vector<1x24x1x64xf32> to vector<24x64xf32>
    %83 = tpu.concatenate %80, %82 in 1 : vector<24x64xf32>, vector<24x64xf32> -> vector<24x128xf32>
    %84 = arith.truncf %83 : vector<24x128xf32> to vector<24x128xbf16>
    %cst_80 = arith.constant dense<0.000000e+00> : vector<24x128xf32>
    %85 = tpu.matmul %78, %84, %cst_80 {dimension_numbers = #tpu.dot_dimension_numbers<[1], [0], [0], [1], [0, 0, 1, 1], [], []>} : vector<24x24xbf16>, vector<24x128xbf16>, vector<24x128xf32> -> vector<24x128xf32>
    %86 = vector.broadcast %13 : vector<24x1xf32> to vector<24x128xf32>
    %87 = arith.addf %85, %86 : vector<24x128xf32>
    %88 = arith.mulf %10, %87 : vector<24x128xf32>
    %cst_81 = arith.constant dense<0.000000e+00> : vector<12x128xf32>
    %89 = tpu.matmul %11, %88, %cst_81 {dimension_numbers = #tpu.dot_dimension_numbers<[1], [0], [0], [1], [0, 0, 1, 1], [], []>} : vector<12x24xf32>, vector<24x128xf32>, vector<12x128xf32> -> vector<12x128xf32>
    %90 = arith.maximumf %77, %89 : vector<12x128xf32>
    %c0_82 = arith.constant 0 : index
    %c0_83 = arith.constant 0 : index
    %91 = vector.load %arg6[%c0_82, %c0_83] : memref<24x24xbf16, #tpu.memory_space<vmem>>, vector<24x24xbf16>
    %c0_84 = arith.constant 0 : index
    %c0_85 = arith.constant 0 : index
    %c6 = arith.constant 6 : index
    %c0_86 = arith.constant 0 : index
    %92 = vector.load %arg2[%c0_84, %c0_85, %c6, %c0_86] : memref<2x24x9x64xf32, #tpu.memory_space<vmem>>, vector<1x24x1x64xf32>
    %93 = vector.shape_cast %92 : vector<1x24x1x64xf32> to vector<24x64xf32>
    %c1_87 = arith.constant 1 : index
    %c0_88 = arith.constant 0 : index
    %c6_89 = arith.constant 6 : index
    %c0_90 = arith.constant 0 : index
    %94 = vector.load %arg2[%c1_87, %c0_88, %c6_89, %c0_90] : memref<2x24x9x64xf32, #tpu.memory_space<vmem>>, vector<1x24x1x64xf32>
    %95 = vector.shape_cast %94 : vector<1x24x1x64xf32> to vector<24x64xf32>
    %96 = tpu.concatenate %93, %95 in 1 : vector<24x64xf32>, vector<24x64xf32> -> vector<24x128xf32>
    %97 = arith.truncf %96 : vector<24x128xf32> to vector<24x128xbf16>
    %cst_91 = arith.constant dense<0.000000e+00> : vector<24x128xf32>
    %98 = tpu.matmul %91, %97, %cst_91 {dimension_numbers = #tpu.dot_dimension_numbers<[1], [0], [0], [1], [0, 0, 1, 1], [], []>} : vector<24x24xbf16>, vector<24x128xbf16>, vector<24x128xf32> -> vector<24x128xf32>
    %99 = vector.broadcast %13 : vector<24x1xf32> to vector<24x128xf32>
    %100 = arith.addf %98, %99 : vector<24x128xf32>
    %101 = arith.mulf %10, %100 : vector<24x128xf32>
    %cst_92 = arith.constant dense<0.000000e+00> : vector<12x128xf32>
    %102 = tpu.matmul %11, %101, %cst_92 {dimension_numbers = #tpu.dot_dimension_numbers<[1], [0], [0], [1], [0, 0, 1, 1], [], []>} : vector<12x24xf32>, vector<24x128xf32>, vector<12x128xf32> -> vector<12x128xf32>
    %103 = arith.maximumf %90, %102 : vector<12x128xf32>
    %c0_93 = arith.constant 0 : index
    %c0_94 = arith.constant 0 : index
    %104 = vector.load %arg6[%c0_93, %c0_94] : memref<24x24xbf16, #tpu.memory_space<vmem>>, vector<24x24xbf16>
    %c0_95 = arith.constant 0 : index
    %c0_96 = arith.constant 0 : index
    %c7 = arith.constant 7 : index
    %c0_97 = arith.constant 0 : index
    %105 = vector.load %arg2[%c0_95, %c0_96, %c7, %c0_97] : memref<2x24x9x64xf32, #tpu.memory_space<vmem>>, vector<1x24x1x64xf32>
    %106 = vector.shape_cast %105 : vector<1x24x1x64xf32> to vector<24x64xf32>
    %c1_98 = arith.constant 1 : index
    %c0_99 = arith.constant 0 : index
    %c7_100 = arith.constant 7 : index
    %c0_101 = arith.constant 0 : index
    %107 = vector.load %arg2[%c1_98, %c0_99, %c7_100, %c0_101] : memref<2x24x9x64xf32, #tpu.memory_space<vmem>>, vector<1x24x1x64xf32>
    %108 = vector.shape_cast %107 : vector<1x24x1x64xf32> to vector<24x64xf32>
    %109 = tpu.concatenate %106, %108 in 1 : vector<24x64xf32>, vector<24x64xf32> -> vector<24x128xf32>
    %110 = arith.truncf %109 : vector<24x128xf32> to vector<24x128xbf16>
    %cst_102 = arith.constant dense<0.000000e+00> : vector<24x128xf32>
    %111 = tpu.matmul %104, %110, %cst_102 {dimension_numbers = #tpu.dot_dimension_numbers<[1], [0], [0], [1], [0, 0, 1, 1], [], []>} : vector<24x24xbf16>, vector<24x128xbf16>, vector<24x128xf32> -> vector<24x128xf32>
    %112 = vector.broadcast %13 : vector<24x1xf32> to vector<24x128xf32>
    %113 = arith.addf %111, %112 : vector<24x128xf32>
    %114 = arith.mulf %10, %113 : vector<24x128xf32>
    %cst_103 = arith.constant dense<0.000000e+00> : vector<12x128xf32>
    %115 = tpu.matmul %11, %114, %cst_103 {dimension_numbers = #tpu.dot_dimension_numbers<[1], [0], [0], [1], [0, 0, 1, 1], [], []>} : vector<12x24xf32>, vector<24x128xf32>, vector<12x128xf32> -> vector<12x128xf32>
    %116 = arith.maximumf %103, %115 : vector<12x128xf32>
    %c0_104 = arith.constant 0 : index
    %c0_105 = arith.constant 0 : index
    %117 = vector.load %arg6[%c0_104, %c0_105] : memref<24x24xbf16, #tpu.memory_space<vmem>>, vector<24x24xbf16>
    %c0_106 = arith.constant 0 : index
    %c0_107 = arith.constant 0 : index
    %c8 = arith.constant 8 : index
    %c0_108 = arith.constant 0 : index
    %118 = vector.load %arg2[%c0_106, %c0_107, %c8, %c0_108] : memref<2x24x9x64xf32, #tpu.memory_space<vmem>>, vector<1x24x1x64xf32>
    %119 = vector.shape_cast %118 : vector<1x24x1x64xf32> to vector<24x64xf32>
    %c1_109 = arith.constant 1 : index
    %c0_110 = arith.constant 0 : index
    %c8_111 = arith.constant 8 : index
    %c0_112 = arith.constant 0 : index
    %120 = vector.load %arg2[%c1_109, %c0_110, %c8_111, %c0_112] : memref<2x24x9x64xf32, #tpu.memory_space<vmem>>, vector<1x24x1x64xf32>
    %121 = vector.shape_cast %120 : vector<1x24x1x64xf32> to vector<24x64xf32>
    %122 = tpu.concatenate %119, %121 in 1 : vector<24x64xf32>, vector<24x64xf32> -> vector<24x128xf32>
    %123 = arith.truncf %122 : vector<24x128xf32> to vector<24x128xbf16>
    %cst_113 = arith.constant dense<0.000000e+00> : vector<24x128xf32>
    %124 = tpu.matmul %117, %123, %cst_113 {dimension_numbers = #tpu.dot_dimension_numbers<[1], [0], [0], [1], [0, 0, 1, 1], [], []>} : vector<24x24xbf16>, vector<24x128xbf16>, vector<24x128xf32> -> vector<24x128xf32>
    %125 = vector.broadcast %13 : vector<24x1xf32> to vector<24x128xf32>
    %126 = arith.addf %124, %125 : vector<24x128xf32>
    %127 = arith.mulf %10, %126 : vector<24x128xf32>
    %cst_114 = arith.constant dense<0.000000e+00> : vector<12x128xf32>
    %128 = tpu.matmul %11, %127, %cst_114 {dimension_numbers = #tpu.dot_dimension_numbers<[1], [0], [0], [1], [0, 0, 1, 1], [], []>} : vector<12x24xf32>, vector<24x128xf32>, vector<12x128xf32> -> vector<12x128xf32>
    %129 = arith.maximumf %116, %128 : vector<12x128xf32>
    %c0_115 = arith.constant 0 : index
    %c0_116 = arith.constant 0 : index
    %130 = vector.load %arg6[%c0_115, %c0_116] : memref<24x24xbf16, #tpu.memory_space<vmem>>, vector<24x24xbf16>
    %c0_117 = arith.constant 0 : index
    %c0_118 = arith.constant 0 : index
    %c0_119 = arith.constant 0 : index
    %c0_120 = arith.constant 0 : index
    %131 = vector.load %arg3[%c0_117, %c0_118, %c0_119, %c0_120] : memref<2x24x9x64xf32, #tpu.memory_space<vmem>>, vector<1x24x1x64xf32>
    %132 = vector.shape_cast %131 : vector<1x24x1x64xf32> to vector<24x64xf32>
    %c1_121 = arith.constant 1 : index
    %c0_122 = arith.constant 0 : index
    %c0_123 = arith.constant 0 : index
    %c0_124 = arith.constant 0 : index
    %133 = vector.load %arg3[%c1_121, %c0_122, %c0_123, %c0_124] : memref<2x24x9x64xf32, #tpu.memory_space<vmem>>, vector<1x24x1x64xf32>
    %134 = vector.shape_cast %133 : vector<1x24x1x64xf32> to vector<24x64xf32>
    %135 = tpu.concatenate %132, %134 in 1 : vector<24x64xf32>, vector<24x64xf32> -> vector<24x128xf32>
    %136 = arith.truncf %135 : vector<24x128xf32> to vector<24x128xbf16>
    %cst_125 = arith.constant dense<0.000000e+00> : vector<24x128xf32>
    %137 = tpu.matmul %130, %136, %cst_125 {dimension_numbers = #tpu.dot_dimension_numbers<[1], [0], [0], [1], [0, 0, 1, 1], [], []>} : vector<24x24xbf16>, vector<24x128xbf16>, vector<24x128xf32> -> vector<24x128xf32>
    %138 = vector.broadcast %13 : vector<24x1xf32> to vector<24x128xf32>
    %139 = arith.addf %137, %138 : vector<24x128xf32>
    %140 = arith.mulf %10, %139 : vector<24x128xf32>
    %cst_126 = arith.constant dense<0.000000e+00> : vector<12x128xf32>
    %141 = tpu.matmul %11, %140, %cst_126 {dimension_numbers = #tpu.dot_dimension_numbers<[1], [0], [0], [1], [0, 0, 1, 1], [], []>} : vector<12x24xf32>, vector<24x128xf32>, vector<12x128xf32> -> vector<12x128xf32>
    %142 = arith.maximumf %129, %141 : vector<12x128xf32>
    %c0_127 = arith.constant 0 : index
    %c0_128 = arith.constant 0 : index
    %143 = vector.load %arg6[%c0_127, %c0_128] : memref<24x24xbf16, #tpu.memory_space<vmem>>, vector<24x24xbf16>
    %c0_129 = arith.constant 0 : index
    %c0_130 = arith.constant 0 : index
    %c1_131 = arith.constant 1 : index
    %c0_132 = arith.constant 0 : index
    %144 = vector.load %arg3[%c0_129, %c0_130, %c1_131, %c0_132] : memref<2x24x9x64xf32, #tpu.memory_space<vmem>>, vector<1x24x1x64xf32>
    %145 = vector.shape_cast %144 : vector<1x24x1x64xf32> to vector<24x64xf32>
    %c1_133 = arith.constant 1 : index
    %c0_134 = arith.constant 0 : index
    %c1_135 = arith.constant 1 : index
    %c0_136 = arith.constant 0 : index
    %146 = vector.load %arg3[%c1_133, %c0_134, %c1_135, %c0_136] : memref<2x24x9x64xf32, #tpu.memory_space<vmem>>, vector<1x24x1x64xf32>
    %147 = vector.shape_cast %146 : vector<1x24x1x64xf32> to vector<24x64xf32>
    %148 = tpu.concatenate %145, %147 in 1 : vector<24x64xf32>, vector<24x64xf32> -> vector<24x128xf32>
    %149 = arith.truncf %148 : vector<24x128xf32> to vector<24x128xbf16>
    %cst_137 = arith.constant dense<0.000000e+00> : vector<24x128xf32>
    %150 = tpu.matmul %143, %149, %cst_137 {dimension_numbers = #tpu.dot_dimension_numbers<[1], [0], [0], [1], [0, 0, 1, 1], [], []>} : vector<24x24xbf16>, vector<24x128xbf16>, vector<24x128xf32> -> vector<24x128xf32>
    %151 = vector.broadcast %13 : vector<24x1xf32> to vector<24x128xf32>
    %152 = arith.addf %150, %151 : vector<24x128xf32>
    %153 = arith.mulf %10, %152 : vector<24x128xf32>
    %cst_138 = arith.constant dense<0.000000e+00> : vector<12x128xf32>
    %154 = tpu.matmul %11, %153, %cst_138 {dimension_numbers = #tpu.dot_dimension_numbers<[1], [0], [0], [1], [0, 0, 1, 1], [], []>} : vector<12x24xf32>, vector<24x128xf32>, vector<12x128xf32> -> vector<12x128xf32>
    %155 = arith.maximumf %142, %154 : vector<12x128xf32>
    %c0_139 = arith.constant 0 : index
    %c0_140 = arith.constant 0 : index
    %156 = vector.load %arg6[%c0_139, %c0_140] : memref<24x24xbf16, #tpu.memory_space<vmem>>, vector<24x24xbf16>
    %c0_141 = arith.constant 0 : index
    %c0_142 = arith.constant 0 : index
    %c2_143 = arith.constant 2 : index
    %c0_144 = arith.constant 0 : index
    %157 = vector.load %arg3[%c0_141, %c0_142, %c2_143, %c0_144] : memref<2x24x9x64xf32, #tpu.memory_space<vmem>>, vector<1x24x1x64xf32>
    %158 = vector.shape_cast %157 : vector<1x24x1x64xf32> to vector<24x64xf32>
    %c1_145 = arith.constant 1 : index
    %c0_146 = arith.constant 0 : index
    %c2_147 = arith.constant 2 : index
    %c0_148 = arith.constant 0 : index
    %159 = vector.load %arg3[%c1_145, %c0_146, %c2_147, %c0_148] : memref<2x24x9x64xf32, #tpu.memory_space<vmem>>, vector<1x24x1x64xf32>
    %160 = vector.shape_cast %159 : vector<1x24x1x64xf32> to vector<24x64xf32>
    %161 = tpu.concatenate %158, %160 in 1 : vector<24x64xf32>, vector<24x64xf32> -> vector<24x128xf32>
    %162 = arith.truncf %161 : vector<24x128xf32> to vector<24x128xbf16>
    %cst_149 = arith.constant dense<0.000000e+00> : vector<24x128xf32>
    %163 = tpu.matmul %156, %162, %cst_149 {dimension_numbers = #tpu.dot_dimension_numbers<[1], [0], [0], [1], [0, 0, 1, 1], [], []>} : vector<24x24xbf16>, vector<24x128xbf16>, vector<24x128xf32> -> vector<24x128xf32>
    %164 = vector.broadcast %13 : vector<24x1xf32> to vector<24x128xf32>
    %165 = arith.addf %163, %164 : vector<24x128xf32>
    %166 = arith.mulf %10, %165 : vector<24x128xf32>
    %cst_150 = arith.constant dense<0.000000e+00> : vector<12x128xf32>
    %167 = tpu.matmul %11, %166, %cst_150 {dimension_numbers = #tpu.dot_dimension_numbers<[1], [0], [0], [1], [0, 0, 1, 1], [], []>} : vector<12x24xf32>, vector<24x128xf32>, vector<12x128xf32> -> vector<12x128xf32>
    %168 = arith.maximumf %155, %167 : vector<12x128xf32>
    %c0_151 = arith.constant 0 : index
    %c0_152 = arith.constant 0 : index
    %169 = vector.load %arg6[%c0_151, %c0_152] : memref<24x24xbf16, #tpu.memory_space<vmem>>, vector<24x24xbf16>
    %c0_153 = arith.constant 0 : index
    %c0_154 = arith.constant 0 : index
    %c3_155 = arith.constant 3 : index
    %c0_156 = arith.constant 0 : index
    %170 = vector.load %arg3[%c0_153, %c0_154, %c3_155, %c0_156] : memref<2x24x9x64xf32, #tpu.memory_space<vmem>>, vector<1x24x1x64xf32>
    %171 = vector.shape_cast %170 : vector<1x24x1x64xf32> to vector<24x64xf32>
    %c1_157 = arith.constant 1 : index
    %c0_158 = arith.constant 0 : index
    %c3_159 = arith.constant 3 : index
    %c0_160 = arith.constant 0 : index
    %172 = vector.load %arg3[%c1_157, %c0_158, %c3_159, %c0_160] : memref<2x24x9x64xf32, #tpu.memory_space<vmem>>, vector<1x24x1x64xf32>
    %173 = vector.shape_cast %172 : vector<1x24x1x64xf32> to vector<24x64xf32>
    %174 = tpu.concatenate %171, %173 in 1 : vector<24x64xf32>, vector<24x64xf32> -> vector<24x128xf32>
    %175 = arith.truncf %174 : vector<24x128xf32> to vector<24x128xbf16>
    %cst_161 = arith.constant dense<0.000000e+00> : vector<24x128xf32>
    %176 = tpu.matmul %169, %175, %cst_161 {dimension_numbers = #tpu.dot_dimension_numbers<[1], [0], [0], [1], [0, 0, 1, 1], [], []>} : vector<24x24xbf16>, vector<24x128xbf16>, vector<24x128xf32> -> vector<24x128xf32>
    %177 = vector.broadcast %13 : vector<24x1xf32> to vector<24x128xf32>
    %178 = arith.addf %176, %177 : vector<24x128xf32>
    %179 = arith.mulf %10, %178 : vector<24x128xf32>
    %cst_162 = arith.constant dense<0.000000e+00> : vector<12x128xf32>
    %180 = tpu.matmul %11, %179, %cst_162 {dimension_numbers = #tpu.dot_dimension_numbers<[1], [0], [0], [1], [0, 0, 1, 1], [], []>} : vector<12x24xf32>, vector<24x128xf32>, vector<12x128xf32> -> vector<12x128xf32>
    %181 = arith.maximumf %168, %180 : vector<12x128xf32>
    %c0_163 = arith.constant 0 : index
    %c0_164 = arith.constant 0 : index
    %182 = vector.load %arg6[%c0_163, %c0_164] : memref<24x24xbf16, #tpu.memory_space<vmem>>, vector<24x24xbf16>
    %c0_165 = arith.constant 0 : index
    %c0_166 = arith.constant 0 : index
    %c4_167 = arith.constant 4 : index
    %c0_168 = arith.constant 0 : index
    %183 = vector.load %arg3[%c0_165, %c0_166, %c4_167, %c0_168] : memref<2x24x9x64xf32, #tpu.memory_space<vmem>>, vector<1x24x1x64xf32>
    %184 = vector.shape_cast %183 : vector<1x24x1x64xf32> to vector<24x64xf32>
    %c1_169 = arith.constant 1 : index
    %c0_170 = arith.constant 0 : index
    %c4_171 = arith.constant 4 : index
    %c0_172 = arith.constant 0 : index
    %185 = vector.load %arg3[%c1_169, %c0_170, %c4_171, %c0_172] : memref<2x24x9x64xf32, #tpu.memory_space<vmem>>, vector<1x24x1x64xf32>
    %186 = vector.shape_cast %185 : vector<1x24x1x64xf32> to vector<24x64xf32>
    %187 = tpu.concatenate %184, %186 in 1 : vector<24x64xf32>, vector<24x64xf32> -> vector<24x128xf32>
    %188 = arith.truncf %187 : vector<24x128xf32> to vector<24x128xbf16>
    %cst_173 = arith.constant dense<0.000000e+00> : vector<24x128xf32>
    %189 = tpu.matmul %182, %188, %cst_173 {dimension_numbers = #tpu.dot_dimension_numbers<[1], [0], [0], [1], [0, 0, 1, 1], [], []>} : vector<24x24xbf16>, vector<24x128xbf16>, vector<24x128xf32> -> vector<24x128xf32>
    %190 = vector.broadcast %13 : vector<24x1xf32> to vector<24x128xf32>
    %191 = arith.addf %189, %190 : vector<24x128xf32>
    %192 = arith.mulf %10, %191 : vector<24x128xf32>
    %cst_174 = arith.constant dense<0.000000e+00> : vector<12x128xf32>
    %193 = tpu.matmul %11, %192, %cst_174 {dimension_numbers = #tpu.dot_dimension_numbers<[1], [0], [0], [1], [0, 0, 1, 1], [], []>} : vector<12x24xf32>, vector<24x128xf32>, vector<12x128xf32> -> vector<12x128xf32>
    %194 = arith.maximumf %181, %193 : vector<12x128xf32>
    %c0_175 = arith.constant 0 : index
    %c0_176 = arith.constant 0 : index
    %195 = vector.load %arg6[%c0_175, %c0_176] : memref<24x24xbf16, #tpu.memory_space<vmem>>, vector<24x24xbf16>
    %c0_177 = arith.constant 0 : index
    %c0_178 = arith.constant 0 : index
    %c5_179 = arith.constant 5 : index
    %c0_180 = arith.constant 0 : index
    %196 = vector.load %arg3[%c0_177, %c0_178, %c5_179, %c0_180] : memref<2x24x9x64xf32, #tpu.memory_space<vmem>>, vector<1x24x1x64xf32>
    %197 = vector.shape_cast %196 : vector<1x24x1x64xf32> to vector<24x64xf32>
    %c1_181 = arith.constant 1 : index
    %c0_182 = arith.constant 0 : index
    %c5_183 = arith.constant 5 : index
    %c0_184 = arith.constant 0 : index
    %198 = vector.load %arg3[%c1_181, %c0_182, %c5_183, %c0_184] : memref<2x24x9x64xf32, #tpu.memory_space<vmem>>, vector<1x24x1x64xf32>
    %199 = vector.shape_cast %198 : vector<1x24x1x64xf32> to vector<24x64xf32>
    %200 = tpu.concatenate %197, %199 in 1 : vector<24x64xf32>, vector<24x64xf32> -> vector<24x128xf32>
    %201 = arith.truncf %200 : vector<24x128xf32> to vector<24x128xbf16>
    %cst_185 = arith.constant dense<0.000000e+00> : vector<24x128xf32>
    %202 = tpu.matmul %195, %201, %cst_185 {dimension_numbers = #tpu.dot_dimension_numbers<[1], [0], [0], [1], [0, 0, 1, 1], [], []>} : vector<24x24xbf16>, vector<24x128xbf16>, vector<24x128xf32> -> vector<24x128xf32>
    %203 = vector.broadcast %13 : vector<24x1xf32> to vector<24x128xf32>
    %204 = arith.addf %202, %203 : vector<24x128xf32>
    %205 = arith.mulf %10, %204 : vector<24x128xf32>
    %cst_186 = arith.constant dense<0.000000e+00> : vector<12x128xf32>
    %206 = tpu.matmul %11, %205, %cst_186 {dimension_numbers = #tpu.dot_dimension_numbers<[1], [0], [0], [1], [0, 0, 1, 1], [], []>} : vector<12x24xf32>, vector<24x128xf32>, vector<12x128xf32> -> vector<12x128xf32>
    %207 = arith.maximumf %194, %206 : vector<12x128xf32>
    %c0_187 = arith.constant 0 : index
    %c0_188 = arith.constant 0 : index
    %208 = vector.load %arg6[%c0_187, %c0_188] : memref<24x24xbf16, #tpu.memory_space<vmem>>, vector<24x24xbf16>
    %c0_189 = arith.constant 0 : index
    %c0_190 = arith.constant 0 : index
    %c6_191 = arith.constant 6 : index
    %c0_192 = arith.constant 0 : index
    %209 = vector.load %arg3[%c0_189, %c0_190, %c6_191, %c0_192] : memref<2x24x9x64xf32, #tpu.memory_space<vmem>>, vector<1x24x1x64xf32>
    %210 = vector.shape_cast %209 : vector<1x24x1x64xf32> to vector<24x64xf32>
    %c1_193 = arith.constant 1 : index
    %c0_194 = arith.constant 0 : index
    %c6_195 = arith.constant 6 : index
    %c0_196 = arith.constant 0 : index
    %211 = vector.load %arg3[%c1_193, %c0_194, %c6_195, %c0_196] : memref<2x24x9x64xf32, #tpu.memory_space<vmem>>, vector<1x24x1x64xf32>
    %212 = vector.shape_cast %211 : vector<1x24x1x64xf32> to vector<24x64xf32>
    %213 = tpu.concatenate %210, %212 in 1 : vector<24x64xf32>, vector<24x64xf32> -> vector<24x128xf32>
    %214 = arith.truncf %213 : vector<24x128xf32> to vector<24x128xbf16>
    %cst_197 = arith.constant dense<0.000000e+00> : vector<24x128xf32>
    %215 = tpu.matmul %208, %214, %cst_197 {dimension_numbers = #tpu.dot_dimension_numbers<[1], [0], [0], [1], [0, 0, 1, 1], [], []>} : vector<24x24xbf16>, vector<24x128xbf16>, vector<24x128xf32> -> vector<24x128xf32>
    %216 = vector.broadcast %13 : vector<24x1xf32> to vector<24x128xf32>
    %217 = arith.addf %215, %216 : vector<24x128xf32>
    %218 = arith.mulf %10, %217 : vector<24x128xf32>
    %cst_198 = arith.constant dense<0.000000e+00> : vector<12x128xf32>
    %219 = tpu.matmul %11, %218, %cst_198 {dimension_numbers = #tpu.dot_dimension_numbers<[1], [0], [0], [1], [0, 0, 1, 1], [], []>} : vector<12x24xf32>, vector<24x128xf32>, vector<12x128xf32> -> vector<12x128xf32>
    %220 = arith.maximumf %207, %219 : vector<12x128xf32>
    %c0_199 = arith.constant 0 : index
    %c0_200 = arith.constant 0 : index
    %221 = vector.load %arg6[%c0_199, %c0_200] : memref<24x24xbf16, #tpu.memory_space<vmem>>, vector<24x24xbf16>
    %c0_201 = arith.constant 0 : index
    %c0_202 = arith.constant 0 : index
    %c7_203 = arith.constant 7 : index
    %c0_204 = arith.constant 0 : index
    %222 = vector.load %arg3[%c0_201, %c0_202, %c7_203, %c0_204] : memref<2x24x9x64xf32, #tpu.memory_space<vmem>>, vector<1x24x1x64xf32>
    %223 = vector.shape_cast %222 : vector<1x24x1x64xf32> to vector<24x64xf32>
    %c1_205 = arith.constant 1 : index
    %c0_206 = arith.constant 0 : index
    %c7_207 = arith.constant 7 : index
    %c0_208 = arith.constant 0 : index
    %224 = vector.load %arg3[%c1_205, %c0_206, %c7_207, %c0_208] : memref<2x24x9x64xf32, #tpu.memory_space<vmem>>, vector<1x24x1x64xf32>
    %225 = vector.shape_cast %224 : vector<1x24x1x64xf32> to vector<24x64xf32>
    %226 = tpu.concatenate %223, %225 in 1 : vector<24x64xf32>, vector<24x64xf32> -> vector<24x128xf32>
    %227 = arith.truncf %226 : vector<24x128xf32> to vector<24x128xbf16>
    %cst_209 = arith.constant dense<0.000000e+00> : vector<24x128xf32>
    %228 = tpu.matmul %221, %227, %cst_209 {dimension_numbers = #tpu.dot_dimension_numbers<[1], [0], [0], [1], [0, 0, 1, 1], [], []>} : vector<24x24xbf16>, vector<24x128xbf16>, vector<24x128xf32> -> vector<24x128xf32>
    %229 = vector.broadcast %13 : vector<24x1xf32> to vector<24x128xf32>
    %230 = arith.addf %228, %229 : vector<24x128xf32>
    %231 = arith.mulf %10, %230 : vector<24x128xf32>
    %cst_210 = arith.constant dense<0.000000e+00> : vector<12x128xf32>
    %232 = tpu.matmul %11, %231, %cst_210 {dimension_numbers = #tpu.dot_dimension_numbers<[1], [0], [0], [1], [0, 0, 1, 1], [], []>} : vector<12x24xf32>, vector<24x128xf32>, vector<12x128xf32> -> vector<12x128xf32>
    %233 = arith.maximumf %220, %232 : vector<12x128xf32>
    %c0_211 = arith.constant 0 : index
    %c0_212 = arith.constant 0 : index
    %234 = vector.load %arg6[%c0_211, %c0_212] : memref<24x24xbf16, #tpu.memory_space<vmem>>, vector<24x24xbf16>
    %c0_213 = arith.constant 0 : index
    %c0_214 = arith.constant 0 : index
    %c8_215 = arith.constant 8 : index
    %c0_216 = arith.constant 0 : index
    %235 = vector.load %arg3[%c0_213, %c0_214, %c8_215, %c0_216] : memref<2x24x9x64xf32, #tpu.memory_space<vmem>>, vector<1x24x1x64xf32>
    %236 = vector.shape_cast %235 : vector<1x24x1x64xf32> to vector<24x64xf32>
    %c1_217 = arith.constant 1 : index
    %c0_218 = arith.constant 0 : index
    %c8_219 = arith.constant 8 : index
    %c0_220 = arith.constant 0 : index
    %237 = vector.load %arg3[%c1_217, %c0_218, %c8_219, %c0_220] : memref<2x24x9x64xf32, #tpu.memory_space<vmem>>, vector<1x24x1x64xf32>
    %238 = vector.shape_cast %237 : vector<1x24x1x64xf32> to vector<24x64xf32>
    %239 = tpu.concatenate %236, %238 in 1 : vector<24x64xf32>, vector<24x64xf32> -> vector<24x128xf32>
    %240 = arith.truncf %239 : vector<24x128xf32> to vector<24x128xbf16>
    %cst_221 = arith.constant dense<0.000000e+00> : vector<24x128xf32>
    %241 = tpu.matmul %234, %240, %cst_221 {dimension_numbers = #tpu.dot_dimension_numbers<[1], [0], [0], [1], [0, 0, 1, 1], [], []>} : vector<24x24xbf16>, vector<24x128xbf16>, vector<24x128xf32> -> vector<24x128xf32>
    %242 = vector.broadcast %13 : vector<24x1xf32> to vector<24x128xf32>
    %243 = arith.addf %241, %242 : vector<24x128xf32>
    %244 = arith.mulf %10, %243 : vector<24x128xf32>
    %cst_222 = arith.constant dense<0.000000e+00> : vector<12x128xf32>
    %245 = tpu.matmul %11, %244, %cst_222 {dimension_numbers = #tpu.dot_dimension_numbers<[1], [0], [0], [1], [0, 0, 1, 1], [], []>} : vector<12x24xf32>, vector<24x128xf32>, vector<12x128xf32> -> vector<12x128xf32>
    %246 = arith.maximumf %233, %245 : vector<12x128xf32>
    %cst_223 = arith.constant 0.000000e+00 : f32
    %247 = vector.broadcast %cst_223 : f32 to vector<12x128xf32>
    %cst_224 = arith.constant 0.000000e+00 : f32
    %248 = vector.broadcast %cst_224 : f32 to vector<24x128xf32>
    %c0_225 = arith.constant 0 : index
    %c0_226 = arith.constant 0 : index
    %249 = vector.load %arg8[%c0_225, %c0_226] : memref<48x24xbf16, #tpu.memory_space<vmem>>, vector<48x24xbf16>
    %c0_227 = arith.constant 0 : index
    %c0_228 = arith.constant 0 : index
    %c0_229 = arith.constant 0 : index
    %c0_230 = arith.constant 0 : index
    %250 = vector.load %arg2[%c0_227, %c0_228, %c0_229, %c0_230] : memref<2x24x9x64xf32, #tpu.memory_space<vmem>>, vector<1x24x1x64xf32>
    %251 = vector.shape_cast %250 : vector<1x24x1x64xf32> to vector<24x64xf32>
    %c1_231 = arith.constant 1 : index
    %c0_232 = arith.constant 0 : index
    %c0_233 = arith.constant 0 : index
    %c0_234 = arith.constant 0 : index
    %252 = vector.load %arg2[%c1_231, %c0_232, %c0_233, %c0_234] : memref<2x24x9x64xf32, #tpu.memory_space<vmem>>, vector<1x24x1x64xf32>
    %253 = vector.shape_cast %252 : vector<1x24x1x64xf32> to vector<24x64xf32>
    %254 = tpu.concatenate %251, %253 in 1 : vector<24x64xf32>, vector<24x64xf32> -> vector<24x128xf32>
    %255 = arith.truncf %254 : vector<24x128xf32> to vector<24x128xbf16>
    %cst_235 = arith.constant dense<0.000000e+00> : vector<48x128xf32>
    %256 = tpu.matmul %249, %255, %cst_235 {dimension_numbers = #tpu.dot_dimension_numbers<[1], [0], [0], [1], [0, 0, 1, 1], [], []>} : vector<48x24xbf16>, vector<24x128xbf16>, vector<48x128xf32> -> vector<48x128xf32>
    %c0_236 = arith.constant 0 : index
    %c0_237 = arith.constant 0 : index
    %257 = vector.load %arg9[%c0_236, %c0_237] : memref<48x1xf32, #tpu.memory_space<vmem>>, vector<48x1xf32>
    %258 = vector.broadcast %257 : vector<48x1xf32> to vector<48x128xf32>
    %259 = arith.addf %256, %258 : vector<48x128xf32>
    %260 = vector.extract_strided_slice %259 {offsets = [0, 0], sizes = [24, 128], strides = [1, 1]} : vector<48x128xf32> to vector<24x128xf32>
    %261 = vector.extract_strided_slice %259 {offsets = [24, 0], sizes = [24, 128], strides = [1, 1]} : vector<48x128xf32> to vector<24x128xf32>
    %262 = arith.mulf %10, %260 : vector<24x128xf32>
    %cst_238 = arith.constant dense<0.000000e+00> : vector<12x128xf32>
    %263 = tpu.matmul %11, %262, %cst_238 {dimension_numbers = #tpu.dot_dimension_numbers<[1], [0], [0], [1], [0, 0, 1, 1], [], []>} : vector<12x24xf32>, vector<24x128xf32>, vector<12x128xf32> -> vector<12x128xf32>
    %264 = arith.subf %263, %246 : vector<12x128xf32>
    %265 = math.exp %264 : vector<12x128xf32>
    %266 = arith.addf %247, %265 : vector<12x128xf32>
    %cst_239 = arith.constant dense<0.000000e+00> : vector<24x128xf32>
    %267 = tpu.matmul %12, %265, %cst_239 {dimension_numbers = #tpu.dot_dimension_numbers<[1], [0], [0], [1], [0, 0, 1, 1], [], []>} : vector<24x12xf32>, vector<12x128xf32>, vector<24x128xf32> -> vector<24x128xf32>
    %268 = arith.mulf %267, %261 : vector<24x128xf32>
    %269 = arith.addf %248, %268 : vector<24x128xf32>
    %c0_240 = arith.constant 0 : index
    %c0_241 = arith.constant 0 : index
    %270 = vector.load %arg8[%c0_240, %c0_241] : memref<48x24xbf16, #tpu.memory_space<vmem>>, vector<48x24xbf16>
    %c0_242 = arith.constant 0 : index
    %c0_243 = arith.constant 0 : index
    %c1_244 = arith.constant 1 : index
    %c0_245 = arith.constant 0 : index
    %271 = vector.load %arg2[%c0_242, %c0_243, %c1_244, %c0_245] : memref<2x24x9x64xf32, #tpu.memory_space<vmem>>, vector<1x24x1x64xf32>
    %272 = vector.shape_cast %271 : vector<1x24x1x64xf32> to vector<24x64xf32>
    %c1_246 = arith.constant 1 : index
    %c0_247 = arith.constant 0 : index
    %c1_248 = arith.constant 1 : index
    %c0_249 = arith.constant 0 : index
    %273 = vector.load %arg2[%c1_246, %c0_247, %c1_248, %c0_249] : memref<2x24x9x64xf32, #tpu.memory_space<vmem>>, vector<1x24x1x64xf32>
    %274 = vector.shape_cast %273 : vector<1x24x1x64xf32> to vector<24x64xf32>
    %275 = tpu.concatenate %272, %274 in 1 : vector<24x64xf32>, vector<24x64xf32> -> vector<24x128xf32>
    %276 = arith.truncf %275 : vector<24x128xf32> to vector<24x128xbf16>
    %cst_250 = arith.constant dense<0.000000e+00> : vector<48x128xf32>
    %277 = tpu.matmul %270, %276, %cst_250 {dimension_numbers = #tpu.dot_dimension_numbers<[1], [0], [0], [1], [0, 0, 1, 1], [], []>} : vector<48x24xbf16>, vector<24x128xbf16>, vector<48x128xf32> -> vector<48x128xf32>
    %c0_251 = arith.constant 0 : index
    %c0_252 = arith.constant 0 : index
    %278 = vector.load %arg9[%c0_251, %c0_252] : memref<48x1xf32, #tpu.memory_space<vmem>>, vector<48x1xf32>
    %279 = vector.broadcast %278 : vector<48x1xf32> to vector<48x128xf32>
    %280 = arith.addf %277, %279 : vector<48x128xf32>
    %281 = vector.extract_strided_slice %280 {offsets = [0, 0], sizes = [24, 128], strides = [1, 1]} : vector<48x128xf32> to vector<24x128xf32>
    %282 = vector.extract_strided_slice %280 {offsets = [24, 0], sizes = [24, 128], strides = [1, 1]} : vector<48x128xf32> to vector<24x128xf32>
    %283 = arith.mulf %10, %281 : vector<24x128xf32>
    %cst_253 = arith.constant dense<0.000000e+00> : vector<12x128xf32>
    %284 = tpu.matmul %11, %283, %cst_253 {dimension_numbers = #tpu.dot_dimension_numbers<[1], [0], [0], [1], [0, 0, 1, 1], [], []>} : vector<12x24xf32>, vector<24x128xf32>, vector<12x128xf32> -> vector<12x128xf32>
    %285 = arith.subf %284, %246 : vector<12x128xf32>
    %286 = math.exp %285 : vector<12x128xf32>
    %287 = arith.addf %266, %286 : vector<12x128xf32>
    %cst_254 = arith.constant dense<0.000000e+00> : vector<24x128xf32>
    %288 = tpu.matmul %12, %286, %cst_254 {dimension_numbers = #tpu.dot_dimension_numbers<[1], [0], [0], [1], [0, 0, 1, 1], [], []>} : vector<24x12xf32>, vector<12x128xf32>, vector<24x128xf32> -> vector<24x128xf32>
    %289 = arith.mulf %288, %282 : vector<24x128xf32>
    %290 = arith.addf %269, %289 : vector<24x128xf32>
    %c0_255 = arith.constant 0 : index
    %c0_256 = arith.constant 0 : index
    %291 = vector.load %arg8[%c0_255, %c0_256] : memref<48x24xbf16, #tpu.memory_space<vmem>>, vector<48x24xbf16>
    %c0_257 = arith.constant 0 : index
    %c0_258 = arith.constant 0 : index
    %c2_259 = arith.constant 2 : index
    %c0_260 = arith.constant 0 : index
    %292 = vector.load %arg2[%c0_257, %c0_258, %c2_259, %c0_260] : memref<2x24x9x64xf32, #tpu.memory_space<vmem>>, vector<1x24x1x64xf32>
    %293 = vector.shape_cast %292 : vector<1x24x1x64xf32> to vector<24x64xf32>
    %c1_261 = arith.constant 1 : index
    %c0_262 = arith.constant 0 : index
    %c2_263 = arith.constant 2 : index
    %c0_264 = arith.constant 0 : index
    %294 = vector.load %arg2[%c1_261, %c0_262, %c2_263, %c0_264] : memref<2x24x9x64xf32, #tpu.memory_space<vmem>>, vector<1x24x1x64xf32>
    %295 = vector.shape_cast %294 : vector<1x24x1x64xf32> to vector<24x64xf32>
    %296 = tpu.concatenate %293, %295 in 1 : vector<24x64xf32>, vector<24x64xf32> -> vector<24x128xf32>
    %297 = arith.truncf %296 : vector<24x128xf32> to vector<24x128xbf16>
    %cst_265 = arith.constant dense<0.000000e+00> : vector<48x128xf32>
    %298 = tpu.matmul %291, %297, %cst_265 {dimension_numbers = #tpu.dot_dimension_numbers<[1], [0], [0], [1], [0, 0, 1, 1], [], []>} : vector<48x24xbf16>, vector<24x128xbf16>, vector<48x128xf32> -> vector<48x128xf32>
    %c0_266 = arith.constant 0 : index
    %c0_267 = arith.constant 0 : index
    %299 = vector.load %arg9[%c0_266, %c0_267] : memref<48x1xf32, #tpu.memory_space<vmem>>, vector<48x1xf32>
    %300 = vector.broadcast %299 : vector<48x1xf32> to vector<48x128xf32>
    %301 = arith.addf %298, %300 : vector<48x128xf32>
    %302 = vector.extract_strided_slice %301 {offsets = [0, 0], sizes = [24, 128], strides = [1, 1]} : vector<48x128xf32> to vector<24x128xf32>
    %303 = vector.extract_strided_slice %301 {offsets = [24, 0], sizes = [24, 128], strides = [1, 1]} : vector<48x128xf32> to vector<24x128xf32>
    %304 = arith.mulf %10, %302 : vector<24x128xf32>
    %cst_268 = arith.constant dense<0.000000e+00> : vector<12x128xf32>
    %305 = tpu.matmul %11, %304, %cst_268 {dimension_numbers = #tpu.dot_dimension_numbers<[1], [0], [0], [1], [0, 0, 1, 1], [], []>} : vector<12x24xf32>, vector<24x128xf32>, vector<12x128xf32> -> vector<12x128xf32>
    %306 = arith.subf %305, %246 : vector<12x128xf32>
    %307 = math.exp %306 : vector<12x128xf32>
    %308 = arith.addf %287, %307 : vector<12x128xf32>
    %cst_269 = arith.constant dense<0.000000e+00> : vector<24x128xf32>
    %309 = tpu.matmul %12, %307, %cst_269 {dimension_numbers = #tpu.dot_dimension_numbers<[1], [0], [0], [1], [0, 0, 1, 1], [], []>} : vector<24x12xf32>, vector<12x128xf32>, vector<24x128xf32> -> vector<24x128xf32>
    %310 = arith.mulf %309, %303 : vector<24x128xf32>
    %311 = arith.addf %290, %310 : vector<24x128xf32>
    %c0_270 = arith.constant 0 : index
    %c0_271 = arith.constant 0 : index
    %312 = vector.load %arg8[%c0_270, %c0_271] : memref<48x24xbf16, #tpu.memory_space<vmem>>, vector<48x24xbf16>
    %c0_272 = arith.constant 0 : index
    %c0_273 = arith.constant 0 : index
    %c3_274 = arith.constant 3 : index
    %c0_275 = arith.constant 0 : index
    %313 = vector.load %arg2[%c0_272, %c0_273, %c3_274, %c0_275] : memref<2x24x9x64xf32, #tpu.memory_space<vmem>>, vector<1x24x1x64xf32>
    %314 = vector.shape_cast %313 : vector<1x24x1x64xf32> to vector<24x64xf32>
    %c1_276 = arith.constant 1 : index
    %c0_277 = arith.constant 0 : index
    %c3_278 = arith.constant 3 : index
    %c0_279 = arith.constant 0 : index
    %315 = vector.load %arg2[%c1_276, %c0_277, %c3_278, %c0_279] : memref<2x24x9x64xf32, #tpu.memory_space<vmem>>, vector<1x24x1x64xf32>
    %316 = vector.shape_cast %315 : vector<1x24x1x64xf32> to vector<24x64xf32>
    %317 = tpu.concatenate %314, %316 in 1 : vector<24x64xf32>, vector<24x64xf32> -> vector<24x128xf32>
    %318 = arith.truncf %317 : vector<24x128xf32> to vector<24x128xbf16>
    %cst_280 = arith.constant dense<0.000000e+00> : vector<48x128xf32>
    %319 = tpu.matmul %312, %318, %cst_280 {dimension_numbers = #tpu.dot_dimension_numbers<[1], [0], [0], [1], [0, 0, 1, 1], [], []>} : vector<48x24xbf16>, vector<24x128xbf16>, vector<48x128xf32> -> vector<48x128xf32>
    %c0_281 = arith.constant 0 : index
    %c0_282 = arith.constant 0 : index
    %320 = vector.load %arg9[%c0_281, %c0_282] : memref<48x1xf32, #tpu.memory_space<vmem>>, vector<48x1xf32>
    %321 = vector.broadcast %320 : vector<48x1xf32> to vector<48x128xf32>
    %322 = arith.addf %319, %321 : vector<48x128xf32>
    %323 = vector.extract_strided_slice %322 {offsets = [0, 0], sizes = [24, 128], strides = [1, 1]} : vector<48x128xf32> to vector<24x128xf32>
    %324 = vector.extract_strided_slice %322 {offsets = [24, 0], sizes = [24, 128], strides = [1, 1]} : vector<48x128xf32> to vector<24x128xf32>
    %325 = arith.mulf %10, %323 : vector<24x128xf32>
    %cst_283 = arith.constant dense<0.000000e+00> : vector<12x128xf32>
    %326 = tpu.matmul %11, %325, %cst_283 {dimension_numbers = #tpu.dot_dimension_numbers<[1], [0], [0], [1], [0, 0, 1, 1], [], []>} : vector<12x24xf32>, vector<24x128xf32>, vector<12x128xf32> -> vector<12x128xf32>
    %327 = arith.subf %326, %246 : vector<12x128xf32>
    %328 = math.exp %327 : vector<12x128xf32>
    %329 = arith.addf %308, %328 : vector<12x128xf32>
    %cst_284 = arith.constant dense<0.000000e+00> : vector<24x128xf32>
    %330 = tpu.matmul %12, %328, %cst_284 {dimension_numbers = #tpu.dot_dimension_numbers<[1], [0], [0], [1], [0, 0, 1, 1], [], []>} : vector<24x12xf32>, vector<12x128xf32>, vector<24x128xf32> -> vector<24x128xf32>
    %331 = arith.mulf %330, %324 : vector<24x128xf32>
    %332 = arith.addf %311, %331 : vector<24x128xf32>
    %c0_285 = arith.constant 0 : index
    %c0_286 = arith.constant 0 : index
    %333 = vector.load %arg8[%c0_285, %c0_286] : memref<48x24xbf16, #tpu.memory_space<vmem>>, vector<48x24xbf16>
    %c0_287 = arith.constant 0 : index
    %c0_288 = arith.constant 0 : index
    %c4_289 = arith.constant 4 : index
    %c0_290 = arith.constant 0 : index
    %334 = vector.load %arg2[%c0_287, %c0_288, %c4_289, %c0_290] : memref<2x24x9x64xf32, #tpu.memory_space<vmem>>, vector<1x24x1x64xf32>
    %335 = vector.shape_cast %334 : vector<1x24x1x64xf32> to vector<24x64xf32>
    %c1_291 = arith.constant 1 : index
    %c0_292 = arith.constant 0 : index
    %c4_293 = arith.constant 4 : index
    %c0_294 = arith.constant 0 : index
    %336 = vector.load %arg2[%c1_291, %c0_292, %c4_293, %c0_294] : memref<2x24x9x64xf32, #tpu.memory_space<vmem>>, vector<1x24x1x64xf32>
    %337 = vector.shape_cast %336 : vector<1x24x1x64xf32> to vector<24x64xf32>
    %338 = tpu.concatenate %335, %337 in 1 : vector<24x64xf32>, vector<24x64xf32> -> vector<24x128xf32>
    %339 = arith.truncf %338 : vector<24x128xf32> to vector<24x128xbf16>
    %cst_295 = arith.constant dense<0.000000e+00> : vector<48x128xf32>
    %340 = tpu.matmul %333, %339, %cst_295 {dimension_numbers = #tpu.dot_dimension_numbers<[1], [0], [0], [1], [0, 0, 1, 1], [], []>} : vector<48x24xbf16>, vector<24x128xbf16>, vector<48x128xf32> -> vector<48x128xf32>
    %c0_296 = arith.constant 0 : index
    %c0_297 = arith.constant 0 : index
    %341 = vector.load %arg9[%c0_296, %c0_297] : memref<48x1xf32, #tpu.memory_space<vmem>>, vector<48x1xf32>
    %342 = vector.broadcast %341 : vector<48x1xf32> to vector<48x128xf32>
    %343 = arith.addf %340, %342 : vector<48x128xf32>
    %344 = vector.extract_strided_slice %343 {offsets = [0, 0], sizes = [24, 128], strides = [1, 1]} : vector<48x128xf32> to vector<24x128xf32>
    %345 = vector.extract_strided_slice %343 {offsets = [24, 0], sizes = [24, 128], strides = [1, 1]} : vector<48x128xf32> to vector<24x128xf32>
    %346 = arith.mulf %10, %344 : vector<24x128xf32>
    %cst_298 = arith.constant dense<0.000000e+00> : vector<12x128xf32>
    %347 = tpu.matmul %11, %346, %cst_298 {dimension_numbers = #tpu.dot_dimension_numbers<[1], [0], [0], [1], [0, 0, 1, 1], [], []>} : vector<12x24xf32>, vector<24x128xf32>, vector<12x128xf32> -> vector<12x128xf32>
    %348 = arith.subf %347, %246 : vector<12x128xf32>
    %349 = math.exp %348 : vector<12x128xf32>
    %350 = arith.addf %329, %349 : vector<12x128xf32>
    %cst_299 = arith.constant dense<0.000000e+00> : vector<24x128xf32>
    %351 = tpu.matmul %12, %349, %cst_299 {dimension_numbers = #tpu.dot_dimension_numbers<[1], [0], [0], [1], [0, 0, 1, 1], [], []>} : vector<24x12xf32>, vector<12x128xf32>, vector<24x128xf32> -> vector<24x128xf32>
    %352 = arith.mulf %351, %345 : vector<24x128xf32>
    %353 = arith.addf %332, %352 : vector<24x128xf32>
    %c0_300 = arith.constant 0 : index
    %c0_301 = arith.constant 0 : index
    %354 = vector.load %arg8[%c0_300, %c0_301] : memref<48x24xbf16, #tpu.memory_space<vmem>>, vector<48x24xbf16>
    %c0_302 = arith.constant 0 : index
    %c0_303 = arith.constant 0 : index
    %c5_304 = arith.constant 5 : index
    %c0_305 = arith.constant 0 : index
    %355 = vector.load %arg2[%c0_302, %c0_303, %c5_304, %c0_305] : memref<2x24x9x64xf32, #tpu.memory_space<vmem>>, vector<1x24x1x64xf32>
    %356 = vector.shape_cast %355 : vector<1x24x1x64xf32> to vector<24x64xf32>
    %c1_306 = arith.constant 1 : index
    %c0_307 = arith.constant 0 : index
    %c5_308 = arith.constant 5 : index
    %c0_309 = arith.constant 0 : index
    %357 = vector.load %arg2[%c1_306, %c0_307, %c5_308, %c0_309] : memref<2x24x9x64xf32, #tpu.memory_space<vmem>>, vector<1x24x1x64xf32>
    %358 = vector.shape_cast %357 : vector<1x24x1x64xf32> to vector<24x64xf32>
    %359 = tpu.concatenate %356, %358 in 1 : vector<24x64xf32>, vector<24x64xf32> -> vector<24x128xf32>
    %360 = arith.truncf %359 : vector<24x128xf32> to vector<24x128xbf16>
    %cst_310 = arith.constant dense<0.000000e+00> : vector<48x128xf32>
    %361 = tpu.matmul %354, %360, %cst_310 {dimension_numbers = #tpu.dot_dimension_numbers<[1], [0], [0], [1], [0, 0, 1, 1], [], []>} : vector<48x24xbf16>, vector<24x128xbf16>, vector<48x128xf32> -> vector<48x128xf32>
    %c0_311 = arith.constant 0 : index
    %c0_312 = arith.constant 0 : index
    %362 = vector.load %arg9[%c0_311, %c0_312] : memref<48x1xf32, #tpu.memory_space<vmem>>, vector<48x1xf32>
    %363 = vector.broadcast %362 : vector<48x1xf32> to vector<48x128xf32>
    %364 = arith.addf %361, %363 : vector<48x128xf32>
    %365 = vector.extract_strided_slice %364 {offsets = [0, 0], sizes = [24, 128], strides = [1, 1]} : vector<48x128xf32> to vector<24x128xf32>
    %366 = vector.extract_strided_slice %364 {offsets = [24, 0], sizes = [24, 128], strides = [1, 1]} : vector<48x128xf32> to vector<24x128xf32>
    %367 = arith.mulf %10, %365 : vector<24x128xf32>
    %cst_313 = arith.constant dense<0.000000e+00> : vector<12x128xf32>
    %368 = tpu.matmul %11, %367, %cst_313 {dimension_numbers = #tpu.dot_dimension_numbers<[1], [0], [0], [1], [0, 0, 1, 1], [], []>} : vector<12x24xf32>, vector<24x128xf32>, vector<12x128xf32> -> vector<12x128xf32>
    %369 = arith.subf %368, %246 : vector<12x128xf32>
    %370 = math.exp %369 : vector<12x128xf32>
    %371 = arith.addf %350, %370 : vector<12x128xf32>
    %cst_314 = arith.constant dense<0.000000e+00> : vector<24x128xf32>
    %372 = tpu.matmul %12, %370, %cst_314 {dimension_numbers = #tpu.dot_dimension_numbers<[1], [0], [0], [1], [0, 0, 1, 1], [], []>} : vector<24x12xf32>, vector<12x128xf32>, vector<24x128xf32> -> vector<24x128xf32>
    %373 = arith.mulf %372, %366 : vector<24x128xf32>
    %374 = arith.addf %353, %373 : vector<24x128xf32>
    %c0_315 = arith.constant 0 : index
    %c0_316 = arith.constant 0 : index
    %375 = vector.load %arg8[%c0_315, %c0_316] : memref<48x24xbf16, #tpu.memory_space<vmem>>, vector<48x24xbf16>
    %c0_317 = arith.constant 0 : index
    %c0_318 = arith.constant 0 : index
    %c6_319 = arith.constant 6 : index
    %c0_320 = arith.constant 0 : index
    %376 = vector.load %arg2[%c0_317, %c0_318, %c6_319, %c0_320] : memref<2x24x9x64xf32, #tpu.memory_space<vmem>>, vector<1x24x1x64xf32>
    %377 = vector.shape_cast %376 : vector<1x24x1x64xf32> to vector<24x64xf32>
    %c1_321 = arith.constant 1 : index
    %c0_322 = arith.constant 0 : index
    %c6_323 = arith.constant 6 : index
    %c0_324 = arith.constant 0 : index
    %378 = vector.load %arg2[%c1_321, %c0_322, %c6_323, %c0_324] : memref<2x24x9x64xf32, #tpu.memory_space<vmem>>, vector<1x24x1x64xf32>
    %379 = vector.shape_cast %378 : vector<1x24x1x64xf32> to vector<24x64xf32>
    %380 = tpu.concatenate %377, %379 in 1 : vector<24x64xf32>, vector<24x64xf32> -> vector<24x128xf32>
    %381 = arith.truncf %380 : vector<24x128xf32> to vector<24x128xbf16>
    %cst_325 = arith.constant dense<0.000000e+00> : vector<48x128xf32>
    %382 = tpu.matmul %375, %381, %cst_325 {dimension_numbers = #tpu.dot_dimension_numbers<[1], [0], [0], [1], [0, 0, 1, 1], [], []>} : vector<48x24xbf16>, vector<24x128xbf16>, vector<48x128xf32> -> vector<48x128xf32>
    %c0_326 = arith.constant 0 : index
    %c0_327 = arith.constant 0 : index
    %383 = vector.load %arg9[%c0_326, %c0_327] : memref<48x1xf32, #tpu.memory_space<vmem>>, vector<48x1xf32>
    %384 = vector.broadcast %383 : vector<48x1xf32> to vector<48x128xf32>
    %385 = arith.addf %382, %384 : vector<48x128xf32>
    %386 = vector.extract_strided_slice %385 {offsets = [0, 0], sizes = [24, 128], strides = [1, 1]} : vector<48x128xf32> to vector<24x128xf32>
    %387 = vector.extract_strided_slice %385 {offsets = [24, 0], sizes = [24, 128], strides = [1, 1]} : vector<48x128xf32> to vector<24x128xf32>
    %388 = arith.mulf %10, %386 : vector<24x128xf32>
    %cst_328 = arith.constant dense<0.000000e+00> : vector<12x128xf32>
    %389 = tpu.matmul %11, %388, %cst_328 {dimension_numbers = #tpu.dot_dimension_numbers<[1], [0], [0], [1], [0, 0, 1, 1], [], []>} : vector<12x24xf32>, vector<24x128xf32>, vector<12x128xf32> -> vector<12x128xf32>
    %390 = arith.subf %389, %246 : vector<12x128xf32>
    %391 = math.exp %390 : vector<12x128xf32>
    %392 = arith.addf %371, %391 : vector<12x128xf32>
    %cst_329 = arith.constant dense<0.000000e+00> : vector<24x128xf32>
    %393 = tpu.matmul %12, %391, %cst_329 {dimension_numbers = #tpu.dot_dimension_numbers<[1], [0], [0], [1], [0, 0, 1, 1], [], []>} : vector<24x12xf32>, vector<12x128xf32>, vector<24x128xf32> -> vector<24x128xf32>
    %394 = arith.mulf %393, %387 : vector<24x128xf32>
    %395 = arith.addf %374, %394 : vector<24x128xf32>
    %c0_330 = arith.constant 0 : index
    %c0_331 = arith.constant 0 : index
    %396 = vector.load %arg8[%c0_330, %c0_331] : memref<48x24xbf16, #tpu.memory_space<vmem>>, vector<48x24xbf16>
    %c0_332 = arith.constant 0 : index
    %c0_333 = arith.constant 0 : index
    %c7_334 = arith.constant 7 : index
    %c0_335 = arith.constant 0 : index
    %397 = vector.load %arg2[%c0_332, %c0_333, %c7_334, %c0_335] : memref<2x24x9x64xf32, #tpu.memory_space<vmem>>, vector<1x24x1x64xf32>
    %398 = vector.shape_cast %397 : vector<1x24x1x64xf32> to vector<24x64xf32>
    %c1_336 = arith.constant 1 : index
    %c0_337 = arith.constant 0 : index
    %c7_338 = arith.constant 7 : index
    %c0_339 = arith.constant 0 : index
    %399 = vector.load %arg2[%c1_336, %c0_337, %c7_338, %c0_339] : memref<2x24x9x64xf32, #tpu.memory_space<vmem>>, vector<1x24x1x64xf32>
    %400 = vector.shape_cast %399 : vector<1x24x1x64xf32> to vector<24x64xf32>
    %401 = tpu.concatenate %398, %400 in 1 : vector<24x64xf32>, vector<24x64xf32> -> vector<24x128xf32>
    %402 = arith.truncf %401 : vector<24x128xf32> to vector<24x128xbf16>
    %cst_340 = arith.constant dense<0.000000e+00> : vector<48x128xf32>
    %403 = tpu.matmul %396, %402, %cst_340 {dimension_numbers = #tpu.dot_dimension_numbers<[1], [0], [0], [1], [0, 0, 1, 1], [], []>} : vector<48x24xbf16>, vector<24x128xbf16>, vector<48x128xf32> -> vector<48x128xf32>
    %c0_341 = arith.constant 0 : index
    %c0_342 = arith.constant 0 : index
    %404 = vector.load %arg9[%c0_341, %c0_342] : memref<48x1xf32, #tpu.memory_space<vmem>>, vector<48x1xf32>
    %405 = vector.broadcast %404 : vector<48x1xf32> to vector<48x128xf32>
    %406 = arith.addf %403, %405 : vector<48x128xf32>
    %407 = vector.extract_strided_slice %406 {offsets = [0, 0], sizes = [24, 128], strides = [1, 1]} : vector<48x128xf32> to vector<24x128xf32>
    %408 = vector.extract_strided_slice %406 {offsets = [24, 0], sizes = [24, 128], strides = [1, 1]} : vector<48x128xf32> to vector<24x128xf32>
    %409 = arith.mulf %10, %407 : vector<24x128xf32>
    %cst_343 = arith.constant dense<0.000000e+00> : vector<12x128xf32>
    %410 = tpu.matmul %11, %409, %cst_343 {dimension_numbers = #tpu.dot_dimension_numbers<[1], [0], [0], [1], [0, 0, 1, 1], [], []>} : vector<12x24xf32>, vector<24x128xf32>, vector<12x128xf32> -> vector<12x128xf32>
    %411 = arith.subf %410, %246 : vector<12x128xf32>
    %412 = math.exp %411 : vector<12x128xf32>
    %413 = arith.addf %392, %412 : vector<12x128xf32>
    %cst_344 = arith.constant dense<0.000000e+00> : vector<24x128xf32>
    %414 = tpu.matmul %12, %412, %cst_344 {dimension_numbers = #tpu.dot_dimension_numbers<[1], [0], [0], [1], [0, 0, 1, 1], [], []>} : vector<24x12xf32>, vector<12x128xf32>, vector<24x128xf32> -> vector<24x128xf32>
    %415 = arith.mulf %414, %408 : vector<24x128xf32>
    %416 = arith.addf %395, %415 : vector<24x128xf32>
    %c0_345 = arith.constant 0 : index
    %c0_346 = arith.constant 0 : index
    %417 = vector.load %arg8[%c0_345, %c0_346] : memref<48x24xbf16, #tpu.memory_space<vmem>>, vector<48x24xbf16>
    %c0_347 = arith.constant 0 : index
    %c0_348 = arith.constant 0 : index
    %c8_349 = arith.constant 8 : index
    %c0_350 = arith.constant 0 : index
    %418 = vector.load %arg2[%c0_347, %c0_348, %c8_349, %c0_350] : memref<2x24x9x64xf32, #tpu.memory_space<vmem>>, vector<1x24x1x64xf32>
    %419 = vector.shape_cast %418 : vector<1x24x1x64xf32> to vector<24x64xf32>
    %c1_351 = arith.constant 1 : index
    %c0_352 = arith.constant 0 : index
    %c8_353 = arith.constant 8 : index
    %c0_354 = arith.constant 0 : index
    %420 = vector.load %arg2[%c1_351, %c0_352, %c8_353, %c0_354] : memref<2x24x9x64xf32, #tpu.memory_space<vmem>>, vector<1x24x1x64xf32>
    %421 = vector.shape_cast %420 : vector<1x24x1x64xf32> to vector<24x64xf32>
    %422 = tpu.concatenate %419, %421 in 1 : vector<24x64xf32>, vector<24x64xf32> -> vector<24x128xf32>
    %423 = arith.truncf %422 : vector<24x128xf32> to vector<24x128xbf16>
    %cst_355 = arith.constant dense<0.000000e+00> : vector<48x128xf32>
    %424 = tpu.matmul %417, %423, %cst_355 {dimension_numbers = #tpu.dot_dimension_numbers<[1], [0], [0], [1], [0, 0, 1, 1], [], []>} : vector<48x24xbf16>, vector<24x128xbf16>, vector<48x128xf32> -> vector<48x128xf32>
    %c0_356 = arith.constant 0 : index
    %c0_357 = arith.constant 0 : index
    %425 = vector.load %arg9[%c0_356, %c0_357] : memref<48x1xf32, #tpu.memory_space<vmem>>, vector<48x1xf32>
    %426 = vector.broadcast %425 : vector<48x1xf32> to vector<48x128xf32>
    %427 = arith.addf %424, %426 : vector<48x128xf32>
    %428 = vector.extract_strided_slice %427 {offsets = [0, 0], sizes = [24, 128], strides = [1, 1]} : vector<48x128xf32> to vector<24x128xf32>
    %429 = vector.extract_strided_slice %427 {offsets = [24, 0], sizes = [24, 128], strides = [1, 1]} : vector<48x128xf32> to vector<24x128xf32>
    %430 = arith.mulf %10, %428 : vector<24x128xf32>
    %cst_358 = arith.constant dense<0.000000e+00> : vector<12x128xf32>
    %431 = tpu.matmul %11, %430, %cst_358 {dimension_numbers = #tpu.dot_dimension_numbers<[1], [0], [0], [1], [0, 0, 1, 1], [], []>} : vector<12x24xf32>, vector<24x128xf32>, vector<12x128xf32> -> vector<12x128xf32>
    %432 = arith.subf %431, %246 : vector<12x128xf32>
    %433 = math.exp %432 : vector<12x128xf32>
    %434 = arith.addf %413, %433 : vector<12x128xf32>
    %cst_359 = arith.constant dense<0.000000e+00> : vector<24x128xf32>
    %435 = tpu.matmul %12, %433, %cst_359 {dimension_numbers = #tpu.dot_dimension_numbers<[1], [0], [0], [1], [0, 0, 1, 1], [], []>} : vector<24x12xf32>, vector<12x128xf32>, vector<24x128xf32> -> vector<24x128xf32>
    %436 = arith.mulf %435, %429 : vector<24x128xf32>
    %437 = arith.addf %416, %436 : vector<24x128xf32>
    %c0_360 = arith.constant 0 : index
    %c0_361 = arith.constant 0 : index
    %438 = vector.load %arg8[%c0_360, %c0_361] : memref<48x24xbf16, #tpu.memory_space<vmem>>, vector<48x24xbf16>
    %c0_362 = arith.constant 0 : index
    %c0_363 = arith.constant 0 : index
    %c0_364 = arith.constant 0 : index
    %c0_365 = arith.constant 0 : index
    %439 = vector.load %arg3[%c0_362, %c0_363, %c0_364, %c0_365] : memref<2x24x9x64xf32, #tpu.memory_space<vmem>>, vector<1x24x1x64xf32>
    %440 = vector.shape_cast %439 : vector<1x24x1x64xf32> to vector<24x64xf32>
    %c1_366 = arith.constant 1 : index
    %c0_367 = arith.constant 0 : index
    %c0_368 = arith.constant 0 : index
    %c0_369 = arith.constant 0 : index
    %441 = vector.load %arg3[%c1_366, %c0_367, %c0_368, %c0_369] : memref<2x24x9x64xf32, #tpu.memory_space<vmem>>, vector<1x24x1x64xf32>
    %442 = vector.shape_cast %441 : vector<1x24x1x64xf32> to vector<24x64xf32>
    %443 = tpu.concatenate %440, %442 in 1 : vector<24x64xf32>, vector<24x64xf32> -> vector<24x128xf32>
    %444 = arith.truncf %443 : vector<24x128xf32> to vector<24x128xbf16>
    %cst_370 = arith.constant dense<0.000000e+00> : vector<48x128xf32>
    %445 = tpu.matmul %438, %444, %cst_370 {dimension_numbers = #tpu.dot_dimension_numbers<[1], [0], [0], [1], [0, 0, 1, 1], [], []>} : vector<48x24xbf16>, vector<24x128xbf16>, vector<48x128xf32> -> vector<48x128xf32>
    %c0_371 = arith.constant 0 : index
    %c0_372 = arith.constant 0 : index
    %446 = vector.load %arg9[%c0_371, %c0_372] : memref<48x1xf32, #tpu.memory_space<vmem>>, vector<48x1xf32>
    %447 = vector.broadcast %446 : vector<48x1xf32> to vector<48x128xf32>
    %448 = arith.addf %445, %447 : vector<48x128xf32>
    %449 = vector.extract_strided_slice %448 {offsets = [0, 0], sizes = [24, 128], strides = [1, 1]} : vector<48x128xf32> to vector<24x128xf32>
    %450 = vector.extract_strided_slice %448 {offsets = [24, 0], sizes = [24, 128], strides = [1, 1]} : vector<48x128xf32> to vector<24x128xf32>
    %451 = arith.mulf %10, %449 : vector<24x128xf32>
    %cst_373 = arith.constant dense<0.000000e+00> : vector<12x128xf32>
    %452 = tpu.matmul %11, %451, %cst_373 {dimension_numbers = #tpu.dot_dimension_numbers<[1], [0], [0], [1], [0, 0, 1, 1], [], []>} : vector<12x24xf32>, vector<24x128xf32>, vector<12x128xf32> -> vector<12x128xf32>
    %453 = arith.subf %452, %246 : vector<12x128xf32>
    %454 = math.exp %453 : vector<12x128xf32>
    %455 = arith.addf %434, %454 : vector<12x128xf32>
    %cst_374 = arith.constant dense<0.000000e+00> : vector<24x128xf32>
    %456 = tpu.matmul %12, %454, %cst_374 {dimension_numbers = #tpu.dot_dimension_numbers<[1], [0], [0], [1], [0, 0, 1, 1], [], []>} : vector<24x12xf32>, vector<12x128xf32>, vector<24x128xf32> -> vector<24x128xf32>
    %457 = arith.mulf %456, %450 : vector<24x128xf32>
    %458 = arith.addf %437, %457 : vector<24x128xf32>
    %c0_375 = arith.constant 0 : index
    %c0_376 = arith.constant 0 : index
    %459 = vector.load %arg8[%c0_375, %c0_376] : memref<48x24xbf16, #tpu.memory_space<vmem>>, vector<48x24xbf16>
    %c0_377 = arith.constant 0 : index
    %c0_378 = arith.constant 0 : index
    %c1_379 = arith.constant 1 : index
    %c0_380 = arith.constant 0 : index
    %460 = vector.load %arg3[%c0_377, %c0_378, %c1_379, %c0_380] : memref<2x24x9x64xf32, #tpu.memory_space<vmem>>, vector<1x24x1x64xf32>
    %461 = vector.shape_cast %460 : vector<1x24x1x64xf32> to vector<24x64xf32>
    %c1_381 = arith.constant 1 : index
    %c0_382 = arith.constant 0 : index
    %c1_383 = arith.constant 1 : index
    %c0_384 = arith.constant 0 : index
    %462 = vector.load %arg3[%c1_381, %c0_382, %c1_383, %c0_384] : memref<2x24x9x64xf32, #tpu.memory_space<vmem>>, vector<1x24x1x64xf32>
    %463 = vector.shape_cast %462 : vector<1x24x1x64xf32> to vector<24x64xf32>
    %464 = tpu.concatenate %461, %463 in 1 : vector<24x64xf32>, vector<24x64xf32> -> vector<24x128xf32>
    %465 = arith.truncf %464 : vector<24x128xf32> to vector<24x128xbf16>
    %cst_385 = arith.constant dense<0.000000e+00> : vector<48x128xf32>
    %466 = tpu.matmul %459, %465, %cst_385 {dimension_numbers = #tpu.dot_dimension_numbers<[1], [0], [0], [1], [0, 0, 1, 1], [], []>} : vector<48x24xbf16>, vector<24x128xbf16>, vector<48x128xf32> -> vector<48x128xf32>
    %c0_386 = arith.constant 0 : index
    %c0_387 = arith.constant 0 : index
    %467 = vector.load %arg9[%c0_386, %c0_387] : memref<48x1xf32, #tpu.memory_space<vmem>>, vector<48x1xf32>
    %468 = vector.broadcast %467 : vector<48x1xf32> to vector<48x128xf32>
    %469 = arith.addf %466, %468 : vector<48x128xf32>
    %470 = vector.extract_strided_slice %469 {offsets = [0, 0], sizes = [24, 128], strides = [1, 1]} : vector<48x128xf32> to vector<24x128xf32>
    %471 = vector.extract_strided_slice %469 {offsets = [24, 0], sizes = [24, 128], strides = [1, 1]} : vector<48x128xf32> to vector<24x128xf32>
    %472 = arith.mulf %10, %470 : vector<24x128xf32>
    %cst_388 = arith.constant dense<0.000000e+00> : vector<12x128xf32>
    %473 = tpu.matmul %11, %472, %cst_388 {dimension_numbers = #tpu.dot_dimension_numbers<[1], [0], [0], [1], [0, 0, 1, 1], [], []>} : vector<12x24xf32>, vector<24x128xf32>, vector<12x128xf32> -> vector<12x128xf32>
    %474 = arith.subf %473, %246 : vector<12x128xf32>
    %475 = math.exp %474 : vector<12x128xf32>
    %476 = arith.addf %455, %475 : vector<12x128xf32>
    %cst_389 = arith.constant dense<0.000000e+00> : vector<24x128xf32>
    %477 = tpu.matmul %12, %475, %cst_389 {dimension_numbers = #tpu.dot_dimension_numbers<[1], [0], [0], [1], [0, 0, 1, 1], [], []>} : vector<24x12xf32>, vector<12x128xf32>, vector<24x128xf32> -> vector<24x128xf32>
    %478 = arith.mulf %477, %471 : vector<24x128xf32>
    %479 = arith.addf %458, %478 : vector<24x128xf32>
    %c0_390 = arith.constant 0 : index
    %c0_391 = arith.constant 0 : index
    %480 = vector.load %arg8[%c0_390, %c0_391] : memref<48x24xbf16, #tpu.memory_space<vmem>>, vector<48x24xbf16>
    %c0_392 = arith.constant 0 : index
    %c0_393 = arith.constant 0 : index
    %c2_394 = arith.constant 2 : index
    %c0_395 = arith.constant 0 : index
    %481 = vector.load %arg3[%c0_392, %c0_393, %c2_394, %c0_395] : memref<2x24x9x64xf32, #tpu.memory_space<vmem>>, vector<1x24x1x64xf32>
    %482 = vector.shape_cast %481 : vector<1x24x1x64xf32> to vector<24x64xf32>
    %c1_396 = arith.constant 1 : index
    %c0_397 = arith.constant 0 : index
    %c2_398 = arith.constant 2 : index
    %c0_399 = arith.constant 0 : index
    %483 = vector.load %arg3[%c1_396, %c0_397, %c2_398, %c0_399] : memref<2x24x9x64xf32, #tpu.memory_space<vmem>>, vector<1x24x1x64xf32>
    %484 = vector.shape_cast %483 : vector<1x24x1x64xf32> to vector<24x64xf32>
    %485 = tpu.concatenate %482, %484 in 1 : vector<24x64xf32>, vector<24x64xf32> -> vector<24x128xf32>
    %486 = arith.truncf %485 : vector<24x128xf32> to vector<24x128xbf16>
    %cst_400 = arith.constant dense<0.000000e+00> : vector<48x128xf32>
    %487 = tpu.matmul %480, %486, %cst_400 {dimension_numbers = #tpu.dot_dimension_numbers<[1], [0], [0], [1], [0, 0, 1, 1], [], []>} : vector<48x24xbf16>, vector<24x128xbf16>, vector<48x128xf32> -> vector<48x128xf32>
    %c0_401 = arith.constant 0 : index
    %c0_402 = arith.constant 0 : index
    %488 = vector.load %arg9[%c0_401, %c0_402] : memref<48x1xf32, #tpu.memory_space<vmem>>, vector<48x1xf32>
    %489 = vector.broadcast %488 : vector<48x1xf32> to vector<48x128xf32>
    %490 = arith.addf %487, %489 : vector<48x128xf32>
    %491 = vector.extract_strided_slice %490 {offsets = [0, 0], sizes = [24, 128], strides = [1, 1]} : vector<48x128xf32> to vector<24x128xf32>
    %492 = vector.extract_strided_slice %490 {offsets = [24, 0], sizes = [24, 128], strides = [1, 1]} : vector<48x128xf32> to vector<24x128xf32>
    %493 = arith.mulf %10, %491 : vector<24x128xf32>
    %cst_403 = arith.constant dense<0.000000e+00> : vector<12x128xf32>
    %494 = tpu.matmul %11, %493, %cst_403 {dimension_numbers = #tpu.dot_dimension_numbers<[1], [0], [0], [1], [0, 0, 1, 1], [], []>} : vector<12x24xf32>, vector<24x128xf32>, vector<12x128xf32> -> vector<12x128xf32>
    %495 = arith.subf %494, %246 : vector<12x128xf32>
    %496 = math.exp %495 : vector<12x128xf32>
    %497 = arith.addf %476, %496 : vector<12x128xf32>
    %cst_404 = arith.constant dense<0.000000e+00> : vector<24x128xf32>
    %498 = tpu.matmul %12, %496, %cst_404 {dimension_numbers = #tpu.dot_dimension_numbers<[1], [0], [0], [1], [0, 0, 1, 1], [], []>} : vector<24x12xf32>, vector<12x128xf32>, vector<24x128xf32> -> vector<24x128xf32>
    %499 = arith.mulf %498, %492 : vector<24x128xf32>
    %500 = arith.addf %479, %499 : vector<24x128xf32>
    %c0_405 = arith.constant 0 : index
    %c0_406 = arith.constant 0 : index
    %501 = vector.load %arg8[%c0_405, %c0_406] : memref<48x24xbf16, #tpu.memory_space<vmem>>, vector<48x24xbf16>
    %c0_407 = arith.constant 0 : index
    %c0_408 = arith.constant 0 : index
    %c3_409 = arith.constant 3 : index
    %c0_410 = arith.constant 0 : index
    %502 = vector.load %arg3[%c0_407, %c0_408, %c3_409, %c0_410] : memref<2x24x9x64xf32, #tpu.memory_space<vmem>>, vector<1x24x1x64xf32>
    %503 = vector.shape_cast %502 : vector<1x24x1x64xf32> to vector<24x64xf32>
    %c1_411 = arith.constant 1 : index
    %c0_412 = arith.constant 0 : index
    %c3_413 = arith.constant 3 : index
    %c0_414 = arith.constant 0 : index
    %504 = vector.load %arg3[%c1_411, %c0_412, %c3_413, %c0_414] : memref<2x24x9x64xf32, #tpu.memory_space<vmem>>, vector<1x24x1x64xf32>
    %505 = vector.shape_cast %504 : vector<1x24x1x64xf32> to vector<24x64xf32>
    %506 = tpu.concatenate %503, %505 in 1 : vector<24x64xf32>, vector<24x64xf32> -> vector<24x128xf32>
    %507 = arith.truncf %506 : vector<24x128xf32> to vector<24x128xbf16>
    %cst_415 = arith.constant dense<0.000000e+00> : vector<48x128xf32>
    %508 = tpu.matmul %501, %507, %cst_415 {dimension_numbers = #tpu.dot_dimension_numbers<[1], [0], [0], [1], [0, 0, 1, 1], [], []>} : vector<48x24xbf16>, vector<24x128xbf16>, vector<48x128xf32> -> vector<48x128xf32>
    %c0_416 = arith.constant 0 : index
    %c0_417 = arith.constant 0 : index
    %509 = vector.load %arg9[%c0_416, %c0_417] : memref<48x1xf32, #tpu.memory_space<vmem>>, vector<48x1xf32>
    %510 = vector.broadcast %509 : vector<48x1xf32> to vector<48x128xf32>
    %511 = arith.addf %508, %510 : vector<48x128xf32>
    %512 = vector.extract_strided_slice %511 {offsets = [0, 0], sizes = [24, 128], strides = [1, 1]} : vector<48x128xf32> to vector<24x128xf32>
    %513 = vector.extract_strided_slice %511 {offsets = [24, 0], sizes = [24, 128], strides = [1, 1]} : vector<48x128xf32> to vector<24x128xf32>
    %514 = arith.mulf %10, %512 : vector<24x128xf32>
    %cst_418 = arith.constant dense<0.000000e+00> : vector<12x128xf32>
    %515 = tpu.matmul %11, %514, %cst_418 {dimension_numbers = #tpu.dot_dimension_numbers<[1], [0], [0], [1], [0, 0, 1, 1], [], []>} : vector<12x24xf32>, vector<24x128xf32>, vector<12x128xf32> -> vector<12x128xf32>
    %516 = arith.subf %515, %246 : vector<12x128xf32>
    %517 = math.exp %516 : vector<12x128xf32>
    %518 = arith.addf %497, %517 : vector<12x128xf32>
    %cst_419 = arith.constant dense<0.000000e+00> : vector<24x128xf32>
    %519 = tpu.matmul %12, %517, %cst_419 {dimension_numbers = #tpu.dot_dimension_numbers<[1], [0], [0], [1], [0, 0, 1, 1], [], []>} : vector<24x12xf32>, vector<12x128xf32>, vector<24x128xf32> -> vector<24x128xf32>
    %520 = arith.mulf %519, %513 : vector<24x128xf32>
    %521 = arith.addf %500, %520 : vector<24x128xf32>
    %c0_420 = arith.constant 0 : index
    %c0_421 = arith.constant 0 : index
    %522 = vector.load %arg8[%c0_420, %c0_421] : memref<48x24xbf16, #tpu.memory_space<vmem>>, vector<48x24xbf16>
    %c0_422 = arith.constant 0 : index
    %c0_423 = arith.constant 0 : index
    %c4_424 = arith.constant 4 : index
    %c0_425 = arith.constant 0 : index
    %523 = vector.load %arg3[%c0_422, %c0_423, %c4_424, %c0_425] : memref<2x24x9x64xf32, #tpu.memory_space<vmem>>, vector<1x24x1x64xf32>
    %524 = vector.shape_cast %523 : vector<1x24x1x64xf32> to vector<24x64xf32>
    %c1_426 = arith.constant 1 : index
    %c0_427 = arith.constant 0 : index
    %c4_428 = arith.constant 4 : index
    %c0_429 = arith.constant 0 : index
    %525 = vector.load %arg3[%c1_426, %c0_427, %c4_428, %c0_429] : memref<2x24x9x64xf32, #tpu.memory_space<vmem>>, vector<1x24x1x64xf32>
    %526 = vector.shape_cast %525 : vector<1x24x1x64xf32> to vector<24x64xf32>
    %527 = tpu.concatenate %524, %526 in 1 : vector<24x64xf32>, vector<24x64xf32> -> vector<24x128xf32>
    %528 = arith.truncf %527 : vector<24x128xf32> to vector<24x128xbf16>
    %cst_430 = arith.constant dense<0.000000e+00> : vector<48x128xf32>
    %529 = tpu.matmul %522, %528, %cst_430 {dimension_numbers = #tpu.dot_dimension_numbers<[1], [0], [0], [1], [0, 0, 1, 1], [], []>} : vector<48x24xbf16>, vector<24x128xbf16>, vector<48x128xf32> -> vector<48x128xf32>
    %c0_431 = arith.constant 0 : index
    %c0_432 = arith.constant 0 : index
    %530 = vector.load %arg9[%c0_431, %c0_432] : memref<48x1xf32, #tpu.memory_space<vmem>>, vector<48x1xf32>
    %531 = vector.broadcast %530 : vector<48x1xf32> to vector<48x128xf32>
    %532 = arith.addf %529, %531 : vector<48x128xf32>
    %533 = vector.extract_strided_slice %532 {offsets = [0, 0], sizes = [24, 128], strides = [1, 1]} : vector<48x128xf32> to vector<24x128xf32>
    %534 = vector.extract_strided_slice %532 {offsets = [24, 0], sizes = [24, 128], strides = [1, 1]} : vector<48x128xf32> to vector<24x128xf32>
    %535 = arith.mulf %10, %533 : vector<24x128xf32>
    %cst_433 = arith.constant dense<0.000000e+00> : vector<12x128xf32>
    %536 = tpu.matmul %11, %535, %cst_433 {dimension_numbers = #tpu.dot_dimension_numbers<[1], [0], [0], [1], [0, 0, 1, 1], [], []>} : vector<12x24xf32>, vector<24x128xf32>, vector<12x128xf32> -> vector<12x128xf32>
    %537 = arith.subf %536, %246 : vector<12x128xf32>
    %538 = math.exp %537 : vector<12x128xf32>
    %539 = arith.addf %518, %538 : vector<12x128xf32>
    %cst_434 = arith.constant dense<0.000000e+00> : vector<24x128xf32>
    %540 = tpu.matmul %12, %538, %cst_434 {dimension_numbers = #tpu.dot_dimension_numbers<[1], [0], [0], [1], [0, 0, 1, 1], [], []>} : vector<24x12xf32>, vector<12x128xf32>, vector<24x128xf32> -> vector<24x128xf32>
    %541 = arith.mulf %540, %534 : vector<24x128xf32>
    %542 = arith.addf %521, %541 : vector<24x128xf32>
    %c0_435 = arith.constant 0 : index
    %c0_436 = arith.constant 0 : index
    %543 = vector.load %arg8[%c0_435, %c0_436] : memref<48x24xbf16, #tpu.memory_space<vmem>>, vector<48x24xbf16>
    %c0_437 = arith.constant 0 : index
    %c0_438 = arith.constant 0 : index
    %c5_439 = arith.constant 5 : index
    %c0_440 = arith.constant 0 : index
    %544 = vector.load %arg3[%c0_437, %c0_438, %c5_439, %c0_440] : memref<2x24x9x64xf32, #tpu.memory_space<vmem>>, vector<1x24x1x64xf32>
    %545 = vector.shape_cast %544 : vector<1x24x1x64xf32> to vector<24x64xf32>
    %c1_441 = arith.constant 1 : index
    %c0_442 = arith.constant 0 : index
    %c5_443 = arith.constant 5 : index
    %c0_444 = arith.constant 0 : index
    %546 = vector.load %arg3[%c1_441, %c0_442, %c5_443, %c0_444] : memref<2x24x9x64xf32, #tpu.memory_space<vmem>>, vector<1x24x1x64xf32>
    %547 = vector.shape_cast %546 : vector<1x24x1x64xf32> to vector<24x64xf32>
    %548 = tpu.concatenate %545, %547 in 1 : vector<24x64xf32>, vector<24x64xf32> -> vector<24x128xf32>
    %549 = arith.truncf %548 : vector<24x128xf32> to vector<24x128xbf16>
    %cst_445 = arith.constant dense<0.000000e+00> : vector<48x128xf32>
    %550 = tpu.matmul %543, %549, %cst_445 {dimension_numbers = #tpu.dot_dimension_numbers<[1], [0], [0], [1], [0, 0, 1, 1], [], []>} : vector<48x24xbf16>, vector<24x128xbf16>, vector<48x128xf32> -> vector<48x128xf32>
    %c0_446 = arith.constant 0 : index
    %c0_447 = arith.constant 0 : index
    %551 = vector.load %arg9[%c0_446, %c0_447] : memref<48x1xf32, #tpu.memory_space<vmem>>, vector<48x1xf32>
    %552 = vector.broadcast %551 : vector<48x1xf32> to vector<48x128xf32>
    %553 = arith.addf %550, %552 : vector<48x128xf32>
    %554 = vector.extract_strided_slice %553 {offsets = [0, 0], sizes = [24, 128], strides = [1, 1]} : vector<48x128xf32> to vector<24x128xf32>
    %555 = vector.extract_strided_slice %553 {offsets = [24, 0], sizes = [24, 128], strides = [1, 1]} : vector<48x128xf32> to vector<24x128xf32>
    %556 = arith.mulf %10, %554 : vector<24x128xf32>
    %cst_448 = arith.constant dense<0.000000e+00> : vector<12x128xf32>
    %557 = tpu.matmul %11, %556, %cst_448 {dimension_numbers = #tpu.dot_dimension_numbers<[1], [0], [0], [1], [0, 0, 1, 1], [], []>} : vector<12x24xf32>, vector<24x128xf32>, vector<12x128xf32> -> vector<12x128xf32>
    %558 = arith.subf %557, %246 : vector<12x128xf32>
    %559 = math.exp %558 : vector<12x128xf32>
    %560 = arith.addf %539, %559 : vector<12x128xf32>
    %cst_449 = arith.constant dense<0.000000e+00> : vector<24x128xf32>
    %561 = tpu.matmul %12, %559, %cst_449 {dimension_numbers = #tpu.dot_dimension_numbers<[1], [0], [0], [1], [0, 0, 1, 1], [], []>} : vector<24x12xf32>, vector<12x128xf32>, vector<24x128xf32> -> vector<24x128xf32>
    %562 = arith.mulf %561, %555 : vector<24x128xf32>
    %563 = arith.addf %542, %562 : vector<24x128xf32>
    %c0_450 = arith.constant 0 : index
    %c0_451 = arith.constant 0 : index
    %564 = vector.load %arg8[%c0_450, %c0_451] : memref<48x24xbf16, #tpu.memory_space<vmem>>, vector<48x24xbf16>
    %c0_452 = arith.constant 0 : index
    %c0_453 = arith.constant 0 : index
    %c6_454 = arith.constant 6 : index
    %c0_455 = arith.constant 0 : index
    %565 = vector.load %arg3[%c0_452, %c0_453, %c6_454, %c0_455] : memref<2x24x9x64xf32, #tpu.memory_space<vmem>>, vector<1x24x1x64xf32>
    %566 = vector.shape_cast %565 : vector<1x24x1x64xf32> to vector<24x64xf32>
    %c1_456 = arith.constant 1 : index
    %c0_457 = arith.constant 0 : index
    %c6_458 = arith.constant 6 : index
    %c0_459 = arith.constant 0 : index
    %567 = vector.load %arg3[%c1_456, %c0_457, %c6_458, %c0_459] : memref<2x24x9x64xf32, #tpu.memory_space<vmem>>, vector<1x24x1x64xf32>
    %568 = vector.shape_cast %567 : vector<1x24x1x64xf32> to vector<24x64xf32>
    %569 = tpu.concatenate %566, %568 in 1 : vector<24x64xf32>, vector<24x64xf32> -> vector<24x128xf32>
    %570 = arith.truncf %569 : vector<24x128xf32> to vector<24x128xbf16>
    %cst_460 = arith.constant dense<0.000000e+00> : vector<48x128xf32>
    %571 = tpu.matmul %564, %570, %cst_460 {dimension_numbers = #tpu.dot_dimension_numbers<[1], [0], [0], [1], [0, 0, 1, 1], [], []>} : vector<48x24xbf16>, vector<24x128xbf16>, vector<48x128xf32> -> vector<48x128xf32>
    %c0_461 = arith.constant 0 : index
    %c0_462 = arith.constant 0 : index
    %572 = vector.load %arg9[%c0_461, %c0_462] : memref<48x1xf32, #tpu.memory_space<vmem>>, vector<48x1xf32>
    %573 = vector.broadcast %572 : vector<48x1xf32> to vector<48x128xf32>
    %574 = arith.addf %571, %573 : vector<48x128xf32>
    %575 = vector.extract_strided_slice %574 {offsets = [0, 0], sizes = [24, 128], strides = [1, 1]} : vector<48x128xf32> to vector<24x128xf32>
    %576 = vector.extract_strided_slice %574 {offsets = [24, 0], sizes = [24, 128], strides = [1, 1]} : vector<48x128xf32> to vector<24x128xf32>
    %577 = arith.mulf %10, %575 : vector<24x128xf32>
    %cst_463 = arith.constant dense<0.000000e+00> : vector<12x128xf32>
    %578 = tpu.matmul %11, %577, %cst_463 {dimension_numbers = #tpu.dot_dimension_numbers<[1], [0], [0], [1], [0, 0, 1, 1], [], []>} : vector<12x24xf32>, vector<24x128xf32>, vector<12x128xf32> -> vector<12x128xf32>
    %579 = arith.subf %578, %246 : vector<12x128xf32>
    %580 = math.exp %579 : vector<12x128xf32>
    %581 = arith.addf %560, %580 : vector<12x128xf32>
    %cst_464 = arith.constant dense<0.000000e+00> : vector<24x128xf32>
    %582 = tpu.matmul %12, %580, %cst_464 {dimension_numbers = #tpu.dot_dimension_numbers<[1], [0], [0], [1], [0, 0, 1, 1], [], []>} : vector<24x12xf32>, vector<12x128xf32>, vector<24x128xf32> -> vector<24x128xf32>
    %583 = arith.mulf %582, %576 : vector<24x128xf32>
    %584 = arith.addf %563, %583 : vector<24x128xf32>
    %c0_465 = arith.constant 0 : index
    %c0_466 = arith.constant 0 : index
    %585 = vector.load %arg8[%c0_465, %c0_466] : memref<48x24xbf16, #tpu.memory_space<vmem>>, vector<48x24xbf16>
    %c0_467 = arith.constant 0 : index
    %c0_468 = arith.constant 0 : index
    %c7_469 = arith.constant 7 : index
    %c0_470 = arith.constant 0 : index
    %586 = vector.load %arg3[%c0_467, %c0_468, %c7_469, %c0_470] : memref<2x24x9x64xf32, #tpu.memory_space<vmem>>, vector<1x24x1x64xf32>
    %587 = vector.shape_cast %586 : vector<1x24x1x64xf32> to vector<24x64xf32>
    %c1_471 = arith.constant 1 : index
    %c0_472 = arith.constant 0 : index
    %c7_473 = arith.constant 7 : index
    %c0_474 = arith.constant 0 : index
    %588 = vector.load %arg3[%c1_471, %c0_472, %c7_473, %c0_474] : memref<2x24x9x64xf32, #tpu.memory_space<vmem>>, vector<1x24x1x64xf32>
    %589 = vector.shape_cast %588 : vector<1x24x1x64xf32> to vector<24x64xf32>
    %590 = tpu.concatenate %587, %589 in 1 : vector<24x64xf32>, vector<24x64xf32> -> vector<24x128xf32>
    %591 = arith.truncf %590 : vector<24x128xf32> to vector<24x128xbf16>
    %cst_475 = arith.constant dense<0.000000e+00> : vector<48x128xf32>
    %592 = tpu.matmul %585, %591, %cst_475 {dimension_numbers = #tpu.dot_dimension_numbers<[1], [0], [0], [1], [0, 0, 1, 1], [], []>} : vector<48x24xbf16>, vector<24x128xbf16>, vector<48x128xf32> -> vector<48x128xf32>
    %c0_476 = arith.constant 0 : index
    %c0_477 = arith.constant 0 : index
    %593 = vector.load %arg9[%c0_476, %c0_477] : memref<48x1xf32, #tpu.memory_space<vmem>>, vector<48x1xf32>
    %594 = vector.broadcast %593 : vector<48x1xf32> to vector<48x128xf32>
    %595 = arith.addf %592, %594 : vector<48x128xf32>
    %596 = vector.extract_strided_slice %595 {offsets = [0, 0], sizes = [24, 128], strides = [1, 1]} : vector<48x128xf32> to vector<24x128xf32>
    %597 = vector.extract_strided_slice %595 {offsets = [24, 0], sizes = [24, 128], strides = [1, 1]} : vector<48x128xf32> to vector<24x128xf32>
    %598 = arith.mulf %10, %596 : vector<24x128xf32>
    %cst_478 = arith.constant dense<0.000000e+00> : vector<12x128xf32>
    %599 = tpu.matmul %11, %598, %cst_478 {dimension_numbers = #tpu.dot_dimension_numbers<[1], [0], [0], [1], [0, 0, 1, 1], [], []>} : vector<12x24xf32>, vector<24x128xf32>, vector<12x128xf32> -> vector<12x128xf32>
    %600 = arith.subf %599, %246 : vector<12x128xf32>
    %601 = math.exp %600 : vector<12x128xf32>
    %602 = arith.addf %581, %601 : vector<12x128xf32>
    %cst_479 = arith.constant dense<0.000000e+00> : vector<24x128xf32>
    %603 = tpu.matmul %12, %601, %cst_479 {dimension_numbers = #tpu.dot_dimension_numbers<[1], [0], [0], [1], [0, 0, 1, 1], [], []>} : vector<24x12xf32>, vector<12x128xf32>, vector<24x128xf32> -> vector<24x128xf32>
    %604 = arith.mulf %603, %597 : vector<24x128xf32>
    %605 = arith.addf %584, %604 : vector<24x128xf32>
    %c0_480 = arith.constant 0 : index
    %c0_481 = arith.constant 0 : index
    %606 = vector.load %arg8[%c0_480, %c0_481] : memref<48x24xbf16, #tpu.memory_space<vmem>>, vector<48x24xbf16>
    %c0_482 = arith.constant 0 : index
    %c0_483 = arith.constant 0 : index
    %c8_484 = arith.constant 8 : index
    %c0_485 = arith.constant 0 : index
    %607 = vector.load %arg3[%c0_482, %c0_483, %c8_484, %c0_485] : memref<2x24x9x64xf32, #tpu.memory_space<vmem>>, vector<1x24x1x64xf32>
    %608 = vector.shape_cast %607 : vector<1x24x1x64xf32> to vector<24x64xf32>
    %c1_486 = arith.constant 1 : index
    %c0_487 = arith.constant 0 : index
    %c8_488 = arith.constant 8 : index
    %c0_489 = arith.constant 0 : index
    %609 = vector.load %arg3[%c1_486, %c0_487, %c8_488, %c0_489] : memref<2x24x9x64xf32, #tpu.memory_space<vmem>>, vector<1x24x1x64xf32>
    %610 = vector.shape_cast %609 : vector<1x24x1x64xf32> to vector<24x64xf32>
    %611 = tpu.concatenate %608, %610 in 1 : vector<24x64xf32>, vector<24x64xf32> -> vector<24x128xf32>
    %612 = arith.truncf %611 : vector<24x128xf32> to vector<24x128xbf16>
    %cst_490 = arith.constant dense<0.000000e+00> : vector<48x128xf32>
    %613 = tpu.matmul %606, %612, %cst_490 {dimension_numbers = #tpu.dot_dimension_numbers<[1], [0], [0], [1], [0, 0, 1, 1], [], []>} : vector<48x24xbf16>, vector<24x128xbf16>, vector<48x128xf32> -> vector<48x128xf32>
    %c0_491 = arith.constant 0 : index
    %c0_492 = arith.constant 0 : index
    %614 = vector.load %arg9[%c0_491, %c0_492] : memref<48x1xf32, #tpu.memory_space<vmem>>, vector<48x1xf32>
    %615 = vector.broadcast %614 : vector<48x1xf32> to vector<48x128xf32>
    %616 = arith.addf %613, %615 : vector<48x128xf32>
    %617 = vector.extract_strided_slice %616 {offsets = [0, 0], sizes = [24, 128], strides = [1, 1]} : vector<48x128xf32> to vector<24x128xf32>
    %618 = vector.extract_strided_slice %616 {offsets = [24, 0], sizes = [24, 128], strides = [1, 1]} : vector<48x128xf32> to vector<24x128xf32>
    %619 = arith.mulf %10, %617 : vector<24x128xf32>
    %cst_493 = arith.constant dense<0.000000e+00> : vector<12x128xf32>
    %620 = tpu.matmul %11, %619, %cst_493 {dimension_numbers = #tpu.dot_dimension_numbers<[1], [0], [0], [1], [0, 0, 1, 1], [], []>} : vector<12x24xf32>, vector<24x128xf32>, vector<12x128xf32> -> vector<12x128xf32>
    %621 = arith.subf %620, %246 : vector<12x128xf32>
    %622 = math.exp %621 : vector<12x128xf32>
    %623 = arith.addf %602, %622 : vector<12x128xf32>
    %cst_494 = arith.constant dense<0.000000e+00> : vector<24x128xf32>
    %624 = tpu.matmul %12, %622, %cst_494 {dimension_numbers = #tpu.dot_dimension_numbers<[1], [0], [0], [1], [0, 0, 1, 1], [], []>} : vector<24x12xf32>, vector<12x128xf32>, vector<24x128xf32> -> vector<24x128xf32>
    %625 = arith.mulf %624, %618 : vector<24x128xf32>
    %626 = arith.addf %605, %625 : vector<24x128xf32>
    %627 = tpu.reciprocal %623 {approx = true} : vector<12x128xf32> -> vector<12x128xf32>
    %cst_495 = arith.constant dense<0.000000e+00> : vector<24x128xf32>
    %628 = tpu.matmul %12, %627, %cst_495 {dimension_numbers = #tpu.dot_dimension_numbers<[1], [0], [0], [1], [0, 0, 1, 1], [], []>} : vector<24x12xf32>, vector<12x128xf32>, vector<24x128xf32> -> vector<24x128xf32>
    %629 = arith.mulf %626, %628 : vector<24x128xf32>
    %c0_496 = arith.constant 0 : index
    %c0_497 = arith.constant 0 : index
    %630 = vector.load %arg12[%c0_496, %c0_497] : memref<48x24xbf16, #tpu.memory_space<vmem>>, vector<48x24xbf16>
    %631 = arith.truncf %629 : vector<24x128xf32> to vector<24x128xbf16>
    %cst_498 = arith.constant dense<0.000000e+00> : vector<48x128xf32>
    %632 = tpu.matmul %630, %631, %cst_498 {dimension_numbers = #tpu.dot_dimension_numbers<[1], [0], [0], [1], [0, 0, 1, 1], [], []>} : vector<48x24xbf16>, vector<24x128xbf16>, vector<48x128xf32> -> vector<48x128xf32>
    %c0_499 = arith.constant 0 : index
    %c0_500 = arith.constant 0 : index
    %633 = vector.load %arg13[%c0_499, %c0_500] : memref<48x1xf32, #tpu.memory_space<vmem>>, vector<48x1xf32>
    %634 = vector.broadcast %633 : vector<48x1xf32> to vector<48x128xf32>
    %635 = arith.addf %632, %634 : vector<48x128xf32>
    %636 = arith.mulf %635, %635 : vector<48x128xf32>
    %637 = arith.mulf %635, %636 : vector<48x128xf32>
    %cst_501 = arith.constant 4.471500e-02 : f32
    %638 = vector.broadcast %cst_501 : f32 to vector<48x128xf32>
    %639 = arith.mulf %638, %637 : vector<48x128xf32>
    %640 = arith.addf %635, %639 : vector<48x128xf32>
    %cst_502 = arith.constant 0.797884583 : f32
    %641 = vector.broadcast %cst_502 : f32 to vector<48x128xf32>
    %642 = arith.mulf %641, %640 : vector<48x128xf32>
    %643 = math.tanh %642 : vector<48x128xf32>
    %cst_503 = arith.constant 1.000000e+00 : f32
    %644 = vector.broadcast %cst_503 : f32 to vector<48x128xf32>
    %645 = arith.addf %644, %643 : vector<48x128xf32>
    %cst_504 = arith.constant 5.000000e-01 : f32
    %646 = vector.broadcast %cst_504 : f32 to vector<48x128xf32>
    %647 = arith.mulf %646, %645 : vector<48x128xf32>
    %648 = arith.mulf %635, %647 : vector<48x128xf32>
    %c0_505 = arith.constant 0 : index
    %c0_506 = arith.constant 0 : index
    %649 = vector.load %arg14[%c0_505, %c0_506] : memref<24x48xbf16, #tpu.memory_space<vmem>>, vector<24x48xbf16>
    %650 = arith.truncf %648 : vector<48x128xf32> to vector<48x128xbf16>
    %cst_507 = arith.constant dense<0.000000e+00> : vector<24x128xf32>
    %651 = tpu.matmul %649, %650, %cst_507 {dimension_numbers = #tpu.dot_dimension_numbers<[1], [0], [0], [1], [0, 0, 1, 1], [], []>} : vector<24x48xbf16>, vector<48x128xbf16>, vector<24x128xf32> -> vector<24x128xf32>
    %c0_508 = arith.constant 0 : index
    %c0_509 = arith.constant 0 : index
    %652 = vector.load %arg15[%c0_508, %c0_509] : memref<24x1xf32, #tpu.memory_space<vmem>>, vector<24x1xf32>
    %653 = vector.broadcast %652 : vector<24x1xf32> to vector<24x128xf32>
    %654 = arith.addf %651, %653 : vector<24x128xf32>
    %655 = arith.addf %629, %654 : vector<24x128xf32>
    %656 = vector.extract_strided_slice %655 {offsets = [0, 0], sizes = [24, 64], strides = [1, 1]} : vector<24x128xf32> to vector<24x64xf32>
    %c0_510 = arith.constant 0 : index
    %c0_511 = arith.constant 0 : index
    %c0_512 = arith.constant 0 : index
    %657 = vector.load %arg16[%c0_510, %c0_511, %c0_512] : memref<2x24x64xf32, #tpu.memory_space<vmem>>, vector<1x24x64xf32>
    %658 = vector.shape_cast %657 : vector<1x24x64xf32> to vector<24x64xf32>
    %659 = vector.shape_cast %656 : vector<24x64xf32> to vector<1x24x64xf32>
    tpu.vector_store %arg16[%c0_510, %c0_511, %c0_512], %659 {strides = array<i32>} : memref<2x24x64xf32, #tpu.memory_space<vmem>>, vector<1x24x64xf32>,
    %660 = vector.extract_strided_slice %655 {offsets = [0, 64], sizes = [24, 64], strides = [1, 1]} : vector<24x128xf32> to vector<24x64xf32>
    %c1_513 = arith.constant 1 : index
    %c0_514 = arith.constant 0 : index
    %c0_515 = arith.constant 0 : index
    %661 = vector.load %arg16[%c1_513, %c0_514, %c0_515] : memref<2x24x64xf32, #tpu.memory_space<vmem>>, vector<1x24x64xf32>
    %662 = vector.shape_cast %661 : vector<1x24x64xf32> to vector<24x64xf32>
    %663 = vector.shape_cast %660 : vector<24x64xf32> to vector<1x24x64xf32>
    tpu.vector_store %arg16[%c1_513, %c0_514, %c0_515], %663 {strides = array<i32>} : memref<2x24x64xf32, #tpu.memory_space<vmem>>, vector<1x24x64xf32>,
    return
  }
  func.func @transform_0(%arg0: i32) -> (i32, i32, i32) {
    %c0_i32 = arith.constant 0 : i32
    %c0_i32_0 = arith.constant 0 : i32
    %c0_i32_1 = arith.constant 0 : i32
    return %c0_i32, %c0_i32_0, %arg0 : i32, i32, i32
  }
  func.func @transform_1(%arg0: i32) -> (i32, i32, i32, i32) {
    %c0_i32 = arith.constant 0 : i32
    %c0_i32_0 = arith.constant 0 : i32
    %c0_i32_1 = arith.constant 0 : i32
    %c0_i32_2 = arith.constant 0 : i32
    return %c0_i32, %c0_i32_0, %c0_i32_1, %arg0 : i32, i32, i32, i32
  }
  func.func @transform_2(%arg0: i32) -> (i32, i32, i32, i32) {
    %c0_i32 = arith.constant 0 : i32
    %c0_i32_0 = arith.constant 0 : i32
    %c0_i32_1 = arith.constant 0 : i32
    %c0_i32_2 = arith.constant 0 : i32
    return %c0_i32, %c0_i32_0, %c0_i32_1, %arg0 : i32, i32, i32, i32
  }
  func.func @transform_3(%arg0: i32) -> (i32, i32) {
    %c0_i32 = arith.constant 0 : i32
    %c0_i32_0 = arith.constant 0 : i32
    %c0_i32_1 = arith.constant 0 : i32
    return %c0_i32, %c0_i32_0 : i32, i32
  }
  func.func @transform_4(%arg0: i32) -> (i32, i32) {
    %c0_i32 = arith.constant 0 : i32
    %c0_i32_0 = arith.constant 0 : i32
    %c0_i32_1 = arith.constant 0 : i32
    return %c0_i32, %c0_i32_0 : i32, i32
  }
  func.func @transform_5(%arg0: i32) -> (i32, i32) {
    %c0_i32 = arith.constant 0 : i32
    %c0_i32_0 = arith.constant 0 : i32
    %c0_i32_1 = arith.constant 0 : i32
    return %c0_i32, %c0_i32_0 : i32, i32
  }
  func.func @transform_6(%arg0: i32) -> (i32, i32) {
    %c0_i32 = arith.constant 0 : i32
    %c0_i32_0 = arith.constant 0 : i32
    %c0_i32_1 = arith.constant 0 : i32
    return %c0_i32, %c0_i32_0 : i32, i32
  }
  func.func @transform_7(%arg0: i32) -> (i32, i32) {
    %c0_i32 = arith.constant 0 : i32
    %c0_i32_0 = arith.constant 0 : i32
    %c0_i32_1 = arith.constant 0 : i32
    return %c0_i32, %c0_i32_0 : i32, i32
  }
  func.func @transform_8(%arg0: i32) -> (i32, i32) {
    %c0_i32 = arith.constant 0 : i32
    %c0_i32_0 = arith.constant 0 : i32
    %c0_i32_1 = arith.constant 0 : i32
    return %c0_i32, %c0_i32_0 : i32, i32
  }
  func.func @transform_9(%arg0: i32) -> (i32, i32) {
    %c0_i32 = arith.constant 0 : i32
    %c0_i32_0 = arith.constant 0 : i32
    %c0_i32_1 = arith.constant 0 : i32
    return %c0_i32, %c0_i32_0 : i32, i32
  }
  func.func @transform_10(%arg0: i32) -> (i32, i32) {
    %c0_i32 = arith.constant 0 : i32
    %c0_i32_0 = arith.constant 0 : i32
    %c0_i32_1 = arith.constant 0 : i32
    return %c0_i32, %c0_i32_0 : i32, i32
  }
  func.func @transform_11(%arg0: i32) -> (i32, i32) {
    %c0_i32 = arith.constant 0 : i32
    %c0_i32_0 = arith.constant 0 : i32
    %c0_i32_1 = arith.constant 0 : i32
    return %c0_i32, %c0_i32_0 : i32, i32
  }
  func.func @transform_12(%arg0: i32) -> (i32, i32) {
    %c0_i32 = arith.constant 0 : i32
    %c0_i32_0 = arith.constant 0 : i32
    %c0_i32_1 = arith.constant 0 : i32
    return %c0_i32, %c0_i32_0 : i32, i32
  }
  func.func @transform_13(%arg0: i32) -> (i32, i32) {
    %c0_i32 = arith.constant 0 : i32
    %c0_i32_0 = arith.constant 0 : i32
    %c0_i32_1 = arith.constant 0 : i32
    return %c0_i32, %c0_i32_0 : i32, i32
  }
  func.func @transform_14(%arg0: i32) -> (i32, i32) {
    %c0_i32 = arith.constant 0 : i32
    %c0_i32_0 = arith.constant 0 : i32
    %c0_i32_1 = arith.constant 0 : i32
    return %c0_i32, %c0_i32_0 : i32, i32
  }
  func.func @transform_15(%arg0: i32) -> (i32, i32, i32) {
    %c0_i32 = arith.constant 0 : i32
    %c0_i32_0 = arith.constant 0 : i32
    %c0_i32_1 = arith.constant 0 : i32
    return %c0_i32, %c0_i32_0, %arg0 : i32, i32, i32
  }
}

</mosaic_0001>

<bundles_post_ra>
// kernel: cross_deformable_attention_forward.1
= control target key start
LH: loop header
LB: loop body
LE: loop exit
PB: predicated region body
PF: predicated region fallthrough
CT: control target
= control target key end

     0   :  { %vm249_vm0 = vcmask 1041409   ;;  %vm252_vm1 = vcmask 1042434   ;;  %vm255_vm2 = vcmask 1043459   ;;  %vm258_vm3 = vcmask 1044484   ;;  %s13413_s17 = smov 64   ;;  %s19237_s1 = inlined_call_operand.vmem [shape: f32[2,24,9,64], index: 1, kind: input, shape index: {}]   ;;  %s19238_s0 = inlined_call_operand.vmem [shape: f32[2,24,64], index: 0, kind: input, shape index: {}]   ;;  %s19239_s4 = inlined_call_operand.vmem [shape: f32[24,1], index: 4, kind: input, shape index: {}]   ;;  %s19240_s6 = inlined_call_operand.vmem [shape: f32[24,1], index: 6, kind: input, shape index: {}]   ;;  %s19241_s5 = inlined_call_operand.vmem [shape: bf16[24,24], index: 5, kind: input, shape index: {}]   ;;  %s19242_s3 = inlined_call_operand.vmem [shape: bf16[24,24], index: 3, kind: input, shape index: {}]   ;;  %s19243_s2 = inlined_call_operand.vmem [shape: f32[2,24,9,64], index: 2, kind: input, shape index: {}]   ;;  %s19244_s8 = inlined_call_operand.vmem [shape: f32[48,1], index: 8, kind: input, shape index: {}]   ;;  %s19245_s12 = inlined_call_operand.vmem [shape: f32[48,1], index: 12, kind: input, shape index: {}]   ;;  %s19246_s14 = inlined_call_operand.vmem [shape: f32[24,1], index: 14, kind: input, shape index: {}]   ;;  %s19247_s9 = inlined_call_operand.vmem [shape: f32[12,24], index: 9, kind: input, shape index: {}]   ;;  %s19248_s7 = inlined_call_operand.vmem [shape: bf16[48,24], index: 7, kind: input, shape index: {}]   ;;  %s19249_s10 = inlined_call_operand.vmem [shape: f32[24,12], index: 10, kind: input, shape index: {}]   ;;  %s19250_s11 = inlined_call_operand.vmem [shape: bf16[48,24], index: 11, kind: input, shape index: {}]   ;;  %s19251_s13 = inlined_call_operand.vmem [shape: bf16[24,48], index: 13, kind: input, shape index: {}]   ;;  %s19252_s15 = inlined_call_operand.vmem [shape: f32[2,24,64], index: 15, kind: output, shape index: {}]  }
   0x1   :  { %v10764_v0 = vld [vmem:[%s19237_s1 + $0x190] sm:$0x1]  ;;  %v10765_v1 = vld [vmem:[%s19237_s1 + $0x1a0] sm:$0x1]  ;;  %vm261_vm4 = vcmask 1045509   ;;  %vm264_vm5 = vcmask 1046534  }
   0x2   :  { %v10766_v2 = vld [vmem:[%s19237_s1 + $0x1b0] sm:$0x1]  ;;  %v10763_v3 = vld [vmem:[%s19237_s1 + $0x180] sm:$0x1]  ;;  %vm267_vm6 = vcmask 1047559   ;;  %v324_v15 = vrot.slane %v10764_v0, 7 }
   0x3   :  { %v10767_v4 = vld [vmem:[%s19237_s1 + $0x1c0] sm:$0x1]  ;;  %v10768_v5 = vld [vmem:[%s19237_s1 + $0x1d0] sm:$0x1]  ;;  %v326_v17 = vrot.slane %v10765_v1, 6  ;;  %v328_v18 = vrot.slane %v10766_v2, 5 }
   0x4   :  { %v10769_v6 = vld [vmem:[%s19237_s1 + $0x1e0] sm:$0x1]  ;;  %v10770_v7 = vld [vmem:[%s19237_s1 + $0x1f0] sm:$0x1]  ;;  %v330_v19 = vrot.slane %v10767_v4, 4  ;;  %v332_v20 = vrot.slane %v10768_v5, 3  ;;  %v325_v21 = vsel %vm249_vm0, %v324_v15, %v10763_v3 }
   0x5   :  { %v10772_v8 = vld [vmem:[%s19237_s1 + $0x210] sm:$0x1]  ;;  %v10773_v9 = vld [vmem:[%s19237_s1 + $0x220] sm:$0x1]  ;;  %v334_v22 = vrot.slane %v10769_v6, 2  ;;  %v336_v23 = vrot.slane %v10770_v7, 1  ;;  %v327_v26 = vsel %vm252_vm1, %v326_v17, %v325_v21 }
   0x6   :  { %v10771_v10 = vld [vmem:[%s19237_s1 + $0x200] sm:$0x1]  ;;  %v10774_v11 = vld [vmem:[%s19237_s1 + $0x230] sm:$0x1]  ;;  %v338_v24 = vrot.slane %v10772_v8, 7  ;;  %v340_v27 = vrot.slane %v10773_v9, 6  ;;  %v329_v31 = vsel %vm255_vm2, %v328_v18, %v327_v26 }
   0x7   :  { %v10775_v12 = vld [vmem:[%s19237_s1 + $0x240] sm:$0x1]  ;;  %v10776_v13 = vld [vmem:[%s19237_s1 + $0x250] sm:$0x1]  ;;  %v10793_v25 = vld [vmem:[%s19237_s1 + $0x181] sm:$0x1]  ;;  %v331_v37 = vsel %vm258_vm3, %v330_v19, %v329_v31 }
   0x8   :  { %v10777_v14 = vld [vmem:[%s19237_s1 + $0x260] sm:$0x1]  ;;  %v10778_v16 = vld [vmem:[%s19237_s1 + $0x270] sm:$0x1]  ;;  %v342_v28 = vrot.slane %v10774_v11, 5  ;;  %v344_v29 = vrot.slane %v10775_v12, 4  ;;  %v339_v32 = vsel %vm249_vm0, %v338_v24, %v10771_v10  ;;  %v333_v43 = vsel %vm261_vm4, %v332_v20, %v331_v37 }
   0x9   :  { %v10794_v30 = vld [vmem:[%s19237_s1 + $0x191] sm:$0x1]  ;;  %v346_v33 = vrot.slane %v10776_v13, 3  ;;  %v348_v34 = vrot.slane %v10777_v14, 2  ;;  %v10795_v35 = vld [vmem:[%s19237_s1 + $0x1a1] sm:$0x1]  ;;  %v341_v38 = vsel %vm252_vm1, %v340_v27, %v339_v32  ;;  %v335_v49 = vsel %vm264_vm5, %v334_v22, %v333_v43 }
   0xa   :  { %v10796_v36 = vld [vmem:[%s19237_s1 + $0x1b1] sm:$0x1]  ;;  %v350_v39 = vrot.slane %v10778_v16, 1  ;;  %v10797_v40 = vld [vmem:[%s19237_s1 + $0x1c1] sm:$0x1]  ;;  %v685_v42 = vrot.slane %v10794_v30, 7  ;;  %v343_v44 = vsel %vm255_vm2, %v342_v28, %v341_v38  ;;  %v337_v55 = vsel %vm267_vm6, %v336_v23, %v335_v49 }
   0xb   :  { %v10798_v41 = vld [vmem:[%s19237_s1 + $0x1d1] sm:$0x1]  ;;  %v10799_v45 = vld [vmem:[%s19237_s1 + $0x1e1] sm:$0x1]  ;;  %v687_v47 = vrot.slane %v10795_v35, 6  ;;  %v689_v48 = vrot.slane %v10796_v36, 5  ;;  %v345_v50 = vsel %vm258_vm3, %v344_v29, %v343_v44 }
   0xc   :  { %v10800_v46 = vld [vmem:[%s19237_s1 + $0x1f1] sm:$0x1]  ;;  %v686_v51 = vsel %vm249_vm0, %v685_v42, %v10793_v25  ;;  %v691_v52 = vrot.slane %v10797_v40, 4  ;;  %v10779_v53 = vld [vmem:[%s19237_s1 + $0x280] sm:$0x1]  ;;  %v347_v56 = vsel %vm261_vm4, %v346_v33, %v345_v50  ;;  %v693_v58 = vrot.slane %v10798_v41, 3 }
   0xd   :  { %v10780_v54 = vld [vmem:[%s19237_s1 + $0x290] sm:$0x1]  ;;  %v688_v57 = vsel %vm252_vm1, %v687_v47, %v686_v51  ;;  %v10781_v59 = vld [vmem:[%s19237_s1 + $0x2a0] sm:$0x1]  ;;  %v349_v61 = vsel %vm264_vm5, %v348_v34, %v347_v56  ;;  %v695_v0 = vrot.slane %v10799_v45, 2  ;;  %v697_v1 = vrot.slane %v10800_v46, 1 }
   0xe   :  { %v10782_v60 = vld [vmem:[%s19237_s1 + $0x2b0] sm:$0x1]  ;;  %v10757_v62 = vld [vmem:[%s19238_s0 + $0x20] sm:$0xff]  ;;  %v690_v63 = vsel %vm255_vm2, %v689_v48, %v688_v57  ;;  %v351_v4 = vsel %vm267_vm6, %v350_v39, %v349_v61  ;;  %v352_v8 = vrot.slane %v10780_v54, 7  ;;  %v354_v9 = vrot.slane %v10781_v59, 6  ;;  %v10756_v29 = vld [vmem:[%s19238_s0 + $0x18] sm:$0xff] }
   0xf   :  { %v10783_v2 = vld [vmem:[%s19237_s1 + $0x2c0] sm:$0x1]  ;;  %v10784_v3 = vld [vmem:[%s19237_s1 + $0x2d0] sm:$0x1]  ;;  %v692_v5 = vsel %vm258_vm3, %v691_v52, %v690_v63  ;;  %v13184_v10 = vpack.i.bf16 %v351_v4, %v337_v55  ;;  %v356_v12 = vrot.slane %v10782_v60, 5  ;;  %vm105_vm7 = vcmask 195584  }
  0x10   :  { %v10785_v6 = vld [vmem:[%s19237_s1 + $0x2e0] sm:$0x1]  ;;  %v10786_v7 = vld [vmem:[%s19237_s1 + $0x2f0] sm:$0x1]  ;;  %v694_v11 = vsel %vm261_vm4, %v693_v58, %v692_v5  ;;  %v358_v13 = vrot.slane %v10783_v2, 4  ;;  %v353_v17 = vsel %vm249_vm0, %v352_v8, %v10779_v53  ;;  %v360_v18 = vrot.slane %v10784_v3, 3 }
  0x11   :  { %v10801_v14 = vld [vmem:[%s19237_s1 + $0x201] sm:$0x1]  ;;  %v10802_v15 = vld [vmem:[%s19237_s1 + $0x211] sm:$0x1]  ;;  %v696_v16 = vsel %vm264_vm5, %v695_v0, %v694_v11  ;;  %v362_v19 = vrot.slane %v10785_v6, 2  ;;  %13185 = vrot.lane.b32.xlu0 %v13184_v10, %s13413_s17  ;;  %v355_v23 = vsel %vm252_vm1, %v354_v9, %v353_v17  ;;  %v364_v24 = vrot.slane %v10786_v7, 1 }
  0x12   :  { %v10803_v20 = vld [vmem:[%s19237_s1 + $0x221] sm:$0x1]  ;;  %v10804_v21 = vld [vmem:[%s19237_s1 + $0x231] sm:$0x1]  ;;  %v698_v22 = vsel %vm267_vm6, %v697_v1, %v696_v16  ;;  %v699_v27 = vrot.slane %v10802_v15, 7  ;;  %v357_v30 = vsel %vm255_vm2, %v356_v12, %v355_v23  ;;  %v10758_v10 = vld [vmem:[%s19238_s0 + $0x28] sm:$0xff] }
  0x13   :  { %v10805_v25 = vld [vmem:[%s19237_s1 + $0x241] sm:$0x1]  ;;  %v10806_v26 = vld [vmem:[%s19237_s1 + $0x251] sm:$0x1]  ;;  %v13194_v28 = vpack.i.bf16 %v698_v22, %v10757_v62  ;;  %v701_v33 = vrot.slane %v10803_v20, 6  ;;  %v703_v34 = vrot.slane %v10804_v21, 5  ;;  %v359_v35 = vsel %vm258_vm3, %v358_v13, %v357_v30 }
  0x14   :  { %v10807_v31 = vld [vmem:[%s19237_s1 + $0x261] sm:$0x1]  ;;  %v10808_v32 = vld [vmem:[%s19237_s1 + $0x271] sm:$0x1]  ;;  %v700_v36 = vsel %vm249_vm0, %v699_v27, %v10801_v14  ;;  %v705_v37 = vrot.slane %v10805_v25, 4  ;;  %v707_v38 = vrot.slane %v10806_v26, 3  ;;  %v361_v41 = vsel %vm261_vm4, %v360_v18, %v359_v35 }
  0x15   :  { %v10809_v39 = vld [vmem:[%s19237_s1 + $0x281] sm:$0x1]  ;;  %v10810_v40 = vld [vmem:[%s19237_s1 + $0x291] sm:$0x1]  ;;  %13195 = vrot.lane.b32.xlu1 %v13194_v28, %s13413_s17  ;;  %v702_v42 = vsel %vm252_vm1, %v701_v33, %v700_v36  ;;  %v709_v43 = vrot.slane %v10807_v31, 2  ;;  %v711_v44 = vrot.slane %v10808_v32, 1  ;;  %v363_v47 = vsel %vm264_vm5, %v362_v19, %v361_v41 }
  0x16   :  { %v10811_v45 = vld [vmem:[%s19237_s1 + $0x2a1] sm:$0x1]  ;;  %v10812_v46 = vld [vmem:[%s19237_s1 + $0x2b1] sm:$0x1]  ;;  %v704_v48 = vsel %vm255_vm2, %v703_v34, %v702_v42  ;;  %v365_v52 = vsel %vm267_vm6, %v364_v24, %v363_v47  ;;  %v713_v55 = vrot.slane %v10810_v40, 7  ;;  %vm70_vm8 = vcmask 523264  }
  0x17   :  { %v10813_v49 = vld [vmem:[%s19237_s1 + $0x2c1] sm:$0x1]  ;;  %v10814_v50 = vld [vmem:[%s19237_s1 + $0x2d1] sm:$0x1]  ;;  %v706_v53 = vsel %vm258_vm3, %v705_v37, %v704_v48  ;;  %v715_v56 = vrot.slane %v10811_v45, 6  ;;  %v13189_v57 = vpack.i.bf16 %v10756_v29, %v365_v52  ;;  %v717_v59 = vrot.slane %v10812_v46, 5 }
  0x18   :  { %v10815_v51 = vld [vmem:[%s19237_s1 + $0x2e1] sm:$0x1]  ;;  %v10816_v54 = vld [vmem:[%s19237_s1 + $0x2f1] sm:$0x1]  ;;  %v708_v58 = vsel %vm261_vm4, %v707_v38, %v706_v53  ;;  %v719_v60 = vrot.slane %v10813_v49, 4  ;;  %v714_v63 = vsel %vm249_vm0, %v713_v55, %v10809_v39  ;;  %v721_v0 = vrot.slane %v10814_v50, 3 }
  0x19   :  { %v10822_v61 = vld [vmem:[%s19237_s1 + $0x192] sm:$0x1]  ;;  %v710_v62 = vsel %vm264_vm5, %v709_v43, %v708_v58  ;;  %v723_v1 = vrot.slane %v10815_v51, 2  ;;  %v10821_v2 = vld [vmem:[%s19237_s1 + $0x182] sm:$0x1]  ;;  %13190 = vrot.lane.b32.xlu0 %v13189_v57, %s13413_s17  ;;  %v716_v5 = vsel %vm252_vm1, %v715_v56, %v714_v63  ;;  %v725_v6 = vrot.slane %v10816_v54, 1 }
  0x1a   :  { %v10823_v3 = vld [vmem:[%s19237_s1 + $0x1a2] sm:$0x1]  ;;  %v712_v4 = vsel %vm267_vm6, %v711_v44, %v710_v62  ;;  %v10824_v7 = vld [vmem:[%s19237_s1 + $0x1b2] sm:$0x1]  ;;  %v1013_v9 = vrot.slane %v10822_v61, 7  ;;  %v718_v11 = vsel %vm255_vm2, %v717_v59, %v716_v5  ;;  %vm112_vm9 = vcmask 1043456  }
  0x1b   :  { %v10825_v8 = vld [vmem:[%s19237_s1 + $0x1c2] sm:$0x1]  ;;  %729 = vrot.lane.b32.xlu1 %v712_v4, %s13413_s17  ;;  %v10826_v12 = vld [vmem:[%s19237_s1 + $0x1d2] sm:$0x1]  ;;  %v720_v15 = vsel %vm258_vm3, %v719_v60, %v718_v11  ;;  %v1015_v27 = vrot.slane %v10823_v3, 6  ;;  %v1017_v28 = vrot.slane %v10824_v7, 5 }
  0x1c   :  { %v10827_v13 = vld [vmem:[%s19237_s1 + $0x1e2] sm:$0x1]  ;;  %v10828_v14 = vld [vmem:[%s19237_s1 + $0x1f2] sm:$0x1]  ;;  %v722_v19 = vsel %vm261_vm4, %v721_v0, %v720_v15  ;;  %v1014_v24 = vsel %vm249_vm0, %v1013_v9, %v10821_v2  ;;  %v1019_v29 = vrot.slane %v10825_v8, 4  ;;  %v1021_v31 = vrot.slane %v10826_v12, 3 }
  0x1d   :  { %v10830_v16 = vld [vmem:[%s19237_s1 + $0x212] sm:$0x1]  ;;  %v10831_v17 = vld [vmem:[%s19237_s1 + $0x222] sm:$0x1]  ;;  %v724_v25 = vsel %vm264_vm5, %v723_v1, %v722_v19  ;;  %v1023_v32 = vrot.slane %v10827_v13, 2  ;;  %v1025_v33 = vrot.slane %v10828_v14, 1  ;;  %v1016_v36 = vsel %vm252_vm1, %v1015_v27, %v1014_v24 }
  0x1e   :  { %v10832_v18 = vld [vmem:[%s19237_s1 + $0x232] sm:$0x1]  ;;  %v10829_v20 = vld [vmem:[%s19237_s1 + $0x202] sm:$0x1]  ;;  %v726_v30 = vsel %vm267_vm6, %v725_v6, %v724_v25  ;;  %v1027_v37 = vrot.slane %v10830_v16, 7  ;;  %v1029_v38 = vrot.slane %v10831_v17, 6  ;;  %v1018_v41 = vsel %vm255_vm2, %v1017_v28, %v1016_v36 }
  0x1f   :  { %v10833_v21 = vld [vmem:[%s19237_s1 + $0x242] sm:$0x1]  ;;  %v10834_v22 = vld [vmem:[%s19237_s1 + $0x252] sm:$0x1]  ;;  %v13199_v35 = vpack.i.bf16 %v726_v30, %v10758_v10  ;;  %v1031_v42 = vrot.slane %v10832_v18, 5  ;;  %v1020_v46 = vsel %vm258_vm3, %v1019_v29, %v1018_v41  ;;  %vm13416_vm10 = vmmov 0  }
  0x20   :  { %v10835_v23 = vld [vmem:[%s19237_s1 + $0x262] sm:$0x1]  ;;  %v10836_v26 = vld [vmem:[%s19237_s1 + $0x272] sm:$0x1]  ;;  %v1033_v43 = vrot.slane %v10833_v21, 4  ;;  %v1035_v44 = vrot.slane %v10834_v22, 3  ;;  %v1028_v47 = vsel %vm249_vm0, %v1027_v37, %v10829_v20  ;;  %v1022_v52 = vsel %vm261_vm4, %v1021_v31, %v1020_v46 }
  0x21   :  { %v10838_v34 = vld [vmem:[%s19237_s1 + $0x292] sm:$0x1]  ;;  %v10839_v39 = vld [vmem:[%s19237_s1 + $0x2a2] sm:$0x1]  ;;  %13200 = vrot.lane.b32.xlu0 %v13199_v35, %s13413_s17  ;;  %v1037_v48 = vrot.slane %v10835_v23, 2  ;;  %v1039_v49 = vrot.slane %v10836_v26, 1  ;;  %v1030_v53 = vsel %vm252_vm1, %v1029_v38, %v1028_v47  ;;  %v1024_v58 = vsel %vm264_vm5, %v1023_v32, %v1022_v52 }
  0x22   :  { %v10840_v40 = vld [vmem:[%s19237_s1 + $0x2b2] sm:$0x1]  ;;  %v10841_v45 = vld [vmem:[%s19237_s1 + $0x2c2] sm:$0x1]  ;;  %v1041_v56 = vrot.slane %v10838_v34, 7  ;;  %v1043_v57 = vrot.slane %v10839_v39, 6  ;;  %v1032_v59 = vsel %vm255_vm2, %v1031_v42, %v1030_v53  ;;  %v1026_v62 = vsel %vm267_vm6, %v1025_v33, %v1024_v58 }
  0x23   :  { %v10837_v50 = vld [vmem:[%s19237_s1 + $0x282] sm:$0x1]  ;;  %v10842_v51 = vld [vmem:[%s19237_s1 + $0x2d2] sm:$0x1]  ;;  %v1045_v60 = vrot.slane %v10840_v40, 5  ;;  %v1047_v61 = vrot.slane %v10841_v45, 4  ;;  %v1034_v63 = vsel %vm258_vm3, %v1033_v43, %v1032_v59 }
  0x24   :  { %v10843_v54 = vld [vmem:[%s19237_s1 + $0x2e2] sm:$0x1]  ;;  %v10844_v55 = vld [vmem:[%s19237_s1 + $0x2f2] sm:$0x1]  ;;  %v1042_v0 = vsel %vm249_vm0, %v1041_v56, %v10837_v50  ;;  %v1049_v1 = vrot.slane %v10842_v51, 3  ;;  %v1036_v4 = vsel %vm261_vm4, %v1035_v44, %v1034_v63  ;;  %vm13418_vm11 = vmmov 1  }
  0x25   :  { %v10850_v2 = vld [vmem:[%s19237_s1 + $0x193] sm:$0x1]  ;;  %v10851_v3 = vld [vmem:[%s19237_s1 + $0x1a3] sm:$0x1]  ;;  %v1044_v5 = vsel %vm252_vm1, %v1043_v57, %v1042_v0  ;;  %v1051_v6 = vrot.slane %v10843_v54, 2  ;;  %v1053_v7 = vrot.slane %v10844_v55, 1  ;;  %v1038_v10 = vsel %vm264_vm5, %v1037_v48, %v1036_v4  ;;  %vm17997_vm12 = vmpackc.low %vm112_vm9, %vm13418_vm11 }
  0x26   :  { %v10852_v8 = vld [vmem:[%s19237_s1 + $0x1b3] sm:$0x1]  ;;  %v10853_v9 = vld [vmem:[%s19237_s1 + $0x1c3] sm:$0x1]  ;;  %v1046_v11 = vsel %vm255_vm2, %v1045_v60, %v1044_v5  ;;  %v1040_v16 = vsel %vm267_vm6, %v1039_v49, %v1038_v10  ;;  %v1341_v29 = vrot.slane %v10850_v2, 7  ;;  %v1343_v30 = vrot.slane %v10851_v3, 6 }
  0x27   :  { %v10849_v12 = vld [vmem:[%s19237_s1 + $0x183] sm:$0x1]  ;;  %v10854_v13 = vld [vmem:[%s19237_s1 + $0x1d3] sm:$0x1]  ;;  %v1048_v17 = vsel %vm258_vm3, %v1047_v61, %v1046_v11  ;;  %v13204_v21 = vpack.i.bf16 %v1040_v16, %v1026_v62  ;;  %v1345_v31 = vrot.slane %v10852_v8, 5  ;;  %v1347_v33 = vrot.slane %v10853_v9, 4 }
  0x28   :  { %v10855_v14 = vld [vmem:[%s19237_s1 + $0x1e3] sm:$0x1]  ;;  %v10856_v15 = vld [vmem:[%s19237_s1 + $0x1f3] sm:$0x1]  ;;  %v1050_v22 = vsel %vm261_vm4, %v1049_v1, %v1048_v17  ;;  %v1349_v34 = vrot.slane %v10854_v13, 3  ;;  %v1342_v37 = vsel %vm249_vm0, %v1341_v29, %v10849_v12  ;;  %vm6330_vm13 = vcmask 97280  }
  0x29   :  { %v10858_v18 = vld [vmem:[%s19237_s1 + $0x213] sm:$0x1]  ;;  %v10859_v19 = vld [vmem:[%s19237_s1 + $0x223] sm:$0x1]  ;;  %v1052_v27 = vsel %vm264_vm5, %v1051_v6, %v1050_v22  ;;  %13205 = vrot.lane.b32.xlu1 %v13204_v21, %s13413_s17  ;;  %v1351_v35 = vrot.slane %v10855_v14, 2  ;;  %v1353_v38 = vrot.slane %v10856_v15, 1  ;;  %v1344_v43 = vsel %vm252_vm1, %v1343_v30, %v1342_v37 }
  0x2a   :  { %v10860_v20 = vld [vmem:[%s19237_s1 + $0x233] sm:$0x1]  ;;  %v10857_v23 = vld [vmem:[%s19237_s1 + $0x203] sm:$0x1]  ;;  %v1054_v32 = vsel %vm267_vm6, %v1053_v7, %v1052_v27  ;;  %v1355_v39 = vrot.slane %v10858_v18, 7  ;;  %v1357_v40 = vrot.slane %v10859_v19, 6  ;;  %v1346_v48 = vsel %vm255_vm2, %v1345_v31, %v1344_v43 }
  0x2b   :  { %v10861_v24 = vld [vmem:[%s19237_s1 + $0x243] sm:$0x1]  ;;  %v10862_v25 = vld [vmem:[%s19237_s1 + $0x253] sm:$0x1]  ;;  %1059 = vrot.lane.b32.xlu0 %v1054_v32, %s13413_s17  ;;  %v1359_v44 = vrot.slane %v10860_v20, 5  ;;  %v1348_v54 = vsel %vm258_vm3, %v1347_v33, %v1346_v48  ;;  %vm10675_vm14 = vcmask 392192  }
  0x2c   :  { %v10863_v26 = vld [vmem:[%s19237_s1 + $0x263] sm:$0x1]  ;;  %v10864_v28 = vld [vmem:[%s19237_s1 + $0x273] sm:$0x1]  ;;  %v1361_v45 = vrot.slane %v10861_v24, 4  ;;  %v1363_v46 = vrot.slane %v10862_v25, 3  ;;  %v1356_v49 = vsel %vm249_vm0, %v1355_v39, %v10857_v23  ;;  %v1350_v59 = vsel %vm261_vm4, %v1349_v34, %v1348_v54 }
  0x2d   :  { %v10866_v36 = vld [vmem:[%s19237_s1 + $0x293] sm:$0x1]  ;;  %v10865_v41 = vld [vmem:[%s19237_s1 + $0x283] sm:$0x1]  ;;  %v1365_v50 = vrot.slane %v10863_v26, 2  ;;  %v1367_v51 = vrot.slane %v10864_v28, 1  ;;  %v1358_v55 = vsel %vm252_vm1, %v1357_v40, %v1356_v49  ;;  %v1352_v1 = vsel %vm264_vm5, %v1351_v35, %v1350_v59 }
  0x2e   :  { %v10867_v42 = vld [vmem:[%s19237_s1 + $0x2a3] sm:$0x1]  ;;  %v10868_v47 = vld [vmem:[%s19237_s1 + $0x2b3] sm:$0x1]  ;;  %v1369_v57 = vrot.slane %v10866_v36, 7  ;;  %v1360_v60 = vsel %vm255_vm2, %v1359_v44, %v1358_v55  ;;  %v1354_v5 = vsel %vm267_vm6, %v1353_v38, %v1352_v1 }
  0x2f   :  { %v10869_v52 = vld [vmem:[%s19237_s1 + $0x2c3] sm:$0x1]  ;;  %v10870_v53 = vld [vmem:[%s19237_s1 + $0x2d3] sm:$0x1]  ;;  %v1371_v58 = vrot.slane %v10867_v42, 6  ;;  %v1373_v62 = vrot.slane %v10868_v47, 5  ;;  %v1362_v2 = vsel %vm258_vm3, %v1361_v45, %v1360_v60 }
  0x30   :  { %v10871_v56 = vld [vmem:[%s19237_s1 + $0x2e3] sm:$0x1]  ;;  %v10872_v61 = vld [vmem:[%s19237_s1 + $0x2f3] sm:$0x1]  ;;  %v1375_v63 = vrot.slane %v10869_v52, 4  ;;  %v1370_v3 = vsel %vm249_vm0, %v1369_v57, %v10865_v41  ;;  %v1377_v4 = vrot.slane %v10870_v53, 3  ;;  %v1364_v6 = vsel %vm261_vm4, %v1363_v46, %v1362_v2 }
  0x31   :  { %v10878_v0 = vld [vmem:[%s19237_s1 + $0x194] sm:$0x1]  ;;  %v1372_v7 = vsel %vm252_vm1, %v1371_v58, %v1370_v3  ;;  %v1379_v8 = vrot.slane %v10871_v56, 2  ;;  %v10877_v9 = vld [vmem:[%s19237_s1 + $0x184] sm:$0x1]  ;;  %v1366_v10 = vsel %vm264_vm5, %v1365_v50, %v1364_v6  ;;  %v1381_v12 = vrot.slane %v10872_v61, 1 }
  0x32   :  { %v1374_v11 = vsel %vm255_vm2, %v1373_v62, %v1372_v7  ;;  %v10879_v13 = vld [vmem:[%s19237_s1 + $0x1a4] sm:$0x1]  ;;  %v10880_v14 = vld [vmem:[%s19237_s1 + $0x1b4] sm:$0x1]  ;;  %v1669_v15 = vrot.slane %v10878_v0, 7  ;;  %v1368_v16 = vsel %vm267_vm6, %v1367_v51, %v1366_v10 }
  0x33   :  { %v1376_v17 = vsel %vm258_vm3, %v1375_v63, %v1374_v11  ;;  %v10881_v18 = vld [vmem:[%s19237_s1 + $0x1c4] sm:$0x1]  ;;  %v10882_v19 = vld [vmem:[%s19237_s1 + $0x1d4] sm:$0x1]  ;;  %v13209_v21 = vpack.i.bf16 %v1368_v16, %v1354_v5  ;;  %v1671_v31 = vrot.slane %v10879_v13, 6  ;;  %v1673_v32 = vrot.slane %v10880_v14, 5 }
  0x34   :  { %v10883_v20 = vld [vmem:[%s19237_s1 + $0x1e4] sm:$0x1]  ;;  %v1378_v22 = vsel %vm261_vm4, %v1377_v4, %v1376_v17  ;;  %v10884_v23 = vld [vmem:[%s19237_s1 + $0x1f4] sm:$0x1]  ;;  %v1670_v27 = vsel %vm249_vm0, %v1669_v15, %v10877_v9  ;;  %v1675_v36 = vrot.slane %v10881_v18, 4  ;;  %v1677_v37 = vrot.slane %v10882_v19, 3 }
  0x35   :  { %v10885_v24 = vld [vmem:[%s19237_s1 + $0x204] sm:$0x1]  ;;  %v10886_v25 = vld [vmem:[%s19237_s1 + $0x214] sm:$0x1]  ;;  %v1380_v28 = vsel %vm264_vm5, %v1379_v8, %v1378_v22  ;;  %13210 = vrot.lane.b32.xlu1 %v13209_v21, %s13413_s17  ;;  %v1672_v39 = vsel %vm252_vm1, %v1671_v31, %v1670_v27  ;;  %v1679_v40 = vrot.slane %v10883_v20, 2  ;;  %v1681_v49 = vrot.slane %v10884_v23, 1 }
  0x36   :  { %v10887_v26 = vld [vmem:[%s19237_s1 + $0x224] sm:$0x1]  ;;  %v10888_v29 = vld [vmem:[%s19237_s1 + $0x234] sm:$0x1]  ;;  %v1382_v33 = vsel %vm267_vm6, %v1381_v12, %v1380_v28  ;;  %v1683_v41 = vrot.slane %v10886_v25, 7  ;;  %v1674_v43 = vsel %vm255_vm2, %v1673_v32, %v1672_v39 }
  0x37   :  { %v10889_v30 = vld [vmem:[%s19237_s1 + $0x244] sm:$0x1]  ;;  %v10890_v34 = vld [vmem:[%s19237_s1 + $0x254] sm:$0x1]  ;;  %1387 = vrot.lane.b32.xlu0 %v1382_v33, %s13413_s17  ;;  %v1685_v42 = vrot.slane %v10887_v26, 6  ;;  %v1687_v44 = vrot.slane %v10888_v29, 5  ;;  %v1676_v48 = vsel %vm258_vm3, %v1675_v36, %v1674_v43 }
  0x38   :  { %v10891_v35 = vld [vmem:[%s19237_s1 + $0x264] sm:$0x1]  ;;  %v10892_v38 = vld [vmem:[%s19237_s1 + $0x274] sm:$0x1]  ;;  %v1689_v45 = vrot.slane %v10889_v30, 4  ;;  %v1684_v50 = vsel %vm249_vm0, %v1683_v41, %v10885_v24  ;;  %v1691_v51 = vrot.slane %v10890_v34, 3  ;;  %v1678_v54 = vsel %vm261_vm4, %v1677_v37, %v1676_v48 }
  0x39   :  { %v10894_v46 = vld [vmem:[%s19237_s1 + $0x294] sm:$0x1]  ;;  %v10895_v47 = vld [vmem:[%s19237_s1 + $0x2a4] sm:$0x1]  ;;  %v1686_v55 = vsel %vm252_vm1, %v1685_v42, %v1684_v50  ;;  %v1693_v56 = vrot.slane %v10891_v35, 2  ;;  %v1695_v57 = vrot.slane %v10892_v38, 1  ;;  %v1680_v60 = vsel %vm264_vm5, %v1679_v40, %v1678_v54 }
  0x3a   :  { %v10896_v52 = vld [vmem:[%s19237_s1 + $0x2b4] sm:$0x1]  ;;  %v10897_v53 = vld [vmem:[%s19237_s1 + $0x2c4] sm:$0x1]  ;;  %v1688_v61 = vsel %vm255_vm2, %v1687_v44, %v1686_v55  ;;  %v1697_v63 = vrot.slane %v10894_v46, 7  ;;  %v1699_v0 = vrot.slane %v10895_v47, 6  ;;  %v1682_v5 = vsel %vm267_vm6, %v1681_v49, %v1680_v60 }
  0x3b   :  { %v10893_v58 = vld [vmem:[%s19237_s1 + $0x284] sm:$0x1]  ;;  %v10898_v59 = vld [vmem:[%s19237_s1 + $0x2d4] sm:$0x1]  ;;  %v1690_v1 = vsel %vm258_vm3, %v1689_v45, %v1688_v61  ;;  %v1701_v3 = vrot.slane %v10896_v52, 5  ;;  %v1703_v4 = vrot.slane %v10897_v53, 4 }
  0x3c   :  { %v10899_v62 = vld [vmem:[%s19237_s1 + $0x2e4] sm:$0x1]  ;;  %v10900_v2 = vld [vmem:[%s19237_s1 + $0x2f4] sm:$0x1]  ;;  %v1692_v6 = vsel %vm261_vm4, %v1691_v51, %v1690_v1  ;;  %v1698_v7 = vsel %vm249_vm0, %v1697_v63, %v10893_v58  ;;  %v1705_v8 = vrot.slane %v10898_v59, 3  ;;  %v80_v44 = vld [vmem:[%s19239_s4 + $0x8] sm:$0xff] }
  0x3d   :  { %v1694_v9 = vsel %vm264_vm5, %v1693_v56, %v1692_v6  ;;  %v1700_v10 = vsel %vm252_vm1, %v1699_v0, %v1698_v7  ;;  %v1707_v11 = vrot.slane %v10899_v62, 2  ;;  %v1709_v14 = vrot.slane %v10900_v2, 1  ;;  %v192_v17 = vld [vmem:[%s19237_s1 + $0x110] sm:$0x1]  ;;  %v193_v19 = vld [vmem:[%s19237_s1 + $0x120] sm:$0x1] }
  0x3e   :  { %v1696_v12 = vsel %vm267_vm6, %v1695_v57, %v1694_v9  ;;  %v1702_v13 = vsel %vm255_vm2, %v1701_v3, %v1700_v10  ;;  %v13991_v21 = vld [vmem:[%s19237_s1 + $0x130] sm:$0x1]  ;;  %v13996_v22 = vld [vmem:[%s19237_s1 + $0x140] sm:$0x1]  ;;  %v283_v26 = vrot.slane %v192_v17, 7  ;;  %v285_v31 = vrot.slane %v193_v19, 6 }
  0x3f   :  { %v13214_v15 = vpack.i.bf16 %v1696_v12, %v1682_v5  ;;  %v1704_v16 = vsel %vm258_vm3, %v1703_v4, %v1702_v13  ;;  %v176_v23 = vld [vmem:[%s19237_s1 + $0x10] sm:$0x1]  ;;  %v191_v25 = vld [vmem:[%s19237_s1 + $0x100] sm:$0x1]  ;;  %v287_v32 = vrot.slane %v13991_v21, 5  ;;  %v289_v33 = vrot.slane %v13996_v22, 4 }
  0x40   :  { %v1706_v18 = vsel %vm261_vm4, %v1705_v8, %v1704_v16  ;;  %v14009_v27 = vld [vmem:[%s19237_s1 + $0x150] sm:$0x1]  ;;  %v14014_v28 = vld [vmem:[%s19237_s1 + $0x160] sm:$0x1]  ;;  %v248_v35 = vrot.slane %v176_v23, 7  ;;  %v284_v39 = vsel %vm249_vm0, %v283_v26, %v191_v25  ;;  %v13414_v0 = vmov 0  }
  0x41   :  { %13215 = vrot.lane.b32.xlu1 %v13214_v15, %s13413_s17  ;;  %v1708_v20 = vsel %vm264_vm5, %v1707_v11, %v1706_v18  ;;  %v175_v29 = vld [vmem:[%s19237_s1] sm:$0x1]  ;;  %v14022_v30 = vld [vmem:[%s19237_s1 + $0x170] sm:$0x1]  ;;  %v291_v45 = vrot.slane %v14009_v27, 3  ;;  %v293_v50 = vrot.slane %v14014_v28, 2  ;;  %v286_v55 = vsel %vm252_vm1, %v285_v31, %v284_v39  ;;  %13220 = vset.pattern.permute.xlu0 %v13414_v0 }
  0x42   :  { %v1710_v24 = vsel %vm267_vm6, %v1709_v14, %v1708_v20  ;;  %v177_v34 = vld [vmem:[%s19237_s1 + $0x20] sm:$0x1]  ;;  %v178_v36 = vld [vmem:[%s19237_s1 + $0x30] sm:$0x1]  ;;  %v250_v53 = vsel %vm249_vm0, %v248_v35, %v175_v29  ;;  %v295_v56 = vrot.slane %v14022_v30, 1  ;;  %13219 = vset.pattern.permute.xlu1 %v13414_v0  ;;  %v288_v13 = vsel %vm255_vm2, %v287_v32, %v286_v55  ;;  %v170_v21 = vld [vmem:[%s19240_s6 + $0x8] sm:$0xff] }
  0x43   :  { %1715 = vrot.lane.b32.xlu0 %v1710_v24, %s13413_s17  ;;  %v14035_v37 = vld [vmem:[%s19237_s1 + $0x40] sm:$0x1]  ;;  %v184_v38 = vld [vmem:[%s19237_s1 + $0x90] sm:$0x1]  ;;  %v251_v49 = vrot.slane %v177_v34, 6  ;;  %v254_v60 = vrot.slane %v178_v36, 5  ;;  %v290_v32 = vsel %vm258_vm3, %v289_v33, %v288_v13 }
  0x44   :  { %v14044_v40 = vld [vmem:[%s19237_s1 + $0x50] sm:$0x1]  ;;  %v14049_v41 = vld [vmem:[%s19237_s1 + $0x60] sm:$0x1]  ;;  %v269_v54 = vrot.slane %v184_v38, 7  ;;  %v257_v61 = vrot.slane %v14035_v37, 4 }
  0x45   :  { %v14054_v42 = vld [vmem:[%s19237_s1 + $0x70] sm:$0x1]  ;;  %v79_v43 = vld [vmem:[%s19239_s4] sm:$0xff]  ;;  %v545_v58 = vld [vmem:[%s19237_s1 + $0x11] sm:$0x1]  ;;  %v260_v62 = vrot.slane %v14044_v40, 3  ;;  %v253_v2 = vsel %vm252_vm1, %v251_v49, %v250_v53 }
  0x46   :  { %v183_v46 = vld [vmem:[%s19237_s1 + $0x80] sm:$0x1]  ;;  %v14072_v48 = vld [vmem:[%s19237_s1 + $0xb0] sm:$0x1]  ;;  %v263_v63 = vrot.slane %v14049_v41, 2  ;;  %v266_v3 = vrot.slane %v14054_v42, 1  ;;  %84 = vperm.xlu1 %13219, %v79_v43   ;;  %v256_v23 = vsel %vm255_vm2, %v254_v60, %v253_v2 }
  0x47   :  { %v185_v47 = vld [vmem:[%s19237_s1 + $0xa0] sm:$0x1]  ;;  %v14083_v52 = vld [vmem:[%s19237_s1 + $0xd0] sm:$0x1]  ;;  %v544_v5 = vld [vmem:[%s19237_s1 + $0x1] sm:$0x1]  ;;  %89 = vperm.xlu0 %13220, %v80_v44   ;;  %v270_v7 = vsel %vm249_vm0, %v269_v54, %v183_v46 }
  0x48   :  { %v14078_v51 = vld [vmem:[%s19237_s1 + $0xc0] sm:$0x1]  ;;  %v14099_v59 = vld [vmem:[%s19237_s1 + $0xf0] sm:$0x1]  ;;  %v271_v4 = vrot.slane %v185_v47, 6  ;;  %v273_v8 = vrot.slane %v14072_v48, 5  ;;  %v259_v48 = vsel %vm258_vm3, %v257_v61, %v256_v23 }
  0x49   :  { %v14091_v57 = vld [vmem:[%s19237_s1 + $0xe0] sm:$0x1]  ;;  %v546_v6 = vld [vmem:[%s19237_s1 + $0x21] sm:$0x1]  ;;  %v275_v9 = vrot.slane %v14078_v51, 4  ;;  %v616_v11 = vrot.slane %v545_v58, 7 }
  0x4a   :  { %v169_v1 = vld [vmem:[%s19240_s6] sm:$0xff]  ;;  %v547_v10 = vld [vmem:[%s19237_s1 + $0x31] sm:$0x1]  ;;  %v277_v14 = vrot.slane %v14083_v52, 3  ;;  %v279_v15 = vrot.slane %v14091_v57, 2  ;;  %v272_v24 = vsel %vm252_vm1, %v271_v4, %v270_v7  ;;  %v281_v25 = vrot.slane %v14099_v59, 1 }
  0x4b   :  { %v81_v12 = vld [vmem:[%s19239_s4 + $0x10] sm:$0xff]  ;;  %v14130_v16 = vld [vmem:[%s19237_s1 + $0x41] sm:$0x1]  ;;  %v618_v31 = vrot.slane %v546_v6, 6  ;;  %382 = vperm.xlu1 %13219, %v169_v1   ;;  %v617_v36 = vsel %vm249_vm0, %v616_v11, %v544_v5  ;;  %v620_v38 = vrot.slane %v547_v10, 5  ;;  %v274_v49 = vsel %vm255_vm2, %v273_v8, %v272_v24 }
  0x4c   :  { %v14135_v17 = vld [vmem:[%s19237_s1 + $0x51] sm:$0x1]  ;;  %v14140_v18 = vld [vmem:[%s19237_s1 + $0x61] sm:$0x1]  ;;  %94 = vperm.xlu0 %13220, %v81_v12   ;;  %v622_v39 = vrot.slane %v14130_v16, 4  ;;  %v292_v7 = vsel %vm261_vm4, %v291_v45, %v290_v32  ;;  %v262_v8 = vsel %vm261_vm4, %v260_v62, %v259_v48  ;;  %v276_v10 = vsel %vm258_vm3, %v275_v9, %v274_v49 }
  0x4d   :  { %v14145_v19 = vld [vmem:[%s19237_s1 + $0x71] sm:$0x1]  ;;  %v554_v26 = vld [vmem:[%s19237_s1 + $0xa1] sm:$0x1]  ;;  %v624_v43 = vrot.slane %v14135_v17, 3  ;;  %v626_v44 = vrot.slane %v14140_v18, 2  ;;  %v619_v58 = vsel %vm252_vm1, %v618_v31, %v617_v36  ;;  %v294_v23 = vsel %vm264_vm5, %v293_v50, %v292_v7 }
  0x4e   :  { %v553_v20 = vld [vmem:[%s19237_s1 + $0x91] sm:$0x1]  ;;  %v14170_v34 = vld [vmem:[%s19237_s1 + $0xc1] sm:$0x1]  ;;  %v628_v51 = vrot.slane %v14145_v19, 1  ;;  %v632_v60 = vrot.slane %v554_v26, 6  ;;  %v621_v13 = vsel %vm255_vm2, %v620_v38, %v619_v58  ;;  %v265_v24 = vsel %vm264_vm5, %v263_v63, %v262_v8 }
  0x4f   :  { %v14162_v29 = vld [vmem:[%s19237_s1 + $0xb1] sm:$0x1]  ;;  %v552_v22 = vld [vmem:[%s19237_s1 + $0x81] sm:$0x1]  ;;  %v630_v53 = vrot.slane %v553_v20, 7  ;;  %387 = vperm.xlu1 %13219, %v170_v21   ;;  %v636_v4 = vrot.slane %v14170_v34, 4  ;;  %v278_v26 = vsel %vm261_vm4, %v277_v14, %v276_v10  ;;  %v623_v41 = vsel %vm258_vm3, %v622_v39, %v621_v13 }
  0x50   :  { %v14175_v35 = vld [vmem:[%s19237_s1 + $0xd1] sm:$0x1]  ;;  %v14187_v33 = vld [vmem:[%s19237_s1 + $0xe1] sm:$0x1]  ;;  %v634_v2 = vrot.slane %v14162_v29, 5 }
  0x51   :  { %v561_v37 = vld [vmem:[%s19237_s1 + $0x111] sm:$0x1]  ;;  %v14195_v46 = vld [vmem:[%s19241_s5] sm:$0xff]   ;;  %v638_v5 = vrot.slane %v14175_v35, 3  ;;  %v640_v6 = vrot.slane %v14187_v33, 2  ;;  %v631_v27 = vsel %vm249_vm0, %v630_v53, %v552_v22 }
  0x52   :  { %v13288_v47 = vld [vmem:[%s19242_s3] sm:$0xff]   ;;  %v644_v0 = vrot.slane %v561_v37, 7  ;;  %v171_v61 = vld [vmem:[%s19240_s6 + $0x10] sm:$0xff]  ;;  %11914 = vmatprep.mubr.msk.bf16.mxu1 %vm105_vm7, %v14195_v46  ;;  %v633_v50 = vsel %vm252_vm1, %v632_v60, %v631_v27 }
  0x53   :  { %v560_v54 = vld [vmem:[%s19237_s1 + $0x101] sm:$0x1]  ;;  %v14216_v1 = vld [vmem:[%s19237_s1 + $0xf1] sm:$0x1]  ;;  %11906 = vmatprep.mubr.msk.bf16.mxu0 %vm105_vm7, %v13288_v47  ;;  %v888_v20 = vld [vmem:[%s19237_s1 + $0x102] sm:$0x1]  ;;  %392 = vperm.xlu1 %13219, %v171_v61   ;;  %v625_v61 = vsel %vm261_vm4, %v624_v43, %v623_v41  ;;  %v635_v57 = vsel %vm255_vm2, %v634_v2, %v633_v50  ;;  %v14344_v2 = vsel %vm267_vm6, %v295_v56, %v294_v23 }
  0x54   :  { %v562_v55 = vld [vmem:[%s19237_s1 + $0x121] sm:$0x1]  ;;  %v563_v11 = vld [vmem:[%s19237_s1 + $0x131] sm:$0x1]  ;;  %v645_v16 = vsel %vm249_vm0, %v644_v0, %v560_v54  ;;  %v889_v21 = vld [vmem:[%s19237_s1 + $0x112] sm:$0x1]  ;;  %v280_v0 = vsel %vm264_vm5, %v279_v15, %v278_v26  ;;  %v14371_v56 = vsel %vm264_vm5, %v626_v44, %v625_v61  ;;  %v637_v59 = vsel %vm258_vm3, %v636_v4, %v635_v57 }
  0x55   :  { %v14235_v12 = vld [vmem:[%s19237_s1 + $0x141] sm:$0x1]  ;;  %v14242_v40 = vld [vmem:[%s19237_s1 + $0x151] sm:$0x1]  ;;  %v646_v62 = vrot.slane %v562_v55, 6  ;;  %v642_v52 = vrot.slane %v14216_v1, 1  ;;  %v14366_v42 = vsel %vm267_vm6, %v281_v25, %v280_v0  ;;  %v639_v57 = vsel %vm261_vm4, %v638_v5, %v637_v59 }
  0x56   :  { %v14247_v45 = vld [vmem:[%s19237_s1 + $0x161] sm:$0x1]  ;;  %v14252_v9 = vld [vmem:[%s19237_s1 + $0x171] sm:$0x1]  ;;  %v890_v29 = vld [vmem:[%s19237_s1 + $0x122] sm:$0x1] }
  0x57   :  { %v891_v31 = vld [vmem:[%s19237_s1 + $0x132] sm:$0x1]  ;;  %v14282_v28 = vld [vmem:[%s19237_s1 + $0x142] sm:$0x1]  ;;  %v972_v32 = vrot.slane %v889_v21, 7  ;;  %v647_v36 = vsel %vm252_vm1, %v646_v62, %v645_v16  ;;  %v648_v37 = vrot.slane %v563_v11, 5 }
  0x58   :  { %v14290_v63 = vld [vmem:[%s19237_s1 + $0x152] sm:$0x1]  ;;  %v14295_v14 = vld [vmem:[%s19237_s1 + $0x162] sm:$0x1]  ;;  %v650_v22 = vrot.slane %v14235_v12, 4  ;;  %v652_v38 = vrot.slane %v14242_v40, 3  ;;  %v14349_v12 = vsel %vm267_vm6, %v266_v3, %v265_v24 }
  0x59   :  { %v654_v39 = vrot.slane %v14247_v45, 2  ;;  %v656_v47 = vrot.slane %v14252_v9, 1  ;;  %v974_v48 = vrot.slane %v890_v29, 6  ;;  %v976_v49 = vrot.slane %v891_v31, 5  ;;  %v14305_v53 = vld [vmem:[%s19237_s1 + $0x172] sm:$0x1] }
  0x5a   :  { %v973_v54 = vsel %vm249_vm0, %v972_v32, %v888_v20  ;;  %v978_v55 = vrot.slane %v14282_v28, 4  ;;  %v980_v58 = vrot.slane %v14290_v63, 3  ;;  %v982_v60 = vrot.slane %v14295_v14, 2  ;;  %v872_v7 = vld [vmem:[%s19237_s1 + $0x2] sm:$0x1] }
  0x5b   :  { %v873_v8 = vld [vmem:[%s19237_s1 + $0x12] sm:$0x1]  ;;  %v874_v10 = vld [vmem:[%s19237_s1 + $0x22] sm:$0x1]  ;;  %v649_v15 = vsel %vm255_vm2, %v648_v37, %v647_v36  ;;  %v975_v13 = vsel %vm252_vm1, %v974_v48, %v973_v54  ;;  %v984_v25 = vrot.slane %v14305_v53, 1 }
  0x5c   :  { %v875_v17 = vld [vmem:[%s19237_s1 + $0x32] sm:$0x1]  ;;  %v14334_v43 = vld [vmem:[%s19237_s1 + $0x42] sm:$0x1]  ;;  %v944_v20 = vrot.slane %v873_v8, 7  ;;  %v946_v21 = vrot.slane %v874_v10, 6  ;;  %v651_v18 = vsel %vm258_vm3, %v650_v22, %v649_v15  ;;  %v977_v26 = vsel %vm255_vm2, %v976_v49, %v975_v13 }
  0x5d   :  { %v14339_v11 = vld [vmem:[%s19237_s1 + $0x52] sm:$0x1]  ;;  %v14355_v27 = vld [vmem:[%s19237_s1 + $0x62] sm:$0x1]  ;;  %v948_v24 = vrot.slane %v875_v17, 5  ;;  %v950_v36 = vrot.slane %v14334_v43, 4  ;;  %v979_v15 = vsel %vm258_vm3, %v978_v55, %v977_v26 }
  0x5e   :  { %v881_v62 = vld [vmem:[%s19237_s1 + $0x92] sm:$0x1]  ;;  %v882_v30 = vld [vmem:[%s19237_s1 + $0xa2] sm:$0x1]  ;;  %v945_v4 = vsel %vm249_vm0, %v944_v20, %v872_v7  ;;  %v10921_v28 = vld [vmem:[%s19237_s1 + $0x285] sm:$0x1] }
  0x5f   :  { %v14376_v3 = vld [vmem:[%s19237_s1 + $0x72] sm:$0x1]  ;;  %v880_v16 = vld [vmem:[%s19237_s1 + $0x82] sm:$0x1]  ;;  %v958_v29 = vrot.slane %v881_v62, 7  ;;  %v960_v31 = vrot.slane %v882_v30, 6  ;;  %v947_v54 = vsel %vm252_vm1, %v946_v21, %v945_v4  ;;  %v653_v30 = vsel %vm261_vm4, %v652_v38, %v651_v18 }
  0x60   :  { %v883_v44 = vld [vmem:[%s19237_s1 + $0xb2] sm:$0x1]  ;;  %v14392_v23 = vld [vmem:[%s19237_s1 + $0xc2] sm:$0x1]  ;;  %v10922_v41 = vld [vmem:[%s19237_s1 + $0x295] sm:$0x1]  ;;  %v949_v21 = vsel %vm255_vm2, %v948_v24, %v947_v54 }
  0x61   :  { %v14398_v34 = vld [vmem:[%s19237_s1 + $0xd2] sm:$0x1]  ;;  %v10923_v50 = vld [vmem:[%s19237_s1 + $0x2a5] sm:$0x1]  ;;  %v14413_v32 = vld [vmem:[%s19237_s1 + $0xe2] sm:$0x1]  ;;  %v959_v0 = vsel %vm249_vm0, %v958_v29, %v880_v16 }
  0x62   :  { %v952_v37 = vrot.slane %v14339_v11, 3  ;;  %v954_v22 = vrot.slane %v14355_v27, 2  ;;  %v956_v48 = vrot.slane %v14376_v3, 1  ;;  %v10924_v49 = vld [vmem:[%s19237_s1 + $0x2b5] sm:$0x1]  ;;  %v962_v61 = vrot.slane %v883_v44, 5 }
  0x63   :  { %v964_v7 = vrot.slane %v14392_v23, 4  ;;  %v10925_v8 = vld [vmem:[%s19237_s1 + $0x2c5] sm:$0x1]  ;;  %v10926_v10 = vld [vmem:[%s19237_s1 + $0x2d5] sm:$0x1]  ;;  %v2025_v13 = vrot.slane %v10922_v41, 7  ;;  %v961_v35 = vsel %vm252_vm1, %v960_v31, %v959_v0  ;;  %v981_v23 = vsel %vm261_vm4, %v980_v58, %v979_v15 }
  0x64   :  { %v10927_v17 = vld [vmem:[%s19237_s1 + $0x2e5] sm:$0x1]  ;;  %v10928_v43 = vld [vmem:[%s19237_s1 + $0x2f5] sm:$0x1]  ;;  %v2027_v62 = vrot.slane %v10923_v50, 6  ;;  %v2029_v16 = vrot.slane %v10924_v49, 5  ;;  %v963_v31 = vsel %vm255_vm2, %v962_v61, %v961_v35  ;;  %v951_v49 = vsel %vm258_vm3, %v950_v36, %v949_v21 }
  0x65   :  { %v2031_v5 = vrot.slane %v10925_v8, 4  ;;  %v10949_v55 = vld [vmem:[%s19237_s1 + $0x286] sm:$0x1]  ;;  %v10950_v20 = vld [vmem:[%s19237_s1 + $0x296] sm:$0x1]  ;;  %v966_v59 = vrot.slane %v14398_v34, 3  ;;  %v2026_v40 = vsel %vm249_vm0, %v2025_v13, %v10921_v28  ;;  %v965_v13 = vsel %vm258_vm3, %v964_v7, %v963_v31 }
  0x66   :  { %v2033_v44 = vrot.slane %v10926_v10, 3  ;;  %v10951_v38 = vld [vmem:[%s19237_s1 + $0x2a6] sm:$0x1]  ;;  %v10952_v18 = vld [vmem:[%s19237_s1 + $0x2b6] sm:$0x1]  ;;  %v968_v26 = vrot.slane %v14413_v32, 2  ;;  %v2028_v24 = vsel %vm252_vm1, %v2027_v62, %v2026_v40  ;;  %v14539_v11 = vsel %vm264_vm5, %v982_v60, %v981_v23 }
  0x67   :  { %v2035_v34 = vrot.slane %v10927_v17, 2  ;;  %v10953_v4 = vld [vmem:[%s19237_s1 + $0x2c6] sm:$0x1]  ;;  %v10954_v29 = vld [vmem:[%s19237_s1 + $0x2d6] sm:$0x1]  ;;  %v2030_v28 = vsel %vm255_vm2, %v2029_v16, %v2028_v24  ;;  %v2037_v63 = vrot.slane %v10928_v43, 1  ;;  %v953_v24 = vsel %vm261_vm4, %v952_v37, %v951_v49 }
  0x68   :  { %v10955_v58 = vld [vmem:[%s19237_s1 + $0x2e6] sm:$0x1]  ;;  %v2353_v41 = vrot.slane %v10950_v20, 7  ;;  %v14479_v50 = vld [vmem:[%s19237_s1 + $0xf2] sm:$0x1]  ;;  %v2032_v54 = vsel %vm258_vm3, %v2031_v5, %v2030_v28  ;;  %v2355_v61 = vrot.slane %v10951_v38, 6  ;;  %v14510_v38 = vsel %vm267_vm6, %v628_v51, %v14371_v56 }
  0x69   :  { %v10956_v0 = vld [vmem:[%s19237_s1 + $0x2f6] sm:$0x1]  ;;  %v2357_v8 = vrot.slane %v10952_v18, 5  ;;  %v2034_v10 = vsel %vm261_vm4, %v2033_v44, %v2032_v54  ;;  %v2359_v17 = vrot.slane %v10953_v4, 4  ;;  %v2361_v43 = vrot.slane %v10954_v29, 3 }
  0x6a   :  { %v2354_v15 = vsel %vm249_vm0, %v2353_v41, %v10949_v55  ;;  %v2036_v62 = vsel %vm264_vm5, %v2035_v34, %v2034_v10  ;;  %v2363_v35 = vrot.slane %v10955_v58, 2  ;;  %v10906_v16 = vld [vmem:[%s19237_s1 + $0x195] sm:$0x1]  ;;  %v970_v5 = vrot.slane %v14479_v50, 1  ;;  %v10905_v7 = vld [vmem:[%s19237_s1 + $0x185] sm:$0x1] }
  0x6b   :  { %v2356_v36 = vsel %vm252_vm1, %v2355_v61, %v2354_v15  ;;  %v2038_v20 = vsel %vm267_vm6, %v2037_v63, %v2036_v62  ;;  %v2365_v55 = vrot.slane %v10956_v0, 1  ;;  %v10907_v40 = vld [vmem:[%s19237_s1 + $0x1a5] sm:$0x1]  ;;  %v10908_v44 = vld [vmem:[%s19237_s1 + $0x1b5] sm:$0x1]  ;;  %v14515_v18 = vsel %vm264_vm5, %v640_v6, %v639_v57 }
  0x6c   :  { %v2358_v21 = vsel %vm255_vm2, %v2357_v8, %v2356_v36  ;;  %2043 = vrot.lane.b32.xlu1 %v2038_v20, %s13413_s17  ;;  %v10909_v19 = vld [vmem:[%s19237_s1 + $0x1c5] sm:$0x1]  ;;  %v10910_v51 = vld [vmem:[%s19237_s1 + $0x1d5] sm:$0x1]  ;;  %v14534_v6 = vsel %vm264_vm5, %v654_v39, %v653_v30  ;;  %v967_v56 = vsel %vm261_vm4, %v966_v59, %v965_v13  ;;  %v1997_v23 = vrot.slane %v10906_v16, 7 }
  0x6d   :  { %v2360_v34 = vsel %vm258_vm3, %v2359_v17, %v2358_v21  ;;  %v10911_v33 = vld [vmem:[%s19237_s1 + $0x1e5] sm:$0x1]  ;;  %v10912_v57 = vld [vmem:[%s19237_s1 + $0x1f5] sm:$0x1]  ;;  %v1999_v4 = vrot.slane %v10907_v40, 6  ;;  %v2001_v29 = vrot.slane %v10908_v44, 5  ;;  %v14565_v31 = vsel %vm264_vm5, %v954_v22, %v953_v24 }
  0x6e   :  { %v2362_v37 = vsel %vm261_vm4, %v2361_v43, %v2360_v34  ;;  %v10913_v45 = vld [vmem:[%s19237_s1 + $0x205] sm:$0x1]  ;;  %v10914_v39 = vld [vmem:[%s19237_s1 + $0x215] sm:$0x1]  ;;  %v2003_v41 = vrot.slane %v10909_v19, 4  ;;  %v2005_v49 = vrot.slane %v10910_v51, 3  ;;  %v1998_v22 = vsel %vm249_vm0, %v1997_v23, %v10905_v7 }
  0x6f   :  { %v10915_v14 = vld [vmem:[%s19237_s1 + $0x225] sm:$0x1]  ;;  %v10916_v60 = vld [vmem:[%s19237_s1 + $0x235] sm:$0x1]  ;;  %v2364_v30 = vsel %vm264_vm5, %v2363_v35, %v2362_v37  ;;  %v2007_v54 = vrot.slane %v10911_v33, 2  ;;  %v2011_v0 = vrot.slane %v10914_v39, 7  ;;  %v969_v8 = vsel %vm264_vm5, %v968_v26, %v967_v56 }
  0x70   :  { %v10917_v59 = vld [vmem:[%s19237_s1 + $0x245] sm:$0x1]  ;;  %v2366_v28 = vsel %vm267_vm6, %v2365_v55, %v2364_v30  ;;  %v10918_v63 = vld [vmem:[%s19237_s1 + $0x255] sm:$0x1]  ;;  %v2013_v61 = vrot.slane %v10915_v14, 6  ;;  %v2000_v10 = vsel %vm252_vm1, %v1999_v4, %v1998_v22  ;;  %v2015_v15 = vrot.slane %v10916_v60, 5 }
  0x71   :  { %v10919_v58 = vld [vmem:[%s19237_s1 + $0x265] sm:$0x1]  ;;  %2371 = vrot.lane.b32.xlu1 %v2366_v28, %s13413_s17  ;;  %v10920_v27 = vld [vmem:[%s19237_s1 + $0x275] sm:$0x1]  ;;  %v2017_v17 = vrot.slane %v10917_v59, 4  ;;  %v2002_v62 = vsel %vm255_vm2, %v2001_v29, %v2000_v10  ;;  %v2009_v36 = vrot.slane %v10912_v57, 1  ;;  %v2012_v35 = vsel %vm249_vm0, %v2011_v0, %v10913_v45 }
  0x72   :  { %v1217_v43 = vld [vmem:[%s19237_s1 + $0x113] sm:$0x1]  ;;  %v1218_v13 = vld [vmem:[%s19237_s1 + $0x123] sm:$0x1]  ;;  %v2019_v32 = vrot.slane %v10918_v63, 3  ;;  %v2004_v20 = vsel %vm258_vm3, %v2003_v41, %v2002_v62  ;;  %v2014_v21 = vsel %vm252_vm1, %v2013_v61, %v2012_v35  ;;  %v2021_v55 = vrot.slane %v10919_v58, 2 }
  0x73   :  { %v1219_v26 = vld [vmem:[%s19237_s1 + $0x133] sm:$0x1]  ;;  %v1220_v16 = vld [vmem:[%s19237_s1 + $0x143] sm:$0x1]  ;;  %v2023_v7 = vrot.slane %v10920_v27, 1  ;;  %v2006_v24 = vsel %vm261_vm4, %v2005_v49, %v2004_v20  ;;  %v2016_v34 = vsel %vm255_vm2, %v2015_v15, %v2014_v21  ;;  %v1300_v33 = vrot.slane %v1217_v43, 7 }
  0x74   :  { %v1216_v40 = vld [vmem:[%s19237_s1 + $0x103] sm:$0x1]  ;;  %v1221_v44 = vld [vmem:[%s19237_s1 + $0x153] sm:$0x1]  ;;  %v1302_v56 = vrot.slane %v1218_v13, 6  ;;  %v2008_v37 = vsel %vm264_vm5, %v2007_v54, %v2006_v24  ;;  %v2018_v57 = vsel %vm258_vm3, %v2017_v17, %v2016_v34  ;;  %v1304_v45 = vrot.slane %v1219_v26, 5 }
  0x75   :  { %v1222_v19 = vld [vmem:[%s19237_s1 + $0x163] sm:$0x1]  ;;  %v1223_v51 = vld [vmem:[%s19237_s1 + $0x173] sm:$0x1]  ;;  %v1306_v39 = vrot.slane %v1220_v16, 4  ;;  %v2010_v60 = vsel %vm267_vm6, %v2009_v36, %v2008_v37  ;;  %v2020_v30 = vsel %vm261_vm4, %v2019_v32, %v2018_v57  ;;  %v1301_v59 = vsel %vm249_vm0, %v1300_v33, %v1216_v40 }
  0x76   :  { %v1201_v14 = vld [vmem:[%s19237_s1 + $0x13] sm:$0x1]  ;;  %v1308_v23 = vrot.slane %v1221_v44, 3  ;;  %v1202_v4 = vld [vmem:[%s19237_s1 + $0x23] sm:$0x1]  ;;  %v2022_v28 = vsel %vm264_vm5, %v2021_v55, %v2020_v30  ;;  %v1303_v63 = vsel %vm252_vm1, %v1302_v56, %v1301_v59  ;;  %v1310_v58 = vrot.slane %v1222_v19, 2 }
  0x77   :  { %v1203_v29 = vld [vmem:[%s19237_s1 + $0x33] sm:$0x1]  ;;  %v1312_v41 = vrot.slane %v1223_v51, 1  ;;  %v1200_v49 = vld [vmem:[%s19237_s1 + $0x3] sm:$0x1]  ;;  %v14642_v54 = vsel %vm267_vm6, %v642_v52, %v14515_v18  ;;  %v14648_v0 = vsel %vm267_vm6, %v656_v47, %v14534_v6  ;;  %v2024_v61 = vsel %vm267_vm6, %v2023_v7, %v2022_v28 }
  0x78   :  { %v1204_v27 = vld [vmem:[%s19237_s1 + $0x43] sm:$0x1]  ;;  %v1205_v22 = vld [vmem:[%s19237_s1 + $0x53] sm:$0x1]  ;;  %v1305_v10 = vsel %vm255_vm2, %v1304_v45, %v1303_v63  ;;  %v14665_v9 = vsel %vm267_vm6, %v984_v25, %v14539_v11  ;;  %v14671_v47 = vsel %vm267_vm6, %v956_v48, %v14565_v31  ;;  %v13221_v18 = vpack.i.bf16 %v2024_v61, %v2010_v60  ;;  %v10978_v21 = vld [vmem:[%s19237_s1 + $0x297] sm:$0x1] }
  0x79   :  { %v1206_v15 = vld [vmem:[%s19237_s1 + $0x63] sm:$0x1]  ;;  %v1207_v1 = vld [vmem:[%s19237_s1 + $0x73] sm:$0x1]  ;;  %v1307_v6 = vsel %vm258_vm3, %v1306_v39, %v1305_v10  ;;  %v14686_v3 = vsel %vm267_vm6, %v970_v5, %v969_v8  ;;  %v1272_v13 = vrot.slane %v1201_v14, 7  ;;  %v1274_v62 = vrot.slane %v1202_v4, 6 }
  0x7a   :  { %v1209_v52 = vld [vmem:[%s19237_s1 + $0x93] sm:$0x1]  ;;  %v1210_v17 = vld [vmem:[%s19237_s1 + $0xa3] sm:$0x1]  ;;  %v1309_v48 = vsel %vm261_vm4, %v1308_v23, %v1307_v6  ;;  %13222 = vrot.lane.b32.xlu0 %v13221_v18, %s13413_s17  ;;  %v1276_v8 = vrot.slane %v1203_v29, 5  ;;  %v1278_v36 = vrot.slane %v1204_v27, 4 }
  0x7b   :  { %v1211_v53 = vld [vmem:[%s19237_s1 + $0xb3] sm:$0x1]  ;;  %v1212_v25 = vld [vmem:[%s19237_s1 + $0xc3] sm:$0x1]  ;;  %v1311_v50 = vsel %vm264_vm5, %v1310_v58, %v1309_v48  ;;  %v1280_v35 = vrot.slane %v1205_v22, 3  ;;  %v1273_v26 = vsel %vm249_vm0, %v1272_v13, %v1200_v49  ;;  %v1282_v16 = vrot.slane %v1206_v15, 2 }
  0x7c   :  { %v1208_v11 = vld [vmem:[%s19237_s1 + $0x83] sm:$0x1]  ;;  %v1213_v31 = vld [vmem:[%s19237_s1 + $0xd3] sm:$0x1]  ;;  %v14704_v32 = vsel %vm267_vm6, %v1312_v41, %v1311_v50  ;;  %v1284_v20 = vrot.slane %v1207_v1, 1  ;;  %v1275_v7 = vsel %vm252_vm1, %v1274_v62, %v1273_v26  ;;  %v1286_v40 = vrot.slane %v1209_v52, 7 }
  0x7d   :  { %v1214_v43 = vld [vmem:[%s19237_s1 + $0xe3] sm:$0x1]  ;;  %v1215_v5 = vld [vmem:[%s19237_s1 + $0xf3] sm:$0x1]  ;;  %v10979_v55 = vld [vmem:[%s19237_s1 + $0x2a7] sm:$0x1]  ;;  %v1277_v19 = vsel %vm255_vm2, %v1276_v8, %v1275_v7 }
  0x7e   :  { %v1288_v44 = vrot.slane %v1210_v17, 6  ;;  %v1290_v24 = vrot.slane %v1211_v53, 5  ;;  %v10980_v34 = vld [vmem:[%s19237_s1 + $0x2b7] sm:$0x1]  ;;  %v1292_v51 = vrot.slane %v1212_v25, 4  ;;  %v1294_v33 = vrot.slane %v1213_v31, 3 }
  0x7f   :  { %v1296_v56 = vrot.slane %v1214_v43, 2  ;;  %v1279_v37 = vsel %vm258_vm3, %v1278_v36, %v1277_v19  ;;  %v1287_v57 = vsel %vm249_vm0, %v1286_v40, %v1208_v11  ;;  %v1298_v45 = vrot.slane %v1215_v5, 1  ;;  %v10977_v39 = vld [vmem:[%s19237_s1 + $0x287] sm:$0x1]  ;;  %v10982_v22 = vld [vmem:[%s19237_s1 + $0x2d7] sm:$0x1] }
  0x80   :  { %v10981_v14 = vld [vmem:[%s19237_s1 + $0x2c7] sm:$0x1]  ;;  %v2681_v60 = vrot.slane %v10978_v21, 7  ;;  %v1281_v59 = vsel %vm261_vm4, %v1280_v35, %v1279_v37  ;;  %v1289_v23 = vsel %vm252_vm1, %v1288_v44, %v1287_v57  ;;  %v2683_v4 = vrot.slane %v10979_v55, 6  ;;  %v52_v6 = vld [vmem:[%s19238_s0 + $0x8] sm:$0xff] }
  0x81   :  { %v2685_v29 = vrot.slane %v10980_v34, 5  ;;  %v1283_v58 = vsel %vm264_vm5, %v1282_v16, %v1281_v59  ;;  %v1291_v41 = vsel %vm255_vm2, %v1290_v24, %v1289_v23  ;;  %v10983_v61 = vld [vmem:[%s19237_s1 + $0x2e7] sm:$0x1]  ;;  %v2687_v15 = vrot.slane %v10981_v14, 4  ;;  %v10984_v53 = vld [vmem:[%s19237_s1 + $0x2f7] sm:$0x1] }
  0x82   :  { %v14731_v49 = vsel %vm267_vm6, %v1284_v20, %v1283_v58  ;;  %v1293_v27 = vsel %vm258_vm3, %v1292_v51, %v1291_v41  ;;  %v2682_v10 = vsel %vm249_vm0, %v2681_v60, %v10977_v39  ;;  %v10935_v43 = vld [vmem:[%s19237_s1 + $0x1a6] sm:$0x1]  ;;  %v10936_v13 = vld [vmem:[%s19237_s1 + $0x1b6] sm:$0x1]  ;;  %v2689_v8 = vrot.slane %v10982_v22, 3 }
  0x83   :  { %v13186_v30 = vpop.permute.xlu0 %13185  ;;  %v1295_v17 = vsel %vm261_vm4, %v1294_v33, %v1293_v27  ;;  %v2684_v25 = vsel %vm252_vm1, %v2683_v4, %v2682_v10  ;;  %v10937_v62 = vld [vmem:[%s19237_s1 + $0x1c6] sm:$0x1]  ;;  %v2691_v36 = vrot.slane %v10983_v61, 2  ;;  %v10938_v35 = vld [vmem:[%s19237_s1 + $0x1d6] sm:$0x1]  ;;  %v2693_v55 = vrot.slane %v10984_v53, 1 }
  0x84   :  { %v13188_v28 = vunpack.i.h.bf16 %v13186_v30  ;;  %v13187_v63 = vunpack.i.l.bf16 %v13186_v30  ;;  %v1297_v31 = vsel %vm264_vm5, %v1296_v56, %v1295_v17  ;;  %v2686_v5 = vsel %vm255_vm2, %v2685_v29, %v2684_v25  ;;  %v10939_v26 = vld [vmem:[%s19237_s1 + $0x1e6] sm:$0x1]  ;;  %v10940_v40 = vld [vmem:[%s19237_s1 + $0x1f6] sm:$0x1]  ;;  %v11006_v25 = vld [vmem:[%s19237_s1 + $0x298] sm:$0x1] }
  0x85   :  { %v14769_v50 = vsel %vm267_vm6, %v1298_v45, %v1297_v31  ;;  %v2688_v21 = vsel %vm258_vm3, %v2687_v15, %v2686_v5  ;;  %v10933_v7 = vld [vmem:[%s19237_s1 + $0x186] sm:$0x1]  ;;  %v2327_v34 = vrot.slane %v10935_v43, 6  ;;  %v2329_v19 = vrot.slane %v10936_v13, 5  ;;  %v10946_v10 = vld [vmem:[%s19237_s1 + $0x256] sm:$0x1] }
  0x86   :  { %v375_v52 = vsel %vm70_vm8, %v14349_v12, %v13187_v63  ;;  %v376_v18 = vsel %vm70_vm8, %v14366_v42, %v13188_v28  ;;  %v10934_v12 = vld [vmem:[%s19237_s1 + $0x196] sm:$0x1]  ;;  %v2690_v44 = vsel %vm261_vm4, %v2689_v8, %v2688_v21  ;;  %v51_v33 = vld [vmem:[%s19238_s0] sm:$0xff]  ;;  %v2331_v37 = vrot.slane %v10937_v62, 4  ;;  %v11009_v62 = vld [vmem:[%s19237_s1 + $0x2c8] sm:$0x1] }
  0x87   :  { %v13196_v1 = vpop.permute.xlu1 %13195  ;;  %v14756_v42 = vpack.c.bf16 %v376_v18, %v375_v52  ;;  %v2325_v24 = vrot.slane %v10934_v12, 7  ;;  %v2692_v56 = vsel %vm264_vm5, %v2691_v36, %v2690_v44  ;;  %v2333_v57 = vrot.slane %v10938_v35, 3  ;;  %v10941_v59 = vld [vmem:[%s19237_s1 + $0x206] sm:$0x1]  ;;  %v10944_v28 = vld [vmem:[%s19237_s1 + $0x236] sm:$0x1] }
  0x88   :  { %v13198_v48 = vunpack.i.h.bf16 %v13196_v1  ;;  %v13197_v11 = vunpack.i.l.bf16 %v13196_v1  ;;  %v2335_v45 = vrot.slane %v10939_v26, 2  ;;  %v2694_v30 = vsel %vm267_vm6, %v2693_v55, %v2692_v56  ;;  %v10943_v23 = vld [vmem:[%s19237_s1 + $0x226] sm:$0x1]  ;;  %v14830_v1 = vld [vmem:[%s19237_s1 + $0x276] sm:$0x1] }
  0x89   :  { %11910 = vmatprep.subr.bf16.mxu1 %v14756_v42  ;;  %v2326_v4 = vsel %vm249_vm0, %v2325_v24, %v10933_v7  ;;  %2699 = vrot.lane.b32.xlu1 %v2694_v30, %s13413_s17  ;;  %v10945_v63 = vld [vmem:[%s19237_s1 + $0x246] sm:$0x1]  ;;  %v2337_v41 = vrot.slane %v10940_v40, 1  ;;  %v11007_v12 = vld [vmem:[%s19237_s1 + $0x2a8] sm:$0x1]  ;;  %v2341_v31 = vrot.slane %v10943_v23, 6 }
  0x8a   :  { %v736_v16 = vsel %vm70_vm8, %v14510_v38, %v13198_v48  ;;  %v72_v20 = vsel %vm70_vm8, %v52_v6, %v13197_v11  ;;  %11911 = vmatpush3.bf16.msra.mxu1 %v14756_v42  ;;  %v10942_v38 = vld [vmem:[%s19237_s1 + $0x216] sm:$0x1]  ;;  %v2328_v58 = vsel %vm252_vm1, %v2327_v34, %v2326_v4  ;;  %v10947_v15 = vld [vmem:[%s19237_s1 + $0x266] sm:$0x1]  ;;  %v14836_v6 = vld [vmem:[%s19241_s5 + $0x8] ss:$0 sps:$4 sm:$0xff]  }
  0x8b   :  { %v13191_v51 = vpop.permute.xlu0 %13190  ;;  %v2339_v27 = vrot.slane %v10942_v38, 7  ;;  %v2330_v52 = vsel %vm255_vm2, %v2329_v19, %v2328_v58  ;;  %v11008_v48 = vld [vmem:[%s19237_s1 + $0x2b8] sm:$0x1]  ;;  %v2343_v43 = vrot.slane %v10944_v28, 5  ;;  %v2345_v13 = vrot.slane %v10945_v63, 4  ;;  %v53_v38 = vld [vmem:[%s19238_s0 + $0x10] sm:$0xff] }
  0x8c   :  { %v13193_v39 = vunpack.i.h.bf16 %v13191_v51  ;;  %v13192_v14 = vunpack.i.l.bf16 %v13191_v51  ;;  %v2332_v17 = vsel %vm258_vm3, %v2331_v37, %v2330_v52  ;;  %v2347_v36 = vrot.slane %v10946_v10, 3  ;;  %v11005_v26 = vld [vmem:[%s19237_s1 + $0x288] sm:$0x1]  ;;  %v11010_v55 = vld [vmem:[%s19237_s1 + $0x2d8] sm:$0x1] }
  0x8d   :  { %v730_v60 = vpop.permute.xlu1 %729  ;;  %v2340_v53 = vsel %vm249_vm0, %v2339_v27, %v10941_v59  ;;  %v2334_v11 = vsel %vm261_vm4, %v2333_v57, %v2332_v17  ;;  %v2349_v35 = vrot.slane %v10947_v15, 2  ;;  %v2351_v21 = vrot.slane %v14830_v1, 1  ;;  %v11011_v7 = vld [vmem:[%s19237_s1 + $0x2e8] sm:$0x1]  ;;  %v11012_v34 = vld [vmem:[%s19237_s1 + $0x2f8] sm:$0x1] }
  0x8e   :  { %v737_v29 = vsel %vm70_vm8, %v14642_v54, %v730_v60  ;;  %v377_v22 = vsel %vm70_vm8, %v14344_v2, %v13192_v14  ;;  %v71_v54 = vsel %vm70_vm8, %v51_v33, %v13193_v39  ;;  %v2336_v8 = vsel %vm264_vm5, %v2335_v45, %v2334_v11  ;;  %v10961_v59 = vld [vmem:[%s19237_s1 + $0x187] sm:$0x1]  ;;  %v10962_v23 = vld [vmem:[%s19237_s1 + $0x197] sm:$0x1] }
  0x8f   :  { %v14818_v61 = vpack.c.bf16 %v737_v29, %v736_v16  ;;  %v379_v2 = vpack.c.bf16 %v377_v22, %v377_v22  ;;  %v74_v18 = vpack.c.bf16 %v72_v20, %v71_v54  ;;  %v2338_v16 = vsel %vm267_vm6, %v2337_v41, %v2336_v8  ;;  %v10963_v4 = vld [vmem:[%s19237_s1 + $0x1a7] sm:$0x1]  ;;  %v10964_v41 = vld [vmem:[%s19237_s1 + $0x1b7] sm:$0x1]  ;;  %v13289_v54 = vld [vmem:[%s19242_s3 + $0x8] ss:$0 sps:$4 sm:$0xff]  }
  0x90   :  { %v2342_v20 = vsel %vm252_vm1, %v2341_v31, %v2340_v53  ;;  %v3009_v40 = vrot.slane %v11006_v25, 7  ;;  %v3011_v19 = vrot.slane %v11007_v12, 6  ;;  %v3013_v51 = vrot.slane %v11008_v48, 5  ;;  %v10965_v27 = vld [vmem:[%s19237_s1 + $0x1c7] sm:$0x1] }
  0x91   :  { %11902 = vmatprep.subr.bf16.mxu0 %v74_v18  ;;  %13160 = vmatprep.subr.msk.bf16.mxu1 %vm112_vm9, %v379_v2  ;;  %v14855_v5 = vsel %vm112_vm9, %v379_v2, 0  ;;  %v2344_v24 = vsel %vm255_vm2, %v2343_v43, %v2342_v20  ;;  %v3015_v33 = vrot.slane %v11009_v62, 4  ;;  %v3017_v60 = vrot.slane %v11010_v55, 3  ;;  %v10966_v1 = vld [vmem:[%s19237_s1 + $0x1d7] sm:$0x1] }
  0x92   :  { %11903 = vmatpush3.bf16.msra.mxu0 %v74_v18  ;;  %11913 = vmatpush3.bf16.msra.mxu1 %v14855_v5  ;;  %v2346_v57 = vsel %vm258_vm3, %v2345_v13, %v2344_v24  ;;  %v3010_v45 = vsel %vm249_vm0, %v3009_v40, %v11005_v26  ;;  %v3019_v30 = vrot.slane %v11011_v7, 2  ;;  %v3021_v58 = vrot.slane %v11012_v34, 1  ;;  %v10967_v52 = vld [vmem:[%s19237_s1 + $0x1e7] sm:$0x1]  ;;  %v10968_v2 = vld [vmem:[%s19237_s1 + $0x1f7] sm:$0x1] }
  0x93   :  { %v13201_v44 = vpop.permute.xlu0 %13200  ;;  %11927 = vmatprep.subr.bf16.mxu1 %v14818_v61  ;;  %v2348_v39 = vsel %vm261_vm4, %v2347_v36, %v2346_v57  ;;  %v3012_v14 = vsel %vm252_vm1, %v3011_v19, %v3010_v45  ;;  %v10970_v53 = vld [vmem:[%s19237_s1 + $0x217] sm:$0x1]  ;;  %v10971_v25 = vld [vmem:[%s19237_s1 + $0x227] sm:$0x1]  ;;  %v2653_v12 = vrot.slane %v10962_v23, 7  ;;  %v2655_v48 = vrot.slane %v10963_v4, 6 }
  0x94   :  { %v13203_v56 = vunpack.i.h.bf16 %v13201_v44  ;;  %v13202_v37 = vunpack.i.l.bf16 %v13201_v44  ;;  %v2350_v63 = vsel %vm264_vm5, %v2349_v35, %v2348_v39  ;;  %v3014_v15 = vsel %vm255_vm2, %v3013_v51, %v3012_v14  ;;  %v10972_v13 = vld [vmem:[%s19237_s1 + $0x237] sm:$0x1]  ;;  %v10973_v36 = vld [vmem:[%s19237_s1 + $0x247] sm:$0x1] }
  0x95   :  { %11915 = vmatmul.mubr.msk.bf16.vlgmr.msra.gmra.mrb[0].mxu1 %vm105_vm7, %v14836_v6  ;;  %v2352_v10 = vsel %vm267_vm6, %v2351_v21, %v2350_v63  ;;  %v3016_v17 = vsel %vm258_vm3, %v3015_v33, %v3014_v15  ;;  %v2657_v62 = vrot.slane %v10964_v41, 5  ;;  %v2654_v35 = vsel %vm249_vm0, %v2653_v12, %v10961_v59  ;;  %v10969_v21 = vld [vmem:[%s19237_s1 + $0x207] sm:$0x1]  ;;  %v10974_v55 = vld [vmem:[%s19237_s1 + $0x257] sm:$0x1] }
  0x96   :  { %v738_v29 = vsel %vm70_vm8, %v14648_v0, %v13203_v56  ;;  %v73_v28 = vsel %vm70_vm8, %v53_v38, %v13202_v37  ;;  %11928 = vmatpush3.bf16.msra.mxu1 %v14818_v61  ;;  %11931 = vmatprep.mubr.msk.bf16.mxu1 %vm105_vm7, %v14195_v46  ;;  %v13226_v18 = vpack.i.bf16 %v2352_v10, %v2338_v16  ;;  %v2659_v26 = vrot.slane %v10965_v27, 4  ;;  %v10975_v24 = vld [vmem:[%s19237_s1 + $0x267] sm:$0x1]  ;;  %v10976_v45 = vld [vmem:[%s19237_s1 + $0x277] sm:$0x1] }
  0x97   :  { %v740_v22 = vpack.c.bf16 %v738_v29, %v738_v29  ;;  %v75_v0 = vpack.c.bf16 %v73_v28, %v73_v28  ;;  %v3018_v43 = vsel %vm261_vm4, %v3017_v60, %v3016_v17  ;;  %v2661_v16 = vrot.slane %v10966_v1, 3  ;;  %v1545_v60 = vld [vmem:[%s19237_s1 + $0x114] sm:$0x1]  ;;  %v1544_v29 = vld [vmem:[%s19237_s1 + $0x104] sm:$0x1] }
  0x98   :  { %v3020_v8 = vsel %vm264_vm5, %v3019_v30, %v3018_v43  ;;  %13227 = vrot.lane.b32.xlu0 %v13226_v18, %s13413_s17  ;;  %v2656_v7 = vsel %vm252_vm1, %v2655_v48, %v2654_v35  ;;  %v2663_v40 = vrot.slane %v10967_v52, 2  ;;  %v2665_v44 = vrot.slane %v10968_v2, 1  ;;  %v1546_v28 = vld [vmem:[%s19237_s1 + $0x124] sm:$0x1]  ;;  %v1551_v15 = vld [vmem:[%s19237_s1 + $0x174] sm:$0x1] }
  0x99   :  { %13159 = vmatprep.subr.msk.bf16.mxu0 %vm112_vm9, %v75_v0  ;;  %v114_v11 = vsel %vm112_vm9, %v75_v0, 0  ;;  %13161 = vmatprep.subr.msk.bf16.mxu1 %vm112_vm9, %v740_v22  ;;  %v14932_v31 = vsel %vm112_vm9, %v740_v22, 0  ;;  %v3022_v20 = vsel %vm267_vm6, %v3021_v58, %v3020_v8  ;;  %v2658_v34 = vsel %vm255_vm2, %v2657_v62, %v2656_v7  ;;  %v1548_v27 = vld [vmem:[%s19237_s1 + $0x144] sm:$0x1]  ;;  %v1549_v22 = vld [vmem:[%s19237_s1 + $0x154] sm:$0x1] }
  0x9a   :  { %11905 = vmatpush3.bf16.msra.mxu0 %v114_v11  ;;  %11930 = vmatpush3.bf16.msra.mxu1 %v14932_v31  ;;  %v2667_v19 = vrot.slane %v10970_v53, 7  ;;  %v2669_v51 = vrot.slane %v10971_v25, 6  ;;  %v2671_v33 = vrot.slane %v10972_v13, 5  ;;  %v2660_v39 = vsel %vm258_vm3, %v2659_v26, %v2658_v34  ;;  %v1550_v0 = vld [vmem:[%s19237_s1 + $0x164] sm:$0x1] }
  0x9b   :  { %v13206_v38 = vpop.permute.xlu1 %13205  ;;  %3027 = vrot.lane.b32.xlu1 %v3022_v20, %s13413_s17  ;;  %v2673_v14 = vrot.slane %v10973_v36, 4  ;;  %v2662_v59 = vsel %vm261_vm4, %v2661_v16, %v2660_v39  ;;  %v2675_v4 = vrot.slane %v10974_v55, 3  ;;  %v2677_v10 = vrot.slane %v10975_v24, 2  ;;  %v1529_v1 = vld [vmem:[%s19237_s1 + $0x14] sm:$0x1] }
  0x9c   :  { %v13208_v56 = vunpack.i.h.bf16 %v13206_v38  ;;  %v13207_v37 = vunpack.i.l.bf16 %v13206_v38  ;;  %v2668_v23 = vsel %vm249_vm0, %v2667_v19, %v10969_v21  ;;  %v2664_v41 = vsel %vm264_vm5, %v2663_v40, %v2662_v59  ;;  %v1530_v53 = vld [vmem:[%s19237_s1 + $0x24] sm:$0x1]  ;;  %v1531_v43 = vld [vmem:[%s19237_s1 + $0x34] sm:$0x1] }
  0x9d   :  { %11907 = vmatmul.mubr.msk.bf16.vlgmr.msra.gmra.mrb[0].mxu0 %vm105_vm7, %v13289_v54  ;;  %v1060_v57 = vpop.permute.xlu0 %1059  ;;  %11932 = vmatmul.mubr.msk.bf16.vlgmr.msra.gmra.mrb[4].mxu1 %vm105_vm7, %v14836_v6  ;;  %v2679_v18 = vrot.slane %v10976_v45, 1  ;;  %v1628_v17 = vrot.slane %v1545_v60, 7  ;;  %v1630_v12 = vrot.slane %v1546_v28, 6  ;;  %v1634_v11 = vrot.slane %v1548_v27, 4  ;;  %v1528_v35 = vld [vmem:[%s19237_s1 + $0x4] sm:$0x1] }
  0x9e   :  { %v1066_v30 = vsel %vm70_vm8, %v14665_v9, %v1060_v57  ;;  %11948 = vmatprep.mubr.msk.bf16.mxu1 %vm105_vm7, %v14195_v46  ;;  %v1547_v9 = vld [vmem:[%s19237_s1 + $0x134] sm:$0x1]  ;;  %v1064_v46 = vsel %vm70_vm8, %v14671_v47, %v13207_v37  ;;  %v1065_v58 = vsel %vm70_vm8, %v14686_v3, %v13208_v56  ;;  %v2666_v47 = vsel %vm267_vm6, %v2665_v44, %v2664_v41  ;;  %v1532_v26 = vld [vmem:[%s19237_s1 + $0x44] sm:$0x1] }
  0x9f   :  { %v1068_v63 = vpack.c.bf16 %v1066_v30, %v1066_v30  ;;  %v14997_v54 = vpack.c.bf16 %v1065_v58, %v1064_v46  ;;  %v2670_v3 = vsel %vm252_vm1, %v2669_v51, %v2668_v23  ;;  %v1632_v48 = vrot.slane %v1547_v9, 5  ;;  %v1533_v55 = vld [vmem:[%s19237_s1 + $0x54] sm:$0x1]  ;;  %v1534_v7 = vld [vmem:[%s19237_s1 + $0x64] sm:$0x1] }
  0xa0   :  { %v2672_v2 = vsel %vm255_vm2, %v2671_v33, %v2670_v3  ;;  %v1629_v62 = vsel %vm249_vm0, %v1628_v17, %v1544_v29  ;;  %v1636_v8 = vrot.slane %v1549_v22, 3  ;;  %v1638_v36 = vrot.slane %v1550_v0, 2  ;;  %v1535_v24 = vld [vmem:[%s19237_s1 + $0x74] sm:$0x1]  ;;  %v1536_v37 = vld [vmem:[%s19237_s1 + $0x84] sm:$0x1] }
  0xa1   :  { %v15008_v52 = vsel %vm112_vm9, %v1068_v63, 0  ;;  %11944 = vmatprep.subr.bf16.mxu1 %v14997_v54  ;;  %v2674_v25 = vsel %vm258_vm3, %v2673_v14, %v2672_v2  ;;  %v1631_v20 = vsel %vm252_vm1, %v1630_v12, %v1629_v62  ;;  %v1640_v21 = vrot.slane %v1551_v15, 1  ;;  %v1537_v34 = vld [vmem:[%s19237_s1 + $0x94] sm:$0x1]  ;;  %v1538_v14 = vld [vmem:[%s19237_s1 + $0xa4] sm:$0x1] }
  0xa2   :  { %11945 = vmatpush3.bf16.msra.mxu1 %v14997_v54  ;;  %v2676_v13 = vsel %vm261_vm4, %v2675_v4, %v2674_v25  ;;  %v1600_v40 = vrot.slane %v1529_v1, 7  ;;  %v1633_v38 = vsel %vm255_vm2, %v1632_v48, %v1631_v20  ;;  %v1602_v19 = vrot.slane %v1530_v53, 6  ;;  %v1539_v60 = vld [vmem:[%s19237_s1 + $0xb4] sm:$0x1]  ;;  %v1540_v28 = vld [vmem:[%s19237_s1 + $0xc4] sm:$0x1] }
  0xa3   :  { %13162 = vmatprep.subr.msk.bf16.mxu1 %vm112_vm9, %v1068_v63  ;;  %v2678_v16 = vsel %vm264_vm5, %v2677_v10, %v2676_v13  ;;  %v1604_v51 = vrot.slane %v1531_v43, 5  ;;  %v1635_v56 = vsel %vm258_vm3, %v1634_v11, %v1633_v38  ;;  %v1606_v45 = vrot.slane %v1532_v26, 4  ;;  %v1541_v9 = vld [vmem:[%s19237_s1 + $0xd4] sm:$0x1]  ;;  %v11034_v15 = vld [vmem:[%s19243_s2 + $0x290] sm:$0x1] }
  0xa4   :  { %v2680_v44 = vsel %vm267_vm6, %v2679_v18, %v2678_v16  ;;  %v1601_v57 = vsel %vm249_vm0, %v1600_v40, %v1528_v35  ;;  %v1637_v39 = vsel %vm261_vm4, %v1636_v8, %v1635_v56  ;;  %v1608_v59 = vrot.slane %v1533_v55, 3  ;;  %v1543_v3 = vld [vmem:[%s19237_s1 + $0xf4] sm:$0x1]  ;;  %v11035_v53 = vld [vmem:[%s19243_s2 + $0x2a0] sm:$0x1] }
  0xa5   :  { %v13231_v33 = vpack.i.bf16 %v2680_v44, %v2666_v47  ;;  %v1603_v30 = vsel %vm252_vm1, %v1602_v19, %v1601_v57  ;;  %v1610_v23 = vrot.slane %v1534_v7, 2  ;;  %v1639_v29 = vsel %vm264_vm5, %v1638_v36, %v1637_v39  ;;  %v1542_v47 = vld [vmem:[%s19237_s1 + $0xe4] sm:$0x1]  ;;  %v11036_v25 = vld [vmem:[%s19243_s2 + $0x2b0] sm:$0x1] }
  0xa6   :  { %11947 = vmatpush3.bf16.msra.mxu1 %v15008_v52  ;;  %v1605_v63 = vsel %vm255_vm2, %v1604_v51, %v1603_v30  ;;  %v1612_v46 = vrot.slane %v1535_v24, 1  ;;  %v1614_v58 = vrot.slane %v1537_v34, 7  ;;  %v15069_v0 = vsel %vm267_vm6, %v1640_v21, %v1639_v29  ;;  %v15100_v11 = vld [vmem:[%s19241_s5] sm:$0xff]   ;;  %v11040_v16 = vld [vmem:[%s19243_s2 + $0x2f0] sm:$0x1] }
  0xa7   :  { %v13211_v4 = vpop.permute.xlu1 %13210  ;;  %13232 = vrot.lane.b32.xlu0 %v13231_v33, %s13413_s17  ;;  %v1607_v10 = vsel %vm258_vm3, %v1606_v45, %v1605_v63  ;;  %v1616_v17 = vrot.slane %v1538_v14, 6  ;;  %v11033_v13 = vld [vmem:[%s19243_s2 + $0x280] sm:$0x1]  ;;  %v1618_v26 = vrot.slane %v1539_v60, 5  ;;  %v10990_v20 = vld [vmem:[%s19237_s1 + $0x198] sm:$0x1] }
  0xa8   :  { %v13213_v41 = vunpack.i.h.bf16 %v13211_v4  ;;  %v13212_v27 = vunpack.i.l.bf16 %v13211_v4  ;;  %v1609_v2 = vsel %vm261_vm4, %v1608_v59, %v1607_v10  ;;  %v1615_v18 = vsel %vm249_vm0, %v1614_v58, %v1536_v37  ;;  %v11039_v62 = vld [vmem:[%s19243_s2 + $0x2e0] sm:$0x1]  ;;  %v10991_v44 = vld [vmem:[%s19237_s1 + $0x1a8] sm:$0x1]  ;;  %v10992_v33 = vld [vmem:[%s19237_s1 + $0x1b8] sm:$0x1] }
  0xa9   :  { %v1388_v22 = vpop.permute.xlu0 %1387  ;;  %11949 = vmatmul.mubr.msk.bf16.vlgmr.msra.gmra.mrb[8].mxu1 %vm105_vm7, %v14836_v6  ;;  %v1611_v43 = vsel %vm264_vm5, %v1610_v23, %v1609_v2  ;;  %v1617_v35 = vsel %vm252_vm1, %v1616_v17, %v1615_v18  ;;  %v1620_v55 = vrot.slane %v1540_v28, 4  ;;  %v1622_v7 = vrot.slane %v1541_v9, 3  ;;  %v10989_v51 = vld [vmem:[%s19237_s1 + $0x188] sm:$0x1]  ;;  %v10994_v23 = vld [vmem:[%s19237_s1 + $0x1d8] sm:$0x1] }
  0xaa   :  { %v1394_v1 = vsel %vm70_vm8, %v14704_v32, %v1388_v22  ;;  %v1392_v32 = vsel %vm70_vm8, %v14731_v49, %v13212_v27  ;;  %v1393_v48 = vsel %vm70_vm8, %v14769_v50, %v13213_v41  ;;  %11965 = vmatprep.mubr.msk.bf16.mxu1 %vm105_vm7, %v15100_v11  ;;  %v11037_v49 = vld [vmem:[%s19243_s2 + $0x2c0] sm:$0x1]  ;;  %v11038_v50 = vld [vmem:[%s19243_s2 + $0x2d0] sm:$0x1]  ;;  %v15120_v36 = vsel %vm267_vm6, %v1612_v46, %v1611_v43  ;;  %v10993_v39 = vld [vmem:[%s19237_s1 + $0x1c8] sm:$0x1] }
  0xab   :  { %v1396_v12 = vpack.c.bf16 %v1394_v1, %v1394_v1  ;;  %v15117_v8 = vpack.c.bf16 %v1393_v48, %v1392_v32  ;;  %v1624_v40 = vrot.slane %v1542_v47, 2  ;;  %v1619_v38 = vsel %vm255_vm2, %v1618_v26, %v1617_v35  ;;  %v10995_v4 = vld [vmem:[%s19237_s1 + $0x1e8] sm:$0x1]  ;;  %v10996_v9 = vld [vmem:[%s19237_s1 + $0x1f8] sm:$0x1] }
  0xac   :  { %v1626_v24 = vrot.slane %v1543_v3, 1  ;;  %v3338_v34 = vrot.slane %v11034_v15, 7  ;;  %v3340_v19 = vrot.slane %v11035_v53, 6  ;;  %v1621_v56 = vsel %vm258_vm3, %v1620_v55, %v1619_v38  ;;  %v10998_v63 = vld [vmem:[%s19237_s1 + $0x218] sm:$0x1] }
  0xad   :  { %v15130_v21 = vsel %vm112_vm9, %v1396_v12, 0  ;;  %11961 = vmatprep.subr.bf16.mxu1 %v15117_v8  ;;  %v3342_v37 = vrot.slane %v11036_v25, 5  ;;  %v3344_v57 = vrot.slane %v11037_v49, 4  ;;  %v3346_v45 = vrot.slane %v11038_v50, 3  ;;  %v10997_v10 = vld [vmem:[%s19237_s1 + $0x208] sm:$0x1] }
  0xae   :  { %11962 = vmatpush3.bf16.msra.mxu1 %v15117_v8  ;;  %v1623_v14 = vsel %vm261_vm4, %v1622_v7, %v1621_v56  ;;  %v3339_v60 = vsel %vm249_vm0, %v3338_v34, %v11033_v13  ;;  %v3348_v30 = vrot.slane %v11039_v62, 2  ;;  %v3350_v59 = vrot.slane %v11040_v16, 1  ;;  %v10999_v15 = vld [vmem:[%s19237_s1 + $0x228] sm:$0x1]  ;;  %v11000_v25 = vld [vmem:[%s19237_s1 + $0x238] sm:$0x1] }
  0xaf   :  { %13163 = vmatprep.subr.msk.bf16.mxu1 %vm112_vm9, %v1396_v12  ;;  %v1625_v29 = vsel %vm264_vm5, %v1624_v40, %v1623_v14  ;;  %v3341_v28 = vsel %vm252_vm1, %v3340_v19, %v3339_v60  ;;  %v2981_v46 = vrot.slane %v10990_v20, 7  ;;  %v2983_v58 = vrot.slane %v10991_v44, 6  ;;  %v11001_v12 = vld [vmem:[%s19237_s1 + $0x248] sm:$0x1]  ;;  %v11002_v62 = vld [vmem:[%s19237_s1 + $0x258] sm:$0x1] }
  0xb0   :  { %v1627_v41 = vsel %vm267_vm6, %v1626_v24, %v1625_v29  ;;  %v3343_v27 = vsel %vm255_vm2, %v3342_v37, %v3341_v28  ;;  %v2985_v22 = vrot.slane %v10992_v33, 5  ;;  %v2987_v47 = vrot.slane %v10993_v39, 4  ;;  %v11003_v35 = vld [vmem:[%s19237_s1 + $0x268] sm:$0x1]  ;;  %v15194_v26 = vld [vmem:[%s19237_s1 + $0x278] sm:$0x1] }
  0xb1   :  { %v3345_v3 = vsel %vm258_vm3, %v3344_v57, %v3343_v27  ;;  %v2982_v1 = vsel %vm249_vm0, %v2981_v46, %v10989_v51  ;;  %v2989_v2 = vrot.slane %v10994_v23, 3  ;;  %v2991_v18 = vrot.slane %v10995_v4, 2  ;;  %v11062_v38 = vld [vmem:[%s19243_s2 + $0x291] sm:$0x1]  ;;  %v11063_v24 = vld [vmem:[%s19243_s2 + $0x2a1] sm:$0x1] }
  0xb2   :  { %11964 = vmatpush3.bf16.msra.mxu1 %v15130_v21  ;;  %v3347_v53 = vsel %vm261_vm4, %v3346_v45, %v3345_v3  ;;  %v2984_v32 = vsel %vm252_vm1, %v2983_v58, %v2982_v1  ;;  %v2993_v48 = vrot.slane %v10996_v9, 1  ;;  %v2995_v43 = vrot.slane %v10998_v63, 7  ;;  %v11061_v56 = vld [vmem:[%s19243_s2 + $0x281] sm:$0x1]  ;;  %v11064_v37 = vld [vmem:[%s19243_s2 + $0x2b1] sm:$0x1] }
  0xb3   :  { %v13216_v17 = vpop.permute.xlu1 %13215  ;;  %v3349_v50 = vsel %vm264_vm5, %v3348_v30, %v3347_v53  ;;  %v2986_v16 = vsel %vm255_vm2, %v2985_v22, %v2984_v32  ;;  %v2997_v44 = vrot.slane %v10999_v15, 6  ;;  %v11067_v60 = vld [vmem:[%s19243_s2 + $0x2e1] sm:$0x1]  ;;  %v15237_v30 = vld [vmem:[%s19243_s2 + $0x2f1] sm:$0x1]  ;;  %v2999_v4 = vrot.slane %v11000_v25, 5 }
  0xb4   :  { %v13218_v13 = vunpack.i.h.bf16 %v13216_v17  ;;  %v13217_v49 = vunpack.i.l.bf16 %v13216_v17  ;;  %v3351_v55 = vsel %vm267_vm6, %v3350_v59, %v3349_v50  ;;  %v2988_v7 = vsel %vm258_vm3, %v2987_v47, %v2986_v16  ;;  %v11018_v59 = vld [vmem:[%s19243_s2 + $0x190] sm:$0x1]  ;;  %v11019_v9 = vld [vmem:[%s19243_s2 + $0x1a0] sm:$0x1] }
  0xb5   :  { %v1716_v20 = vpop.permute.xlu0 %1715  ;;  %11966 = vmatmul.mubr.msk.bf16.vlgmr.msra.gmra.mrb[12].mxu1 %vm105_vm7, %v14836_v6  ;;  %v2996_v40 = vsel %vm249_vm0, %v2995_v43, %v10997_v10  ;;  %3356 = vrot.lane.b32.xlu1 %v3351_v55, %s13413_s17  ;;  %v2990_v33 = vsel %vm261_vm4, %v2989_v2, %v2988_v7  ;;  %v3001_v29 = vrot.slane %v11001_v12, 4  ;;  %v3003_v28 = vrot.slane %v11002_v62, 3  ;;  %v11020_v63 = vld [vmem:[%s19243_s2 + $0x1b0] sm:$0x1]  ;;  %v11017_v27 = vld [vmem:[%s19243_s2 + $0x180] sm:$0x1] }
  0xb6   :  { %v1722_v34 = vsel %vm70_vm8, %v15069_v0, %v1716_v20  ;;  %v1720_v19 = vsel %vm70_vm8, %v15120_v36, %v13217_v49  ;;  %v1721_v51 = vsel %vm70_vm8, %v1627_v41, %v13218_v13  ;;  %v11065_v0 = vld [vmem:[%s19243_s2 + $0x2c1] sm:$0x1]  ;;  %v11066_v36 = vld [vmem:[%s19243_s2 + $0x2d1] sm:$0x1]  ;;  %v2992_v39 = vsel %vm264_vm5, %v2991_v18, %v2990_v33  ;;  %11982 = vmatprep.mubr.msk.bf16.mxu1 %vm105_vm7, %v15100_v11  ;;  %v11021_v22 = vld [vmem:[%s19243_s2 + $0x1c0] sm:$0x1] }
  0xb7   :  { %v1724_v57 = vpack.c.bf16 %v1722_v34, %v1722_v34  ;;  %v15227_v45 = vpack.c.bf16 %v1721_v51, %v1720_v19  ;;  %v2998_v14 = vsel %vm252_vm1, %v2997_v44, %v2996_v40  ;;  %v2994_v23 = vsel %vm267_vm6, %v2993_v48, %v2992_v39  ;;  %v11022_v1 = vld [vmem:[%s19243_s2 + $0x1d0] sm:$0x1]  ;;  %v11023_v25 = vld [vmem:[%s19243_s2 + $0x1e0] sm:$0x1] }
  0xb8   :  { %v3005_v46 = vrot.slane %v11003_v35, 2  ;;  %v3007_v58 = vrot.slane %v15194_v26, 1  ;;  %v3666_v41 = vrot.slane %v11062_v38, 7  ;;  %v3000_v47 = vsel %vm255_vm2, %v2999_v4, %v2998_v14  ;;  %v11024_v12 = vld [vmem:[%s19243_s2 + $0x1f0] sm:$0x1] }
  0xb9   :  { %11978 = vmatprep.subr.bf16.mxu1 %v15227_v45  ;;  %v15254_v11 = vsel %vm112_vm9, %v1724_v57, 0  ;;  %v3668_v3 = vrot.slane %v11063_v24, 6  ;;  %v3670_v10 = vrot.slane %v11064_v37, 5  ;;  %v3672_v15 = vrot.slane %v11065_v0, 4  ;;  %v11026_v13 = vld [vmem:[%s19243_s2 + $0x210] sm:$0x1] }
  0xba   :  { %11979 = vmatpush3.bf16.msra.mxu1 %v15227_v45  ;;  %v3002_v2 = vsel %vm258_vm3, %v3001_v29, %v3000_v47  ;;  %v3667_v18 = vsel %vm249_vm0, %v3666_v41, %v11061_v56  ;;  %v3674_v17 = vrot.slane %v11066_v36, 3  ;;  %v3676_v53 = vrot.slane %v11067_v60, 2  ;;  %v11027_v49 = vld [vmem:[%s19243_s2 + $0x220] sm:$0x1]  ;;  %v11028_v26 = vld [vmem:[%s19243_s2 + $0x230] sm:$0x1] }
  0xbb   :  { %13164 = vmatprep.subr.msk.bf16.mxu1 %vm112_vm9, %v1724_v57  ;;  %v3004_v32 = vsel %vm261_vm4, %v3003_v28, %v3002_v2  ;;  %v3669_v48 = vsel %vm252_vm1, %v3668_v3, %v3667_v18  ;;  %v3678_v43 = vrot.slane %v15237_v30, 1  ;;  %v3310_v50 = vrot.slane %v11018_v59, 7  ;;  %v11029_v16 = vld [vmem:[%s19243_s2 + $0x240] sm:$0x1]  ;;  %v11030_v38 = vld [vmem:[%s19243_s2 + $0x250] sm:$0x1] }
  0xbc   :  { %v3006_v62 = vsel %vm264_vm5, %v3005_v46, %v3004_v32  ;;  %v3671_v35 = vsel %vm255_vm2, %v3670_v10, %v3669_v48  ;;  %v3312_v20 = vrot.slane %v11019_v9, 6  ;;  %v3314_v55 = vrot.slane %v11020_v63, 5  ;;  %v11025_v44 = vld [vmem:[%s19243_s2 + $0x200] sm:$0x1]  ;;  %v15310_v56 = vld [vmem:[%s19243_s2 + $0x270] sm:$0x1] }
  0xbd   :  { %v3008_v7 = vsel %vm267_vm6, %v3007_v58, %v3006_v62  ;;  %v3673_v40 = vsel %vm258_vm3, %v3672_v15, %v3671_v35  ;;  %v11031_v24 = vld [vmem:[%s19243_s2 + $0x260] sm:$0x1]  ;;  %v3311_v34 = vsel %vm249_vm0, %v3310_v50, %v11017_v27  ;;  %v3316_v19 = vrot.slane %v11021_v22, 4  ;;  %v11090_v36 = vld [vmem:[%s19243_s2 + $0x292] sm:$0x1] }
  0xbe   :  { %11981 = vmatpush3.bf16.msra.mxu1 %v15254_v11  ;;  %v13236_v51 = vpack.i.bf16 %v3008_v7, %v2994_v23  ;;  %v3675_v33 = vsel %vm261_vm4, %v3674_v17, %v3673_v40  ;;  %v3313_v37 = vsel %vm252_vm1, %v3312_v20, %v3311_v34  ;;  %v3318_v0 = vrot.slane %v11022_v1, 3  ;;  %v11091_v30 = vld [vmem:[%s19243_s2 + $0x2a2] sm:$0x1]  ;;  %v11092_v59 = vld [vmem:[%s19243_s2 + $0x2b2] sm:$0x1] }
  0xbf   :  { %v3677_v57 = vsel %vm264_vm5, %v3676_v53, %v3675_v33  ;;  %v3315_v39 = vsel %vm255_vm2, %v3314_v55, %v3313_v37  ;;  %v3320_v14 = vrot.slane %v11023_v25, 2  ;;  %v3322_v60 = vrot.slane %v11024_v12, 1  ;;  %v11089_v9 = vld [vmem:[%s19243_s2 + $0x282] sm:$0x1]  ;;  %v11094_v46 = vld [vmem:[%s19243_s2 + $0x2d2] sm:$0x1] }
  0xc0   :  { %13237 = vrot.lane.b32.xlu0 %v13236_v51, %s13413_s17  ;;  %v3679_v23 = vsel %vm267_vm6, %v3678_v43, %v3677_v57  ;;  %v3317_v4 = vsel %vm258_vm3, %v3316_v19, %v3315_v39  ;;  %v3324_v29 = vrot.slane %v11026_v13, 7  ;;  %v3326_v28 = vrot.slane %v11027_v49, 6  ;;  %v11093_v63 = vld [vmem:[%s19243_s2 + $0x2c2] sm:$0x1]  ;;  %v11096_v1 = vld [vmem:[%s19243_s2 + $0x2f2] sm:$0x1] }
  0xc1   :  { %11983 = vmatmul.mubr.msk.bf16.vlgmr.msra.gmra.mrb[16].mxu1 %vm105_vm7, %v14836_v6  ;;  %3684 = vrot.lane.b32.xlu1 %v3679_v23, %s13413_s17  ;;  %v3319_v58 = vsel %vm261_vm4, %v3318_v0, %v3317_v4  ;;  %v3328_v41 = vrot.slane %v11028_v26, 5  ;;  %v3330_v27 = vrot.slane %v11029_v16, 4  ;;  %v3332_v22 = vrot.slane %v11030_v38, 3  ;;  %v11095_v6 = vld [vmem:[%s19243_s2 + $0x2e2] sm:$0x1] }
  0xc2   :  { %v3321_v47 = vsel %vm264_vm5, %v3320_v14, %v3319_v58  ;;  %v3325_v3 = vsel %vm249_vm0, %v3324_v29, %v11025_v44  ;;  %v3334_v10 = vrot.slane %v11031_v24, 2  ;;  %v3336_v15 = vrot.slane %v15310_v56, 1  ;;  %v11046_v2 = vld [vmem:[%s19243_s2 + $0x191] sm:$0x1]  ;;  %v11047_v12 = vld [vmem:[%s19243_s2 + $0x1a1] sm:$0x1] }
  0xc3   :  { %v3323_v18 = vsel %vm267_vm6, %v3322_v60, %v3321_v47  ;;  %v3327_v17 = vsel %vm252_vm1, %v3326_v28, %v3325_v3  ;;  %v3994_v53 = vrot.slane %v11090_v36, 7  ;;  %v3996_v25 = vrot.slane %v11091_v30, 6  ;;  %v11048_v32 = vld [vmem:[%s19243_s2 + $0x1b1] sm:$0x1]  ;;  %v11049_v50 = vld [vmem:[%s19243_s2 + $0x1c1] sm:$0x1] }
  0xc4   :  { %v3329_v48 = vsel %vm255_vm2, %v3328_v41, %v3327_v17  ;;  %v3998_v43 = vrot.slane %v11092_v59, 5  ;;  %v4000_v13 = vrot.slane %v11093_v63, 4  ;;  %v4002_v49 = vrot.slane %v11094_v46, 3  ;;  %v11045_v20 = vld [vmem:[%s19243_s2 + $0x181] sm:$0x1] }
  0xc5   :  { %v3331_v62 = vsel %vm258_vm3, %v3330_v27, %v3329_v48  ;;  %v3995_v35 = vsel %vm249_vm0, %v3994_v53, %v11089_v9  ;;  %v4004_v26 = vrot.slane %v11095_v6, 2  ;;  %v4006_v16 = vrot.slane %v11096_v1, 1  ;;  %v11050_v55 = vld [vmem:[%s19243_s2 + $0x1d1] sm:$0x1]  ;;  %v11051_v44 = vld [vmem:[%s19243_s2 + $0x1e1] sm:$0x1] }
  0xc6   :  { %v3333_v7 = vsel %vm261_vm4, %v3332_v22, %v3331_v62  ;;  %v3997_v40 = vsel %vm252_vm1, %v3996_v25, %v3995_v35  ;;  %v11052_v38 = vld [vmem:[%s19243_s2 + $0x1f1] sm:$0x1]  ;;  %v3638_v24 = vrot.slane %v11046_v2, 7  ;;  %v3640_v34 = vrot.slane %v11047_v12, 6  ;;  %v11053_v33 = vld [vmem:[%s19243_s2 + $0x201] sm:$0x1] }
  0xc7   :  { %v3335_v19 = vsel %vm264_vm5, %v3334_v10, %v3333_v7  ;;  %v3999_v51 = vsel %vm255_vm2, %v3998_v43, %v3997_v40  ;;  %v11054_v56 = vld [vmem:[%s19243_s2 + $0x211] sm:$0x1]  ;;  %v11055_v37 = vld [vmem:[%s19243_s2 + $0x221] sm:$0x1]  ;;  %v3642_v0 = vrot.slane %v11048_v32, 5  ;;  %v3644_v36 = vrot.slane %v11049_v50, 4 }
  0xc8   :  { %v3337_v57 = vsel %vm267_vm6, %v3336_v15, %v3335_v19  ;;  %v4001_v39 = vsel %vm258_vm3, %v4000_v13, %v3999_v51  ;;  %v11056_v14 = vld [vmem:[%s19243_s2 + $0x231] sm:$0x1]  ;;  %v11057_v60 = vld [vmem:[%s19243_s2 + $0x241] sm:$0x1]  ;;  %v3639_v30 = vsel %vm249_vm0, %v3638_v24, %v11045_v20  ;;  %v3646_v59 = vrot.slane %v11050_v55, 3 }
  0xc9   :  { %v13241_v23 = vpack.i.bf16 %v3337_v57, %v3323_v18  ;;  %v4003_v4 = vsel %vm261_vm4, %v4002_v49, %v4001_v39  ;;  %v11058_v29 = vld [vmem:[%s19243_s2 + $0x251] sm:$0x1]  ;;  %v11059_v28 = vld [vmem:[%s19243_s2 + $0x261] sm:$0x1]  ;;  %v3641_v9 = vsel %vm252_vm1, %v3640_v34, %v3639_v30  ;;  %v3648_v63 = vrot.slane %v11051_v44, 2 }
  0xca   :  { %v4005_v46 = vsel %vm264_vm5, %v4004_v26, %v4003_v4  ;;  %v11060_v58 = vld [vmem:[%s19243_s2 + $0x271] sm:$0x1]  ;;  %v3643_v41 = vsel %vm255_vm2, %v3642_v0, %v3641_v9  ;;  %v3650_v27 = vrot.slane %v11052_v38, 1  ;;  %v3652_v22 = vrot.slane %v11054_v56, 7  ;;  %v11118_v6 = vld [vmem:[%s19243_s2 + $0x293] sm:$0x1] }
  0xcb   :  { %13242 = vrot.lane.b32.xlu0 %v13241_v23, %s13413_s17  ;;  %v4007_v47 = vsel %vm267_vm6, %v4006_v16, %v4005_v46  ;;  %v3645_v3 = vsel %vm258_vm3, %v3644_v36, %v3643_v41  ;;  %v3654_v10 = vrot.slane %v11055_v37, 6  ;;  %v3656_v15 = vrot.slane %v11056_v14, 5  ;;  %v11117_v1 = vld [vmem:[%s19243_s2 + $0x283] sm:$0x1]  ;;  %v11120_v18 = vld [vmem:[%s19243_s2 + $0x2b3] sm:$0x1] }
  0xcc   :  { %v11119_v2 = vld [vmem:[%s19243_s2 + $0x2a3] sm:$0x1]  ;;  %4012 = vrot.lane.b32.xlu1 %v4007_v47, %s13413_s17  ;;  %v3647_v17 = vsel %vm261_vm4, %v3646_v59, %v3645_v3  ;;  %v3653_v53 = vsel %vm249_vm0, %v3652_v22, %v11053_v33  ;;  %v3658_v25 = vrot.slane %v11057_v60, 4  ;;  %v3660_v12 = vrot.slane %v11058_v29, 3  ;;  %v11122_v48 = vld [vmem:[%s19243_s2 + $0x2d3] sm:$0x1] }
  0xcd   :  { %v11121_v32 = vld [vmem:[%s19243_s2 + $0x2c3] sm:$0x1]  ;;  %v3649_v43 = vsel %vm264_vm5, %v3648_v63, %v3647_v17  ;;  %v3655_v13 = vsel %vm252_vm1, %v3654_v10, %v3653_v53  ;;  %v3662_v49 = vrot.slane %v11059_v28, 2  ;;  %v11124_v62 = vld [vmem:[%s19243_s2 + $0x2f3] sm:$0x1]  ;;  %v3664_v26 = vrot.slane %v11060_v58, 1 }
  0xce   :  { %v11123_v50 = vld [vmem:[%s19243_s2 + $0x2e3] sm:$0x1]  ;;  %v3657_v35 = vsel %vm255_vm2, %v3656_v15, %v3655_v13  ;;  %v4322_v16 = vrot.slane %v11118_v6, 7  ;;  %v4324_v20 = vrot.slane %v11119_v2, 6  ;;  %v11074_v55 = vld [vmem:[%s19243_s2 + $0x192] sm:$0x1]  ;;  %v3651_v19 = vsel %vm267_vm6, %v3650_v27, %v3649_v43 }
  0xcf   :  { %v3659_v7 = vsel %vm258_vm3, %v3658_v25, %v3657_v35  ;;  %v4326_v40 = vrot.slane %v11120_v18, 5  ;;  %v4328_v44 = vrot.slane %v11121_v32, 4  ;;  %v11073_v38 = vld [vmem:[%s19243_s2 + $0x182] sm:$0x1]  ;;  %v11076_v34 = vld [vmem:[%s19243_s2 + $0x1b2] sm:$0x1] }
  0xd0   :  { %v11075_v24 = vld [vmem:[%s19243_s2 + $0x1a2] sm:$0x1]  ;;  %v3661_v51 = vsel %vm261_vm4, %v3660_v12, %v3659_v7  ;;  %v4323_v33 = vsel %vm249_vm0, %v4322_v16, %v11117_v1  ;;  %v4330_v56 = vrot.slane %v11122_v48, 3  ;;  %v11078_v0 = vld [vmem:[%s19243_s2 + $0x1d2] sm:$0x1]  ;;  %v4332_v39 = vrot.slane %v11123_v50, 2 }
  0xd1   :  { %v11077_v37 = vld [vmem:[%s19243_s2 + $0x1c2] sm:$0x1]  ;;  %v3663_v36 = vsel %vm264_vm5, %v3662_v49, %v3661_v51  ;;  %v4325_v57 = vsel %vm252_vm1, %v4324_v20, %v4323_v33  ;;  %v4334_v14 = vrot.slane %v11124_v62, 1  ;;  %v11080_v30 = vld [vmem:[%s19243_s2 + $0x1f2] sm:$0x1]  ;;  %v3966_v9 = vrot.slane %v11074_v55, 7 }
  0xd2   :  { %v11079_v60 = vld [vmem:[%s19243_s2 + $0x1e2] sm:$0x1]  ;;  %v3665_v59 = vsel %vm267_vm6, %v3664_v26, %v3663_v36  ;;  %v4327_v23 = vsel %vm255_vm2, %v4326_v40, %v4325_v57  ;;  %v11082_v29 = vld [vmem:[%s19243_s2 + $0x212] sm:$0x1]  ;;  %v3968_v63 = vrot.slane %v11075_v24, 6  ;;  %v3970_v22 = vrot.slane %v11076_v34, 5 }
  0xd3   :  { %v11081_v4 = vld [vmem:[%s19243_s2 + $0x202] sm:$0x1]  ;;  %v13246_v46 = vpack.i.bf16 %v3665_v59, %v3651_v19  ;;  %v4329_v58 = vsel %vm258_vm3, %v4328_v44, %v4327_v23  ;;  %v11084_v41 = vld [vmem:[%s19243_s2 + $0x232] sm:$0x1]  ;;  %v3972_v6 = vrot.slane %v11077_v37, 4  ;;  %v3967_v15 = vsel %vm249_vm0, %v3966_v9, %v11073_v38 }
  0xd4   :  { %v11083_v28 = vld [vmem:[%s19243_s2 + $0x222] sm:$0x1]  ;;  %v4331_v47 = vsel %vm261_vm4, %v4330_v56, %v4329_v58  ;;  %v11086_v3 = vld [vmem:[%s19243_s2 + $0x252] sm:$0x1]  ;;  %v3974_v1 = vrot.slane %v11078_v0, 3  ;;  %v3976_v2 = vrot.slane %v11079_v60, 2  ;;  %v3969_v53 = vsel %vm252_vm1, %v3968_v63, %v3967_v15 }
  0xd5   :  { %v11085_v27 = vld [vmem:[%s19243_s2 + $0x242] sm:$0x1]  ;;  %13247 = vrot.lane.b32.xlu0 %v13246_v46, %s13413_s17  ;;  %v4333_v18 = vsel %vm264_vm5, %v4332_v39, %v4331_v47  ;;  %v11088_v17 = vld [vmem:[%s19243_s2 + $0x272] sm:$0x1]  ;;  %v3978_v25 = vrot.slane %v11080_v30, 1  ;;  %v3980_v12 = vrot.slane %v11082_v29, 7  ;;  %v3971_v43 = vsel %vm255_vm2, %v3970_v22, %v3969_v53 }
  0xd6   :  { %v11087_v10 = vld [vmem:[%s19243_s2 + $0x262] sm:$0x1]  ;;  %v11146_v32 = vld [vmem:[%s19243_s2 + $0x294] sm:$0x1]  ;;  %v4335_v48 = vsel %vm267_vm6, %v4334_v14, %v4333_v18  ;;  %v3982_v13 = vrot.slane %v11083_v28, 6  ;;  %v3984_v49 = vrot.slane %v11084_v41, 5  ;;  %v3973_v26 = vsel %vm258_vm3, %v3972_v6, %v3971_v43 }
  0xd7   :  { %v11145_v50 = vld [vmem:[%s19243_s2 + $0x284] sm:$0x1]  ;;  %v11148_v35 = vld [vmem:[%s19243_s2 + $0x2b4] sm:$0x1]  ;;  %4340 = vrot.lane.b32.xlu1 %v4335_v48, %s13413_s17  ;;  %v3981_v16 = vsel %vm249_vm0, %v3980_v12, %v11081_v4  ;;  %v3986_v20 = vrot.slane %v11085_v27, 4  ;;  %v3988_v55 = vrot.slane %v11086_v3, 3  ;;  %v3975_v44 = vsel %vm261_vm4, %v3974_v1, %v3973_v26 }
  0xd8   :  { %v11147_v62 = vld [vmem:[%s19243_s2 + $0x2a4] sm:$0x1]  ;;  %v11150_v40 = vld [vmem:[%s19243_s2 + $0x2d4] sm:$0x1]  ;;  %v3983_v38 = vsel %vm252_vm1, %v3982_v13, %v3981_v16  ;;  %v3990_v24 = vrot.slane %v11087_v10, 2  ;;  %v3992_v34 = vrot.slane %v11088_v17, 1  ;;  %v3977_v33 = vsel %vm264_vm5, %v3976_v2, %v3975_v44 }
  0xd9   :  { %v11149_v7 = vld [vmem:[%s19243_s2 + $0x2c4] sm:$0x1]  ;;  %v11152_v51 = vld [vmem:[%s19243_s2 + $0x2f4] sm:$0x1]  ;;  %v3985_v56 = vsel %vm255_vm2, %v3984_v49, %v3983_v38  ;;  %v4650_v37 = vrot.slane %v11146_v32, 7  ;;  %v4652_v0 = vrot.slane %v11147_v62, 6  ;;  %v3979_v4 = vsel %vm267_vm6, %v3978_v25, %v3977_v33 }
  0xda   :  { %v11151_v19 = vld [vmem:[%s19243_s2 + $0x2e4] sm:$0x1]  ;;  %v11101_v36 = vld [vmem:[%s19243_s2 + $0x183] sm:$0x1]  ;;  %v11102_v57 = vld [vmem:[%s19243_s2 + $0x193] sm:$0x1]  ;;  %v3987_v14 = vsel %vm258_vm3, %v3986_v20, %v3985_v56 }
  0xdb   :  { %v11103_v39 = vld [vmem:[%s19243_s2 + $0x1a3] sm:$0x1]  ;;  %v4654_v60 = vrot.slane %v11148_v35, 5  ;;  %v4656_v30 = vrot.slane %v11149_v7, 4  ;;  %v11104_v59 = vld [vmem:[%s19243_s2 + $0x1b3] sm:$0x1]  ;;  %v3989_v29 = vsel %vm261_vm4, %v3988_v55, %v3987_v14  ;;  %v4651_v28 = vsel %vm249_vm0, %v4650_v37, %v11145_v50 }
  0xdc   :  { %v11105_v23 = vld [vmem:[%s19243_s2 + $0x1c3] sm:$0x1]  ;;  %v4658_v9 = vrot.slane %v11150_v40, 3  ;;  %v11106_v63 = vld [vmem:[%s19243_s2 + $0x1d3] sm:$0x1]  ;;  %v3991_v58 = vsel %vm264_vm5, %v3990_v24, %v3989_v29  ;;  %v4653_v41 = vsel %vm252_vm1, %v4652_v0, %v4651_v28  ;;  %v4660_v27 = vrot.slane %v11151_v19, 2 }
  0xdd   :  { %v11107_v46 = vld [vmem:[%s19243_s2 + $0x1e3] sm:$0x1]  ;;  %v11108_v22 = vld [vmem:[%s19243_s2 + $0x1f3] sm:$0x1]  ;;  %v4294_v47 = vrot.slane %v11102_v57, 7  ;;  %v3993_v3 = vsel %vm267_vm6, %v3992_v34, %v3991_v58  ;;  %v4655_v10 = vsel %vm255_vm2, %v4654_v60, %v4653_v41  ;;  %v4662_v15 = vrot.slane %v11152_v51, 1 }
  0xde   :  { %v11110_v6 = vld [vmem:[%s19243_s2 + $0x213] sm:$0x1]  ;;  %v11111_v1 = vld [vmem:[%s19243_s2 + $0x223] sm:$0x1]  ;;  %v13251_v18 = vpack.i.bf16 %v3993_v3, %v3979_v4  ;;  %v4657_v17 = vsel %vm258_vm3, %v4656_v30, %v4655_v10  ;;  %v4296_v48 = vrot.slane %v11103_v39, 6  ;;  %v4298_v49 = vrot.slane %v11104_v59, 5 }
  0xdf   :  { %v11112_v2 = vld [vmem:[%s19243_s2 + $0x233] sm:$0x1]  ;;  %v11109_v53 = vld [vmem:[%s19243_s2 + $0x203] sm:$0x1]  ;;  %v4295_v32 = vsel %vm249_vm0, %v4294_v47, %v11101_v36  ;;  %v4659_v43 = vsel %vm261_vm4, %v4658_v9, %v4657_v17  ;;  %v4300_v50 = vrot.slane %v11105_v23, 4  ;;  %v4302_v62 = vrot.slane %v11106_v63, 3 }
  0xe0   :  { %v11113_v25 = vld [vmem:[%s19243_s2 + $0x243] sm:$0x1]  ;;  %v11114_v12 = vld [vmem:[%s19243_s2 + $0x253] sm:$0x1]  ;;  %13252 = vrot.lane.b32.xlu0 %v13251_v18, %s13413_s17  ;;  %v4661_v35 = vsel %vm264_vm5, %v4660_v27, %v4659_v43  ;;  %v4297_v16 = vsel %vm252_vm1, %v4296_v48, %v4295_v32  ;;  %v4304_v20 = vrot.slane %v11107_v46, 2  ;;  %v4306_v55 = vrot.slane %v11108_v22, 1 }
  0xe1   :  { %v11115_v13 = vld [vmem:[%s19243_s2 + $0x263] sm:$0x1]  ;;  %v11116_v26 = vld [vmem:[%s19243_s2 + $0x273] sm:$0x1]  ;;  %v11174_v7 = vld [vmem:[%s19243_s2 + $0x295] sm:$0x1]  ;;  %v4663_v40 = vsel %vm267_vm6, %v4662_v15, %v4661_v35  ;;  %v4299_v44 = vsel %vm255_vm2, %v4298_v49, %v4297_v16 }
  0xe2   :  { %v4308_v38 = vrot.slane %v11110_v6, 7  ;;  %v4310_v24 = vrot.slane %v11111_v1, 6  ;;  %v11173_v34 = vld [vmem:[%s19243_s2 + $0x285] sm:$0x1]  ;;  %v11176_v51 = vld [vmem:[%s19243_s2 + $0x2b5] sm:$0x1]  ;;  %4668 = vrot.lane.b32.xlu1 %v4663_v40, %s13413_s17  ;;  %v4301_v33 = vsel %vm258_vm3, %v4300_v50, %v4299_v44 }
  0xe3   :  { %v11175_v19 = vld [vmem:[%s19243_s2 + $0x2a5] sm:$0x1]  ;;  %v4312_v56 = vrot.slane %v11112_v2, 5  ;;  %v4314_v37 = vrot.slane %v11113_v25, 4  ;;  %v4316_v0 = vrot.slane %v11114_v12, 3  ;;  %v4303_v57 = vsel %vm261_vm4, %v4302_v62, %v4301_v33 }
  0xe4   :  { %v11177_v36 = vld [vmem:[%s19243_s2 + $0x2c5] sm:$0x1]  ;;  %v4309_v39 = vsel %vm249_vm0, %v4308_v38, %v11109_v53  ;;  %v4318_v14 = vrot.slane %v11115_v13, 2  ;;  %v4320_v60 = vrot.slane %v11116_v26, 1  ;;  %v11178_v30 = vld [vmem:[%s19243_s2 + $0x2d5] sm:$0x1]  ;;  %v4305_v23 = vsel %vm264_vm5, %v4304_v20, %v4303_v57 }
  0xe5   :  { %v11179_v59 = vld [vmem:[%s19243_s2 + $0x2e5] sm:$0x1]  ;;  %v4311_v4 = vsel %vm252_vm1, %v4310_v24, %v4309_v39  ;;  %v11180_v29 = vld [vmem:[%s19243_s2 + $0x2f5] sm:$0x1]  ;;  %v4978_v28 = vrot.slane %v11174_v7, 7  ;;  %v4980_v9 = vrot.slane %v11175_v19, 6  ;;  %v4307_v6 = vsel %vm267_vm6, %v4306_v55, %v4305_v23 }
  0xe6   :  { %v11130_v63 = vld [vmem:[%s19243_s2 + $0x194] sm:$0x1]  ;;  %v4313_v46 = vsel %vm255_vm2, %v4312_v56, %v4311_v4  ;;  %v4982_v58 = vrot.slane %v11176_v51, 5  ;;  %v4984_v41 = vrot.slane %v11177_v36, 4  ;;  %v11129_v27 = vld [vmem:[%s19243_s2 + $0x184] sm:$0x1] }
  0xe7   :  { %v11131_v22 = vld [vmem:[%s19243_s2 + $0x1a4] sm:$0x1]  ;;  %v4315_v47 = vsel %vm258_vm3, %v4314_v37, %v4313_v46  ;;  %v4979_v3 = vsel %vm249_vm0, %v4978_v28, %v11173_v34  ;;  %v4986_v10 = vrot.slane %v11178_v30, 3  ;;  %v11132_v15 = vld [vmem:[%s19243_s2 + $0x1b4] sm:$0x1]  ;;  %v4988_v17 = vrot.slane %v11179_v59, 2 }
  0xe8   :  { %v11133_v1 = vld [vmem:[%s19243_s2 + $0x1c4] sm:$0x1]  ;;  %v4317_v2 = vsel %vm261_vm4, %v4316_v0, %v4315_v47  ;;  %v4981_v18 = vsel %vm252_vm1, %v4980_v9, %v4979_v3  ;;  %v11134_v53 = vld [vmem:[%s19243_s2 + $0x1d4] sm:$0x1]  ;;  %v4622_v12 = vrot.slane %v11130_v63, 7  ;;  %v4990_v43 = vrot.slane %v11180_v29, 1 }
  0xe9   :  { %v11135_v25 = vld [vmem:[%s19243_s2 + $0x1e4] sm:$0x1]  ;;  %v4319_v32 = vsel %vm264_vm5, %v4318_v14, %v4317_v2  ;;  %v4983_v48 = vsel %vm255_vm2, %v4982_v58, %v4981_v18  ;;  %v11136_v13 = vld [vmem:[%s19243_s2 + $0x1f4] sm:$0x1]  ;;  %v4624_v24 = vrot.slane %v11131_v22, 6  ;;  %v4626_v34 = vrot.slane %v11132_v15, 5 }
  0xea   :  { %v11138_v49 = vld [vmem:[%s19243_s2 + $0x214] sm:$0x1]  ;;  %v4321_v50 = vsel %vm267_vm6, %v4320_v60, %v4319_v32  ;;  %v4985_v62 = vsel %vm258_vm3, %v4984_v41, %v4983_v48  ;;  %v11137_v35 = vld [vmem:[%s19243_s2 + $0x204] sm:$0x1]  ;;  %v4623_v55 = vsel %vm249_vm0, %v4622_v12, %v11129_v27  ;;  %v4628_v33 = vrot.slane %v11133_v1, 4 }
  0xeb   :  { %v11139_v26 = vld [vmem:[%s19243_s2 + $0x224] sm:$0x1]  ;;  %v11140_v16 = vld [vmem:[%s19243_s2 + $0x234] sm:$0x1]  ;;  %v13256_v7 = vpack.i.bf16 %v4321_v50, %v4307_v6  ;;  %v4987_v40 = vsel %vm261_vm4, %v4986_v10, %v4985_v62  ;;  %v4630_v56 = vrot.slane %v11134_v53, 3  ;;  %v4632_v37 = vrot.slane %v11135_v25, 2 }
  0xec   :  { %v11141_v20 = vld [vmem:[%s19243_s2 + $0x244] sm:$0x1]  ;;  %v11142_v44 = vld [vmem:[%s19243_s2 + $0x254] sm:$0x1]  ;;  %v4989_v19 = vsel %vm264_vm5, %v4988_v17, %v4987_v40  ;;  %v4625_v36 = vsel %vm252_vm1, %v4624_v24, %v4623_v55  ;;  %v4634_v57 = vrot.slane %v11136_v13, 1  ;;  %v4636_v39 = vrot.slane %v11138_v49, 7 }
  0xed   :  { %v11143_v38 = vld [vmem:[%s19243_s2 + $0x264] sm:$0x1]  ;;  %v11144_v51 = vld [vmem:[%s19243_s2 + $0x274] sm:$0x1]  ;;  %13257 = vrot.lane.b32.xlu0 %v13256_v7, %s13413_s17  ;;  %v4991_v0 = vsel %vm267_vm6, %v4990_v43, %v4989_v19  ;;  %v11202_v14 = vld [vmem:[%s19243_s2 + $0x296] sm:$0x1]  ;;  %v4627_v30 = vsel %vm255_vm2, %v4626_v34, %v4625_v36 }
  0xee   :  { %v11203_v60 = vld [vmem:[%s19243_s2 + $0x2a6] sm:$0x1]  ;;  %4996 = vrot.lane.b32.xlu1 %v4991_v0, %s13413_s17  ;;  %v4638_v59 = vrot.slane %v11139_v26, 6  ;;  %v4640_v23 = vrot.slane %v11140_v16, 5  ;;  %v4642_v4 = vrot.slane %v11141_v20, 4  ;;  %v4629_v28 = vsel %vm258_vm3, %v4628_v33, %v4627_v30 }
  0xef   :  { %v11204_v29 = vld [vmem:[%s19243_s2 + $0x2b6] sm:$0x1]  ;;  %v4637_v9 = vsel %vm249_vm0, %v4636_v39, %v11137_v35  ;;  %v4644_v63 = vrot.slane %v11142_v44, 3  ;;  %v4646_v46 = vrot.slane %v11143_v38, 2  ;;  %v11201_v58 = vld [vmem:[%s19243_s2 + $0x286] sm:$0x1]  ;;  %v4631_v27 = vsel %vm261_vm4, %v4630_v56, %v4629_v28 }
  0xf0   :  { %v11205_v41 = vld [vmem:[%s19243_s2 + $0x2c6] sm:$0x1]  ;;  %v4639_v22 = vsel %vm252_vm1, %v4638_v59, %v4637_v9  ;;  %v4648_v6 = vrot.slane %v11144_v51, 1  ;;  %v11206_v47 = vld [vmem:[%s19243_s2 + $0x2d6] sm:$0x1]  ;;  %v5306_v10 = vrot.slane %v11202_v14, 7  ;;  %v4633_v15 = vsel %vm264_vm5, %v4632_v37, %v4631_v27 }
  0xf1   :  { %v11207_v3 = vld [vmem:[%s19243_s2 + $0x2e6] sm:$0x1]  ;;  %v4641_v1 = vsel %vm255_vm2, %v4640_v23, %v4639_v22  ;;  %v11208_v2 = vld [vmem:[%s19243_s2 + $0x2f6] sm:$0x1]  ;;  %v5308_v18 = vrot.slane %v11203_v60, 6  ;;  %v5310_v17 = vrot.slane %v11204_v29, 5  ;;  %v4635_v25 = vsel %vm267_vm6, %v4634_v57, %v4633_v15 }
  0xf2   :  { %v11158_v53 = vld [vmem:[%s19243_s2 + $0x195] sm:$0x1]  ;;  %v4643_v12 = vsel %vm258_vm3, %v4642_v4, %v4641_v1  ;;  %v5307_v32 = vsel %vm249_vm0, %v5306_v10, %v11201_v58  ;;  %v5312_v48 = vrot.slane %v11205_v41, 4  ;;  %v11157_v43 = vld [vmem:[%s19243_s2 + $0x185] sm:$0x1]  ;;  %v5314_v50 = vrot.slane %v11206_v47, 3 }
  0xf3   :  { %v4645_v13 = vsel %vm261_vm4, %v4644_v63, %v4643_v12  ;;  %v5309_v49 = vsel %vm252_vm1, %v5308_v18, %v5307_v32  ;;  %v5316_v62 = vrot.slane %v11207_v3, 2  ;;  %v11159_v35 = vld [vmem:[%s19243_s2 + $0x1a5] sm:$0x1]  ;;  %v11160_v26 = vld [vmem:[%s19243_s2 + $0x1b5] sm:$0x1]  ;;  %v5318_v55 = vrot.slane %v11208_v2, 1 }
  0xf4   :  { %v4647_v16 = vsel %vm264_vm5, %v4646_v46, %v4645_v13  ;;  %v5311_v20 = vsel %vm255_vm2, %v5310_v17, %v5309_v49  ;;  %v11161_v7 = vld [vmem:[%s19243_s2 + $0x1c5] sm:$0x1]  ;;  %v11162_v40 = vld [vmem:[%s19243_s2 + $0x1d5] sm:$0x1]  ;;  %v4950_v44 = vrot.slane %v11158_v53, 7  ;;  %v4952_v30 = vrot.slane %v11159_v35, 6 }
  0xf5   :  { %v4649_v38 = vsel %vm267_vm6, %v4648_v6, %v4647_v16  ;;  %v5313_v24 = vsel %vm258_vm3, %v5312_v48, %v5311_v20  ;;  %v11163_v34 = vld [vmem:[%s19243_s2 + $0x1e5] sm:$0x1]  ;;  %v11164_v19 = vld [vmem:[%s19243_s2 + $0x1f5] sm:$0x1]  ;;  %v4954_v59 = vrot.slane %v11160_v26, 5  ;;  %v4956_v23 = vrot.slane %v11161_v7, 4 }
  0xf6   :  { %v11166_v51 = vld [vmem:[%s19243_s2 + $0x215] sm:$0x1]  ;;  %v13261_v33 = vpack.i.bf16 %v4649_v38, %v4635_v25  ;;  %v5315_v56 = vsel %vm261_vm4, %v5314_v50, %v5313_v24  ;;  %v11165_v37 = vld [vmem:[%s19243_s2 + $0x205] sm:$0x1]  ;;  %v4951_v39 = vsel %vm249_vm0, %v4950_v44, %v11157_v43  ;;  %v4958_v9 = vrot.slane %v11162_v40, 3 }
  0xf7   :  { %v11167_v0 = vld [vmem:[%s19243_s2 + $0x225] sm:$0x1]  ;;  %v11168_v36 = vld [vmem:[%s19243_s2 + $0x235] sm:$0x1]  ;;  %v5317_v14 = vsel %vm264_vm5, %v5316_v62, %v5315_v56  ;;  %v4960_v63 = vrot.slane %v11163_v34, 2  ;;  %v4953_v46 = vsel %vm252_vm1, %v4952_v30, %v4951_v39  ;;  %v4964_v58 = vrot.slane %v11166_v51, 7 }
  0xf8   :  { %v11169_v57 = vld [vmem:[%s19243_s2 + $0x245] sm:$0x1]  ;;  %v11170_v60 = vld [vmem:[%s19243_s2 + $0x255] sm:$0x1]  ;;  %13262 = vrot.lane.b32.xlu0 %v13261_v33, %s13413_s17  ;;  %v5319_v4 = vsel %vm267_vm6, %v5318_v55, %v5317_v14  ;;  %v4966_v41 = vrot.slane %v11167_v0, 6  ;;  %v4968_v27 = vrot.slane %v11168_v36, 5  ;;  %v4955_v6 = vsel %vm255_vm2, %v4954_v59, %v4953_v46 }
  0xf9   :  { %v11171_v29 = vld [vmem:[%s19243_s2 + $0x265] sm:$0x1]  ;;  %v11172_v28 = vld [vmem:[%s19243_s2 + $0x275] sm:$0x1]  ;;  %5324 = vrot.lane.b32.xlu1 %v5319_v4, %s13413_s17  ;;  %v11230_v22 = vld [vmem:[%s19243_s2 + $0x297] sm:$0x1]  ;;  %v4957_v1 = vsel %vm258_vm3, %v4956_v23, %v4955_v6  ;;  %v4965_v2 = vsel %vm249_vm0, %v4964_v58, %v11165_v37 }
  0xfa   :  { %v4962_v47 = vrot.slane %v11164_v19, 1  ;;  %v4970_v3 = vrot.slane %v11169_v57, 4  ;;  %v11229_v10 = vld [vmem:[%s19243_s2 + $0x287] sm:$0x1]  ;;  %v4972_v18 = vrot.slane %v11170_v60, 3  ;;  %v5634_v25 = vrot.slane %v11230_v22, 7 }
  0xfb   :  { %v11231_v15 = vld [vmem:[%s19243_s2 + $0x2a7] sm:$0x1]  ;;  %v11232_v17 = vld [vmem:[%s19243_s2 + $0x2b7] sm:$0x1]  ;;  %v4959_v12 = vsel %vm261_vm4, %v4958_v9, %v4957_v1  ;;  %v4967_v32 = vsel %vm252_vm1, %v4966_v41, %v4965_v2  ;;  %v4974_v48 = vrot.slane %v11171_v29, 2  ;;  %v4976_v43 = vrot.slane %v11172_v28, 1 }
  0xfc   :  { %v11233_v53 = vld [vmem:[%s19243_s2 + $0x2c7] sm:$0x1]  ;;  %v11234_v13 = vld [vmem:[%s19243_s2 + $0x2d7] sm:$0x1]  ;;  %v4961_v50 = vsel %vm264_vm5, %v4960_v63, %v4959_v12  ;;  %v4969_v62 = vsel %vm255_vm2, %v4968_v27, %v4967_v32  ;;  %v5635_v26 = vsel %vm249_vm0, %v5634_v25, %v11229_v10  ;;  %v5636_v16 = vrot.slane %v11231_v15, 6 }
  0xfd   :  { %v11235_v49 = vld [vmem:[%s19243_s2 + $0x2e7] sm:$0x1]  ;;  %v11236_v35 = vld [vmem:[%s19243_s2 + $0x2f7] sm:$0x1]  ;;  %v11186_v20 = vld [vmem:[%s19243_s2 + $0x196] sm:$0x1]  ;;  %v4963_v55 = vsel %vm267_vm6, %v4962_v47, %v4961_v50  ;;  %v4971_v7 = vsel %vm258_vm3, %v4970_v3, %v4969_v62 }
  0xfe   :  { %v5638_v40 = vrot.slane %v11232_v17, 5  ;;  %v5640_v44 = vrot.slane %v11233_v53, 4  ;;  %v4973_v38 = vsel %vm261_vm4, %v4972_v18, %v4971_v7  ;;  %v5637_v24 = vsel %vm252_vm1, %v5636_v16, %v5635_v26  ;;  %v11185_v51 = vld [vmem:[%s19243_s2 + $0x186] sm:$0x1]  ;;  %v11188_v36 = vld [vmem:[%s19243_s2 + $0x1b6] sm:$0x1] }
  0xff   :  { %v5642_v34 = vrot.slane %v11234_v13, 3  ;;  %v5644_v19 = vrot.slane %v11235_v49, 2  ;;  %v4975_v33 = vsel %vm264_vm5, %v4974_v48, %v4973_v38  ;;  %v5646_v37 = vrot.slane %v11236_v35, 1  ;;  %v11187_v0 = vld [vmem:[%s19243_s2 + $0x1a6] sm:$0x1] }
 0x100   :  { %v5639_v56 = vsel %vm255_vm2, %v5638_v40, %v5637_v24  ;;  %v5278_v57 = vrot.slane %v11186_v20, 7  ;;  %v4977_v39 = vsel %vm267_vm6, %v4976_v43, %v4975_v33  ;;  %v11189_v60 = vld [vmem:[%s19243_s2 + $0x1c6] sm:$0x1]  ;;  %v11190_v30 = vld [vmem:[%s19243_s2 + $0x1d6] sm:$0x1]  ;;  %v5280_v22 = vrot.slane %v11187_v0, 6 }
 0x101   :  { %v5641_v14 = vsel %vm258_vm3, %v5640_v44, %v5639_v56  ;;  %v11191_v59 = vld [vmem:[%s19243_s2 + $0x1e6] sm:$0x1]  ;;  %v13266_v23 = vpack.i.bf16 %v4977_v39, %v4963_v55  ;;  %v11192_v29 = vld [vmem:[%s19243_s2 + $0x1f6] sm:$0x1]  ;;  %v5282_v6 = vrot.slane %v11188_v36, 5  ;;  %v5284_v15 = vrot.slane %v11189_v60, 4 }
 0x102   :  { %v5643_v4 = vsel %vm261_vm4, %v5642_v34, %v5641_v14  ;;  %v11193_v28 = vld [vmem:[%s19243_s2 + $0x206] sm:$0x1]  ;;  %v11194_v9 = vld [vmem:[%s19243_s2 + $0x216] sm:$0x1]  ;;  %v5279_v46 = vsel %vm249_vm0, %v5278_v57, %v11185_v51  ;;  %v5286_v1 = vrot.slane %v11190_v30, 3  ;;  %v5288_v17 = vrot.slane %v11191_v59, 2 }
 0x103   :  { %v11195_v63 = vld [vmem:[%s19243_s2 + $0x226] sm:$0x1]  ;;  %v5645_v58 = vsel %vm264_vm5, %v5644_v19, %v5643_v4  ;;  %v11196_v41 = vld [vmem:[%s19243_s2 + $0x236] sm:$0x1]  ;;  %13267 = vrot.lane.b32.xlu0 %v13266_v23, %s13413_s17  ;;  %v5281_v18 = vsel %vm252_vm1, %v5280_v22, %v5279_v46  ;;  %v5292_v53 = vrot.slane %v11194_v9, 7  ;;  %v5290_v50 = vrot.slane %v11192_v29, 1 }
 0x104   :  { %v11197_v27 = vld [vmem:[%s19243_s2 + $0x246] sm:$0x1]  ;;  %v5647_v47 = vsel %vm267_vm6, %v5646_v37, %v5645_v58  ;;  %v11198_v3 = vld [vmem:[%s19243_s2 + $0x256] sm:$0x1]  ;;  %v5294_v25 = vrot.slane %v11195_v63, 6  ;;  %v5283_v12 = vsel %vm255_vm2, %v5282_v6, %v5281_v18  ;;  %v5296_v32 = vrot.slane %v11196_v41, 5 }
 0x105   :  { %v11199_v10 = vld [vmem:[%s19243_s2 + $0x266] sm:$0x1]  ;;  %5652 = vrot.lane.b32.xlu1 %v5647_v47, %s13413_s17  ;;  %v11200_v2 = vld [vmem:[%s19243_s2 + $0x276] sm:$0x1]  ;;  %v5298_v48 = vrot.slane %v11197_v27, 4  ;;  %v5285_v49 = vsel %vm258_vm3, %v5284_v15, %v5283_v12  ;;  %v5293_v62 = vsel %vm249_vm0, %v5292_v53, %v11193_v28  ;;  %v5300_v35 = vrot.slane %v11198_v3, 3 }
 0x106   :  { %v11258_v43 = vld [vmem:[%s19243_s2 + $0x298] sm:$0x1]  ;;  %v11259_v13 = vld [vmem:[%s19243_s2 + $0x2a8] sm:$0x1]  ;;  %v5287_v20 = vsel %vm261_vm4, %v5286_v1, %v5285_v49  ;;  %v5295_v55 = vsel %vm252_vm1, %v5294_v25, %v5293_v62  ;;  %v5302_v7 = vrot.slane %v11199_v10, 2  ;;  %v5304_v40 = vrot.slane %v11200_v2, 1 }
 0x107   :  { %v11260_v26 = vld [vmem:[%s19243_s2 + $0x2b8] sm:$0x1]  ;;  %v11261_v16 = vld [vmem:[%s19243_s2 + $0x2c8] sm:$0x1]  ;;  %v5289_v24 = vsel %vm264_vm5, %v5288_v17, %v5287_v20  ;;  %v5297_v34 = vsel %vm255_vm2, %v5296_v32, %v5295_v55  ;;  %v5962_v51 = vrot.slane %v11258_v43, 7  ;;  %v5964_v33 = vrot.slane %v11259_v13, 6 }
 0x108   :  { %v11257_v44 = vld [vmem:[%s19243_s2 + $0x288] sm:$0x1]  ;;  %v11262_v38 = vld [vmem:[%s19243_s2 + $0x2d8] sm:$0x1]  ;;  %v11214_v56 = vld [vmem:[%s19243_s2 + $0x197] sm:$0x1]  ;;  %v5299_v37 = vsel %vm258_vm3, %v5298_v48, %v5297_v34  ;;  %v5291_v39 = vsel %vm267_vm6, %v5290_v50, %v5289_v24 }
 0x109   :  { %v11263_v19 = vld [vmem:[%s19243_s2 + $0x2e8] sm:$0x1]  ;;  %v11264_v0 = vld [vmem:[%s19243_s2 + $0x2f8] sm:$0x1]  ;;  %v5966_v36 = vrot.slane %v11260_v26, 5  ;;  %v5968_v57 = vrot.slane %v11261_v16, 4  ;;  %v5301_v14 = vsel %vm261_vm4, %v5300_v35, %v5299_v37  ;;  %v5963_v60 = vsel %vm249_vm0, %v5962_v51, %v11257_v44 }
 0x10a   :  { %v5970_v30 = vrot.slane %v11262_v38, 3  ;;  %v11213_v59 = vld [vmem:[%s19243_s2 + $0x187] sm:$0x1]  ;;  %v5303_v4 = vsel %vm264_vm5, %v5302_v7, %v5301_v14  ;;  %v5965_v29 = vsel %vm252_vm1, %v5964_v33, %v5963_v60  ;;  %v5972_v28 = vrot.slane %v11263_v19, 2  ;;  %v11216_v9 = vld [vmem:[%s19243_s2 + $0x1b7] sm:$0x1] }
 0x10b   :  { %v11215_v23 = vld [vmem:[%s19243_s2 + $0x1a7] sm:$0x1]  ;;  %v5606_v46 = vrot.slane %v11214_v56, 7  ;;  %v5305_v58 = vsel %vm267_vm6, %v5304_v40, %v5303_v4  ;;  %v5967_v41 = vsel %vm255_vm2, %v5966_v36, %v5965_v29  ;;  %v5974_v27 = vrot.slane %v11264_v0, 1  ;;  %v11218_v22 = vld [vmem:[%s19243_s2 + $0x1d7] sm:$0x1] }
 0x10c   :  { %v11217_v63 = vld [vmem:[%s19243_s2 + $0x1c7] sm:$0x1]  ;;  %v13271_v47 = vpack.i.bf16 %v5305_v58, %v5291_v39  ;;  %v5969_v3 = vsel %vm258_vm3, %v5968_v57, %v5967_v41  ;;  %v11220_v10 = vld [vmem:[%s19243_s2 + $0x1f7] sm:$0x1]  ;;  %v5608_v12 = vrot.slane %v11215_v23, 6  ;;  %v5610_v32 = vrot.slane %v11216_v9, 5 }
 0x10d   :  { %v11219_v6 = vld [vmem:[%s19243_s2 + $0x1e7] sm:$0x1]  ;;  %v11222_v1 = vld [vmem:[%s19243_s2 + $0x217] sm:$0x1]  ;;  %v5607_v18 = vsel %vm249_vm0, %v5606_v46, %v11213_v59  ;;  %v5971_v17 = vsel %vm261_vm4, %v5970_v30, %v5969_v3  ;;  %v5612_v49 = vrot.slane %v11217_v63, 4  ;;  %v5614_v50 = vrot.slane %v11218_v22, 3 }
 0x10e   :  { %v11221_v15 = vld [vmem:[%s19243_s2 + $0x207] sm:$0x1]  ;;  %v11224_v53 = vld [vmem:[%s19243_s2 + $0x237] sm:$0x1]  ;;  %13272 = vrot.lane.b32.xlu0 %v13271_v47, %s13413_s17  ;;  %v5973_v48 = vsel %vm264_vm5, %v5972_v28, %v5971_v17  ;;  %v5609_v26 = vsel %vm252_vm1, %v5608_v12, %v5607_v18  ;;  %v5616_v16 = vrot.slane %v11219_v6, 2  ;;  %v5620_v20 = vrot.slane %v11222_v1, 7 }
 0x10f   :  { %v11223_v2 = vld [vmem:[%s19243_s2 + $0x227] sm:$0x1]  ;;  %v11226_v43 = vld [vmem:[%s19243_s2 + $0x257] sm:$0x1]  ;;  %v5975_v62 = vsel %vm267_vm6, %v5974_v27, %v5973_v48  ;;  %v11242_v55 = vld [vmem:[%s19243_s2 + $0x198] sm:$0x1]  ;;  %v5611_v7 = vsel %vm255_vm2, %v5610_v32, %v5609_v26 }
 0x110   :  { %v11225_v25 = vld [vmem:[%s19243_s2 + $0x247] sm:$0x1]  ;;  %v11228_v35 = vld [vmem:[%s19243_s2 + $0x277] sm:$0x1]  ;;  %5980 = vrot.lane.b32.xlu1 %v5975_v62, %s13413_s17  ;;  %v5622_v40 = vrot.slane %v11223_v2, 6  ;;  %v5624_v44 = vrot.slane %v11224_v53, 5  ;;  %v5613_v19 = vsel %vm258_vm3, %v5612_v49, %v5611_v7  ;;  %v5621_v33 = vsel %vm249_vm0, %v5620_v20, %v11221_v15 }
 0x111   :  { %v11227_v13 = vld [vmem:[%s19243_s2 + $0x267] sm:$0x1]  ;;  %v5626_v38 = vrot.slane %v11225_v25, 4  ;;  %v6128_v24 = vld [vmem:[%s19244_s8 + $0x8] sm:$0xff]  ;;  %v5618_v51 = vrot.slane %v11220_v10, 1  ;;  %v5628_v56 = vrot.slane %v11226_v43, 3  ;;  %v5615_v36 = vsel %vm261_vm4, %v5614_v50, %v5613_v19 }
 0x112   :  { %v11241_v34 = vld [vmem:[%s19243_s2 + $0x188] sm:$0x1]  ;;  %v11244_v0 = vld [vmem:[%s19243_s2 + $0x1b8] sm:$0x1]  ;;  %v5623_v57 = vsel %vm252_vm1, %v5622_v40, %v5621_v33  ;;  %v5630_v39 = vrot.slane %v11227_v13, 2  ;;  %v5934_v30 = vrot.slane %v11242_v55, 7  ;;  %v5617_v59 = vsel %vm264_vm5, %v5616_v16, %v5615_v36 }
 0x113   :  { %v11243_v37 = vld [vmem:[%s19243_s2 + $0x1a8] sm:$0x1]  ;;  %v11246_v60 = vld [vmem:[%s19243_s2 + $0x1d8] sm:$0x1]  ;;  %v5625_v23 = vsel %vm255_vm2, %v5624_v44, %v5623_v57  ;;  %v5632_v4 = vrot.slane %v11228_v35, 1  ;;  %v5619_v22 = vsel %vm267_vm6, %v5618_v51, %v5617_v59  ;;  %v5938_v15 = vrot.slane %v11244_v0, 5 }
 0x114   :  { %v11245_v14 = vld [vmem:[%s19243_s2 + $0x1c8] sm:$0x1]  ;;  %v11248_v28 = vld [vmem:[%s19243_s2 + $0x1f8] sm:$0x1]  ;;  %v5627_v63 = vsel %vm258_vm3, %v5626_v38, %v5625_v23  ;;  %6140 = vperm.xlu1 %13219, %v6128_v24   ;;  %v5935_v27 = vsel %vm249_vm0, %v5934_v30, %v11241_v34  ;;  %v5936_v10 = vrot.slane %v11243_v37, 6  ;;  %v5942_v17 = vrot.slane %v11246_v60, 3 }
 0x115   :  { %v11247_v29 = vld [vmem:[%s19243_s2 + $0x1e8] sm:$0x1]  ;;  %v6130_v9 = vld [vmem:[%s19244_s8 + $0x18] sm:$0xff]  ;;  %v5629_v6 = vsel %vm261_vm4, %v5628_v56, %v5627_v63  ;;  %v5940_v18 = vrot.slane %v11245_v14, 4  ;;  %v5946_v48 = vrot.slane %v11248_v28, 1  ;;  %v6127_v14 = vld [vmem:[%s19244_s8] sm:$0xff] }
 0x116   :  { %v11249_v46 = vld [vmem:[%s19243_s2 + $0x208] sm:$0x1]  ;;  %v11250_v58 = vld [vmem:[%s19243_s2 + $0x218] sm:$0x1]  ;;  %v5631_v1 = vsel %vm264_vm5, %v5630_v39, %v5629_v6  ;;  %v5944_v53 = vrot.slane %v11247_v29, 2  ;;  %v5937_v32 = vsel %vm252_vm1, %v5936_v10, %v5935_v27  ;;  %v6129_v30 = vld [vmem:[%s19244_s8 + $0x10] sm:$0xff] }
 0x117   :  { %v11251_v41 = vld [vmem:[%s19243_s2 + $0x228] sm:$0x1]  ;;  %v11252_v47 = vld [vmem:[%s19243_s2 + $0x238] sm:$0x1]  ;;  %v5633_v25 = vsel %vm267_vm6, %v5632_v4, %v5631_v1  ;;  %v5948_v43 = vrot.slane %v11250_v58, 7  ;;  %v5939_v50 = vsel %vm255_vm2, %v5938_v15, %v5937_v32  ;;  %v6131_v23 = vld [vmem:[%s19244_s8 + $0x20] sm:$0xff]  ;;  %v85_v58 = vpop.permute.xlu1 %84 }
 0x118   :  { %v11253_v3 = vld [vmem:[%s19243_s2 + $0x248] sm:$0x1]  ;;  %v11254_v2 = vld [vmem:[%s19243_s2 + $0x258] sm:$0x1]  ;;  %v13276_v13 = vpack.i.bf16 %v5633_v25, %v5619_v22  ;;  %v5950_v62 = vrot.slane %v11251_v41, 6  ;;  %v5952_v35 = vrot.slane %v11252_v47, 5  ;;  %6150 = vperm.xlu1 %13219, %v6130_v9   ;;  %v5941_v26 = vsel %vm258_vm3, %v5940_v18, %v5939_v50 }
 0x119   :  { %v11255_v12 = vld [vmem:[%s19243_s2 + $0x268] sm:$0x1]  ;;  %v11256_v49 = vld [vmem:[%s19243_s2 + $0x278] sm:$0x1]  ;;  %v5949_v16 = vsel %vm249_vm0, %v5948_v43, %v11249_v46  ;;  %v5954_v20 = vrot.slane %v11253_v3, 4  ;;  %v5956_v55 = vrot.slane %v11254_v2, 3  ;;  %v5943_v40 = vsel %vm261_vm4, %v5942_v17, %v5941_v26  ;;  %v90_v3 = vpop.permute.xlu0 %89 }
 0x11a   :  { %v6132_v7 = vld [vmem:[%s19244_s8 + $0x28] sm:$0xff]  ;;  %13277 = vrot.lane.b32.xlu0 %v13276_v13, %s13413_s17  ;;  %v5951_v44 = vsel %vm252_vm1, %v5950_v62, %v5949_v16  ;;  %v5958_v38 = vrot.slane %v11255_v12, 2  ;;  %v5945_v24 = vsel %vm264_vm5, %v5944_v53, %v5943_v40  ;;  %v5960_v19 = vrot.slane %v11256_v49, 1  ;;  %v10472_v39 = vld [vmem:[%s19245_s12 + $0x18] sm:$0xff]  ;;  %v10469_v4 = vld [vmem:[%s19245_s12] sm:$0xff] }
 0x11b   :  { %v5953_v34 = vsel %vm255_vm2, %v5952_v35, %v5951_v44  ;;  %v5947_v33 = vsel %vm267_vm6, %v5946_v48, %v5945_v24  ;;  %v10470_v37 = vld [vmem:[%s19245_s12 + $0x8] sm:$0xff]  ;;  %v10471_v29 = vld [vmem:[%s19245_s12 + $0x10] sm:$0xff]  ;;  %v10473_v28 = vld [vmem:[%s19245_s12 + $0x20] sm:$0xff]  ;;  %v16115_v27 = vpop.permute.xlu1 %382 }
 0x11c   :  { %v5955_v51 = vsel %vm258_vm3, %v5954_v20, %v5953_v34  ;;  %6160 = vperm.xlu1 %13219, %v6132_v7   ;;  %v10474_v60 = vld [vmem:[%s19245_s12 + $0x28] sm:$0xff]  ;;  %v10649_v9 = vld [vmem:[%s19246_s14] sm:$0xff]  ;;  %v10651_v63 = vld [vmem:[%s19246_s14 + $0x10] sm:$0xff] }
 0x11d   :  { %v5957_v56 = vsel %vm261_vm4, %v5956_v55, %v5955_v51  ;;  %v10650_v59 = vld [vmem:[%s19246_s14 + $0x8] sm:$0xff]  ;;  %v16109_v46 = vld [vmem:[%s19247_s9] sm:$0xff]  ;;  %v95_v43 = vpop.permute.xlu0 %94 }
 0x11e   :  { %v5959_v0 = vsel %vm264_vm5, %v5958_v38, %v5957_v56  ;;  %11924 = vmatprep.mubr.msk.f32.mxu0 %vm105_vm7, %v16109_v46  ;;  %12009 = vmatprep.mubr.msk.f32.mxu1 %vm105_vm7, %v16109_v46  ;;  %v16141_v51 = vld [vmem:[%s19247_s9 + $0x8] sm:$0xf]  ;;  %v1873_v56 = vld [vmem:[%s19237_s1 + $0x115] sm:$0x1] }
 0x11f   :  { %v5961_v36 = vsel %vm267_vm6, %v5960_v19, %v5959_v0  ;;  %v16117_v10 = vpop.permute.xlu1 %387 }
 0x120   :  { %v13281_v57 = vpack.i.bf16 %v5961_v36, %v5947_v33  ;;  %10482 = vperm.xlu1 %13219, %v10470_v37  }
 0x122   :  { %13282 = vrot.lane.b32.xlu0 %v13281_v57, %s13413_s17 }
 0x123   :  { %v16133_v7 = vpop.permute.xlu1 %392 }
 0x124   :  { %10492 = vperm.xlu1 %13219, %v10472_v39   ;;  %v1857_v39 = vld [vmem:[%s19237_s1 + $0x15] sm:$0x1] }
 0x126   :  { %6135 = vperm.xlu0 %13220, %v6127_v14  }
 0x128   :  { %10502 = vperm.xlu1 %13219, %v10474_v60   ;;  %v1865_v60 = vld [vmem:[%s19237_s1 + $0x95] sm:$0x1] }
 0x12a   :  { %6145 = vperm.xlu0 %13220, %v6129_v30   ;;  %v1872_v30 = vld [vmem:[%s19237_s1 + $0x105] sm:$0x1] }
 0x12c   :  { %10659 = vperm.xlu1 %13219, %v10650_v59   ;;  %v1874_v59 = vld [vmem:[%s19237_s1 + $0x125] sm:$0x1] }
 0x12e   :  { %6155 = vperm.xlu0 %13220, %v6131_v23   ;;  %v1956_v23 = vrot.slane %v1873_v56, 7  ;;  %v16237_v56 = vpop.permute.xlu0 %13222 }
 0x132   :  { %10477 = vperm.xlu0 %13220, %v10469_v4   ;;  %v1875_v4 = vld [vmem:[%s19237_s1 + $0x135] sm:$0x1] }
 0x136   :  { %10487 = vperm.xlu0 %13220, %v10471_v29  }
 0x13a   :  { %10497 = vperm.xlu0 %13220, %v10473_v28  }
 0x13e   :  { %10654 = vperm.xlu0 %13220, %v10649_v9  }
 0x142   :  { %10664 = vperm.xlu0 %13220, %v10651_v63   ;;  %v1858_v63 = vld [vmem:[%s19237_s1 + $0x25] sm:$0x1] }
 0x168   :  { %v11916_v41 = vpop.f32.mrb[0].mxu1 }
 0x169   :  { %v446_v22 = vpop.f32.mrb[1].mxu1  ;;  %v455_v40 = vadd.f32 %v11916_v41, %v16133_v7  ;;  %v1856_v41 = vld [vmem:[%s19237_s1 + $0x5] sm:$0x1] }
 0x16a   :  { %v11917_v6 = vpop.f32.mrb[2].mxu1  ;;  %v447_v13 = vadd.f32 %v446_v22, %v16115_v27  ;;  %v1866_v22 = vld [vmem:[%s19237_s1 + $0xa5] sm:$0x1] }
 0x16b   :  { %v449_v47 = vpop.f32.mrb[3].mxu1  ;;  %v1942_v6 = vrot.slane %v1865_v60, 7 }
 0x16c   :  { %v450_v49 = vadd.f32 %v449_v47, %v16117_v10  ;;  %v16183_v47 = vld [vmem:[%s19237_s1 + $0x145] sm:$0x1] }
 0x170   :  { %v11908_v15 = vpop.f32.mrb[0].mxu0  ;;  %v11933_v1 = vpop.f32.mrb[4].mxu1 }
 0x171   :  { %v150_v2 = vpop.f32.mrb[1].mxu0  ;;  %v778_v18 = vpop.f32.mrb[5].mxu1  ;;  %v16127_v35 = vadd.f32 %v11908_v15, %v95_v43  ;;  %v787_v34 = vadd.f32 %v11933_v1, %v16133_v7  ;;  %v1864_v1 = vld [vmem:[%s19237_s1 + $0x85] sm:$0x1]  ;;  %v1867_v43 = vld [vmem:[%s19237_s1 + $0xb5] sm:$0x1] }
 0x172   :  { %v16119_v17 = vadd.f32 %v150_v2, %v85_v58  ;;  %v11909_v53 = vpop.f32.mrb[2].mxu0  ;;  %v779_v25 = vadd.f32 %v778_v18, %v16115_v27  ;;  %v11934_v12 = vpop.f32.mrb[6].mxu1  ;;  %v1928_v58 = vrot.slane %v1857_v39, 7  ;;  %v16191_v2 = vld [vmem:[%s19237_s1 + $0x155] sm:$0x1]  ;;  %v1957_v18 = vsel %vm249_vm0, %v1956_v23, %v1872_v30 }
 0x173   :  { %v153_v32 = vpop.f32.mrb[3].mxu0  ;;  %v781_v48 = vpop.f32.mrb[7].mxu1  ;;  %v462_v24 = vmul.f32 %v455_v40, %v16127_v35  ;;  %v794_v36 = vmul.f32 %v787_v34, %v16127_v35  ;;  %v1859_v53 = vld [vmem:[%s19237_s1 + $0x35] sm:$0x1]  ;;  %v16202_v12 = vld [vmem:[%s19237_s1 + $0x116] sm:$0x1] }
 0x174   :  { %v16124_v50 = vadd.f32 %v153_v32, %v90_v3  ;;  %v782_v62 = vadd.f32 %v781_v48, %v16117_v10  ;;  %v460_v26 = vmul.f32 %v447_v13, %v16119_v17  ;;  %v792_v20 = vmul.f32 %v779_v25, %v16119_v17  ;;  %v16207_v32 = vld [vmem:[%s19237_s1 + $0x126] sm:$0x1]  ;;  %v2193_v40 = vld [vmem:[%s19237_s1 + $0x96] sm:$0x1]  ;;  %v1868_v34 = vld [vmem:[%s19237_s1 + $0xc5] sm:$0x1] }
 0x175   :  { %v1958_v3 = vrot.slane %v1874_v59, 6  ;;  %v1930_v25 = vrot.slane %v1858_v63, 6  ;;  %v1929_v13 = vsel %vm249_vm0, %v1928_v58, %v1856_v41  ;;  %v2184_v23 = vld [vmem:[%s19237_s1 + $0x6] sm:$0x1]  ;;  %v2286_v63 = vrot.slane %v16207_v32, 6 }
 0x176   :  { %v461_v16 = vmul.f32 %v450_v49, %v16124_v50  ;;  %v793_v55 = vmul.f32 %v782_v62, %v16124_v50  ;;  %v1944_v49 = vrot.slane %v1866_v22, 6  ;;  %v2185_v62 = vld [vmem:[%s19237_s1 + $0x16] sm:$0x1]  ;;  %v2192_v22 = vld [vmem:[%s19237_s1 + $0x86] sm:$0x1] }
 0x177   :  { %v2256_v39 = vrot.slane %v2185_v62, 7  ;;  %v2198_v32 = vld [vmem:[%s19237_s1 + $0xe6] sm:$0x1] }
 0x178   :  { %v12939_v44 = vpack.c.bf16 %v461_v16, %v460_v26  ;;  %v12943_v38 = vpack.c.bf16 %v793_v55, %v792_v20  ;;  %v1960_v26 = vrot.slane %v1875_v4, 5  ;;  %v1962_v16 = vrot.slane %v16183_v47, 4  ;;  %v1860_v20 = vld [vmem:[%s19237_s1 + $0x45] sm:$0x1]  ;;  %v2194_v4 = vld [vmem:[%s19237_s1 + $0xa6] sm:$0x1] }
 0x179   :  { %v1943_v55 = vsel %vm249_vm0, %v1942_v6, %v1864_v1  ;;  %v1934_v41 = vrot.slane %v1860_v20, 4  ;;  %v1948_v1 = vrot.slane %v1868_v34, 4 }
 0x17a   :  { %12940 = vmatprep.subr.bf16.mxu0 %v12939_v44  ;;  %v1945_v59 = vsel %vm252_vm1, %v1944_v49, %v1943_v55  ;;  %v2200_v49 = vld [vmem:[%s19237_s1 + $0x106] sm:$0x1]  ;;  %v1862_v55 = vld [vmem:[%s19237_s1 + $0x65] sm:$0x1] }
 0x17b   :  { %12942 = vmatpush3.bf16.msra.mxu0 %v12939_v44  ;;  %v1959_v44 = vsel %vm252_vm1, %v1958_v3, %v1957_v18  ;;  %v1869_v3 = vld [vmem:[%s19237_s1 + $0xd5] sm:$0x1]  ;;  %v2187_v18 = vld [vmem:[%s19237_s1 + $0x36] sm:$0x1] }
 0x17c   :  { %11922 = vmatprep.subr.mxu0 %v462_v24  ;;  %v11950_v19 = vpop.f32.mrb[8].mxu1 }
 0x17d   :  { %v1106_v33 = vpop.f32.mrb[9].mxu1  ;;  %v1115_v29 = vadd.f32 %v11950_v19, %v16133_v7  ;;  %v1932_v19 = vrot.slane %v1859_v53, 5 }
 0x17e   :  { %v1107_v37 = vadd.f32 %v1106_v33, %v16115_v27  ;;  %v11951_v0 = vpop.f32.mrb[10].mxu1  ;;  %v1964_v33 = vrot.slane %v16191_v2, 3 }
 0x17f   :  { %11923 = vmatpush3.msra.mxu0 %v462_v24  ;;  %v1109_v57 = vpop.f32.mrb[11].mxu1  ;;  %v1122_v48 = vmul.f32 %v1115_v29, %v16127_v35  ;;  %v16231_v24 = vld [vmem:[%s19237_s1 + $0x55] sm:$0x1]  ;;  %v1931_v0 = vsel %vm252_vm1, %v1930_v25, %v1929_v13  ;;  %v2270_v29 = vrot.slane %v2193_v40, 7  ;;  %v2272_v13 = vrot.slane %v2194_v4, 6 }
 0x180   :  { %12944 = vmatprep.subr.bf16.mxu0 %v12943_v38  ;;  %11925 = vmatmul.mubr.msk.f32.vlgmr.msra.gmra.mrb[4].mxu0 %vm105_vm7, %v16141_v51  ;;  %v1110_v14 = vadd.f32 %v1109_v57, %v16117_v10  ;;  %v1120_v28 = vmul.f32 %v1107_v37, %v16119_v17  ;;  %v2186_v57 = vld [vmem:[%s19237_s1 + $0x26] sm:$0x1]  ;;  %v1936_v25 = vrot.slane %v16231_v24, 3  ;;  %v1870_v24 = vld [vmem:[%s19237_s1 + $0xe5] sm:$0x1] }
 0x181   :  { %12946 = vmatpush3.bf16.msra.mxu0 %v12943_v38  ;;  %11941 = vmatprep.mubr.msk.f32.mxu0 %vm105_vm7, %v16109_v46  ;;  %v2258_v53 = vrot.slane %v2186_v57, 6  ;;  %v2271_v40 = vsel %vm249_vm0, %v2270_v29, %v2192_v22  ;;  %v1863_v29 = vld [vmem:[%s19237_s1 + $0x75] sm:$0x1] }
 0x182   :  { %11939 = vmatprep.subr.mxu0 %v794_v36  ;;  %v1121_v9 = vmul.f32 %v1110_v14, %v16124_v50  ;;  %v13225_v14 = vunpack.i.h.bf16 %v16237_v56  ;;  %v1879_v22 = vld [vmem:[%s19237_s1 + $0x175] sm:$0x1] }
 0x184   :  { %v12947_v15 = vpack.c.bf16 %v1121_v9, %v1120_v28  ;;  %v1961_v28 = vsel %vm255_vm2, %v1960_v26, %v1959_v44  ;;  %v2284_v9 = vrot.slane %v16202_v12, 7  ;;  %v13224_v44 = vunpack.i.l.bf16 %v16237_v56 }
 0x185   :  { %11940 = vmatpush3.msra.mxu0 %v794_v36  ;;  %v1946_v36 = vrot.slane %v1867_v43, 5  ;;  %v2257_v43 = vsel %vm249_vm0, %v2256_v39, %v2184_v23  ;;  %v2196_v39 = vld [vmem:[%s19237_s1 + $0xc6] sm:$0x1]  ;;  %v2203_v23 = vld [vmem:[%s19237_s1 + $0x136] sm:$0x1] }
 0x186   :  { %11942 = vmatmul.mubr.msk.f32.vlgmr.msra.gmra.mrb[6].mxu0 %vm105_vm7, %v16141_v51  ;;  %12948 = vmatprep.subr.bf16.mxu0 %v12947_v15  ;;  %v2285_v4 = vsel %vm249_vm0, %v2284_v9, %v2200_v49  ;;  %v1952_v9 = vrot.slane %v1870_v24, 2 }
 0x187   :  { %11958 = vmatprep.mubr.msk.f32.mxu0 %vm105_vm7, %v16109_v46  ;;  %12950 = vmatpush3.bf16.msra.mxu0 %v12947_v15  ;;  %v1933_v15 = vsel %vm255_vm2, %v1932_v19, %v1931_v0  ;;  %v1947_v12 = vsel %vm255_vm2, %v1946_v36, %v1945_v59  ;;  %v1950_v19 = vrot.slane %v1869_v3, 3  ;;  %v1878_v0 = vld [vmem:[%s19237_s1 + $0x165] sm:$0x1]  ;;  %v1963_v59 = vsel %vm258_vm3, %v1962_v16, %v1961_v28  ;;  %v1871_v16 = vld [vmem:[%s19237_s1 + $0xf5] sm:$0x1] }
 0x188   :  { %v11967_v38 = vpop.f32.mrb[12].mxu1  ;;  %11956 = vmatprep.subr.mxu0 %v1122_v48  ;;  %v1935_v34 = vsel %vm258_vm3, %v1934_v41, %v1933_v15  ;;  %v1949_v57 = vsel %vm258_vm3, %v1948_v1, %v1947_v12  ;;  %v2273_v41 = vsel %vm252_vm1, %v2272_v13, %v2271_v40  ;;  %v1966_v15 = vrot.slane %v1878_v0, 2  ;;  %v2204_v1 = vld [vmem:[%s19237_s1 + $0x146] sm:$0x1] }
 0x189   :  { %v1434_v37 = vpop.f32.mrb[13].mxu1  ;;  %v1443_v62 = vadd.f32 %v11967_v38, %v16133_v7  ;;  %v2188_v38 = vld [vmem:[%s19237_s1 + $0x46] sm:$0x1]  ;;  %v1937_v28 = vsel %vm261_vm4, %v1936_v25, %v1935_v34  ;;  %v2276_v12 = vrot.slane %v2196_v39, 4  ;;  %v2288_v13 = vrot.slane %v2203_v23, 5 }
 0x18a   :  { %v1435_v60 = vadd.f32 %v1434_v37, %v16115_v27  ;;  %v11968_v30 = vpop.f32.mrb[14].mxu1  ;;  %v2260_v37 = vrot.slane %v2187_v18, 5  ;;  %v2262_v3 = vrot.slane %v2188_v38, 4  ;;  %v1951_v18 = vsel %vm261_vm4, %v1950_v19, %v1949_v57  ;;  %v2190_v38 = vld [vmem:[%s19237_s1 + $0x66] sm:$0x1] }
 0x18b   :  { %v1437_v58 = vpop.f32.mrb[15].mxu1  ;;  %11957 = vmatpush3.msra.mxu0 %v1122_v48  ;;  %v2195_v48 = vld [vmem:[%s19237_s1 + $0xb6] sm:$0x1]  ;;  %v1450_v47 = vmul.f32 %v1443_v62, %v16127_v35  ;;  %v1940_v62 = vrot.slane %v1863_v29, 1  ;;  %v1954_v2 = vrot.slane %v1871_v16, 1  ;;  %v1953_v19 = vsel %vm264_vm5, %v1952_v9, %v1951_v18 }
 0x18c   :  { %v1438_v6 = vadd.f32 %v1437_v58, %v16117_v10  ;;  %11959 = vmatmul.mubr.msk.f32.vlgmr.msra.gmra.mrb[8].mxu0 %vm105_vm7, %v16141_v51  ;;  %v1448_v26 = vmul.f32 %v1435_v60, %v16119_v17  ;;  %v2259_v60 = vsel %vm252_vm1, %v2258_v53, %v2257_v43  ;;  %v2274_v30 = vrot.slane %v2195_v48, 5  ;;  %v2197_v53 = vld [vmem:[%s19237_s1 + $0xd6] sm:$0x1] }
 0x18d   :  { %11975 = vmatprep.mubr.msk.f32.mxu0 %vm105_vm7, %v16109_v46  ;;  %v1938_v58 = vrot.slane %v1862_v55, 2  ;;  %v2261_v25 = vsel %vm255_vm2, %v2260_v37, %v2259_v60  ;;  %v1965_v48 = vsel %vm261_vm4, %v1964_v33, %v1963_v59  ;;  %v2205_v43 = vld [vmem:[%s19237_s1 + $0x156] sm:$0x1]  ;;  %v2278_v37 = vrot.slane %v2197_v53, 3  ;;  %v2206_v59 = vld [vmem:[%s19237_s1 + $0x166] sm:$0x1] }
 0x18e   :  { %v1449_v20 = vmul.f32 %v1438_v6, %v16124_v50  ;;  %v2189_v6 = vld [vmem:[%s19237_s1 + $0x56] sm:$0x1]  ;;  %v1968_v0 = vrot.slane %v1879_v22, 1  ;;  %v2292_v57 = vrot.slane %v2205_v43, 3  ;;  %v2266_v16 = vrot.slane %v2190_v38, 2 }
 0x18f   :  { %v1939_v40 = vsel %vm264_vm5, %v1938_v58, %v1937_v28  ;;  %v2264_v24 = vrot.slane %v2189_v6, 3  ;;  %v1955_v58 = vsel %vm267_vm6, %v1954_v2, %v1953_v19  ;;  %v2199_v22 = vld [vmem:[%s19237_s1 + $0xf6] sm:$0x1]  ;;  %v2280_v28 = vrot.slane %v2198_v32, 2 }
 0x190   :  { %v12951_v36 = vpack.c.bf16 %v1449_v20, %v1448_v26  ;;  %v2275_v26 = vsel %vm255_vm2, %v2274_v30, %v2273_v41  ;;  %v2287_v20 = vsel %vm252_vm1, %v2286_v63, %v2285_v4  ;;  %v2263_v63 = vsel %vm258_vm3, %v2262_v3, %v2261_v25  ;;  %v2191_v41 = vld [vmem:[%s19237_s1 + $0x76] sm:$0x1] }
 0x191   :  { %v2277_v60 = vsel %vm258_vm3, %v2276_v12, %v2275_v26  ;;  %v1967_v30 = vsel %vm264_vm5, %v1966_v15, %v1965_v48  ;;  %v2289_v23 = vsel %vm255_vm2, %v2288_v13, %v2287_v20  ;;  %v1941_v29 = vsel %vm267_vm6, %v1940_v62, %v1939_v40  ;;  %v2207_v43 = vld [vmem:[%s19237_s1 + $0x176] sm:$0x1]  ;;  %v2044_v20 = vpop.permute.xlu1 %2043  ;;  %v13228_v40 = vpop.permute.xlu0 %13227 }
 0x192   :  { %12952 = vmatprep.subr.bf16.mxu0 %v12951_v36  ;;  %v2279_v15 = vsel %vm261_vm4, %v2278_v37, %v2277_v60  ;;  %v2294_v18 = vrot.slane %v2206_v59, 2  ;;  %v1969_v53 = vsel %vm267_vm6, %v1968_v0, %v1967_v30  ;;  %v2268_v12 = vrot.slane %v2191_v41, 1 }
 0x193   :  { %12954 = vmatpush3.bf16.msra.mxu0 %v12951_v36  ;;  %v2290_v36 = vrot.slane %v2204_v1, 4  ;;  %v2282_v48 = vrot.slane %v2199_v22, 1  ;;  %v2048_v13 = vsel %vm70_vm8, %v1941_v29, %v13224_v44  ;;  %v2281_v26 = vsel %vm264_vm5, %v2280_v28, %v2279_v15 }
 0x194   :  { %v11984_v49 = vpop.f32.mrb[16].mxu1  ;;  %11973 = vmatprep.subr.mxu0 %v1450_v47  ;;  %v2296_v44 = vrot.slane %v2207_v43, 1  ;;  %v2530_v43 = vld [vmem:[%s19237_s1 + $0x127] sm:$0x1] }
 0x195   :  { %v1762_v55 = vpop.f32.mrb[17].mxu1  ;;  %v1771_v9 = vadd.f32 %v11984_v49, %v16133_v7  ;;  %v2291_v1 = vsel %vm258_vm3, %v2290_v36, %v2289_v23  ;;  %v2049_v49 = vsel %vm70_vm8, %v1955_v58, %v13225_v14  ;;  %v2283_v19 = vsel %vm267_vm6, %v2282_v48, %v2281_v26  ;;  %v16407_v36 = vld [vmem:[%s19241_s5] sm:$0xff]   ;;  %v16423_v23 = vld [vmem:[%s19241_s5 + $0x8] ss:$0 sps:$4 sm:$0xff]   ;;  %v2521_v48 = vld [vmem:[%s19237_s1 + $0x97] sm:$0x1] }
 0x196   :  { %v1763_v33 = vadd.f32 %v1762_v55, %v16115_v27  ;;  %v11985_v34 = vpop.f32.mrb[18].mxu1  ;;  %v2293_v55 = vsel %vm261_vm4, %v2292_v57, %v2291_v1  ;;  %v16392_v56 = vpack.c.bf16 %v2049_v49, %v2048_v13  ;;  %v2372_v57 = vpop.permute.xlu1 %2371  ;;  %v2528_v49 = vld [vmem:[%s19237_s1 + $0x107] sm:$0x1] }
 0x197   :  { %v1765_v39 = vpop.f32.mrb[19].mxu1  ;;  %11974 = vmatpush3.msra.mxu0 %v1450_v47  ;;  %v2265_v47 = vsel %vm261_vm4, %v2264_v24, %v2263_v63  ;;  %v1778_v2 = vmul.f32 %v1771_v9, %v16127_v35  ;;  %v2050_v24 = vsel %vm70_vm8, %v1969_v53, %v2044_v20  ;;  %v13229_v34 = vunpack.i.l.bf16 %v13228_v40  ;;  %v2514_v26 = vld [vmem:[%s19237_s1 + $0x27] sm:$0x1] }
 0x198   :  { %v1766_v4 = vadd.f32 %v1765_v39, %v16117_v10  ;;  %11976 = vmatmul.mubr.msk.f32.vlgmr.msra.gmra.mrb[10].mxu0 %vm105_vm7, %v16141_v51  ;;  %v1776_v6 = vmul.f32 %v1763_v33, %v16119_v17  ;;  %v2267_v62 = vsel %vm264_vm5, %v2266_v16, %v2265_v47  ;;  %v13230_v33 = vunpack.i.h.bf16 %v13228_v40  ;;  %v2522_v20 = vld [vmem:[%s19237_s1 + $0xa7] sm:$0x1] }
 0x199   :  { %11992 = vmatprep.mubr.msk.f32.mxu0 %vm105_vm7, %v16109_v46  ;;  %v2269_v14 = vsel %vm267_vm6, %v2268_v12, %v2267_v62  ;;  %v2295_v38 = vsel %vm264_vm5, %v2294_v18, %v2293_v55  ;;  %v2052_v32 = vpack.c.bf16 %v2050_v24, %v2050_v24  ;;  %v2513_v12 = vld [vmem:[%s19237_s1 + $0x17] sm:$0x1]  ;;  %v2598_v40 = vrot.slane %v2521_v48, 7  ;;  %v2512_v24 = vld [vmem:[%s19237_s1 + $0x7] sm:$0x1] }
 0x19a   :  { %v1777_v3 = vmul.f32 %v1766_v4, %v16124_v50  ;;  %v2376_v63 = vsel %vm70_vm8, %v2269_v14, %v13229_v34  ;;  %v2377_v37 = vsel %vm70_vm8, %v2283_v19, %v13230_v33  ;;  %v2297_v0 = vsel %vm267_vm6, %v2296_v44, %v2295_v38  ;;  %v2531_v62 = vld [vmem:[%s19237_s1 + $0x137] sm:$0x1]  ;;  %v2520_v33 = vld [vmem:[%s19237_s1 + $0x87] sm:$0x1] }
 0x19b   :  { %v16413_v39 = vsel %vm112_vm9, %v2052_v32, 0  ;;  %v16415_v60 = vpack.c.bf16 %v2377_v37, %v2376_v63  ;;  %v2378_v30 = vsel %vm70_vm8, %v2297_v0, %v2372_v57  ;;  %v2584_v55 = vrot.slane %v2513_v12, 7  ;;  %v2532_v34 = vld [vmem:[%s19237_s1 + $0x147] sm:$0x1]  ;;  %v2515_v14 = vld [vmem:[%s19237_s1 + $0x37] sm:$0x1] }
 0x19c   :  { %v12955_v25 = vpack.c.bf16 %v1777_v3, %v1776_v6  ;;  %v2380_v59 = vpack.c.bf16 %v2378_v30, %v2378_v30  ;;  %v2523_v38 = vld [vmem:[%s19237_s1 + $0xb7] sm:$0x1]  ;;  %v2600_v63 = vrot.slane %v2522_v20, 6  ;;  %v16485_v0 = vld [vmem:[%s19237_s1 + $0x167] sm:$0x1]  ;;  %v2616_v57 = vrot.slane %v2531_v62, 5 }
 0x19d   :  { %v2533_v37 = vld [vmem:[%s19237_s1 + $0x157] sm:$0x1] }
 0x19e   :  { %12956 = vmatprep.subr.bf16.mxu0 %v12955_v25  ;;  %v16432_v4 = vsel %vm112_vm9, %v2380_v59, 0  ;;  %v2517_v12 = vld [vmem:[%s19237_s1 + $0x57] sm:$0x1] }
 0x19f   :  { %12958 = vmatpush3.bf16.msra.mxu0 %v12955_v25  ;;  %v2529_v25 = vld [vmem:[%s19237_s1 + $0x117] sm:$0x1] }
 0x1a0   :  { %11990 = vmatprep.subr.mxu0 %v1778_v2  ;;  %v2612_v13 = vrot.slane %v2529_v25, 7  ;;  %v2857_v25 = vld [vmem:[%s19237_s1 + $0x118] sm:$0x1] }
 0x1a2   :  { %v2613_v44 = vsel %vm249_vm0, %v2612_v13, %v2528_v49  ;;  %v2525_v49 = vld [vmem:[%s19237_s1 + $0xd7] sm:$0x1] }
 0x1a3   :  { %11991 = vmatpush3.msra.mxu0 %v1778_v2  ;;  %v2614_v2 = vrot.slane %v2530_v43, 6 }
 0x1a4   :  { %11993 = vmatmul.mubr.msk.f32.vlgmr.msra.gmra.mrb[12].mxu0 %vm105_vm7, %v16141_v51  ;;  %11995 = vmatprep.subr.bf16.mxu0 %v16392_v56 }
 0x1a5   :  { %11996 = vmatpush3.bf16.msra.mxu0 %v16392_v56  ;;  %11999 = vmatprep.mubr.msk.bf16.mxu0 %vm105_vm7, %v16407_v36 }
 0x1a6   :  { %13165 = vmatprep.subr.msk.bf16.mxu0 %vm112_vm9, %v2052_v32  ;;  %v2586_v32 = vrot.slane %v2514_v26, 6  ;;  %v2842_v26 = vld [vmem:[%s19237_s1 + $0x28] sm:$0x1] }
 0x1a9   :  { %11998 = vmatpush3.bf16.msra.mxu0 %v16413_v39 }
 0x1aa   :  { %12012 = vmatprep.subr.bf16.mxu0 %v16415_v60 }
 0x1ac   :  { %12000 = vmatmul.mubr.msk.bf16.vlgmr.msra.gmra.mrb[16].mxu0 %vm105_vm7, %v16423_v23 }
 0x1ad   :  { %12013 = vmatpush3.bf16.msra.mxu0 %v16415_v60  ;;  %12016 = vmatprep.mubr.msk.bf16.mxu0 %vm105_vm7, %v16407_v36 }
 0x1ae   :  { %13166 = vmatprep.subr.msk.bf16.mxu0 %vm112_vm9, %v2380_v59 }
 0x1b1   :  { %12015 = vmatpush3.bf16.msra.mxu0 %v16432_v4 }
 0x1b4   :  { %12017 = vmatmul.mubr.msk.bf16.vlgmr.msra.gmra.mrb[20].mxu0 %vm105_vm7, %v16423_v23 }
 0x1b5   :  { %12043 = vmatprep.mubr.msk.f32.mxu0 %vm105_vm7, %v16109_v46 }
 0x253   :  { %v11926_v29 = vpop.f32.mrb[4].mxu0 }
 0x254   :  { %v535_v58 = vpop.f32.mrb[5].mxu0 }
 0x259   :  { %v11943_v41 = vpop.f32.mrb[6].mxu0 }
 0x25a   :  { %v871_v22 = vmax.f32 %v11926_v29, %v11943_v41  ;;  %v861_v47 = vpop.f32.mrb[7].mxu0  ;;  %v2585_v29 = vsel %vm249_vm0, %v2584_v55, %v2512_v24  ;;  %v16494_v41 = vld [vmem:[%s19237_s1 + $0x177] sm:$0x1]  ;;  %v2856_v55 = vld [vmem:[%s19237_s1 + $0x108] sm:$0x1] }
 0x25b   :  { %v870_v16 = vmax.f32 %v535_v58, %v861_v47  ;;  %v2599_v58 = vsel %vm249_vm0, %v2598_v40, %v2520_v33  ;;  %v2618_v47 = vrot.slane %v2532_v34, 4  ;;  %v2587_v48 = vsel %vm252_vm1, %v2586_v32, %v2585_v29  ;;  %v2850_v24 = vld [vmem:[%s19237_s1 + $0xa8] sm:$0x1] }
 0x25c   :  { %v2601_v43 = vsel %vm252_vm1, %v2600_v63, %v2599_v58  ;;  %v2848_v32 = vld [vmem:[%s19237_s1 + $0x88] sm:$0x1]  ;;  %v2914_v29 = vrot.slane %v2842_v26, 6 }
 0x25f   :  { %v11960_v28 = vpop.f32.mrb[8].mxu0 }
 0x260   :  { %v1199_v9 = vmax.f32 %v871_v22, %v11960_v28  ;;  %v1189_v6 = vpop.f32.mrb[9].mxu0  ;;  %v2615_v22 = vsel %vm252_vm1, %v2614_v2, %v2613_v44  ;;  %v2516_v28 = vld [vmem:[%s19237_s1 + $0x47] sm:$0x1]  ;;  %v2840_v2 = vld [vmem:[%s19237_s1 + $0x8] sm:$0x1] }
 0x261   :  { %v1198_v3 = vmax.f32 %v870_v16, %v1189_v6  ;;  %v2524_v6 = vld [vmem:[%s19237_s1 + $0xc7] sm:$0x1]  ;;  %v2617_v13 = vsel %vm255_vm2, %v2616_v57, %v2615_v22  ;;  %v2590_v62 = vrot.slane %v2516_v28, 4  ;;  %v2858_v44 = vld [vmem:[%s19237_s1 + $0x128] sm:$0x1]  ;;  %v2592_v22 = vrot.slane %v2517_v12, 3 }
 0x262   :  { %v2604_v40 = vrot.slane %v2524_v6, 4  ;;  %v2619_v63 = vsel %vm258_vm3, %v2618_v47, %v2617_v13  ;;  %v2518_v57 = vld [vmem:[%s19237_s1 + $0x67] sm:$0x1]  ;;  %v2606_v28 = vrot.slane %v2525_v49, 3  ;;  %v2928_v47 = vrot.slane %v2850_v24, 6 }
 0x263   :  { %v2942_v26 = vrot.slane %v2858_v44, 6  ;;  %v2519_v44 = vld [vmem:[%s19237_s1 + $0x77] sm:$0x1] }
 0x26b   :  { %v11977_v15 = vpop.f32.mrb[10].mxu0 }
 0x26c   :  { %v1527_v1 = vmax.f32 %v1199_v9, %v11977_v15  ;;  %v1517_v18 = vpop.f32.mrb[11].mxu0  ;;  %v2841_v9 = vld [vmem:[%s19237_s1 + $0x18] sm:$0x1]  ;;  %v2602_v15 = vrot.slane %v2523_v38, 5 }
 0x26d   :  { %v1526_v53 = vmax.f32 %v1198_v3, %v1517_v18  ;;  %v2588_v3 = vrot.slane %v2515_v14, 5  ;;  %v2620_v18 = vrot.slane %v2533_v37, 3  ;;  %v2912_v20 = vrot.slane %v2841_v9, 7  ;;  %v2851_v9 = vld [vmem:[%s19237_s1 + $0xb8] sm:$0x1] }
 0x26e   :  { %v2940_v14 = vrot.slane %v2857_v25, 7  ;;  %v2603_v38 = vsel %vm255_vm2, %v2602_v15, %v2601_v43  ;;  %v2526_v25 = vld [vmem:[%s19237_s1 + $0xe7] sm:$0x1] }
 0x26f   :  { %v2913_v6 = vsel %vm249_vm0, %v2912_v20, %v2840_v2  ;;  %v2621_v13 = vsel %vm261_vm4, %v2620_v18, %v2619_v63  ;;  %v2844_v2 = vld [vmem:[%s19237_s1 + $0x48] sm:$0x1] }
 0x270   :  { %v2941_v49 = vsel %vm249_vm0, %v2940_v14, %v2856_v55  ;;  %v2852_v18 = vld [vmem:[%s19237_s1 + $0xc8] sm:$0x1]  ;;  %v2915_v55 = vsel %vm252_vm1, %v2914_v29, %v2913_v6  ;;  %v2527_v29 = vld [vmem:[%s19237_s1 + $0xf7] sm:$0x1] }
 0x277   :  { %v11994_v19 = vpop.f32.mrb[12].mxu0 }
 0x278   :  { %v16487_v30 = vmax.f32 %v1527_v1, %v11994_v19  ;;  %v1845_v59 = vpop.f32.mrb[13].mxu0  ;;  %v2849_v1 = vld [vmem:[%s19237_s1 + $0x98] sm:$0x1]  ;;  %v2589_v19 = vsel %vm255_vm2, %v2588_v3, %v2587_v48  ;;  %v2605_v48 = vsel %vm258_vm3, %v2604_v40, %v2603_v38  ;;  %v2594_v40 = vrot.slane %v2518_v57, 2 }
 0x279   :  { %v16497_v16 = vmax.f32 %v1526_v53, %v1845_v59  ;;  %v2926_v33 = vrot.slane %v2849_v1, 7  ;;  %v2843_v59 = vld [vmem:[%s19237_s1 + $0x38] sm:$0x1]  ;;  %v2591_v12 = vsel %vm258_vm3, %v2590_v62, %v2589_v19  ;;  %v2607_v19 = vsel %vm261_vm4, %v2606_v28, %v2605_v48 }
 0x27a   :  { %v16559_v3 = vld [vmem:[%s19237_s1 + $0x138] sm:$0x1]  ;;  %v2916_v24 = vrot.slane %v2843_v59, 5  ;;  %v2593_v14 = vsel %vm261_vm4, %v2592_v22, %v2591_v12  ;;  %v2608_v38 = vrot.slane %v2526_v25, 2  ;;  %v2918_v22 = vrot.slane %v2844_v2, 4 }
 0x27b   :  { %v2927_v43 = vsel %vm249_vm0, %v2926_v33, %v2848_v32  ;;  %v2930_v33 = vrot.slane %v2851_v9, 5  ;;  %v2845_v9 = vld [vmem:[%s19237_s1 + $0x58] sm:$0x1]  ;;  %v2944_v28 = vrot.slane %v16559_v3, 5  ;;  %v2943_v25 = vsel %vm252_vm1, %v2942_v26, %v2941_v49  ;;  %v2846_v49 = vld [vmem:[%s19237_s1 + $0x68] sm:$0x1] }
 0x27c   :  { %v2929_v32 = vsel %vm252_vm1, %v2928_v47, %v2927_v43  ;;  %v2917_v47 = vsel %vm255_vm2, %v2916_v24, %v2915_v55  ;;  %v2596_v43 = vrot.slane %v2519_v44, 1  ;;  %v2595_v2 = vsel %vm264_vm5, %v2594_v40, %v2593_v14  ;;  %v13233_v24 = vpop.permute.xlu0 %13232  ;;  %v2854_v26 = vld [vmem:[%s19237_s1 + $0xe8] sm:$0x1] }
 0x27d   :  { %v2931_v3 = vsel %vm255_vm2, %v2930_v33, %v2929_v32  ;;  %v2920_v34 = vrot.slane %v2845_v9, 3  ;;  %v2919_v40 = vsel %vm258_vm3, %v2918_v22, %v2917_v47  ;;  %v19271_v44 = vrot.slane %v16485_v0, 2  ;;  %v2847_v9 = vld [vmem:[%s19237_s1 + $0x78] sm:$0x1] }
 0x27e   :  { %v2597_v0 = vsel %vm267_vm6, %v2596_v43, %v2595_v2  ;;  %v2855_v22 = vld [vmem:[%s19237_s1 + $0xf8] sm:$0x1]  ;;  %v2922_v47 = vrot.slane %v2846_v49, 2 }
 0x27f   :  { %v12001_v37 = vpop.f32.mrb[16].mxu0  ;;  %v2623_v14 = vsel %vm264_vm5, %v19271_v44, %v2621_v13 }
 0x280   :  { %v2090_v58 = vpop.f32.mrb[17].mxu0  ;;  %v2099_v63 = vadd.f32 %v12001_v37, %v16133_v7  ;;  %v2853_v37 = vld [vmem:[%s19237_s1 + $0xd8] sm:$0x1] }
 0x281   :  { %v2091_v15 = vadd.f32 %v2090_v58, %v16115_v27  ;;  %v12002_v1 = vpop.f32.mrb[18].mxu0  ;;  %v16576_v58 = vld [vmem:[%s19237_s1 + $0x148] sm:$0x1]  ;;  %v2934_v33 = vrot.slane %v2853_v37, 3  ;;  %v2921_v37 = vsel %vm261_vm4, %v2920_v34, %v2919_v40 }
 0x282   :  { %v2093_v20 = vpop.f32.mrb[19].mxu0  ;;  %v2946_v6 = vrot.slane %v16576_v58, 4  ;;  %v2861_v1 = vld [vmem:[%s19237_s1 + $0x158] sm:$0x1]  ;;  %v2609_v58 = vsel %vm264_vm5, %v2608_v38, %v2607_v19  ;;  %v13235_v38 = vunpack.i.h.bf16 %v13233_v24 }
 0x283   :  { %v2094_v62 = vadd.f32 %v2093_v20, %v16117_v10  ;;  %v2104_v57 = vmul.f32 %v2091_v15, %v16119_v17  ;;  %v2932_v15 = vrot.slane %v2852_v18, 4  ;;  %v2106_v18 = vmul.f32 %v2099_v63, %v16127_v35  ;;  %v2862_v63 = vld [vmem:[%s19237_s1 + $0x168] sm:$0x1] }
 0x284   :  { %v2948_v19 = vrot.slane %v2861_v1, 3 }
 0x285   :  { %v2105_v59 = vmul.f32 %v2094_v62, %v16124_v50  ;;  %v2610_v62 = vrot.slane %v2527_v29, 1 }
 0x287   :  { %v12018_v12 = vpop.f32.mrb[20].mxu0  ;;  %v12959_v48 = vpack.c.bf16 %v2105_v59, %v2104_v57  ;;  %v2945_v57 = vsel %vm255_vm2, %v2944_v28, %v2943_v25  ;;  %v13234_v59 = vunpack.i.l.bf16 %v13233_v24  ;;  %v2611_v13 = vsel %vm267_vm6, %v2610_v62, %v2609_v58  ;;  %v2863_v62 = vld [vmem:[%s19237_s1 + $0x178] sm:$0x1] }
 0x288   :  { %v2418_v20 = vpop.f32.mrb[21].mxu0  ;;  %v2936_v28 = vrot.slane %v2854_v26, 2  ;;  %v2947_v43 = vsel %vm258_vm3, %v2946_v6, %v2945_v57  ;;  %v2924_v58 = vrot.slane %v2847_v9, 1  ;;  %v2705_v24 = vsel %vm70_vm8, %v2611_v13, %v13235_v38  ;;  %v13238_v26 = vpop.permute.xlu0 %13237 }
 0x289   :  { %v2419_v55 = vadd.f32 %v2418_v20, %v16115_v27  ;;  %12960 = vmatprep.subr.bf16.mxu1 %v12959_v48  ;;  %v12019_v53 = vpop.f32.mrb[22].mxu0  ;;  %v19272_v20 = vrot.slane %v16494_v41, 1  ;;  %v2704_v6 = vsel %vm70_vm8, %v2597_v0, %v13234_v59  ;;  %v2923_v41 = vsel %vm264_vm5, %v2922_v47, %v2921_v37 }
 0x28a   :  { %12962 = vmatpush3.bf16.msra.mxu1 %v12959_v48  ;;  %v2421_v32 = vpop.f32.mrb[23].mxu0  ;;  %v2933_v53 = vsel %vm258_vm3, %v2932_v15, %v2931_v3  ;;  %v2427_v15 = vadd.f32 %v12018_v12, %v16133_v7  ;;  %v2950_v3 = vrot.slane %v2862_v63, 2  ;;  %v2938_v12 = vrot.slane %v2855_v22, 1 }
 0x28b   :  { %v2422_v29 = vadd.f32 %v2421_v32, %v16117_v10  ;;  %12007 = vmatprep.subr.mxu1 %v2106_v18  ;;  %v2432_v1 = vmul.f32 %v2419_v55, %v16119_v17  ;;  %v2935_v48 = vsel %vm261_vm4, %v2934_v33, %v2933_v53  ;;  %v2625_v2 = vsel %vm267_vm6, %v19272_v20, %v2623_v14  ;;  %v2700_v55 = vpop.permute.xlu1 %2699  ;;  %v3170_v20 = vld [vmem:[%s19243_s2 + $0x20] sm:$0x1] }
 0x28c   :  { %v2949_v49 = vsel %vm261_vm4, %v2948_v19, %v2947_v43  ;;  %v2434_v40 = vmul.f32 %v2427_v15, %v16127_v35  ;;  %v2706_v33 = vsel %vm70_vm8, %v2625_v2, %v2700_v55  ;;  %v13240_v44 = vunpack.i.h.bf16 %v13238_v26  ;;  %v3177_v43 = vld [vmem:[%s19243_s2 + $0x90] sm:$0x1]  ;;  %v3178_v2 = vld [vmem:[%s19243_s2 + $0xa0] sm:$0x1] }
 0x28d   :  { %v2433_v25 = vmul.f32 %v2422_v29, %v16124_v50  ;;  %v13239_v14 = vunpack.i.l.bf16 %v13238_v26  ;;  %v2952_v32 = vrot.slane %v2863_v62, 1  ;;  %v16660_v53 = vpack.c.bf16 %v2705_v24, %v2704_v6  ;;  %v3168_v62 = vld [vmem:[%s19243_s2] sm:$0x1]  ;;  %v3179_v26 = vld [vmem:[%s19243_s2 + $0xb0] sm:$0x1] }
 0x28e   :  { %12008 = vmatpush3.msra.mxu1 %v2106_v18  ;;  %v2937_v18 = vsel %vm264_vm5, %v2936_v28, %v2935_v48  ;;  %v2925_v38 = vsel %vm267_vm6, %v2924_v58, %v2923_v41  ;;  %v2951_v57 = vsel %vm264_vm5, %v2950_v3, %v2949_v49  ;;  %v2708_v19 = vpack.c.bf16 %v2706_v33, %v2706_v33  ;;  %v3169_v48 = vld [vmem:[%s19243_s2 + $0x10] sm:$0x1]  ;;  %v3176_v6 = vld [vmem:[%s19243_s2 + $0x80] sm:$0x1] }
 0x28f   :  { %12010 = vmatmul.mubr.msk.f32.vlgmr.msra.gmra.mrb[20].mxu1 %vm105_vm7, %v16141_v51  ;;  %v12963_v34 = vpack.c.bf16 %v2433_v25, %v2432_v1  ;;  %v2939_v63 = vsel %vm267_vm6, %v2938_v12, %v2937_v18  ;;  %v3032_v59 = vsel %vm70_vm8, %v2925_v38, %v13239_v14  ;;  %v2953_v0 = vsel %vm267_vm6, %v2952_v32, %v2951_v57  ;;  %v3028_v13 = vpop.permute.xlu1 %3027  ;;  %v3185_v3 = vld [vmem:[%s19243_s2 + $0x110] sm:$0x1]  ;;  %v16732_v24 = vld [vmem:[%s19243_s2 + $0x140] sm:$0x1] }
 0x290   :  { %12026 = vmatprep.mubr.msk.f32.mxu1 %vm105_vm7, %v16109_v46  ;;  %v3033_v29 = vsel %vm70_vm8, %v2939_v63, %v13240_v44  ;;  %v16676_v9 = vsel %vm112_vm9, %v2708_v19, 0  ;;  %v3034_v37 = vsel %vm70_vm8, %v2953_v0, %v3028_v13  ;;  %v3255_v58 = vrot.slane %v3177_v43, 7  ;;  %v16737_v41 = vld [vmem:[%s19243_s2 + $0x150] sm:$0x1]  ;;  %v16748_v44 = vld [vmem:[%s19243_s2 + $0x160] sm:$0x1] }
 0x291   :  { %12964 = vmatprep.subr.bf16.mxu1 %v12963_v34  ;;  %19273 = vst [vmem:[#allocation2_spill] sm:$0xff] %v16676_v9  ;;  %v16678_v22 = vpack.c.bf16 %v3033_v29, %v3032_v59  ;;  %v3269_v12 = vrot.slane %v3185_v3, 7  ;;  %v3171_v18 = vld [vmem:[%s19243_s2 + $0x30] sm:$0x1]  ;;  %v3257_v33 = vrot.slane %v3178_v2, 6  ;;  %v3275_v29 = vrot.slane %v16732_v24, 4 }
 0x292   :  { %12966 = vmatpush3.bf16.msra.mxu1 %v12963_v34  ;;  %v3241_v34 = vrot.slane %v3169_v48, 7  ;;  %v16753_v14 = vld [vmem:[%s19243_s2 + $0x170] sm:$0x1]  ;;  %v3514_v13 = vld [vmem:[%s19243_s2 + $0x111] sm:$0x1]  ;;  %v3259_v48 = vrot.slane %v3179_v26, 5 }
 0x293   :  { %12024 = vmatprep.subr.mxu1 %v2434_v40  ;;  %19274 = vst [vmem:[#allocation3_spill] sm:$0xff] %v16678_v22  ;;  %v3506_v43 = vld [vmem:[%s19243_s2 + $0x91] sm:$0x1]  ;;  %v3182_v3 = vld [vmem:[%s19243_s2 + $0xe0] sm:$0x1] }
 0x294   :  { %v3242_v57 = vsel %vm249_vm0, %v3241_v34, %v3168_v62  ;;  %v3181_v34 = vld [vmem:[%s19243_s2 + $0xd0] sm:$0x1]  ;;  %v16810_v26 = vld [vmem:[%s19243_s2 + $0x131] sm:$0x1] }
 0x296   :  { %12025 = vmatpush3.msra.mxu1 %v2434_v40  ;;  %v3243_v40 = vrot.slane %v3170_v20, 6 }
 0x297   :  { %12027 = vmatmul.mubr.msk.f32.vlgmr.msra.gmra.mrb[22].mxu1 %vm105_vm7, %v16141_v51  ;;  %12029 = vmatprep.subr.bf16.mxu1 %v16660_v53  ;;  %v3036_v51 = vpack.c.bf16 %v3034_v37, %v3034_v37 }
 0x298   :  { %12030 = vmatpush3.bf16.msra.mxu1 %v16660_v53  ;;  %12033 = vmatprep.mubr.msk.bf16.mxu1 %vm105_vm7, %v16407_v36 }
 0x299   :  { %13167 = vmatprep.subr.msk.bf16.mxu1 %vm112_vm9, %v2708_v19  ;;  %v16690_v47 = vsel %vm112_vm9, %v3036_v51, 0  ;;  %v3256_v19 = vsel %vm249_vm0, %v3255_v58, %v3176_v6  ;;  %v3513_v6 = vld [vmem:[%s19243_s2 + $0x101] sm:$0x1] }
 0x29a   :  { %19275 = vst [vmem:[#allocation4_spill] sm:$0xff] %v16690_v47  ;;  %v3258_v20 = vsel %vm252_vm1, %v3257_v33, %v3256_v19  ;;  %v3505_v19 = vld [vmem:[%s19243_s2 + $0x81] sm:$0x1] }
 0x29c   :  { %12032 = vmatpush3.bf16.msra.mxu1 %v16676_v9 }
 0x29d   :  { %12046 = vmatprep.subr.bf16.mxu1 %v16678_v22 }
 0x29f   :  { %12034 = vmatmul.mubr.msk.bf16.vlgmr.msra.gmra.mrb[24].mxu1 %vm105_vm7, %v16423_v23 }
 0x2a0   :  { %12047 = vmatpush3.bf16.msra.mxu1 %v16678_v22  ;;  %12050 = vmatprep.mubr.msk.bf16.mxu1 %vm105_vm7, %v16407_v36 }
 0x2a1   :  { %13168 = vmatprep.subr.msk.bf16.mxu1 %vm112_vm9, %v3036_v51  ;;  %v3172_v51 = vld [vmem:[%s19243_s2 + $0x40] sm:$0x1] }
 0x2a2   :  { %v3247_v58 = vrot.slane %v3172_v51, 4 }
 0x2a4   :  { %12049 = vmatpush3.bf16.msra.mxu1 %v16690_v47 }
 0x2a7   :  { %12051 = vmatmul.mubr.msk.bf16.vlgmr.msra.gmra.mrb[28].mxu1 %vm105_vm7, %v16423_v23 }
 0x2a8   :  { %12077 = vmatprep.mubr.msk.f32.mxu1 %vm105_vm7, %v16109_v46  ;;  %v3186_v46 = vld [vmem:[%s19243_s2 + $0x120] sm:$0x1] }
 0x2a9   :  { %v3271_v55 = vrot.slane %v3186_v46, 6  ;;  %v16784_v46 = vld [vmem:[%s19243_s2 + $0x121] sm:$0x1] }
 0x2aa   :  { %v3599_v33 = vrot.slane %v16784_v46, 6  ;;  %v3263_v46 = vrot.slane %v3181_v34, 3 }
 0x362   :  { %v12011_v28 = vpop.f32.mrb[20].mxu1 }
 0x363   :  { %v2183_v15 = vmax.f32 %v16487_v30, %v12011_v28  ;;  %v2173_v1 = vpop.f32.mrb[21].mxu1  ;;  %v3187_v30 = vld [vmem:[%s19243_s2 + $0x130] sm:$0x1]  ;;  %v3498_v28 = vld [vmem:[%s19243_s2 + $0x11] sm:$0x1] }
 0x364   :  { %v2182_v25 = vmax.f32 %v16497_v16, %v2173_v1  ;;  %v3184_v16 = vld [vmem:[%s19243_s2 + $0x100] sm:$0x1]  ;;  %v3273_v32 = vrot.slane %v3187_v30, 5  ;;  %v3245_v1 = vrot.slane %v3171_v18, 5  ;;  %v3173_v30 = vld [vmem:[%s19243_s2 + $0x50] sm:$0x1] }
 0x365   :  { %v3270_v59 = vsel %vm249_vm0, %v3269_v12, %v3184_v16  ;;  %v3244_v16 = vsel %vm252_vm1, %v3243_v40, %v3242_v57  ;;  %v3499_v12 = vld [vmem:[%s19243_s2 + $0x21] sm:$0x1]  ;;  %v3569_v62 = vrot.slane %v3498_v28, 7  ;;  %v3597_v40 = vrot.slane %v3514_v13, 7  ;;  %v3174_v28 = vld [vmem:[%s19243_s2 + $0x60] sm:$0x1] }
 0x366   :  { %v3272_v2 = vsel %vm252_vm1, %v3271_v55, %v3270_v59  ;;  %v3497_v18 = vld [vmem:[%s19243_s2 + $0x1] sm:$0x1]  ;;  %v3260_v57 = vsel %vm255_vm2, %v3259_v48, %v3258_v20  ;;  %v3500_v13 = vld [vmem:[%s19243_s2 + $0x31] sm:$0x1] }
 0x367   :  { %v3507_v55 = vld [vmem:[%s19243_s2 + $0xa1] sm:$0x1]  ;;  %v3274_v59 = vsel %vm255_vm2, %v3273_v32, %v3272_v2  ;;  %v3508_v48 = vld [vmem:[%s19243_s2 + $0xb1] sm:$0x1]  ;;  %v3598_v0 = vsel %vm249_vm0, %v3597_v40, %v3513_v6  ;;  %v3175_v40 = vld [vmem:[%s19243_s2 + $0x70] sm:$0x1] }
 0x368   :  { %v3585_v32 = vrot.slane %v3507_v55, 6  ;;  %v3276_v34 = vsel %vm258_vm3, %v3275_v29, %v3274_v59  ;;  %v3501_v55 = vld [vmem:[%s19243_s2 + $0x41] sm:$0x1] }
 0x369   :  { %v3509_v29 = vld [vmem:[%s19243_s2 + $0xc1] sm:$0x1] }
 0x36a   :  { %v12028_v49 = vpop.f32.mrb[22].mxu1 }
 0x36b   :  { %v16755_v38 = vmax.f32 %v2183_v15, %v12028_v49  ;;  %v2501_v63 = vpop.f32.mrb[23].mxu1  ;;  %v3180_v15 = vld [vmem:[%s19243_s2 + $0xc0] sm:$0x1]  ;;  %v3583_v49 = vrot.slane %v3506_v43, 7 }
 0x36c   :  { %v16765_v37 = vmax.f32 %v2182_v25, %v2501_v63  ;;  %v3261_v24 = vrot.slane %v3180_v15, 4  ;;  %v3246_v63 = vsel %vm255_vm2, %v3245_v1, %v3244_v16  ;;  %v3571_v15 = vrot.slane %v3499_v12, 6 }
 0x36d   :  { %v3249_v1 = vrot.slane %v3173_v30, 3  ;;  %v3570_v16 = vsel %vm249_vm0, %v3569_v62, %v3497_v18  ;;  %v3248_v25 = vsel %vm258_vm3, %v3247_v58, %v3246_v63  ;;  %v3584_v30 = vsel %vm249_vm0, %v3583_v49, %v3505_v19  ;;  %v16845_v58 = vld [vmem:[%s19243_s2 + $0x141] sm:$0x1] }
 0x36e   :  { %v3262_v12 = vsel %vm258_vm3, %v3261_v24, %v3260_v57  ;;  %v3601_v62 = vrot.slane %v16810_v26, 5  ;;  %v3251_v49 = vrot.slane %v3174_v28, 2  ;;  %v3572_v6 = vsel %vm252_vm1, %v3571_v15, %v3570_v16  ;;  %v3183_v15 = vld [vmem:[%s19243_s2 + $0xf0] sm:$0x1] }
 0x36f   :  { %v3587_v26 = vrot.slane %v3508_v48, 5  ;;  %v3250_v63 = vsel %vm261_vm4, %v3249_v1, %v3248_v25  ;;  %v3264_v57 = vsel %vm261_vm4, %v3263_v46, %v3262_v12  ;;  %v3265_v19 = vrot.slane %v3182_v3, 2  ;;  %v3502_v48 = vld [vmem:[%s19243_s2 + $0x51] sm:$0x1] }
 0x370   :  { %v3586_v59 = vsel %vm252_vm1, %v3585_v32, %v3584_v30  ;;  %v3575_v25 = vrot.slane %v3501_v55, 4  ;;  %v19276_v1 = vrot.slane %v16737_v41, 3  ;;  %v3603_v46 = vrot.slane %v16845_v58, 4 }
 0x371   :  { %v3589_v32 = vrot.slane %v3509_v29, 4  ;;  %v3600_v12 = vsel %vm252_vm1, %v3599_v33, %v3598_v0  ;;  %v3253_v41 = vrot.slane %v3175_v40, 1  ;;  %v3252_v58 = vsel %vm264_vm5, %v3251_v49, %v3250_v63  ;;  %v3503_v0 = vld [vmem:[%s19243_s2 + $0x61] sm:$0x1] }
 0x372   :  { %v12035_v51 = vpop.f32.mrb[24].mxu1  ;;  %v3278_v3 = vsel %vm261_vm4, %v19276_v1, %v3276_v34  ;;  %v3588_v34 = vsel %vm255_vm2, %v3587_v26, %v3586_v59  ;;  %v3267_v1 = vrot.slane %v3183_v15, 1  ;;  %v3577_v47 = vrot.slane %v3502_v48, 3  ;;  %v3511_v33 = vld [vmem:[%s19243_s2 + $0xe1] sm:$0x1]  ;;  %v13243_v59 = vpop.permute.xlu0 %13242 }
 0x373   :  { %v2746_v43 = vpop.f32.mrb[25].mxu1  ;;  %v2755_v28 = vadd.f32 %v12035_v51, %v16133_v7  ;;  %v3510_v51 = vld [vmem:[%s19243_s2 + $0xd1] sm:$0x1]  ;;  %v19277_v40 = vrot.slane %v16748_v44, 2  ;;  %v13245_v15 = vunpack.i.h.bf16 %v13243_v59  ;;  %v13244_v48 = vunpack.i.l.bf16 %v13243_v59 }
 0x374   :  { %v2747_v20 = vadd.f32 %v2746_v43, %v16115_v27  ;;  %v12036_v2 = vpop.f32.mrb[26].mxu1  ;;  %v3573_v43 = vrot.slane %v3500_v13, 5  ;;  %v3591_v26 = vrot.slane %v3510_v51, 3  ;;  %v3254_v44 = vsel %vm267_vm6, %v3253_v41, %v3252_v58  ;;  %v3512_v51 = vld [vmem:[%s19243_s2 + $0xf1] sm:$0x1] }
 0x375   :  { %v2749_v18 = vpop.f32.mrb[27].mxu1  ;;  %v3280_v63 = vsel %vm264_vm5, %v19277_v40, %v3278_v3 }
 0x376   :  { %v2750_v24 = vadd.f32 %v2749_v18, %v16117_v10  ;;  %v2760_v13 = vmul.f32 %v2747_v20, %v16119_v17  ;;  %v3574_v16 = vsel %vm255_vm2, %v3573_v43, %v3572_v6  ;;  %v3518_v20 = vld [vmem:[%s19243_s2 + $0x151] sm:$0x1]  ;;  %v2762_v43 = vmul.f32 %v2755_v28, %v16127_v35 }
 0x377   :  { %v3576_v49 = vsel %vm258_vm3, %v3575_v25, %v3574_v16 }
 0x378   :  { %v2761_v2 = vmul.f32 %v2750_v24, %v16124_v50  ;;  %v3266_v24 = vsel %vm264_vm5, %v3265_v19, %v3264_v57  ;;  %v3602_v57 = vsel %vm255_vm2, %v3601_v62, %v3600_v12  ;;  %v3605_v19 = vrot.slane %v3518_v20, 3  ;;  %v3504_v62 = vld [vmem:[%s19243_s2 + $0x71] sm:$0x1] }
 0x379   :  { %v3268_v3 = vsel %vm267_vm6, %v3267_v1, %v3266_v24  ;;  %v3578_v16 = vsel %vm261_vm4, %v3577_v47, %v3576_v49  ;;  %v3593_v20 = vrot.slane %v3511_v33, 2  ;;  %v3604_v24 = vsel %vm258_vm3, %v3603_v46, %v3602_v57  ;;  %v16920_v47 = vld [vmem:[%s19247_s9 + $0x8] sm:$0xf]  ;;  %v16930_v46 = vld [vmem:[%s19247_s9] sm:$0xff] }
 0x37a   :  { %v12052_v30 = vpop.f32.mrb[28].mxu1  ;;  %v12967_v18 = vpack.c.bf16 %v2761_v2, %v2760_v13  ;;  %v3590_v13 = vsel %vm258_vm3, %v3589_v32, %v3588_v34  ;;  %v3519_v2 = vld [vmem:[%s19243_s2 + $0x161] sm:$0x1]  ;;  %v3579_v32 = vrot.slane %v3503_v0, 2  ;;  %v3362_v0 = vsel %vm70_vm8, %v3268_v3, %v13245_v15 }
 0x37b   :  { %v3074_v55 = vpop.f32.mrb[29].mxu1  ;;  %v3083_v12 = vadd.f32 %v12052_v30, %v16133_v7  ;;  %v3592_v34 = vsel %vm261_vm4, %v3591_v26, %v3590_v13  ;;  %v3607_v1 = vrot.slane %v3519_v2, 2  ;;  %v3357_v26 = vpop.permute.xlu1 %3356  ;;  %v3606_v40 = vsel %vm261_vm4, %v3605_v19, %v3604_v24 }
 0x37c   :  { %v3075_v29 = vadd.f32 %v3074_v55, %v16115_v27  ;;  %12968 = vmatprep.subr.bf16.mxu0 %v12967_v18  ;;  %v12053_v6 = vpop.f32.mrb[30].mxu1  ;;  %v19278_v55 = vrot.slane %v16753_v14, 1  ;;  %v3520_v14 = vld [vmem:[%s19243_s2 + $0x171] sm:$0x1]  ;;  %v3580_v33 = vsel %vm264_vm5, %v3579_v32, %v3578_v16  ;;  %v3594_v49 = vsel %vm264_vm5, %v3593_v20, %v3592_v34 }
 0x37d   :  { %12970 = vmatpush3.bf16.msra.mxu0 %v12967_v18  ;;  %v3077_v28 = vpop.f32.mrb[31].mxu1  ;;  %v3595_v6 = vrot.slane %v3512_v51, 1  ;;  %v3090_v57 = vmul.f32 %v3083_v12, %v16127_v35  ;;  %v3609_v2 = vrot.slane %v3520_v14, 1 }
 0x37e   :  { %v3078_v25 = vadd.f32 %v3077_v28, %v16117_v10  ;;  %12041 = vmatprep.subr.mxu0 %v2762_v43  ;;  %v3088_v18 = vmul.f32 %v3075_v29, %v16119_v17  ;;  %v3282_v58 = vsel %vm267_vm6, %v19278_v55, %v3280_v63  ;;  %v3581_v29 = vrot.slane %v3504_v62, 1  ;;  %v13248_v63 = vpop.permute.xlu0 %13247 }
 0x37f   :  { %v3363_v59 = vsel %vm70_vm8, %v3282_v58, %v3357_v26  ;;  %v13250_v28 = vunpack.i.h.bf16 %v13248_v63  ;;  %v13249_v13 = vunpack.i.l.bf16 %v13248_v63  ;;  %v3685_v16 = vpop.permute.xlu1 %3684  ;;  %v17013_v26 = vld [vmem:[%s19243_s2 + $0x142] sm:$0x1]  ;;  %v3828_v63 = vld [vmem:[%s19243_s2 + $0x32] sm:$0x1] }
 0x380   :  { %v3089_v41 = vmul.f32 %v3078_v25, %v16124_v50  ;;  %v3582_v15 = vsel %vm267_vm6, %v3581_v29, %v3580_v33  ;;  %v3596_v25 = vsel %vm267_vm6, %v3595_v6, %v3594_v49  ;;  %v3365_v19 = vpack.c.bf16 %v3363_v59, %v3363_v59  ;;  %v3827_v29 = vld [vmem:[%s19243_s2 + $0x22] sm:$0x1] }
 0x381   :  { %12042 = vmatpush3.msra.mxu0 %v2762_v43  ;;  %v3361_v43 = vsel %vm70_vm8, %v3254_v44, %v13244_v48  ;;  %v3608_v44 = vsel %vm264_vm5, %v3607_v1, %v3606_v40  ;;  %v3689_v3 = vsel %vm70_vm8, %v3582_v15, %v13249_v13  ;;  %v3690_v62 = vsel %vm70_vm8, %v3596_v25, %v13250_v28  ;;  %v3834_v1 = vld [vmem:[%s19243_s2 + $0x92] sm:$0x1]  ;;  %v3835_v6 = vld [vmem:[%s19243_s2 + $0xa2] sm:$0x1] }
 0x382   :  { %12044 = vmatmul.mubr.msk.f32.vlgmr.msra.gmra.mrb[14].mxu0 %vm105_vm7, %v16920_v47  ;;  %v12971_v30 = vpack.c.bf16 %v3089_v41, %v3088_v18  ;;  %v16941_v48 = vpack.c.bf16 %v3362_v0, %v3361_v43  ;;  %v3610_v51 = vsel %vm267_vm6, %v3609_v2, %v3608_v44  ;;  %v16957_v32 = vsel %vm112_vm9, %v3365_v19, 0  ;;  %v3825_v33 = vld [vmem:[%s19243_s2 + $0x2] sm:$0x1]  ;;  %v17018_v40 = vld [vmem:[%s19243_s2 + $0x152] sm:$0x1] }
 0x383   :  { %12060 = vmatprep.mubr.msk.f32.mxu0 %vm105_vm7, %v16930_v46  ;;  %19280 = vst [vmem:[#allocation6_spill] sm:$0xff] %v16957_v32  ;;  %v16959_v20 = vpack.c.bf16 %v3690_v62, %v3689_v3  ;;  %v3691_v12 = vsel %vm70_vm8, %v3610_v51, %v3685_v16  ;;  %v3911_v43 = vrot.slane %v3834_v1, 7  ;;  %v3833_v49 = vld [vmem:[%s19243_s2 + $0x82] sm:$0x1]  ;;  %v3836_v28 = vld [vmem:[%s19243_s2 + $0xb2] sm:$0x1] }
 0x384   :  { %12972 = vmatprep.subr.bf16.mxu0 %v12971_v30  ;;  %19279 = vst [vmem:[#allocation5_spill] sm:$0xff] %v16941_v48  ;;  %v3693_v18 = vpack.c.bf16 %v3691_v12, %v3691_v12  ;;  %v3899_v13 = vrot.slane %v3827_v29, 6  ;;  %v3913_v2 = vrot.slane %v3835_v6, 6  ;;  %v17029_v15 = vld [vmem:[%s19243_s2 + $0x162] sm:$0x1]  ;;  %v3931_v12 = vrot.slane %v17013_v26, 4 }
 0x385   :  { %12974 = vmatpush3.bf16.msra.mxu0 %v12971_v30  ;;  %19281 = vst [vmem:[#allocation7_spill] sm:$0xff] %v16959_v20  ;;  %v3843_v30 = vld [vmem:[%s19243_s2 + $0x122] sm:$0x1]  ;;  %v17034_v25 = vld [vmem:[%s19243_s2 + $0x172] sm:$0x1]  ;;  %v3912_v51 = vsel %vm249_vm0, %v3911_v43, %v3833_v49 }
 0x386   :  { %12058 = vmatprep.subr.mxu0 %v3090_v57  ;;  %v16971_v41 = vsel %vm112_vm9, %v3693_v18, 0  ;;  %v3837_v1 = vld [vmem:[%s19243_s2 + $0xc2] sm:$0x1]  ;;  %v17065_v29 = vld [vmem:[%s19243_s2 + $0x123] sm:$0x1]  ;;  %v3914_v43 = vsel %vm252_vm1, %v3913_v2, %v3912_v51 }
 0x387   :  { %19282 = vst [vmem:[#allocation8_spill] sm:$0xff] %v16971_v41  ;;  %v3830_v6 = vld [vmem:[%s19243_s2 + $0x52] sm:$0x1]  ;;  %v4155_v26 = vld [vmem:[%s19243_s2 + $0x23] sm:$0x1]  ;;  %v4255_v51 = vrot.slane %v17065_v29, 6 }
 0x388   :  { %v4227_v29 = vrot.slane %v4155_v26, 6 }
 0x389   :  { %12059 = vmatpush3.msra.mxu0 %v3090_v57  ;;  %v3927_v57 = vrot.slane %v3843_v30, 6  ;;  %v3915_v30 = vrot.slane %v3836_v28, 5  ;;  %v3917_v28 = vrot.slane %v3837_v1, 4 }
 0x38a   :  { %12061 = vmatmul.mubr.msk.f32.vlgmr.msra.gmra.mrb[24].mxu0 %vm105_vm7, %v16920_v47  ;;  %12063 = vmatprep.subr.bf16.mxu0 %v16941_v48 }
 0x38b   :  { %12064 = vmatpush3.bf16.msra.mxu0 %v16941_v48  ;;  %12067 = vmatprep.mubr.msk.bf16.mxu0 %vm105_vm7, %v16407_v36 }
 0x38c   :  { %13169 = vmatprep.subr.msk.bf16.mxu0 %vm112_vm9, %v3365_v19 }
 0x38f   :  { %12066 = vmatpush3.bf16.msra.mxu0 %v16957_v32 }
 0x390   :  { %12080 = vmatprep.subr.bf16.mxu0 %v16959_v20 }
 0x392   :  { %12068 = vmatmul.mubr.msk.bf16.vlgmr.msra.gmra.mrb[28].mxu0 %vm105_vm7, %v16423_v23 }
 0x393   :  { %12081 = vmatpush3.bf16.msra.mxu0 %v16959_v20  ;;  %12084 = vmatprep.mubr.msk.bf16.mxu0 %vm105_vm7, %v16407_v36  ;;  %v3826_v36 = vld [vmem:[%s19243_s2 + $0x12] sm:$0x1] }
 0x394   :  { %13170 = vmatprep.subr.msk.bf16.mxu0 %vm112_vm9, %v3693_v18  ;;  %v3897_v14 = vrot.slane %v3826_v36, 7  ;;  %v4154_v36 = vld [vmem:[%s19243_s2 + $0x13] sm:$0x1] }
 0x396   :  { %v3898_v62 = vsel %vm249_vm0, %v3897_v14, %v3825_v33  ;;  %v3838_v33 = vld [vmem:[%s19243_s2 + $0xd2] sm:$0x1] }
 0x397   :  { %12083 = vmatpush3.bf16.msra.mxu0 %v16971_v41  ;;  %v3900_v14 = vsel %vm252_vm1, %v3899_v13, %v3898_v62  ;;  %v4153_v13 = vld [vmem:[%s19243_s2 + $0x3] sm:$0x1]  ;;  %v3839_v41 = vld [vmem:[%s19243_s2 + $0xe2] sm:$0x1] }
 0x39a   :  { %12085 = vmatmul.mubr.msk.bf16.vlgmr.msra.gmra.mrb[32].mxu0 %vm105_vm7, %v16423_v23  ;;  %v3842_v23 = vld [vmem:[%s19243_s2 + $0x112] sm:$0x1] }
 0x39b   :  { %12111 = vmatprep.mubr.msk.f32.mxu0 %vm105_vm7, %v16930_v46  ;;  %v3925_v0 = vrot.slane %v3842_v23, 7  ;;  %v3901_v23 = vrot.slane %v3828_v63, 5  ;;  %v4225_v63 = vrot.slane %v4154_v36, 7  ;;  %v4161_v36 = vld [vmem:[%s19243_s2 + $0x83] sm:$0x1] }
 0x455   :  { %v12045_v34 = vpop.f32.mrb[14].mxu0 }
 0x456   :  { %v2839_v55 = vmax.f32 %v16755_v38, %v12045_v34  ;;  %v2829_v58 = vpop.f32.mrb[15].mxu0  ;;  %v3844_v38 = vld [vmem:[%s19243_s2 + $0x132] sm:$0x1]  ;;  %v4170_v34 = vld [vmem:[%s19243_s2 + $0x113] sm:$0x1] }
 0x457   :  { %v2838_v24 = vmax.f32 %v16765_v37, %v2829_v58  ;;  %v3841_v37 = vld [vmem:[%s19243_s2 + $0x102] sm:$0x1]  ;;  %v3929_v44 = vrot.slane %v3844_v38, 5  ;;  %v4162_v38 = vld [vmem:[%s19243_s2 + $0x93] sm:$0x1]  ;;  %v4253_v62 = vrot.slane %v4170_v34, 7 }
 0x458   :  { %v3926_v16 = vsel %vm249_vm0, %v3925_v0, %v3841_v37  ;;  %v4239_v2 = vrot.slane %v4162_v38, 7  ;;  %v3831_v38 = vld [vmem:[%s19243_s2 + $0x62] sm:$0x1]  ;;  %v4156_v34 = vld [vmem:[%s19243_s2 + $0x33] sm:$0x1] }
 0x459   :  { %v3928_v0 = vsel %vm252_vm1, %v3927_v57, %v3926_v16  ;;  %v4163_v57 = vld [vmem:[%s19243_s2 + $0xa3] sm:$0x1]  ;;  %v3902_v16 = vsel %vm255_vm2, %v3901_v23, %v3900_v14  ;;  %v3905_v23 = vrot.slane %v3830_v6, 3  ;;  %v3919_v14 = vrot.slane %v3838_v33, 3 }
 0x45a   :  { %v3930_v1 = vsel %vm255_vm2, %v3929_v44, %v3928_v0  ;;  %v4241_v44 = vrot.slane %v4163_v57, 6  ;;  %v4240_v6 = vsel %vm249_vm0, %v4239_v2, %v4161_v36  ;;  %v3907_v57 = vrot.slane %v3831_v38, 2 }
 0x45b   :  { %v3932_v33 = vsel %vm258_vm3, %v3931_v12, %v3930_v1  ;;  %v4165_v12 = vld [vmem:[%s19243_s2 + $0xc3] sm:$0x1] }
 0x45c   :  { %v4242_v36 = vsel %vm252_vm1, %v4241_v44, %v4240_v6  ;;  %v4245_v44 = vrot.slane %v4165_v12, 4 }
 0x45d   :  { %v12062_v59 = vpop.f32.mrb[24].mxu0 }
 0x45e   :  { %v17036_v19 = vmax.f32 %v2839_v55, %v12062_v59  ;;  %v3157_v3 = vpop.f32.mrb[25].mxu0  ;;  %v3829_v55 = vld [vmem:[%s19243_s2 + $0x42] sm:$0x1]  ;;  %v4169_v59 = vld [vmem:[%s19243_s2 + $0x103] sm:$0x1] }
 0x45f   :  { %v17046_v58 = vmax.f32 %v2838_v24, %v3157_v3  ;;  %v3903_v49 = vrot.slane %v3829_v55, 4  ;;  %v17091_v3 = vld [vmem:[%s19243_s2 + $0x133] sm:$0x1]  ;;  %v3916_v55 = vsel %vm255_vm2, %v3915_v30, %v3914_v43  ;;  %v4226_v43 = vsel %vm249_vm0, %v4225_v63, %v4153_v13 }
 0x460   :  { %v4164_v30 = vld [vmem:[%s19243_s2 + $0xb3] sm:$0x1]  ;;  %v3918_v26 = vsel %vm258_vm3, %v3917_v28, %v3916_v55  ;;  %v4254_v32 = vsel %vm249_vm0, %v4253_v62, %v4169_v59  ;;  %v4257_v63 = vrot.slane %v17091_v3, 5  ;;  %v4228_v59 = vsel %vm252_vm1, %v4227_v29, %v4226_v43  ;;  %v3832_v3 = vld [vmem:[%s19243_s2 + $0x72] sm:$0x1] }
 0x461   :  { %v3904_v20 = vsel %vm258_vm3, %v3903_v49, %v3902_v16  ;;  %v17126_v49 = vld [vmem:[%s19243_s2 + $0x143] sm:$0x1]  ;;  %v4243_v2 = vrot.slane %v4164_v30, 5  ;;  %v3920_v16 = vsel %vm261_vm4, %v3919_v14, %v3918_v26  ;;  %v3921_v55 = vrot.slane %v3839_v41, 2  ;;  %v3840_v29 = vld [vmem:[%s19243_s2 + $0xf2] sm:$0x1] }
 0x462   :  { %v3906_v62 = vsel %vm261_vm4, %v3905_v23, %v3904_v20  ;;  %v4158_v30 = vld [vmem:[%s19243_s2 + $0x53] sm:$0x1]  ;;  %v19283_v23 = vrot.slane %v17018_v40, 3  ;;  %v4259_v14 = vrot.slane %v17126_v49, 4  ;;  %v4256_v26 = vsel %vm252_vm1, %v4255_v51, %v4254_v32  ;;  %v4159_v32 = vld [vmem:[%s19243_s2 + $0x63] sm:$0x1] }
 0x463   :  { %v3909_v40 = vrot.slane %v3832_v3, 1  ;;  %v3908_v49 = vsel %vm264_vm5, %v3907_v57, %v3906_v62  ;;  %v4233_v48 = vrot.slane %v4158_v30, 3  ;;  %v4167_v51 = vld [vmem:[%s19243_s2 + $0xe3] sm:$0x1]  ;;  %v19284_v3 = vrot.slane %v17029_v15, 2 }
 0x464   :  { %v3934_v41 = vsel %vm261_vm4, %v19283_v23, %v3932_v33  ;;  %v4244_v33 = vsel %vm255_vm2, %v4243_v2, %v4242_v36  ;;  %v3923_v23 = vrot.slane %v3840_v29, 1  ;;  %v13253_v36 = vpop.permute.xlu0 %13252 }
 0x465   :  { %v12069_v37 = vpop.f32.mrb[28].mxu0  ;;  %v3936_v62 = vsel %vm264_vm5, %v19284_v3, %v3934_v41  ;;  %v13255_v29 = vunpack.i.h.bf16 %v13253_v36  ;;  %v13254_v30 = vunpack.i.l.bf16 %v13253_v36  ;;  %v3910_v15 = vsel %vm267_vm6, %v3909_v40, %v3908_v49 }
 0x466   :  { %v3403_v24 = vpop.f32.mrb[29].mxu0  ;;  %v3412_v1 = vadd.f32 %v12069_v37, %v16133_v7  ;;  %v4166_v37 = vld [vmem:[%s19243_s2 + $0xd3] sm:$0x1] }
 0x467   :  { %v3404_v0 = vadd.f32 %v3403_v24, %v16115_v27  ;;  %v12070_v18 = vpop.f32.mrb[30].mxu0  ;;  %v4229_v24 = vrot.slane %v4156_v34, 5  ;;  %v4247_v2 = vrot.slane %v4166_v37, 3  ;;  %v4168_v37 = vld [vmem:[%s19243_s2 + $0xf3] sm:$0x1] }
 0x468   :  { %v3406_v13 = vpop.f32.mrb[31].mxu0  ;;  %v4157_v18 = vld [vmem:[%s19243_s2 + $0x43] sm:$0x1] }
 0x469   :  { %v3407_v28 = vadd.f32 %v3406_v13, %v16117_v10  ;;  %v3417_v38 = vmul.f32 %v3404_v0, %v16119_v17  ;;  %v4231_v20 = vrot.slane %v4157_v18, 4  ;;  %v4230_v43 = vsel %vm255_vm2, %v4229_v24, %v4228_v59  ;;  %v4174_v0 = vld [vmem:[%s19243_s2 + $0x153] sm:$0x1] }
 0x46a   :  { %v3419_v24 = vmul.f32 %v3412_v1, %v16127_v35 }
 0x46b   :  { %v3418_v34 = vmul.f32 %v3407_v28, %v16124_v50  ;;  %v3922_v28 = vsel %vm264_vm5, %v3921_v55, %v3920_v16  ;;  %v4232_v57 = vsel %vm258_vm3, %v4231_v20, %v4230_v43  ;;  %v4258_v16 = vsel %vm255_vm2, %v4257_v63, %v4256_v26  ;;  %v4160_v63 = vld [vmem:[%s19243_s2 + $0x73] sm:$0x1] }
 0x46c   :  { %v4261_v55 = vrot.slane %v4174_v0, 3  ;;  %v3924_v41 = vsel %vm267_vm6, %v3923_v23, %v3922_v28  ;;  %v4234_v43 = vsel %vm261_vm4, %v4233_v48, %v4232_v57  ;;  %v4249_v0 = vrot.slane %v4167_v51, 2  ;;  %v4013_v51 = vpop.permute.xlu1 %4012 }
 0x46d   :  { %v12086_v6 = vpop.f32.mrb[32].mxu0  ;;  %v12975_v13 = vpack.c.bf16 %v3418_v34, %v3417_v38  ;;  %v4246_v38 = vsel %vm258_vm3, %v4245_v44, %v4244_v33  ;;  %v4175_v34 = vld [vmem:[%s19243_s2 + $0x163] sm:$0x1]  ;;  %v4235_v44 = vrot.slane %v4159_v32, 2  ;;  %v19285_v28 = vrot.slane %v17034_v25, 1 }
 0x46e   :  { %v3731_v18 = vpop.f32.mrb[33].mxu0  ;;  %v3740_v26 = vadd.f32 %v12086_v6, %v16133_v7  ;;  %v4248_v33 = vsel %vm261_vm4, %v4247_v2, %v4246_v38  ;;  %v4263_v49 = vrot.slane %v4175_v34, 2  ;;  %v4251_v6 = vrot.slane %v4168_v37, 1  ;;  %v13258_v2 = vpop.permute.xlu0 %13257 }
 0x46f   :  { %v3732_v12 = vadd.f32 %v3731_v18, %v16115_v27  ;;  %12976 = vmatprep.subr.bf16.mxu1 %v12975_v13  ;;  %v12087_v59 = vpop.f32.mrb[34].mxu0  ;;  %v4260_v18 = vsel %vm258_vm3, %v4259_v14, %v4258_v16  ;;  %v3938_v23 = vsel %vm267_vm6, %v19285_v28, %v3936_v62  ;;  %v4017_v14 = vsel %vm70_vm8, %v3910_v15, %v13254_v30 }
 0x470   :  { %12978 = vmatpush3.bf16.msra.mxu1 %v12975_v13  ;;  %v3734_v1 = vpop.f32.mrb[35].mxu0  ;;  %v4237_v59 = vrot.slane %v4160_v63, 1  ;;  %v4236_v25 = vsel %vm264_vm5, %v4235_v44, %v4234_v43  ;;  %v4250_v32 = vsel %vm264_vm5, %v4249_v0, %v4248_v33  ;;  %v4262_v57 = vsel %vm261_vm4, %v4261_v55, %v4260_v18  ;;  %v17227_v63 = vld [vmem:[%s19241_s5] sm:$0xff]   ;;  %v4341_v37 = vpop.permute.xlu1 %4340  ;;  %v4498_v33 = vld [vmem:[%s19243_s2 + $0x114] sm:$0x1] }
 0x471   :  { %v3735_v20 = vadd.f32 %v3734_v1, %v16117_v10  ;;  %12075 = vmatprep.subr.mxu1 %v3419_v24  ;;  %v3745_v13 = vmul.f32 %v3732_v12, %v16119_v17  ;;  %v4176_v12 = vld [vmem:[%s19243_s2 + $0x173] sm:$0x1]  ;;  %v3747_v3 = vmul.f32 %v3740_v26, %v16127_v35  ;;  %v4019_v62 = vsel %vm70_vm8, %v3938_v23, %v4013_v51 }
 0x472   :  { %v13260_v16 = vunpack.i.h.bf16 %v13258_v2  ;;  %v13259_v36 = vunpack.i.l.bf16 %v13258_v2  ;;  %v4265_v1 = vrot.slane %v4176_v12, 1  ;;  %v4238_v34 = vsel %vm267_vm6, %v4237_v59, %v4236_v25  ;;  %v4490_v59 = vld [vmem:[%s19243_s2 + $0x94] sm:$0x1]  ;;  %v4489_v2 = vld [vmem:[%s19243_s2 + $0x84] sm:$0x1] }
 0x473   :  { %v3746_v40 = vmul.f32 %v3735_v20, %v16124_v50  ;;  %v4264_v30 = vsel %vm264_vm5, %v4263_v49, %v4262_v57  ;;  %v4021_v55 = vpack.c.bf16 %v4019_v62, %v4019_v62  ;;  %v4581_v12 = vrot.slane %v4498_v33, 7  ;;  %v4481_v57 = vld [vmem:[%s19243_s2 + $0x4] sm:$0x1] }
 0x474   :  { %12076 = vmatpush3.msra.mxu1 %v3419_v24  ;;  %v4018_v24 = vsel %vm70_vm8, %v3924_v41, %v13255_v29  ;;  %v4252_v29 = vsel %vm267_vm6, %v4251_v6, %v4250_v32  ;;  %v4345_v20 = vsel %vm70_vm8, %v4238_v34, %v13259_v36  ;;  %v4266_v41 = vsel %vm267_vm6, %v4265_v1, %v4264_v30  ;;  %v4499_v6 = vld [vmem:[%s19243_s2 + $0x124] sm:$0x1]  ;;  %v4492_v1 = vld [vmem:[%s19243_s2 + $0xb4] sm:$0x1] }
 0x475   :  { %12078 = vmatmul.mubr.msk.f32.vlgmr.msra.gmra.mrb[32].mxu1 %vm105_vm7, %v16920_v47  ;;  %v12979_v48 = vpack.c.bf16 %v3746_v40, %v3745_v13  ;;  %v17212_v38 = vpack.c.bf16 %v4018_v24, %v4017_v14  ;;  %v4346_v15 = vsel %vm70_vm8, %v4252_v29, %v13260_v16  ;;  %v17233_v43 = vsel %vm112_vm9, %v4021_v55, 0  ;;  %v17243_v13 = vld [vmem:[%s19241_s5 + $0x8] ss:$0 sps:$4 sm:$0xff]   ;;  %v4483_v14 = vld [vmem:[%s19243_s2 + $0x24] sm:$0x1] }
 0x476   :  { %12094 = vmatprep.mubr.msk.f32.mxu1 %vm105_vm7, %v16930_v46  ;;  %19287 = vst [vmem:[#allocation10_spill] sm:$0xff] %v17233_v43  ;;  %v17235_v44 = vpack.c.bf16 %v4346_v15, %v4345_v20  ;;  %v4347_v0 = vsel %vm70_vm8, %v4266_v41, %v4341_v37  ;;  %v4491_v24 = vld [vmem:[%s19243_s2 + $0xa4] sm:$0x1]  ;;  %v4567_v32 = vrot.slane %v4490_v59, 7  ;;  %v4583_v51 = vrot.slane %v4499_v6, 6 }
 0x477   :  { %12980 = vmatprep.subr.bf16.mxu1 %v12979_v48  ;;  %19286 = vst [vmem:[#allocation9_spill] sm:$0xff] %v17212_v38  ;;  %v4349_v26 = vpack.c.bf16 %v4347_v0, %v4347_v0  ;;  %v4484_v16 = vld [vmem:[%s19243_s2 + $0x34] sm:$0x1]  ;;  %v4555_v34 = vrot.slane %v4483_v14, 6  ;;  %v4569_v29 = vrot.slane %v4491_v24, 6 }
 0x478   :  { %12982 = vmatpush3.bf16.msra.mxu1 %v12979_v48  ;;  %19288 = vst [vmem:[#allocation11_spill] sm:$0xff] %v17235_v44  ;;  %v4482_v48 = vld [vmem:[%s19243_s2 + $0x14] sm:$0x1]  ;;  %v4568_v0 = vsel %vm249_vm0, %v4567_v32, %v4489_v2  ;;  %v4493_v59 = vld [vmem:[%s19243_s2 + $0xc4] sm:$0x1]  ;;  %v4557_v6 = vrot.slane %v4484_v16, 5 }
 0x479   :  { %12092 = vmatprep.subr.mxu1 %v3747_v3  ;;  %v17252_v40 = vsel %vm112_vm9, %v4349_v26, 0  ;;  %v4553_v25 = vrot.slane %v4482_v48, 7  ;;  %v4502_v30 = vld [vmem:[%s19243_s2 + $0x154] sm:$0x1]  ;;  %v4810_v48 = vld [vmem:[%s19243_s2 + $0x15] sm:$0x1]  ;;  %v4570_v32 = vsel %vm252_vm1, %v4569_v29, %v4568_v0 }
 0x47a   :  { %19289 = vst [vmem:[#allocation12_spill] sm:$0xff] %v17252_v40  ;;  %v4826_v14 = vld [vmem:[%s19243_s2 + $0x115] sm:$0x1]  ;;  %v4486_v24 = vld [vmem:[%s19243_s2 + $0x54] sm:$0x1] }
 0x47b   :  { %v4554_v37 = vsel %vm249_vm0, %v4553_v25, %v4481_v57  ;;  %v4494_v57 = vld [vmem:[%s19243_s2 + $0xd4] sm:$0x1]  ;;  %v4825_v16 = vld [vmem:[%s19243_s2 + $0x105] sm:$0x1] }
 0x47c   :  { %12093 = vmatpush3.msra.mxu1 %v3747_v3  ;;  %v4501_v3 = vld [vmem:[%s19243_s2 + $0x144] sm:$0x1]  ;;  %v4556_v25 = vsel %vm252_vm1, %v4555_v34, %v4554_v37  ;;  %v4819_v34 = vld [vmem:[%s19243_s2 + $0xa5] sm:$0x1] }
 0x47d   :  { %12095 = vmatmul.mubr.msk.f32.vlgmr.msra.gmra.mrb[34].mxu1 %vm105_vm7, %v16920_v47  ;;  %12097 = vmatprep.subr.bf16.mxu1 %v17212_v38  ;;  %v4558_v37 = vsel %vm255_vm2, %v4557_v6, %v4556_v25  ;;  %v4561_v6 = vrot.slane %v4486_v24, 3  ;;  %v4575_v25 = vrot.slane %v4494_v57, 3 }
 0x47e   :  { %12098 = vmatpush3.bf16.msra.mxu1 %v17212_v38  ;;  %12101 = vmatprep.mubr.msk.bf16.mxu1 %vm105_vm7, %v17227_v63  ;;  %v17396_v38 = vld [vmem:[%s19243_s2 + $0x145] sm:$0x1] }
 0x47f   :  { %13171 = vmatprep.subr.msk.bf16.mxu1 %vm112_vm9, %v4021_v55  ;;  %v17307_v55 = vld [vmem:[%s19243_s2 + $0x164] sm:$0x1] }
 0x482   :  { %12100 = vmatpush3.bf16.msra.mxu1 %v17233_v43 }
 0x483   :  { %12114 = vmatprep.subr.bf16.mxu1 %v17235_v44 }
 0x485   :  { %12102 = vmatmul.mubr.msk.bf16.vlgmr.msra.gmra.mrb[36].mxu1 %vm105_vm7, %v17243_v13 }
 0x486   :  { %12115 = vmatpush3.bf16.msra.mxu1 %v17235_v44  ;;  %12118 = vmatprep.mubr.msk.bf16.mxu1 %vm105_vm7, %v17227_v63 }
 0x487   :  { %13172 = vmatprep.subr.msk.bf16.mxu1 %vm112_vm9, %v4349_v26  ;;  %v17316_v26 = vld [vmem:[%s19243_s2 + $0x174] sm:$0x1] }
 0x48a   :  { %12117 = vmatpush3.bf16.msra.mxu1 %v17252_v40 }
 0x48d   :  { %12119 = vmatmul.mubr.msk.bf16.vlgmr.msra.gmra.mrb[40].mxu1 %vm105_vm7, %v17243_v13 }
 0x48e   :  { %12145 = vmatprep.mubr.msk.f32.mxu1 %vm105_vm7, %v16930_v46 }
 0x548   :  { %v12079_v18 = vpop.f32.mrb[32].mxu1 }
 0x549   :  { %v3496_v49 = vmax.f32 %v17036_v19, %v12079_v18  ;;  %v3486_v28 = vpop.f32.mrb[33].mxu1  ;;  %v4497_v19 = vld [vmem:[%s19243_s2 + $0x104] sm:$0x1]  ;;  %v4587_v18 = vrot.slane %v4501_v3, 4  ;;  %v4811_v3 = vld [vmem:[%s19243_s2 + $0x25] sm:$0x1] }
 0x54a   :  { %v3495_v23 = vmax.f32 %v17046_v58, %v3486_v28  ;;  %v4500_v58 = vld [vmem:[%s19243_s2 + $0x134] sm:$0x1]  ;;  %v4582_v62 = vsel %vm249_vm0, %v4581_v12, %v4497_v19  ;;  %v4571_v12 = vrot.slane %v4492_v1, 5  ;;  %v4818_v19 = vld [vmem:[%s19243_s2 + $0x95] sm:$0x1] }
 0x54b   :  { %v4585_v20 = vrot.slane %v4500_v58, 5  ;;  %v4584_v33 = vsel %vm252_vm1, %v4583_v51, %v4582_v62  ;;  %v4881_v62 = vrot.slane %v4810_v48, 7  ;;  %v4809_v1 = vld [vmem:[%s19243_s2 + $0x5] sm:$0x1]  ;;  %v4895_v29 = vrot.slane %v4818_v19, 7 }
 0x54c   :  { %v4572_v0 = vsel %vm255_vm2, %v4571_v12, %v4570_v32  ;;  %v4812_v19 = vld [vmem:[%s19243_s2 + $0x35] sm:$0x1] }
 0x54d   :  { %v4586_v51 = vsel %vm255_vm2, %v4585_v20, %v4584_v33  ;;  %v4827_v20 = vld [vmem:[%s19243_s2 + $0x125] sm:$0x1]  ;;  %v4820_v12 = vld [vmem:[%s19243_s2 + $0xb5] sm:$0x1]  ;;  %v4882_v32 = vsel %vm249_vm0, %v4881_v62, %v4809_v1 }
 0x54e   :  { %v4817_v33 = vld [vmem:[%s19243_s2 + $0x85] sm:$0x1] }
 0x54f   :  { %v4896_v44 = vsel %vm249_vm0, %v4895_v29, %v4817_v33  ;;  %v4899_v29 = vrot.slane %v4820_v12, 5 }
 0x550   :  { %v12096_v36 = vpop.f32.mrb[34].mxu1 }
 0x551   :  { %v17309_v15 = vmax.f32 %v3496_v49, %v12096_v36  ;;  %v3814_v41 = vpop.f32.mrb[35].mxu1  ;;  %v4485_v49 = vld [vmem:[%s19243_s2 + $0x44] sm:$0x1]  ;;  %v4573_v36 = vrot.slane %v4493_v59, 4 }
 0x552   :  { %v17319_v28 = vmax.f32 %v3495_v23, %v3814_v41  ;;  %v4589_v23 = vrot.slane %v4502_v30, 3  ;;  %v4559_v2 = vrot.slane %v4485_v49, 4  ;;  %v4909_v41 = vrot.slane %v4826_v14, 7  ;;  %v4487_v59 = vld [vmem:[%s19243_s2 + $0x64] sm:$0x1] }
 0x553   :  { %v4588_v49 = vsel %vm258_vm3, %v4587_v18, %v4586_v51  ;;  %v4883_v14 = vrot.slane %v4811_v3, 6  ;;  %v4897_v18 = vrot.slane %v4819_v34, 6  ;;  %v4828_v51 = vld [vmem:[%s19243_s2 + $0x135] sm:$0x1]  ;;  %v4495_v3 = vld [vmem:[%s19243_s2 + $0xe4] sm:$0x1]  ;;  %v4574_v57 = vsel %vm258_vm3, %v4573_v36, %v4572_v0 }
 0x554   :  { %v4560_v24 = vsel %vm258_vm3, %v4559_v2, %v4558_v37  ;;  %v4590_v62 = vsel %vm261_vm4, %v4589_v23, %v4588_v49  ;;  %v4910_v1 = vsel %vm249_vm0, %v4909_v41, %v4825_v16  ;;  %v4911_v34 = vrot.slane %v4827_v20, 6  ;;  %v4821_v23 = vld [vmem:[%s19243_s2 + $0xc5] sm:$0x1]  ;;  %v4488_v20 = vld [vmem:[%s19243_s2 + $0x74] sm:$0x1] }
 0x555   :  { %v4563_v36 = vrot.slane %v4487_v59, 2  ;;  %v4884_v16 = vsel %vm252_vm1, %v4883_v14, %v4882_v32  ;;  %v4562_v41 = vsel %vm261_vm4, %v4561_v6, %v4560_v24  ;;  %v4576_v37 = vsel %vm261_vm4, %v4575_v25, %v4574_v57  ;;  %v4814_v14 = vld [vmem:[%s19243_s2 + $0x55] sm:$0x1] }
 0x556   :  { %v4577_v0 = vrot.slane %v4495_v3, 2  ;;  %v4898_v33 = vsel %vm252_vm1, %v4897_v18, %v4896_v44  ;;  %v4913_v12 = vrot.slane %v4828_v51, 5  ;;  %v4915_v25 = vrot.slane %v17396_v38, 4  ;;  %v4822_v44 = vld [vmem:[%s19243_s2 + $0xd5] sm:$0x1] }
 0x557   :  { %v4830_v32 = vld [vmem:[%s19243_s2 + $0x155] sm:$0x1]  ;;  %v4912_v18 = vsel %vm252_vm1, %v4911_v34, %v4910_v1  ;;  %v4565_v57 = vrot.slane %v4488_v20, 1  ;;  %v4900_v51 = vsel %vm255_vm2, %v4899_v29, %v4898_v33  ;;  %v4564_v38 = vsel %vm264_vm5, %v4563_v36, %v4562_v41  ;;  %v4815_v1 = vld [vmem:[%s19243_s2 + $0x65] sm:$0x1]  ;;  %v13263_v33 = vpop.permute.xlu0 %13262 }
 0x558   :  { %v12103_v48 = vpop.f32.mrb[36].mxu1  ;;  %v4889_v9 = vrot.slane %v4814_v14, 3  ;;  %v4823_v34 = vld [vmem:[%s19243_s2 + $0xe5] sm:$0x1]  ;;  %v4903_v29 = vrot.slane %v4822_v44, 3  ;;  %v19290_v20 = vrot.slane %v17307_v55, 2  ;;  %v13264_v14 = vunpack.i.l.bf16 %v13263_v33 }
 0x559   :  { %v4059_v30 = vpop.f32.mrb[37].mxu1  ;;  %v4566_v55 = vsel %vm267_vm6, %v4565_v57, %v4564_v38  ;;  %v4824_v44 = vld [vmem:[%s19243_s2 + $0xf5] sm:$0x1]  ;;  %v19291_v38 = vrot.slane %v17316_v26, 1 }
 0x55a   :  { %v4060_v58 = vadd.f32 %v4059_v30, %v16115_v27  ;;  %v12104_v40 = vpop.f32.mrb[38].mxu1  ;;  %v4885_v30 = vrot.slane %v4812_v19, 5  ;;  %v4496_v19 = vld [vmem:[%s19243_s2 + $0xf4] sm:$0x1]  ;;  %v4592_v41 = vsel %vm264_vm5, %v19290_v20, %v4590_v62 }
 0x55b   :  { %v4062_v43 = vpop.f32.mrb[39].mxu1  ;;  %v4813_v40 = vld [vmem:[%s19243_s2 + $0x45] sm:$0x1]  ;;  %v4579_v22 = vrot.slane %v4496_v19, 1  ;;  %v13265_v19 = vunpack.i.h.bf16 %v13263_v33 }
 0x55c   :  { %v4063_v2 = vadd.f32 %v4062_v43, %v16117_v10  ;;  %v4068_v43 = vadd.f32 %v12103_v48, %v16133_v7  ;;  %v4073_v49 = vmul.f32 %v4060_v58, %v16119_v17  ;;  %v4887_v6 = vrot.slane %v4813_v40, 4 }
 0x55d   :  { %v4886_v58 = vsel %vm255_vm2, %v4885_v30, %v4884_v16  ;;  %v4901_v48 = vrot.slane %v4821_v23, 4 }
 0x55e   :  { %v4074_v59 = vmul.f32 %v4063_v2, %v16124_v50  ;;  %v4578_v2 = vsel %vm264_vm5, %v4577_v0, %v4576_v37  ;;  %v4075_v30 = vmul.f32 %v4068_v43, %v16127_v35  ;;  %v4888_v36 = vsel %vm258_vm3, %v4887_v6, %v4886_v58 }
 0x55f   :  { %v4914_v37 = vsel %vm255_vm2, %v4913_v12, %v4912_v18  ;;  %v4917_v0 = vrot.slane %v4830_v32, 3  ;;  %v4580_v62 = vsel %vm267_vm6, %v4579_v22, %v4578_v2  ;;  %v4816_v12 = vld [vmem:[%s19243_s2 + $0x75] sm:$0x1]  ;;  %v4890_v58 = vsel %vm261_vm4, %v4889_v9, %v4888_v36 }
 0x560   :  { %v12120_v3 = vpop.f32.mrb[40].mxu1  ;;  %v12983_v24 = vpack.c.bf16 %v4074_v59, %v4073_v49  ;;  %v4902_v49 = vsel %vm258_vm3, %v4901_v48, %v4900_v51  ;;  %v4831_v59 = vld [vmem:[%s19243_s2 + $0x165] sm:$0x1]  ;;  %v4891_v48 = vrot.slane %v4815_v1, 2  ;;  %v4905_v32 = vrot.slane %v4823_v34, 2  ;;  %v4669_v34 = vpop.permute.xlu1 %4668 }
 0x561   :  { %v4387_v40 = vpop.f32.mrb[41].mxu1  ;;  %v4396_v18 = vadd.f32 %v12120_v3, %v16133_v7  ;;  %v4904_v22 = vsel %vm261_vm4, %v4903_v29, %v4902_v49  ;;  %v4916_v51 = vsel %vm258_vm3, %v4915_v25, %v4914_v37  ;;  %v4594_v2 = vsel %vm267_vm6, %v19291_v38, %v4592_v41  ;;  %v13268_v29 = vpop.permute.xlu0 %13267  ;;  %v5146_v38 = vld [vmem:[%s19243_s2 + $0x96] sm:$0x1] }
 0x562   :  { %v4388_v23 = vadd.f32 %v4387_v40, %v16115_v27  ;;  %12984 = vmatprep.subr.bf16.mxu0 %v12983_v24  ;;  %v12121_v16 = vpop.f32.mrb[42].mxu1  ;;  %v4919_v40 = vrot.slane %v4831_v59, 2  ;;  %v4907_v3 = vrot.slane %v4824_v44, 1  ;;  %v4673_v25 = vsel %vm70_vm8, %v4566_v55, %v13264_v14 }
 0x563   :  { %12986 = vmatpush3.bf16.msra.mxu0 %v12983_v24  ;;  %v4390_v43 = vpop.f32.mrb[43].mxu1  ;;  %v4893_v16 = vrot.slane %v4816_v12, 1  ;;  %v4892_v26 = vsel %vm264_vm5, %v4891_v48, %v4890_v58  ;;  %v4906_v1 = vsel %vm264_vm5, %v4905_v32, %v4904_v22  ;;  %v4918_v36 = vsel %vm261_vm4, %v4917_v0, %v4916_v51 }
 0x564   :  { %v4391_v6 = vadd.f32 %v4390_v43, %v16117_v10  ;;  %12109 = vmatprep.subr.mxu0 %v4075_v30  ;;  %v4401_v24 = vmul.f32 %v4388_v23, %v16119_v17  ;;  %v4832_v23 = vld [vmem:[%s19243_s2 + $0x175] sm:$0x1]  ;;  %v4403_v20 = vmul.f32 %v4396_v18, %v16127_v35  ;;  %v4675_v41 = vsel %vm70_vm8, %v4594_v2, %v4669_v34  ;;  %v4997_v12 = vpop.permute.xlu1 %4996  ;;  %v5154_v18 = vld [vmem:[%s19243_s2 + $0x116] sm:$0x1] }
 0x565   :  { %v13270_v37 = vunpack.i.h.bf16 %v13268_v29  ;;  %v13269_v33 = vunpack.i.l.bf16 %v13268_v29  ;;  %v4921_v43 = vrot.slane %v4832_v23, 1  ;;  %v4894_v59 = vsel %vm267_vm6, %v4893_v16, %v4892_v26  ;;  %v5147_v16 = vld [vmem:[%s19243_s2 + $0xa6] sm:$0x1] }
 0x566   :  { %v4402_v57 = vmul.f32 %v4391_v6, %v16124_v50  ;;  %v4920_v14 = vsel %vm264_vm5, %v4919_v40, %v4918_v36  ;;  %v4677_v0 = vpack.c.bf16 %v4675_v41, %v4675_v41  ;;  %v5138_v40 = vld [vmem:[%s19243_s2 + $0x16] sm:$0x1]  ;;  %v5237_v2 = vrot.slane %v5154_v18, 7  ;;  %v5145_v26 = vld [vmem:[%s19243_s2 + $0x86] sm:$0x1] }
 0x567   :  { %12110 = vmatpush3.msra.mxu0 %v4075_v30  ;;  %v4674_v30 = vsel %vm70_vm8, %v4580_v62, %v13265_v19  ;;  %v4908_v19 = vsel %vm267_vm6, %v4907_v3, %v4906_v1  ;;  %v5001_v6 = vsel %vm70_vm8, %v4894_v59, %v13269_v33  ;;  %v4922_v62 = vsel %vm267_vm6, %v4921_v43, %v4920_v14  ;;  %v5157_v1 = vld [vmem:[%s19243_s2 + $0x146] sm:$0x1]  ;;  %v5140_v36 = vld [vmem:[%s19243_s2 + $0x36] sm:$0x1]  ;;  %v5466_v18 = vld [vmem:[%s19243_s2 + $0x17] sm:$0x1] }
 0x568   :  { %12112 = vmatmul.mubr.msk.f32.vlgmr.msra.gmra.mrb[26].mxu0 %vm105_vm7, %v16920_v47  ;;  %v12987_v9 = vpack.c.bf16 %v4402_v57, %v4401_v24  ;;  %v17479_v49 = vpack.c.bf16 %v4674_v30, %v4673_v25  ;;  %v5002_v55 = vsel %vm70_vm8, %v4908_v19, %v13270_v37  ;;  %v17495_v44 = vsel %vm112_vm9, %v4677_v0, 0  ;;  %v5137_v30 = vld [vmem:[%s19243_s2 + $0x6] sm:$0x1]  ;;  %v5158_v33 = vld [vmem:[%s19243_s2 + $0x156] sm:$0x1] }
 0x569   :  { %12128 = vmatprep.mubr.msk.f32.mxu0 %vm105_vm7, %v16930_v46  ;;  %v17497_v58 = vpack.c.bf16 %v5002_v55, %v5001_v6  ;;  %v5003_v48 = vsel %vm70_vm8, %v4922_v62, %v4997_v12  ;;  %v5209_v3 = vrot.slane %v5138_v40, 7  ;;  %v5223_v23 = vrot.slane %v5146_v38, 7  ;;  %v17564_v43 = vld [vmem:[%s19243_s2 + $0x166] sm:$0x1]  ;;  %v17573_v55 = vld [vmem:[%s19243_s2 + $0x176] sm:$0x1] }
 0x56a   :  { %12988 = vmatprep.subr.bf16.mxu0 %v12987_v9  ;;  %v5225_v37 = vrot.slane %v5147_v16, 6  ;;  %v5243_v12 = vrot.slane %v5157_v1, 4  ;;  %v5474_v40 = vld [vmem:[%s19243_s2 + $0x97] sm:$0x1]  ;;  %v5150_v16 = vld [vmem:[%s19243_s2 + $0xd6] sm:$0x1] }
 0x56b   :  { %12990 = vmatpush3.bf16.msra.mxu0 %v12987_v9  ;;  %19292 = vst [vmem:[#allocation13_spill] sm:$0xff] %v17497_v58  ;;  %v5139_v9 = vld [vmem:[%s19243_s2 + $0x26] sm:$0x1]  ;;  %v5224_v6 = vsel %vm249_vm0, %v5223_v23, %v5145_v26  ;;  %v5467_v23 = vld [vmem:[%s19243_s2 + $0x27] sm:$0x1] }
 0x56c   :  { %12126 = vmatprep.subr.mxu0 %v4403_v20  ;;  %v5211_v41 = vrot.slane %v5139_v9, 6  ;;  %v5465_v1 = vld [vmem:[%s19243_s2 + $0x7] sm:$0x1] }
 0x56d   :  { %v17653_v38 = vld [vmem:[%s19243_s2 + $0x147] sm:$0x1] }
 0x56f   :  { %12127 = vmatpush3.msra.mxu0 %v4403_v20  ;;  %v5148_v20 = vld [vmem:[%s19243_s2 + $0xb6] sm:$0x1] }
 0x570   :  { %12129 = vmatmul.mubr.msk.f32.vlgmr.msra.gmra.mrb[36].mxu0 %vm105_vm7, %v16920_v47  ;;  %12131 = vmatprep.subr.bf16.mxu0 %v17479_v49  ;;  %v5005_v47 = vpack.c.bf16 %v5003_v48, %v5003_v48 }
 0x571   :  { %12132 = vmatpush3.bf16.msra.mxu0 %v17479_v49  ;;  %12135 = vmatprep.mubr.msk.bf16.mxu0 %vm105_vm7, %v17227_v63 }
 0x572   :  { %13173 = vmatprep.subr.msk.bf16.mxu0 %vm112_vm9, %v4677_v0  ;;  %v17509_v32 = vsel %vm112_vm9, %v5005_v47, 0  ;;  %v5210_v0 = vsel %vm249_vm0, %v5209_v3, %v5137_v30  ;;  %v5481_v30 = vld [vmem:[%s19243_s2 + $0x107] sm:$0x1] }
 0x573   :  { %19293 = vst [vmem:[#allocation14_spill] sm:$0xff] %v17509_v32 }
 0x575   :  { %12134 = vmatpush3.bf16.msra.mxu0 %v17495_v44 }
 0x576   :  { %12148 = vmatprep.subr.bf16.mxu0 %v17497_v58 }
 0x578   :  { %12136 = vmatmul.mubr.msk.bf16.vlgmr.msra.gmra.mrb[40].mxu0 %vm105_vm7, %v17243_v13 }
 0x579   :  { %12149 = vmatpush3.bf16.msra.mxu0 %v17497_v58  ;;  %12152 = vmatprep.mubr.msk.bf16.mxu0 %vm105_vm7, %v17227_v63 }
 0x57a   :  { %13174 = vmatprep.subr.msk.bf16.mxu0 %vm112_vm9, %v5005_v47  ;;  %v5141_v47 = vld [vmem:[%s19243_s2 + $0x46] sm:$0x1] }
 0x57b   :  { %v5215_v3 = vrot.slane %v5141_v47, 4  ;;  %v5539_v47 = vrot.slane %v5467_v23, 6 }
 0x57d   :  { %12151 = vmatpush3.bf16.msra.mxu0 %v17509_v32 }
 0x580   :  { %12153 = vmatmul.mubr.msk.bf16.vlgmr.msra.gmra.mrb[44].mxu0 %vm105_vm7, %v17243_v13 }
 0x581   :  { %12179 = vmatprep.mubr.msk.f32.mxu0 %vm105_vm7, %v16930_v46  ;;  %v5155_v46 = vld [vmem:[%s19243_s2 + $0x126] sm:$0x1] }
 0x582   :  { %v5239_v25 = vrot.slane %v5155_v46, 6  ;;  %v5482_v46 = vld [vmem:[%s19243_s2 + $0x117] sm:$0x1] }
 0x63b   :  { %v12113_v24 = vpop.f32.mrb[26].mxu0 }
 0x63c   :  { %v4152_v57 = vmax.f32 %v17309_v15, %v12113_v24  ;;  %v4142_v22 = vpop.f32.mrb[27].mxu0  ;;  %v5153_v15 = vld [vmem:[%s19243_s2 + $0x106] sm:$0x1] }
 0x63d   :  { %v4151_v51 = vmax.f32 %v17319_v28, %v4142_v22  ;;  %v5156_v28 = vld [vmem:[%s19243_s2 + $0x136] sm:$0x1]  ;;  %v5238_v34 = vsel %vm249_vm0, %v5237_v2, %v5153_v15  ;;  %v5149_v24 = vld [vmem:[%s19243_s2 + $0xc6] sm:$0x1]  ;;  %v5227_v22 = vrot.slane %v5148_v20, 5  ;;  %v5212_v15 = vsel %vm252_vm1, %v5211_v41, %v5210_v0 }
 0x63e   :  { %v5241_v59 = vrot.slane %v5156_v28, 5  ;;  %v5240_v62 = vsel %vm252_vm1, %v5239_v25, %v5238_v34  ;;  %v5142_v2 = vld [vmem:[%s19243_s2 + $0x56] sm:$0x1]  ;;  %v5226_v28 = vsel %vm252_vm1, %v5225_v37, %v5224_v6  ;;  %v5537_v25 = vrot.slane %v5466_v18, 7  ;;  %v5475_v34 = vld [vmem:[%s19243_s2 + $0xa7] sm:$0x1] }
 0x63f   :  { %v5229_v26 = vrot.slane %v5149_v24, 4  ;;  %v5483_v20 = vld [vmem:[%s19243_s2 + $0x127] sm:$0x1]  ;;  %v5565_v41 = vrot.slane %v5482_v46, 7  ;;  %v5143_v6 = vld [vmem:[%s19243_s2 + $0x66] sm:$0x1] }
 0x640   :  { %v5242_v9 = vsel %vm255_vm2, %v5241_v59, %v5240_v62  ;;  %v5473_v59 = vld [vmem:[%s19243_s2 + $0x87] sm:$0x1]  ;;  %v5468_v62 = vld [vmem:[%s19243_s2 + $0x37] sm:$0x1]  ;;  %v5217_v24 = vrot.slane %v5142_v2, 3 }
 0x641   :  { %v5484_v46 = vld [vmem:[%s19243_s2 + $0x137] sm:$0x1] }
 0x643   :  { %v12130_v29 = vpop.f32.mrb[36].mxu0 }
 0x644   :  { %v17566_v19 = vmax.f32 %v4152_v57, %v12130_v29  ;;  %v4470_v14 = vpop.f32.mrb[37].mxu0  ;;  %v5213_v57 = vrot.slane %v5140_v36, 5  ;;  %v5551_v36 = vrot.slane %v5474_v40, 7  ;;  %v5538_v40 = vsel %vm249_vm0, %v5537_v25, %v5465_v1 }
 0x645   :  { %v17576_v48 = vmax.f32 %v4151_v51, %v4470_v14  ;;  %v5245_v51 = vrot.slane %v5158_v33, 3  ;;  %v5228_v33 = vsel %vm255_vm2, %v5227_v22, %v5226_v28  ;;  %v5244_v14 = vsel %vm258_vm3, %v5243_v12, %v5242_v9  ;;  %v5476_v22 = vld [vmem:[%s19243_s2 + $0xb7] sm:$0x1]  ;;  %v5151_v9 = vld [vmem:[%s19243_s2 + $0xe6] sm:$0x1] }
 0x646   :  { %v5214_v37 = vsel %vm255_vm2, %v5213_v57, %v5212_v15  ;;  %v5231_v57 = vrot.slane %v5150_v16, 3  ;;  %v5553_v12 = vrot.slane %v5475_v34, 6  ;;  %v5230_v16 = vsel %vm258_vm3, %v5229_v26, %v5228_v33 }
 0x647   :  { %v5216_v2 = vsel %vm258_vm3, %v5215_v3, %v5214_v37  ;;  %v5552_v23 = vsel %vm249_vm0, %v5551_v36, %v5473_v59  ;;  %v5246_v25 = vsel %vm261_vm4, %v5245_v51, %v5244_v14  ;;  %v5566_v1 = vsel %vm249_vm0, %v5565_v41, %v5481_v30  ;;  %v5477_v51 = vld [vmem:[%s19243_s2 + $0xc7] sm:$0x1] }
 0x648   :  { %v5567_v34 = vrot.slane %v5483_v20, 6  ;;  %v5219_v26 = vrot.slane %v5143_v6, 2  ;;  %v5540_v30 = vsel %vm252_vm1, %v5539_v47, %v5538_v40  ;;  %v5555_v36 = vrot.slane %v5476_v22, 5  ;;  %v5144_v20 = vld [vmem:[%s19243_s2 + $0x76] sm:$0x1] }
 0x649   :  { %v5218_v41 = vsel %vm261_vm4, %v5217_v24, %v5216_v2  ;;  %v5232_v37 = vsel %vm261_vm4, %v5231_v57, %v5230_v16  ;;  %v5233_v33 = vrot.slane %v5151_v9, 2  ;;  %v5554_v59 = vsel %vm252_vm1, %v5553_v12, %v5552_v23  ;;  %v5470_v47 = vld [vmem:[%s19243_s2 + $0x57] sm:$0x1] }
 0x64a   :  { %v5569_v22 = vrot.slane %v5484_v46, 5  ;;  %v5571_v57 = vrot.slane %v17653_v38, 4  ;;  %v5557_v12 = vrot.slane %v5477_v51, 4  ;;  %v5568_v9 = vsel %vm252_vm1, %v5567_v34, %v5566_v1  ;;  %v5471_v1 = vld [vmem:[%s19243_s2 + $0x67] sm:$0x1] }
 0x64b   :  { %v12137_v0 = vpop.f32.mrb[40].mxu0  ;;  %v5221_v23 = vrot.slane %v5144_v20, 1  ;;  %v5556_v46 = vsel %vm255_vm2, %v5555_v36, %v5554_v59  ;;  %v5220_v38 = vsel %vm264_vm5, %v5219_v26, %v5218_v41  ;;  %v5545_v58 = vrot.slane %v5470_v47, 3  ;;  %v5479_v34 = vld [vmem:[%s19243_s2 + $0xe7] sm:$0x1]  ;;  %v13273_v59 = vpop.permute.xlu0 %13272 }
 0x64c   :  { %v4715_v18 = vpop.f32.mrb[41].mxu0  ;;  %v19294_v20 = vrot.slane %v17564_v43, 2  ;;  %v13274_v47 = vunpack.i.l.bf16 %v13273_v59 }
 0x64d   :  { %v4716_v15 = vadd.f32 %v4715_v18, %v16115_v27  ;;  %v12138_v28 = vpop.f32.mrb[42].mxu0  ;;  %v5469_v18 = vld [vmem:[%s19243_s2 + $0x47] sm:$0x1]  ;;  %v5222_v43 = vsel %vm267_vm6, %v5221_v23, %v5220_v38 }
 0x64e   :  { %v4718_v29 = vpop.f32.mrb[43].mxu0  ;;  %v5541_v28 = vrot.slane %v5468_v62, 5  ;;  %v5152_v62 = vld [vmem:[%s19243_s2 + $0xf6] sm:$0x1]  ;;  %v5543_v24 = vrot.slane %v5469_v18, 4  ;;  %v5248_v41 = vsel %vm264_vm5, %v19294_v20, %v5246_v25 }
 0x64f   :  { %v4719_v3 = vadd.f32 %v4718_v29, %v16117_v10  ;;  %v4724_v29 = vadd.f32 %v12137_v0, %v16133_v7  ;;  %v4729_v14 = vmul.f32 %v4716_v15, %v16119_v17  ;;  %v5478_v0 = vld [vmem:[%s19243_s2 + $0xd7] sm:$0x1]  ;;  %v5235_v32 = vrot.slane %v5152_v62, 1 }
 0x650   :  { %v5542_v40 = vsel %vm255_vm2, %v5541_v28, %v5540_v30  ;;  %v5486_v15 = vld [vmem:[%s19243_s2 + $0x157] sm:$0x1]  ;;  %v5559_v36 = vrot.slane %v5478_v0, 3  ;;  %v13275_v62 = vunpack.i.h.bf16 %v13273_v59 }
 0x651   :  { %v4730_v6 = vmul.f32 %v4719_v3, %v16124_v50  ;;  %v5234_v3 = vsel %vm264_vm5, %v5233_v33, %v5232_v37  ;;  %v4731_v28 = vmul.f32 %v4724_v29, %v16127_v35  ;;  %v5544_v26 = vsel %vm258_vm3, %v5543_v24, %v5542_v40  ;;  %v5480_v0 = vld [vmem:[%s19243_s2 + $0xf7] sm:$0x1] }
 0x652   :  { %v5570_v37 = vsel %vm255_vm2, %v5569_v22, %v5568_v9  ;;  %v5573_v33 = vrot.slane %v5486_v15, 3  ;;  %v5236_v25 = vsel %vm267_vm6, %v5235_v32, %v5234_v3  ;;  %v5472_v22 = vld [vmem:[%s19243_s2 + $0x77] sm:$0x1]  ;;  %v5546_v40 = vsel %vm261_vm4, %v5545_v58, %v5544_v26  ;;  %v17725_v58 = vld [vmem:[%s19247_s9 + $0x8] sm:$0xf] }
 0x653   :  { %v12154_v2 = vpop.f32.mrb[44].mxu0  ;;  %v12991_v16 = vpack.c.bf16 %v4730_v6, %v4729_v14  ;;  %v5558_v14 = vsel %vm258_vm3, %v5557_v12, %v5556_v46  ;;  %v5487_v6 = vld [vmem:[%s19243_s2 + $0x167] sm:$0x1]  ;;  %v5547_v12 = vrot.slane %v5471_v1, 2  ;;  %v5561_v15 = vrot.slane %v5479_v34, 2 }
 0x654   :  { %v5043_v18 = vpop.f32.mrb[45].mxu0  ;;  %v5052_v9 = vadd.f32 %v12154_v2, %v16133_v7  ;;  %v5560_v32 = vsel %vm261_vm4, %v5559_v36, %v5558_v14  ;;  %v19295_v46 = vrot.slane %v17573_v55, 1  ;;  %v5572_v38 = vsel %vm258_vm3, %v5571_v57, %v5570_v37  ;;  %v5488_v55 = vld [vmem:[%s19243_s2 + $0x177] sm:$0x1]  ;;  %v17735_v57 = vld [vmem:[%s19247_s9] sm:$0xff]  ;;  %v5325_v36 = vpop.permute.xlu1 %5324 }
 0x655   :  { %v5044_v51 = vadd.f32 %v5043_v18, %v16115_v27  ;;  %12992 = vmatprep.subr.bf16.mxu1 %v12991_v16  ;;  %v12155_v30 = vpop.f32.mrb[46].mxu0  ;;  %v5575_v3 = vrot.slane %v5487_v6, 2  ;;  %v5330_v1 = vsel %vm70_vm8, %v5236_v25, %v13275_v62  ;;  %v5548_v34 = vsel %vm264_vm5, %v5547_v12, %v5546_v40 }
 0x656   :  { %12994 = vmatpush3.bf16.msra.mxu1 %v12991_v16  ;;  %v5046_v29 = vpop.f32.mrb[47].mxu0  ;;  %v5250_v18 = vsel %vm267_vm6, %v19295_v46, %v5248_v41  ;;  %v5563_v30 = vrot.slane %v5480_v0, 1  ;;  %v5562_v26 = vsel %vm264_vm5, %v5561_v15, %v5560_v32  ;;  %v5574_v20 = vsel %vm261_vm4, %v5573_v33, %v5572_v38  ;;  %v13278_v41 = vpop.permute.xlu0 %13277 }
 0x657   :  { %v5047_v24 = vadd.f32 %v5046_v29, %v16117_v10  ;;  %12143 = vmatprep.subr.mxu1 %v4731_v28  ;;  %v5057_v16 = vmul.f32 %v5044_v51, %v16119_v17  ;;  %v5549_v51 = vrot.slane %v5472_v22, 1  ;;  %v5059_v37 = vmul.f32 %v5052_v9, %v16127_v35 }
 0x658   :  { %v5331_v59 = vsel %vm70_vm8, %v5250_v18, %v5325_v36  ;;  %v13280_v29 = vunpack.i.h.bf16 %v13278_v41  ;;  %v13279_v14 = vunpack.i.l.bf16 %v13278_v41  ;;  %v5577_v6 = vrot.slane %v5488_v55, 1  ;;  %v5653_v40 = vpop.permute.xlu1 %5652  ;;  %v5793_v55 = vld [vmem:[%s19243_s2 + $0x8] sm:$0x1] }
 0x659   :  { %v5058_v23 = vmul.f32 %v5047_v24, %v16124_v50  ;;  %v5550_v62 = vsel %vm267_vm6, %v5549_v51, %v5548_v34  ;;  %v5564_v24 = vsel %vm267_vm6, %v5563_v30, %v5562_v26  ;;  %v5333_v33 = vpack.c.bf16 %v5331_v59, %v5331_v59  ;;  %v5809_v34 = vld [vmem:[%s19243_s2 + $0x108] sm:$0x1] }
 0x65a   :  { %12144 = vmatpush3.msra.mxu1 %v4731_v28  ;;  %v5329_v28 = vsel %vm70_vm8, %v5222_v43, %v13274_v47  ;;  %v5576_v43 = vsel %vm264_vm5, %v5575_v3, %v5574_v20  ;;  %v5657_v25 = vsel %vm70_vm8, %v5550_v62, %v13279_v14  ;;  %v5658_v22 = vsel %vm70_vm8, %v5564_v24, %v13280_v29  ;;  %v5794_v3 = vld [vmem:[%s19243_s2 + $0x18] sm:$0x1]  ;;  %v5801_v20 = vld [vmem:[%s19243_s2 + $0x88] sm:$0x1] }
 0x65b   :  { %12146 = vmatmul.mubr.msk.f32.vlgmr.msra.gmra.mrb[44].mxu1 %vm105_vm7, %v17725_v58  ;;  %v12995_v2 = vpack.c.bf16 %v5058_v23, %v5057_v16  ;;  %v17746_v47 = vpack.c.bf16 %v5330_v1, %v5329_v28  ;;  %v5578_v0 = vsel %vm267_vm6, %v5577_v6, %v5576_v43  ;;  %v17762_v12 = vsel %vm112_vm9, %v5333_v33, 0  ;;  %v5803_v28 = vld [vmem:[%s19243_s2 + $0xa8] sm:$0x1]  ;;  %v5812_v29 = vld [vmem:[%s19243_s2 + $0x138] sm:$0x1] }
 0x65c   :  { %12162 = vmatprep.mubr.msk.f32.mxu1 %vm105_vm7, %v17735_v57  ;;  %v17764_v15 = vpack.c.bf16 %v5658_v22, %v5657_v25  ;;  %v5659_v9 = vsel %vm70_vm8, %v5578_v0, %v5653_v40  ;;  %v5865_v51 = vrot.slane %v5794_v3, 7  ;;  %v5804_v6 = vld [vmem:[%s19243_s2 + $0xb8] sm:$0x1]  ;;  %v5881_v24 = vrot.slane %v5803_v28, 6  ;;  %v5797_v25 = vld [vmem:[%s19243_s2 + $0x48] sm:$0x1] }
 0x65d   :  { %12996 = vmatprep.subr.bf16.mxu1 %v12995_v2  ;;  %v5661_v16 = vpack.c.bf16 %v5659_v9, %v5659_v9  ;;  %v5813_v0 = vld [vmem:[%s19243_s2 + $0x148] sm:$0x1]  ;;  %v5897_v40 = vrot.slane %v5812_v29, 5  ;;  %v5871_v3 = vrot.slane %v5797_v25, 4 }
 0x65e   :  { %12998 = vmatpush3.bf16.msra.mxu1 %v12995_v2  ;;  %v5811_v2 = vld [vmem:[%s19243_s2 + $0x128] sm:$0x1]  ;;  %v5866_v62 = vsel %vm249_vm0, %v5865_v51, %v5793_v55 }
 0x65f   :  { %12160 = vmatprep.subr.mxu1 %v5059_v37  ;;  %v17776_v23 = vsel %vm112_vm9, %v5661_v16, 0  ;;  %v5895_v14 = vrot.slane %v5811_v2, 6  ;;  %v5805_v9 = vld [vmem:[%s19243_s2 + $0xc8] sm:$0x1] }
 0x660   :  { %v5885_v51 = vrot.slane %v5805_v9, 4  ;;  %v5807_v29 = vld [vmem:[%s19243_s2 + $0xe8] sm:$0x1] }
 0x662   :  { %12161 = vmatpush3.msra.mxu1 %v5059_v37  ;;  %v5796_v37 = vld [vmem:[%s19243_s2 + $0x38] sm:$0x1] }
 0x663   :  { %12163 = vmatmul.mubr.msk.f32.vlgmr.msra.gmra.mrb[46].mxu1 %vm105_vm7, %v17725_v58  ;;  %12165 = vmatprep.subr.bf16.mxu1 %v17746_v47  ;;  %v5869_v22 = vrot.slane %v5796_v37, 5 }
 0x664   :  { %12166 = vmatpush3.bf16.msra.mxu1 %v17746_v47  ;;  %12169 = vmatprep.mubr.msk.bf16.mxu1 %vm105_vm7, %v17227_v63 }
 0x665   :  { %13175 = vmatprep.subr.msk.bf16.mxu1 %vm112_vm9, %v5333_v33 }
 0x668   :  { %12168 = vmatpush3.bf16.msra.mxu1 %v17762_v12 }
 0x669   :  { %12182 = vmatprep.subr.bf16.mxu1 %v17764_v15 }
 0x66b   :  { %12170 = vmatmul.mubr.msk.bf16.vlgmr.msra.gmra.mrb[48].mxu1 %vm105_vm7, %v17243_v13 }
 0x66c   :  { %12183 = vmatpush3.bf16.msra.mxu1 %v17764_v15  ;;  %12186 = vmatprep.mubr.msk.bf16.mxu1 %vm105_vm7, %v17227_v63  ;;  %v5810_v63 = vld [vmem:[%s19243_s2 + $0x118] sm:$0x1] }
 0x66d   :  { %13176 = vmatprep.subr.msk.bf16.mxu1 %vm112_vm9, %v5661_v16 }
 0x670   :  { %12185 = vmatpush3.bf16.msra.mxu1 %v17776_v23 }
 0x673   :  { %12187 = vmatmul.mubr.msk.bf16.vlgmr.msra.gmra.mrb[52].mxu1 %vm105_vm7, %v17243_v13  ;;  %v5802_v13 = vld [vmem:[%s19243_s2 + $0x98] sm:$0x1] }
 0x674   :  { %12213 = vmatprep.mubr.msk.f32.mxu1 %vm105_vm7, %v17735_v57  ;;  %v5879_v1 = vrot.slane %v5802_v13, 7  ;;  %v5899_v13 = vrot.slane %v5813_v0, 4 }
 0x676   :  { %v5880_v33 = vsel %vm249_vm0, %v5879_v1, %v5801_v20  ;;  %v5799_v20 = vld [vmem:[%s19243_s2 + $0x68] sm:$0x1] }
 0x677   :  { %v5875_v9 = vrot.slane %v5799_v20, 2 }
 0x72e   :  { %v12147_v32 = vpop.f32.mrb[44].mxu1 }
 0x72f   :  { %v4808_v46 = vmax.f32 %v17566_v19, %v12147_v32  ;;  %v4798_v18 = vpop.f32.mrb[45].mxu1  ;;  %v5893_v19 = vrot.slane %v5810_v63, 7  ;;  %v5883_v32 = vrot.slane %v5804_v6, 5  ;;  %v5798_v63 = vld [vmem:[%s19243_s2 + $0x58] sm:$0x1] }
 0x730   :  { %v4807_v38 = vmax.f32 %v17576_v48, %v4798_v18  ;;  %v5795_v48 = vld [vmem:[%s19243_s2 + $0x28] sm:$0x1]  ;;  %v5882_v18 = vsel %vm252_vm1, %v5881_v24, %v5880_v33  ;;  %v5873_v37 = vrot.slane %v5798_v63, 3 }
 0x731   :  { %v5867_v59 = vrot.slane %v5795_v48, 6  ;;  %v5894_v43 = vsel %vm249_vm0, %v5893_v19, %v5809_v34  ;;  %v5806_v19 = vld [vmem:[%s19243_s2 + $0xd8] sm:$0x1]  ;;  %v5884_v34 = vsel %vm255_vm2, %v5883_v32, %v5882_v18  ;;  %v5815_v33 = vld [vmem:[%s19243_s2 + $0x168] sm:$0x1] }
 0x732   :  { %v5887_v6 = vrot.slane %v5806_v19, 3 }
 0x733   :  { %v5868_v16 = vsel %vm252_vm1, %v5867_v59, %v5866_v62 }
 0x734   :  { %v5870_v48 = vsel %vm255_vm2, %v5869_v22, %v5868_v16  ;;  %v5808_v16 = vld [vmem:[%s19243_s2 + $0xf8] sm:$0x1] }
 0x736   :  { %v12164_v30 = vpop.f32.mrb[46].mxu1 }
 0x737   :  { %v17809_v26 = vmax.f32 %v4808_v46, %v12164_v30  ;;  %v5126_v36 = vpop.f32.mrb[47].mxu1  ;;  %v5896_v46 = vsel %vm252_vm1, %v5895_v14, %v5894_v43  ;;  %v5814_v30 = vld [vmem:[%s19243_s2 + $0x158] sm:$0x1]  ;;  %v5872_v14 = vsel %vm258_vm3, %v5871_v3, %v5870_v48  ;;  %v5886_v43 = vsel %vm258_vm3, %v5885_v51, %v5884_v34 }
 0x738   :  { %v17814_v41 = vmax.f32 %v4807_v38, %v5126_v36  ;;  %v5898_v55 = vsel %vm255_vm2, %v5897_v40, %v5896_v46  ;;  %v5901_v24 = vrot.slane %v5814_v30, 3  ;;  %v5800_v40 = vld [vmem:[%s19243_s2 + $0x78] sm:$0x1]  ;;  %v5874_v32 = vsel %vm261_vm4, %v5873_v37, %v5872_v14  ;;  %v13283_v37 = vpop.permute.xlu0 %13282 }
 0x739   :  { %v5900_v62 = vsel %vm258_vm3, %v5899_v13, %v5898_v55  ;;  %v5889_v46 = vrot.slane %v5807_v29, 2  ;;  %v5816_v3 = vld [vmem:[%s19243_s2 + $0x178] sm:$0x1]  ;;  %v5877_v48 = vrot.slane %v5800_v40, 1  ;;  %v13285_v14 = vunpack.i.h.bf16 %v13283_v37 }
 0x73a   :  { %v5902_v13 = vsel %vm261_vm4, %v5901_v24, %v5900_v62  ;;  %v5905_v20 = vrot.slane %v5816_v3, 1 }
 0x73e   :  { %v12171_v38 = vpop.f32.mrb[48].mxu1 }
 0x73f   :  { %v5371_v2 = vpop.f32.mrb[49].mxu1  ;;  %v5380_v25 = vadd.f32 %v12171_v38, %v16133_v7  ;;  %v5888_v38 = vsel %vm261_vm4, %v5887_v6, %v5886_v43  ;;  %v13284_v6 = vunpack.i.l.bf16 %v13283_v37 }
 0x740   :  { %v5372_v28 = vadd.f32 %v5371_v2, %v16115_v27  ;;  %v12172_v1 = vpop.f32.mrb[50].mxu1  ;;  %v5903_v2 = vrot.slane %v5815_v33, 2 }
 0x741   :  { %v5374_v36 = vpop.f32.mrb[51].mxu1  ;;  %v5387_v51 = vmul.f32 %v5380_v25, %v16127_v35  ;;  %v5891_v1 = vrot.slane %v5808_v16, 1  ;;  %v5981_v16 = vpop.permute.xlu1 %5980 }
 0x742   :  { %v5375_v59 = vadd.f32 %v5374_v36, %v16117_v10  ;;  %v5385_v22 = vmul.f32 %v5372_v28, %v16119_v17  ;;  %v5876_v28 = vsel %vm264_vm5, %v5875_v9, %v5874_v32  ;;  %v5890_v36 = vsel %vm264_vm5, %v5889_v46, %v5888_v38  ;;  %v13395_v38 = vld [vmem:[%s19241_s5] sm:$0xff]  }
 0x743   :  { %v5904_v29 = vsel %vm264_vm5, %v5903_v2, %v5902_v13  ;;  %v5878_v62 = vsel %vm267_vm6, %v5877_v48, %v5876_v28  ;;  %v5892_v25 = vsel %vm267_vm6, %v5891_v1, %v5890_v36  ;;  %v19269_v13 = vmov 0.0   ;;  %v13396_v2 = vld [vmem:[%s19241_s5 + $0x8] ss:$0 sps:$4 sm:$0xff]  }
 0x744   :  { %v5386_v0 = vmul.f32 %v5375_v59, %v16124_v50  ;;  %v5985_v40 = vsel %vm70_vm8, %v5878_v62, %v13284_v6  ;;  %v5986_v9 = vsel %vm70_vm8, %v5892_v25, %v13285_v14 }
 0x746   :  { %v12188_v18 = vpop.f32.mrb[52].mxu1  ;;  %v12999_v63 = vpack.c.bf16 %v5386_v0, %v5385_v22  ;;  %v5906_v22 = vsel %vm267_vm6, %v5905_v20, %v5904_v29 }
 0x747   :  { %v5699_v19 = vpop.f32.mrb[53].mxu1  ;;  %v5708_v24 = vadd.f32 %v12188_v18, %v16133_v7  ;;  %v5987_v46 = vsel %vm70_vm8, %v5906_v22, %v5981_v16  ;;  %v17901_v18 = vpack.c.bf16 %v5986_v9, %v5985_v40 }
 0x748   :  { %v5700_v30 = vadd.f32 %v5699_v19, %v16115_v27  ;;  %13000 = vmatprep.subr.bf16.mxu0 %v12999_v63  ;;  %v12189_v55 = vpop.f32.mrb[54].mxu1  ;;  %v17928_v19 = vld [vmem:[%s19248_s7] sm:$0xff]  }
 0x749   :  { %13002 = vmatpush3.bf16.msra.mxu0 %v12999_v63  ;;  %v5702_v34 = vpop.f32.mrb[55].mxu1  ;;  %v5715_v32 = vmul.f32 %v5708_v24, %v16127_v35  ;;  %v5989_v63 = vpack.c.bf16 %v5987_v46, %v5987_v46 }
 0x74a   :  { %v5703_v59 = vadd.f32 %v5702_v34, %v16117_v10  ;;  %12177 = vmatprep.subr.mxu0 %v5387_v51  ;;  %v5713_v43 = vmul.f32 %v5700_v30, %v16119_v17 }
 0x74b   :  { %v17913_v3 = vsel %vm112_vm9, %v5989_v63, 0 }
 0x74c   :  { %v5714_v33 = vmul.f32 %v5703_v59, %v16124_v50  ;;  %19296 = vst [vmem:[#allocation15_spill] sm:$0xff] %v17913_v3 }
 0x74d   :  { %12178 = vmatpush3.msra.mxu0 %v5387_v51 }
 0x74e   :  { %12180 = vmatmul.mubr.msk.f32.vlgmr.msra.gmra.mrb[38].mxu0 %vm105_vm7, %v17725_v58  ;;  %v13003_v0 = vpack.c.bf16 %v5714_v33, %v5713_v43  ;;  %v17960_v43 = vpop.permute.xlu0 %6135 }
 0x74f   :  { %12196 = vmatprep.mubr.msk.f32.mxu0 %vm105_vm7, %v17735_v57 }
 0x750   :  { %13004 = vmatprep.subr.bf16.mxu0 %v13003_v0 }
 0x751   :  { %13006 = vmatpush3.bf16.msra.mxu0 %v13003_v0  ;;  %v17963_v0 = vpop.permute.xlu1 %6140 }
 0x752   :  { %12194 = vmatprep.subr.mxu0 %v5715_v32  ;;  %v17969_v46 = vpop.permute.xlu0 %6145 }
 0x755   :  { %12195 = vmatpush3.msra.mxu0 %v5715_v32 }
 0x756   :  { %12197 = vmatmul.mubr.msk.f32.vlgmr.msra.gmra.mrb[48].mxu0 %vm105_vm7, %v17725_v58  ;;  %12199 = vmatprep.subr.bf16.mxu0 %v17901_v18 }
 0x757   :  { %12200 = vmatpush3.bf16.msra.mxu0 %v17901_v18  ;;  %12203 = vmatprep.mubr.msk.bf16.mxu0 %vm105_vm7, %v13395_v38 }
 0x758   :  { %13177 = vmatprep.subr.msk.bf16.mxu0 %vm112_vm9, %v5989_v63 }
 0x75b   :  { %12202 = vmatpush3.bf16.msra.mxu0 %v17913_v3 }
 0x75c   :  { %12216 = vmatprep.subr.bf16.mxu0 %v19269_v13 }
 0x75e   :  { %12204 = vmatmul.mubr.msk.bf16.vlgmr.msra.gmra.mrb[52].mxu0 %vm105_vm7, %v13396_v2 }
 0x75f   :  { %12217 = vmatpush3.bf16.msra.mxu0 %v14756_v42  ;;  %12220 = vmatprep.mubr.msk.bf16.mxu0 %vm13416_vm10, %v19269_v13  ;;  %v17938_v42 = vld [vmem:[%s19248_s7 + $0x8] sm:$0xff]  }
 0x760   :  { %12218 = vmatprep.subr.bf16.mxu0 %v19269_v13 }
 0x763   :  { %12219 = vmatpush3.bf16.msra.mxu0 %v14855_v5  ;;  %v17947_v5 = vld [vmem:[%s19248_s7 + $0x10] sm:$0xff]  }
 0x766   :  { %12221 = vmatmul.mubr.msk.bf16.vlgmr.msra.gmra.mrb[56].mxu0 %vm105_vm7, %v17928_v19 }
 0x767   :  { %12224 = vmatprep.mubr.msk.bf16.mxu0 %vm13416_vm10, %v19269_v13 }
 0x76e   :  { %12225 = vmatmul.mubr.msk.bf16.gmra.mrb[60].mxu0 %vm105_vm7, %v17938_v42 }
 0x76f   :  { %12228 = vmatprep.mubr.msk.bf16.mxu0 %vm13416_vm10, %v19269_v13 }
 0x776   :  { %12229 = vmatmul.mubr.msk.bf16.gmra.mrb[64].mxu0 %vm105_vm7, %v17947_v5 }
 0x777   :  { %12276 = vmatprep.mubr.msk.f32.mxu0 %vm105_vm7, %v17735_v57 }
 0x821   :  { %v12181_v48 = vpop.f32.mrb[38].mxu0 }
 0x822   :  { %v5464_v51 = vmax.f32 %v17809_v26, %v12181_v48  ;;  %v5454_v30 = vpop.f32.mrb[39].mxu0 }
 0x823   :  { %v5463_v55 = vmax.f32 %v17814_v41, %v5454_v30 }
 0x829   :  { %v12198_v28 = vpop.f32.mrb[48].mxu0 }
 0x82a   :  { %v5792_v1 = vmax.f32 %v5464_v51, %v12198_v28  ;;  %v5782_v34 = vpop.f32.mrb[49].mxu0 }
 0x82b   :  { %v5791_v36 = vmax.f32 %v5463_v55, %v5782_v34 }
 0x831   :  { %v12205_v20 = vpop.f32.mrb[52].mxu0 }
 0x832   :  { %v6027_v37 = vpop.f32.mrb[53].mxu0  ;;  %v6036_v62 = vadd.f32 %v12205_v20, %v16133_v7 }
 0x833   :  { %v6028_v59 = vadd.f32 %v6027_v37, %v16115_v27  ;;  %v12206_v29 = vpop.f32.mrb[54].mxu0  ;;  %v19266_v37 = vmov 0.0|0.0  }
 0x834   :  { %v6030_v14 = vpop.f32.mrb[55].mxu0  ;;  %v6043_v27 = vmul.f32 %v6036_v62, %v16127_v35 }
 0x835   :  { %v6031_v6 = vadd.f32 %v6030_v14, %v16117_v10  ;;  %v6041_v24 = vmul.f32 %v6028_v59, %v16119_v17 }
 0x837   :  { %v6042_v26 = vmul.f32 %v6031_v6, %v16124_v50 }
 0x839   :  { %v6221_v41 = vpop.f32.mrb[56].mxu0  ;;  %v13007_v33 = vpack.c.bf16 %v6042_v26, %v6041_v24 }
 0x83a   :  { %v6222_v25 = vadd.f32 %v6221_v41, %v17960_v43  ;;  %v12222_v22 = vpop.f32.mrb[57].mxu0 }
 0x83b   :  { %13008 = vmatprep.subr.bf16.mxu1 %v13007_v33  ;;  %v6224_v40 = vpop.f32.mrb[58].mxu0 }
 0x83c   :  { %v6225_v10 = vadd.f32 %v6224_v40, %v17963_v0  ;;  %13010 = vmatpush3.bf16.msra.mxu1 %v13007_v33  ;;  %v12223_v7 = vpop.f32.mrb[59].mxu0  ;;  %v6244_v9 = vmul.f32 %v6222_v25, %v16119_v17  ;;  %v18008_v40 = vld [vmem:[%s19249_s10] sm:$0xff] }
 0x83d   :  { %12211 = vmatprep.subr.mxu1 %v6043_v27 }
 0x83e   :  { %v6245_v16 = vmul.f32 %v6225_v10, %v16124_v50  ;;  %v18019_v10 = vld [vmem:[%s19249_s10 + $0x8] sm:$0xff] }
 0x840   :  { %12212 = vmatpush3.msra.mxu1 %v6043_v27  ;;  %v13011_v32 = vpack.c.bf16 %v6245_v16, %v6244_v9  ;;  %v18070_v16 = vpop.permute.xlu0 %6155 }
 0x841   :  { %12214 = vmatmul.mubr.msk.f32.vlgmr.msra.gmra.mrb[56].mxu1 %vm105_vm7, %v17725_v58  ;;  %v6229_v63 = vpop.f32.mrb[60].mxu0 }
 0x842   :  { %v6230_v38 = vadd.f32 %v6229_v63, %v17969_v46  ;;  %v12226_v2 = vpop.f32.mrb[61].mxu0  ;;  %13012 = vmatprep.subr.bf16.mxu1 %v13011_v32  ;;  %12238 = vmatprep.mubr.msk.f32.mxu1 %vm105_vm7, %v17735_v57 }
 0x843   :  { %v17976_v48 = vpop.f32.mrb[62].mxu0  ;;  %13014 = vmatpush3.bf16.msra.mxu1 %v13011_v32 }
 0x844   :  { %v6246_v51 = vmul.f32 %v6230_v38, %v16127_v35  ;;  %v12227_v30 = vpop.f32.mrb[63].mxu0 }
 0x846   :  { %12236 = vmatprep.subr.mxu1 %v6246_v51 }
 0x847   :  { %12237 = vmatpush3.msra.mxu1 %v6246_v51 }
 0x848   :  { %12239 = vmatmul.mubr.msk.f32.vlgmr.msra.gmra.mrb[58].mxu1 %vm105_vm7, %v17725_v58  ;;  %13015 = vmatprep.subr.bf16.mxu1 %v19266_v37 }
 0x849   :  { %v6237_v55 = vpop.f32.mrb[64].mxu0  ;;  %12245 = vmatprep.mubr.msk.f32.mxu1 %vm13416_vm10, %v19269_v13 }
 0x84a   :  { %v12230_v28 = vpop.f32.mrb[65].mxu0  ;;  %v6238_v32 = vadd.f32 %v6237_v55, %v18070_v16 }
 0x84b   :  { %v17983_v34 = vpop.f32.mrb[66].mxu0 }
 0x84c   :  { %v12231_v20 = vpop.f32.mrb[67].mxu0 }
 0x914   :  { %v12215_v59 = vpop.f32.mrb[56].mxu1 }
 0x915   :  { %v17986_v29 = vmax.f32 %v5792_v1, %v12215_v59  ;;  %v6110_v14 = vpop.f32.mrb[57].mxu1 }
 0x916   :  { %v17988_v6 = vmax.f32 %v5791_v36, %v6110_v14 }
 0x91b   :  { %v12240_v62 = vpop.f32.mrb[58].mxu1 }
 0x91c   :  { %v6323_v24 = vsub.f32 %v12240_v62, %v17986_v29  ;;  %v6313_v26 = vpop.f32.mrb[59].mxu1 }
 0x91d   :  { %v6322_v41 = vsub.f32 %v6313_v26, %v17988_v6 }
 0x91e   :  { %v6326_v33 = vmul.f32 1.442695, %v6323_v24 }
 0x91f   :  { %v6324_v25 = vmul.f32 1.442695, %v6322_v41 }
 0x920   :  { %13298 = vpow2.f32 %v6326_v33 }
 0x921   :  { %13300 = vpow2.f32 %v6324_v25 }
 0x92a   :  { %v17992_v22 = vpop.eup %13298 }
 0x92b   :  { %v17994_v27 = vpop.eup %13300 }
 0x92c   :  { %v13016_v36 = vpack.c.bf16 %v17992_v22, %v17994_v27 }
 0x92e   :  { %13018 = vmatpush3.bf16.msk.msra.mxu1 %vm17997_vm12, %v13016_v36 }
 0x92f   :  { %12254 = vmatprep.subr.bf16.mxu1 %v19269_v13 }
 0x931   :  { %12246 = vmatmul.mubr.msk.f32.vlgmr.msra.gmra.mrb[60].mxu1 %vm6330_vm13, %v18008_v40 }
 0x932   :  { %12255 = vmatpush3.bf16.msra.mxu1 %v14818_v61  ;;  %12248 = vmatprep.mubr.msk.f32.mxu1 %vm13416_vm10, %v19269_v13  ;;  %v18030_v61 = vld [vmem:[%s19249_s10 + $0x10] sm:$0xff] }
 0x933   :  { %12256 = vmatprep.subr.bf16.mxu1 %v19269_v13 }
 0x935   :  { %12249 = vmatmul.mubr.msk.f32.gmra.mrb[62].mxu1 %vm6330_vm13, %v18019_v10 }
 0x936   :  { %12257 = vmatpush3.bf16.msra.mxu1 %v14932_v31  ;;  %12251 = vmatprep.mubr.msk.f32.mxu1 %vm13416_vm10, %v19269_v13  ;;  %v18064_v31 = vpop.permute.xlu1 %6150 }
 0x937   :  { %12292 = vmatprep.subr.bf16.mxu1 %v19269_v13 }
 0x939   :  { %12252 = vmatmul.mubr.msk.f32.gmra.mrb[64].mxu1 %vm6330_vm13, %v18030_v61 }
 0x93a   :  { %12258 = vmatprep.mubr.msk.bf16.mxu1 %vm13416_vm10, %v19269_v13  ;;  %v18075_v51 = vpop.permute.xlu1 %6160 }
 0x93b   :  { %v6241_v30 = vadd.f32 %v17983_v34, %v18075_v51 }
 0x93d   :  { %12259 = vmatmul.mubr.msk.bf16.vlgmr.msra.gmra.mrb[68].mxu1 %vm105_vm7, %v17928_v19 }
 0x93e   :  { %12293 = vmatpush3.bf16.msra.mxu1 %v14997_v54  ;;  %12262 = vmatprep.mubr.msk.bf16.mxu1 %vm13416_vm10, %v19269_v13  ;;  %v6233_v54 = vadd.f32 %v17976_v48, %v18064_v31 }
 0x93f   :  { %12294 = vmatprep.subr.bf16.mxu1 %v19269_v13 }
 0x942   :  { %12295 = vmatpush3.bf16.msra.mxu1 %v15008_v52 }
 0x945   :  { %12263 = vmatmul.mubr.msk.bf16.gmra.mrb[72].mxu1 %vm105_vm7, %v17938_v42 }
 0x946   :  { %12266 = vmatprep.mubr.msk.bf16.mxu1 %vm13416_vm10, %v19269_v13 }
 0x94d   :  { %12267 = vmatmul.mubr.msk.bf16.gmra.mrb[76].mxu1 %vm105_vm7, %v17947_v5 }
 0x94e   :  { %12296 = vmatprep.mubr.msk.bf16.mxu1 %vm13416_vm10, %v19269_v13 }
 0x955   :  { %12297 = vmatmul.mubr.msk.bf16.vlgmr.msra.gmra.mrb[80].mxu1 %vm105_vm7, %v17928_v19 }
 0x956   :  { %12300 = vmatprep.mubr.msk.bf16.mxu1 %vm13416_vm10, %v19269_v13 }
 0x95d   :  { %12301 = vmatmul.mubr.msk.bf16.gmra.mrb[84].mxu1 %vm105_vm7, %v17938_v42 }
 0x95e   :  { %12304 = vmatprep.mubr.msk.bf16.mxu1 %vm13416_vm10, %v19269_v13 }
 0x965   :  { %12305 = vmatmul.mubr.msk.bf16.gmra.mrb[88].mxu1 %vm105_vm7, %v17947_v5 }
 0x966   :  { %12352 = vmatprep.mubr.msk.f32.mxu1 %vm105_vm7, %v17735_v57 }
 0xa04   :  { %v6409_v52 = vpop.f32.mrb[60].mxu1 }
 0xa05   :  { %v18068_v7 = vmul.f32 %v6409_v52, %v6233_v54  ;;  %v12247_v9 = vpop.f32.mrb[61].mxu1 }
 0xa08   :  { %v6414_v63 = vpop.f32.mrb[62].mxu1 }
 0xa09   :  { %v18073_v38 = vmul.f32 %v6414_v63, %v6238_v32  ;;  %v12250_v2 = vpop.f32.mrb[63].mxu1 }
 0xa0c   :  { %v6419_v28 = vpop.f32.mrb[64].mxu1 }
 0xa0d   :  { %v18079_v20 = vmul.f32 %v6419_v28, %v6241_v30  ;;  %v12253_v48 = vpop.f32.mrb[65].mxu1 }
 0xa10   :  { %v6463_v59 = vpop.f32.mrb[68].mxu1 }
 0xa11   :  { %v6464_v14 = vadd.f32 %v6463_v59, %v17960_v43  ;;  %v12260_v62 = vpop.f32.mrb[69].mxu1 }
 0xa12   :  { %v6466_v24 = vpop.f32.mrb[70].mxu1 }
 0xa13   :  { %v6467_v55 = vadd.f32 %v6466_v24, %v17963_v0  ;;  %v12261_v26 = vpop.f32.mrb[71].mxu1  ;;  %v6486_v41 = vmul.f32 %v6464_v14, %v16119_v17 }
 0xa15   :  { %v6487_v33 = vmul.f32 %v6467_v55, %v16124_v50 }
 0xa17   :  { %v13019_v25 = vpack.c.bf16 %v6487_v33, %v6486_v41 }
 0xa18   :  { %v6471_v36 = vpop.f32.mrb[72].mxu1 }
 0xa19   :  { %v6472_v34 = vadd.f32 %v6471_v36, %v17969_v46  ;;  %v12264_v54 = vpop.f32.mrb[73].mxu1  ;;  %13020 = vmatprep.subr.bf16.mxu0 %v13019_v25 }
 0xa1a   :  { %v6474_v52 = vpop.f32.mrb[74].mxu1  ;;  %13022 = vmatpush3.bf16.msra.mxu0 %v13019_v25 }
 0xa1b   :  { %v6488_v9 = vmul.f32 %v6472_v34, %v16127_v35  ;;  %v12265_v32 = vpop.f32.mrb[75].mxu1 }
 0xa1d   :  { %12274 = vmatprep.subr.mxu0 %v6488_v9 }
 0xa1e   :  { %12275 = vmatpush3.msra.mxu0 %v6488_v9 }
 0xa1f   :  { %12277 = vmatmul.mubr.msk.f32.vlgmr.msra.gmra.mrb[50].mxu0 %vm105_vm7, %v17725_v58  ;;  %13023 = vmatprep.subr.bf16.mxu0 %v19266_v37 }
 0xa20   :  { %v6479_v63 = vpop.f32.mrb[76].mxu1  ;;  %12283 = vmatprep.mubr.msk.f32.mxu0 %vm13416_vm10, %v19269_v13 }
 0xa21   :  { %v12268_v2 = vpop.f32.mrb[77].mxu1 }
 0xa22   :  { %v6482_v30 = vpop.f32.mrb[78].mxu1 }
 0xa23   :  { %v12269_v28 = vpop.f32.mrb[79].mxu1 }
 0xa28   :  { %v6695_v48 = vpop.f32.mrb[80].mxu1 }
 0xa29   :  { %v6696_v59 = vadd.f32 %v6695_v48, %v17960_v43  ;;  %v12298_v14 = vpop.f32.mrb[81].mxu1 }
 0xa2a   :  { %v6698_v62 = vpop.f32.mrb[82].mxu1 }
 0xa2b   :  { %v6699_v24 = vadd.f32 %v6698_v62, %v17963_v0  ;;  %v12299_v55 = vpop.f32.mrb[83].mxu1  ;;  %v6718_v26 = vmul.f32 %v6696_v59, %v16119_v17 }
 0xa2d   :  { %v6719_v41 = vmul.f32 %v6699_v24, %v16124_v50 }
 0xa2f   :  { %v13027_v33 = vpack.c.bf16 %v6719_v41, %v6718_v26 }
 0xa30   :  { %v6703_v25 = vpop.f32.mrb[84].mxu1 }
 0xa31   :  { %v12302_v36 = vpop.f32.mrb[85].mxu1 }
 0xa32   :  { %v18096_v34 = vpop.f32.mrb[86].mxu1 }
 0xa33   :  { %v12303_v54 = vpop.f32.mrb[87].mxu1 }
 0xa34   :  { %v6704_v54 = vadd.f32 %v6703_v25, %v17969_v46 }
 0xa38   :  { %v18098_v9 = vpop.f32.mrb[88].mxu1 }
 0xa39   :  { %v12306_v32 = vpop.f32.mrb[89].mxu1 }
 0xa3a   :  { %v18100_v2 = vpop.f32.mrb[90].mxu1  ;;  %v6720_v32 = vmul.f32 %v6704_v54, %v16127_v35 }
 0xa3b   :  { %v12307_v28 = vpop.f32.mrb[91].mxu1 }
 0xaf2   :  { %v12278_v48 = vpop.f32.mrb[50].mxu0 }
 0xaf3   :  { %v6565_v14 = vsub.f32 %v12278_v48, %v17986_v29  ;;  %v6555_v62 = vpop.f32.mrb[51].mxu0 }
 0xaf4   :  { %v6564_v59 = vsub.f32 %v6555_v62, %v17988_v6 }
 0xaf5   :  { %v6568_v55 = vmul.f32 1.442695, %v6565_v14  ;;  %v6480_v14 = vadd.f32 %v6479_v63, %v18070_v16 }
 0xaf6   :  { %v6566_v24 = vmul.f32 1.442695, %v6564_v59 }
 0xaf7   :  { %13302 = vpow2.f32 %v6568_v55 }
 0xaf8   :  { %13304 = vpow2.f32 %v6566_v24 }
 0xb01   :  { %v13303_v26 = vpop.eup %13302 }
 0xb02   :  { %v13305_v41 = vpop.eup %13304 }
 0xb03   :  { %v13024_v36 = vpack.c.bf16 %v13303_v26, %v13305_v41 }
 0xb05   :  { %13026 = vmatpush3.bf16.msk.msra.mxu0 %vm17997_vm12, %v13024_v36  ;;  %v6483_v36 = vadd.f32 %v6482_v30, %v18075_v51 }
 0xb06   :  { %13028 = vmatprep.subr.bf16.mxu0 %v13027_v33 }
 0xb08   :  { %12284 = vmatmul.mubr.msk.f32.vlgmr.msra.gmra.mrb[68].mxu0 %vm6330_vm13, %v18008_v40 }
 0xb09   :  { %13030 = vmatpush3.bf16.msra.mxu0 %v13027_v33  ;;  %12286 = vmatprep.mubr.msk.f32.mxu0 %vm13416_vm10, %v19269_v13  ;;  %v6475_v33 = vadd.f32 %v6474_v52, %v18064_v31 }
 0xb0a   :  { %12312 = vmatprep.subr.mxu0 %v6720_v32 }
 0xb0c   :  { %12287 = vmatmul.mubr.msk.f32.gmra.mrb[70].mxu0 %vm6330_vm13, %v18019_v10 }
 0xb0d   :  { %12313 = vmatpush3.msra.mxu0 %v6720_v32  ;;  %12289 = vmatprep.mubr.msk.f32.mxu0 %vm13416_vm10, %v19269_v13 }
 0xb0e   :  { %13031 = vmatprep.subr.bf16.mxu0 %v19266_v37 }
 0xb10   :  { %12290 = vmatmul.mubr.msk.f32.gmra.mrb[72].mxu0 %vm6330_vm13, %v18030_v61 }
 0xb11   :  { %12314 = vmatprep.mubr.msk.f32.mxu0 %vm105_vm7, %v17735_v57 }
 0xb14   :  { %12315 = vmatmul.mubr.msk.f32.vlgmr.msra.gmra.mrb[74].mxu0 %vm105_vm7, %v17725_v58 }
 0xb15   :  { %12321 = vmatprep.mubr.msk.f32.mxu0 %vm13416_vm10, %v19269_v13 }
 0xbdb   :  { %v6641_v25 = vpop.f32.mrb[68].mxu0 }
 0xbdc   :  { %v6655_v28 = vmul.f32 %v6641_v25, %v6475_v33  ;;  %v12285_v48 = vpop.f32.mrb[69].mxu0 }
 0xbde   :  { %v6658_v62 = vadd.f32 %v6655_v28, %v18068_v7  ;;  %v6571_v28 = vadd.f32 %v13303_v26, %v17992_v22  ;;  %v6712_v26 = vadd.f32 %v18098_v9, %v18070_v16 }
 0xbdf   :  { %v6646_v59 = vpop.f32.mrb[70].mxu0 }
 0xbe0   :  { %v6656_v55 = vmul.f32 %v6646_v59, %v6480_v14  ;;  %v12288_v24 = vpop.f32.mrb[71].mxu0 }
 0xbe2   :  { %v6659_v54 = vadd.f32 %v6656_v55, %v18073_v38  ;;  %v6570_v38 = vadd.f32 %v13305_v41, %v17994_v27 }
 0xbe3   :  { %v6651_v32 = vpop.f32.mrb[72].mxu0 }
 0xbe4   :  { %v6657_v37 = vmul.f32 %v6651_v32, %v6483_v36  ;;  %v12291_v3 = vpop.f32.mrb[73].mxu0  ;;  %v6715_v32 = vadd.f32 %v18100_v2, %v18075_v51 }
 0xbe6   :  { %v6660_v13 = vadd.f32 %v6657_v37, %v18079_v20  ;;  %v19299_v20 = vmov 0.0  }
 0xbe7   :  { %v12316_v52 = vpop.f32.mrb[74].mxu0 }
 0xbe8   :  { %v6797_v33 = vsub.f32 %v12316_v52, %v17986_v29  ;;  %v6787_v25 = vpop.f32.mrb[75].mxu0 }
 0xbe9   :  { %v6796_v63 = vsub.f32 %v6787_v25, %v17988_v6 }
 0xbea   :  { %v6800_v48 = vmul.f32 1.442695, %v6797_v33 }
 0xbeb   :  { %v6798_v7 = vmul.f32 1.442695, %v6796_v63 }
 0xbec   :  { %13306 = vpow2.f32 %v6800_v48 }
 0xbed   :  { %13308 = vpow2.f32 %v6798_v7 }
 0xbf6   :  { %v13307_v30 = vpop.eup %13306 }
 0xbf7   :  { %v13309_v14 = vpop.eup %13308  ;;  %v18135_v59 = vadd.f32 %v13307_v30, %v6571_v28 }
 0xbf8   :  { %v18137_v3 = vadd.f32 %v13309_v14, %v6570_v38  ;;  %v13032_v37 = vpack.c.bf16 %v13307_v30, %v13309_v14 }
 0xbfa   :  { %13034 = vmatpush3.bf16.msk.msra.mxu0 %vm17997_vm12, %v13032_v37 }
 0xbfb   :  { %12330 = vmatprep.subr.bf16.mxu0 %v19299_v20 }
 0xbfd   :  { %12322 = vmatmul.mubr.msk.f32.vlgmr.msra.gmra.mrb[76].mxu0 %vm6330_vm13, %v18008_v40 }
 0xbfe   :  { %12331 = vmatpush3.bf16.msra.mxu0 %v15117_v8  ;;  %12324 = vmatprep.mubr.msk.f32.mxu0 %vm13416_vm10, %v19299_v20  ;;  %v6707_v8 = vadd.f32 %v18096_v34, %v18064_v31 }
 0xbff   :  { %12332 = vmatprep.subr.bf16.mxu0 %v19299_v20 }
 0xc01   :  { %12325 = vmatmul.mubr.msk.f32.gmra.mrb[78].mxu0 %vm6330_vm13, %v18019_v10 }
 0xc02   :  { %12333 = vmatpush3.bf16.msra.mxu0 %v15130_v21  ;;  %12327 = vmatprep.mubr.msk.f32.mxu0 %vm13416_vm10, %v19299_v20 }
 0xc05   :  { %12328 = vmatmul.mubr.msk.f32.gmra.mrb[80].mxu0 %vm6330_vm13, %v18030_v61 }
 0xc06   :  { %12334 = vmatprep.mubr.msk.bf16.mxu0 %vm13416_vm10, %v19299_v20 }
 0xc09   :  { %12335 = vmatmul.mubr.msk.bf16.vlgmr.msra.gmra.mrb[84].mxu0 %vm105_vm7, %v17928_v19 }
 0xc0a   :  { %12338 = vmatprep.mubr.msk.bf16.mxu0 %vm13416_vm10, %v19299_v20 }
 0xc11   :  { %12339 = vmatmul.mubr.msk.bf16.gmra.mrb[88].mxu0 %vm105_vm7, %v17938_v42 }
 0xc12   :  { %12342 = vmatprep.mubr.msk.bf16.mxu0 %vm13416_vm10, %v19299_v20 }
 0xc19   :  { %12343 = vmatmul.mubr.msk.bf16.gmra.mrb[92].mxu0 %vm105_vm7, %v17947_v5 }
 0xc1a   :  { %12390 = vmatprep.mubr.msk.f32.mxu0 %vm105_vm7, %v17735_v57 }
 0xcd0   :  { %v6873_v21 = vpop.f32.mrb[76].mxu0 }
 0xcd1   :  { %v6887_v22 = vmul.f32 %v6873_v21, %v6707_v8  ;;  %v12323_v27 = vpop.f32.mrb[77].mxu0 }
 0xcd2   :  { %v19300_v27 = vmov 0.0|0.0  }
 0xcd3   :  { %v18173_v41 = vadd.f32 %v6887_v22, %v6658_v62 }
 0xcd4   :  { %v6878_v55 = vpop.f32.mrb[78].mxu0 }
 0xcd5   :  { %v6888_v24 = vmul.f32 %v6878_v55, %v6712_v26  ;;  %v12326_v36 = vpop.f32.mrb[79].mxu0 }
 0xcd7   :  { %v18177_v52 = vadd.f32 %v6888_v24, %v6659_v54 }
 0xcd8   :  { %v6883_v33 = vpop.f32.mrb[80].mxu0 }
 0xcd9   :  { %v6889_v25 = vmul.f32 %v6883_v33, %v6715_v32  ;;  %v12329_v63 = vpop.f32.mrb[81].mxu0 }
 0xcdb   :  { %v18179_v34 = vadd.f32 %v6889_v25, %v6660_v13 }
 0xcdc   :  { %v6927_v48 = vpop.f32.mrb[84].mxu0 }
 0xcdd   :  { %v6928_v7 = vadd.f32 %v6927_v48, %v17960_v43  ;;  %v12336_v28 = vpop.f32.mrb[85].mxu0 }
 0xcde   :  { %v6930_v9 = vpop.f32.mrb[86].mxu0 }
 0xcdf   :  { %v6931_v62 = vadd.f32 %v6930_v9, %v17963_v0  ;;  %v12337_v30 = vpop.f32.mrb[87].mxu0  ;;  %v6950_v38 = vmul.f32 %v6928_v7, %v16119_v17 }
 0xce1   :  { %v6951_v14 = vmul.f32 %v6931_v62, %v16124_v50 }
 0xce3   :  { %v13035_v2 = vpack.c.bf16 %v6951_v14, %v6950_v38 }
 0xce4   :  { %v6935_v54 = vpop.f32.mrb[88].mxu0 }
 0xce5   :  { %v6936_v37 = vadd.f32 %v6935_v54, %v17969_v46  ;;  %v12340_v8 = vpop.f32.mrb[89].mxu0  ;;  %13036 = vmatprep.subr.bf16.mxu1 %v13035_v2 }
 0xce6   :  { %v6938_v13 = vpop.f32.mrb[90].mxu0  ;;  %13038 = vmatpush3.bf16.msra.mxu1 %v13035_v2 }
 0xce7   :  { %v6952_v21 = vmul.f32 %v6936_v37, %v16127_v35  ;;  %v12341_v22 = vpop.f32.mrb[91].mxu0 }
 0xce9   :  { %12350 = vmatprep.subr.mxu1 %v6952_v21 }
 0xcea   :  { %12351 = vmatpush3.msra.mxu1 %v6952_v21 }
 0xceb   :  { %12353 = vmatmul.mubr.msk.f32.vlgmr.msra.gmra.mrb[66].mxu1 %vm105_vm7, %v17725_v58  ;;  %13039 = vmatprep.subr.bf16.mxu1 %v19300_v27 }
 0xcec   :  { %v6943_v26 = vpop.f32.mrb[92].mxu0  ;;  %12359 = vmatprep.mubr.msk.f32.mxu1 %vm13416_vm10, %v19299_v20 }
 0xced   :  { %v12344_v55 = vpop.f32.mrb[93].mxu0  ;;  %v6944_v38 = vadd.f32 %v6943_v26, %v18070_v16 }
 0xcee   :  { %v6946_v24 = vpop.f32.mrb[94].mxu0 }
 0xcef   :  { %v12345_v36 = vpop.f32.mrb[95].mxu0  ;;  %v6947_v8 = vadd.f32 %v6946_v24, %v18075_v51 }
 0xdbe   :  { %v12354_v32 = vpop.f32.mrb[66].mxu1 }
 0xdbf   :  { %v7029_v33 = vsub.f32 %v12354_v32, %v17986_v29  ;;  %v7019_v25 = vpop.f32.mrb[67].mxu1 }
 0xdc0   :  { %v7028_v63 = vsub.f32 %v7019_v25, %v17988_v6 }
 0xdc1   :  { %v7032_v48 = vmul.f32 1.442695, %v7029_v33 }
 0xdc2   :  { %v7030_v7 = vmul.f32 1.442695, %v7028_v63 }
 0xdc3   :  { %13310 = vpow2.f32 %v7032_v48 }
 0xdc4   :  { %13312 = vpow2.f32 %v7030_v7 }
 0xdcd   :  { %v13311_v58 = vpop.eup %13310 }
 0xdce   :  { %v13313_v28 = vpop.eup %13312  ;;  %v18195_v9 = vadd.f32 %v13311_v58, %v18135_v59 }
 0xdcf   :  { %v18198_v62 = vadd.f32 %v13313_v28, %v18137_v3  ;;  %v13040_v30 = vpack.c.bf16 %v13311_v58, %v13313_v28 }
 0xdd1   :  { %13042 = vmatpush3.bf16.msk.msra.mxu1 %vm17997_vm12, %v13040_v30 }
 0xdd2   :  { %12368 = vmatprep.subr.bf16.mxu1 %v19299_v20 }
 0xdd4   :  { %12360 = vmatmul.mubr.msk.f32.vlgmr.msra.gmra.mrb[92].mxu1 %vm6330_vm13, %v18008_v40 }
 0xdd5   :  { %12369 = vmatpush3.bf16.msra.mxu1 %v15227_v45  ;;  %12362 = vmatprep.mubr.msk.f32.mxu1 %vm13416_vm10, %v19299_v20  ;;  %v6939_v45 = vadd.f32 %v6938_v13, %v18064_v31 }
 0xdd6   :  { %12370 = vmatprep.subr.bf16.mxu1 %v19299_v20 }
 0xdd8   :  { %12363 = vmatmul.mubr.msk.f32.gmra.mrb[94].mxu1 %vm6330_vm13, %v18019_v10 }
 0xdd9   :  { %12371 = vmatpush3.bf16.msra.mxu1 %v15254_v11  ;;  %12365 = vmatprep.mubr.msk.f32.mxu1 %vm13416_vm10, %v19299_v20 }
 0xddc   :  { %12366 = vmatmul.mubr.msk.f32.gmra.mrb[96].mxu1 %vm6330_vm13, %v18030_v61 }
 0xddd   :  { %12372 = vmatprep.mubr.msk.bf16.mxu1 %vm13416_vm10, %v19299_v20 }
 0xde0   :  { %12373 = vmatmul.mubr.msk.bf16.vlgmr.msra.gmra.mrb[100].mxu1 %vm105_vm7, %v17928_v19 }
 0xde1   :  { %12376 = vmatprep.mubr.msk.bf16.mxu1 %vm13416_vm10, %v19299_v20 }
 0xde8   :  { %12377 = vmatmul.mubr.msk.bf16.gmra.mrb[104].mxu1 %vm105_vm7, %v17938_v42 }
 0xde9   :  { %12380 = vmatprep.mubr.msk.bf16.mxu1 %vm13416_vm10, %v19299_v20 }
 0xdf0   :  { %12381 = vmatmul.mubr.msk.bf16.gmra.mrb[108].mxu1 %vm105_vm7, %v17947_v5 }
 0xdf1   :  { %12428 = vmatprep.mubr.msk.f32.mxu1 %vm105_vm7, %v17735_v57 }
 0xea7   :  { %v7105_v11 = vpop.f32.mrb[92].mxu1 }
 0xea8   :  { %v7119_v59 = vmul.f32 %v7105_v11, %v6939_v45  ;;  %v12361_v3 = vpop.f32.mrb[93].mxu1  ;;  %v18251_v45 = vld [vmem:[%s19247_s9 + $0x8] sm:$0xf] }
 0xeaa   :  { %v18233_v14 = vadd.f32 %v7119_v59, %v18173_v41 }
 0xeab   :  { %v7110_v2 = vpop.f32.mrb[94].mxu1 }
 0xeac   :  { %v7120_v54 = vmul.f32 %v7110_v2, %v6944_v38  ;;  %v12364_v37 = vpop.f32.mrb[95].mxu1 }
 0xeae   :  { %v18237_v21 = vadd.f32 %v7120_v54, %v18177_v52 }
 0xeaf   :  { %v7115_v22 = vpop.f32.mrb[96].mxu1 }
 0xeb0   :  { %v7121_v57 = vmul.f32 %v7115_v22, %v6947_v8  ;;  %v12367_v55 = vpop.f32.mrb[97].mxu1 }
 0xeb2   :  { %v18240_v13 = vadd.f32 %v7121_v57, %v18179_v34 }
 0xeb3   :  { %v7159_v36 = vpop.f32.mrb[100].mxu1 }
 0xeb4   :  { %v7160_v26 = vadd.f32 %v7159_v36, %v17960_v43  ;;  %v12374_v32 = vpop.f32.mrb[101].mxu1 }
 0xeb5   :  { %v7162_v41 = vpop.f32.mrb[102].mxu1 }
 0xeb6   :  { %v7163_v33 = vadd.f32 %v7162_v41, %v17963_v0  ;;  %v12375_v25 = vpop.f32.mrb[103].mxu1  ;;  %v7182_v63 = vmul.f32 %v7160_v26, %v16119_v17 }
 0xeb8   :  { %v7183_v24 = vmul.f32 %v7163_v33, %v16124_v50 }
 0xeba   :  { %v13043_v52 = vpack.c.bf16 %v7183_v24, %v7182_v63 }
 0xebb   :  { %v7167_v48 = vpop.f32.mrb[104].mxu1 }
 0xebc   :  { %v7168_v7 = vadd.f32 %v7167_v48, %v17969_v46  ;;  %v12378_v58 = vpop.f32.mrb[105].mxu1  ;;  %13044 = vmatprep.subr.bf16.mxu0 %v13043_v52 }
 0xebd   :  { %v7170_v34 = vpop.f32.mrb[106].mxu1  ;;  %13046 = vmatpush3.bf16.msra.mxu0 %v13043_v52 }
 0xebe   :  { %v7184_v28 = vmul.f32 %v7168_v7, %v16127_v35  ;;  %v12379_v30 = vpop.f32.mrb[107].mxu1 }
 0xec0   :  { %12388 = vmatprep.subr.mxu0 %v7184_v28 }
 0xec1   :  { %12389 = vmatpush3.msra.mxu0 %v7184_v28 }
 0xec2   :  { %12391 = vmatmul.mubr.msk.f32.vlgmr.msra.gmra.mrb[82].mxu0 %vm105_vm7, %v18251_v45  ;;  %13047 = vmatprep.subr.bf16.mxu0 %v19300_v27 }
 0xec3   :  { %v7175_v11 = vpop.f32.mrb[108].mxu1  ;;  %12397 = vmatprep.mubr.msk.f32.mxu0 %vm13416_vm10, %v19299_v20 }
 0xec4   :  { %v12382_v59 = vpop.f32.mrb[109].mxu1  ;;  %v7176_v25 = vadd.f32 %v7175_v11, %v18070_v16 }
 0xec5   :  { %v7178_v3 = vpop.f32.mrb[110].mxu1 }
 0xec6   :  { %v12383_v38 = vpop.f32.mrb[111].mxu1  ;;  %v7179_v7 = vadd.f32 %v7178_v3, %v18075_v51 }
 0xf95   :  { %v12392_v2 = vpop.f32.mrb[82].mxu0 }
 0xf96   :  { %v7261_v54 = vsub.f32 %v12392_v2, %v17986_v29  ;;  %v7251_v37 = vpop.f32.mrb[83].mxu0 }
 0xf97   :  { %v7260_v8 = vsub.f32 %v7251_v37, %v17988_v6 }
 0xf98   :  { %v7264_v22 = vmul.f32 1.442695, %v7261_v54 }
 0xf99   :  { %v7262_v57 = vmul.f32 1.442695, %v7260_v8 }
 0xf9a   :  { %13314 = vpow2.f32 %v7264_v22 }
 0xf9b   :  { %13316 = vpow2.f32 %v7262_v57 }
 0xfa4   :  { %v13315_v55 = vpop.eup %13314 }
 0xfa5   :  { %v13317_v36 = vpop.eup %13316  ;;  %v18261_v26 = vadd.f32 %v13315_v55, %v18195_v9 }
 0xfa6   :  { %v18264_v32 = vadd.f32 %v13317_v36, %v18198_v62  ;;  %v13048_v41 = vpack.c.bf16 %v13315_v55, %v13317_v36 }
 0xfa8   :  { %13050 = vmatpush3.bf16.msk.msra.mxu0 %vm17997_vm12, %v13048_v41 }
 0xfa9   :  { %12406 = vmatprep.subr.bf16.mxu0 %v19299_v20 }
 0xfab   :  { %12398 = vmatmul.mubr.msk.f32.vlgmr.msra.gmra.mrb[96].mxu0 %vm6330_vm13, %v18008_v40 }
 0xfac   :  { %12407 = vmatpush3.bf16.msra.mxu0 %v16392_v56  ;;  %12400 = vmatprep.mubr.msk.f32.mxu0 %vm13416_vm10, %v19299_v20  ;;  %v18297_v56 = vld [vmem:[%s19247_s9] sm:$0xff] }
 0xfad   :  { %12408 = vmatprep.subr.bf16.mxu0 %v19299_v20 }
 0xfaf   :  { %12401 = vmatmul.mubr.msk.f32.gmra.mrb[98].mxu0 %vm6330_vm13, %v18019_v10 }
 0xfb0   :  { %12409 = vmatpush3.bf16.msra.mxu0 %v16413_v39  ;;  %12403 = vmatprep.mubr.msk.f32.mxu0 %vm13416_vm10, %v19299_v20  ;;  %v7171_v39 = vadd.f32 %v7170_v34, %v18064_v31 }
 0xfb3   :  { %12404 = vmatmul.mubr.msk.f32.gmra.mrb[100].mxu0 %vm6330_vm13, %v18030_v61 }
 0xfb4   :  { %12410 = vmatprep.mubr.msk.bf16.mxu0 %vm13416_vm10, %v19299_v20 }
 0xfb7   :  { %12411 = vmatmul.mubr.msk.bf16.vlgmr.msra.gmra.mrb[104].mxu0 %vm105_vm7, %v17928_v19 }
 0xfb8   :  { %12414 = vmatprep.mubr.msk.bf16.mxu0 %vm13416_vm10, %v19299_v20 }
 0xfbf   :  { %12415 = vmatmul.mubr.msk.bf16.gmra.mrb[108].mxu0 %vm105_vm7, %v17938_v42 }
 0xfc0   :  { %12418 = vmatprep.mubr.msk.bf16.mxu0 %vm13416_vm10, %v19299_v20 }
 0xfc7   :  { %12419 = vmatmul.mubr.msk.bf16.gmra.mrb[112].mxu0 %vm105_vm7, %v17947_v5 }
 0xfc8   :  { %12466 = vmatprep.mubr.msk.f32.mxu0 %vm105_vm7, %v18297_v56 }
0x107e   :  { %v7337_v9 = vpop.f32.mrb[96].mxu0 }
0x107f   :  { %v7351_v62 = vmul.f32 %v7337_v9, %v7171_v39  ;;  %v12399_v33 = vpop.f32.mrb[97].mxu0 }
0x1081   :  { %v18304_v63 = vadd.f32 %v7351_v62, %v18233_v14 }
0x1082   :  { %v7342_v24 = vpop.f32.mrb[98].mxu0 }
0x1083   :  { %v7352_v52 = vmul.f32 %v7342_v24, %v7176_v25  ;;  %v12402_v48 = vpop.f32.mrb[99].mxu0 }
0x1085   :  { %v18308_v58 = vadd.f32 %v7352_v52, %v18237_v21 }
0x1086   :  { %v7347_v28 = vpop.f32.mrb[100].mxu0 }
0x1087   :  { %v7353_v30 = vmul.f32 %v7347_v28, %v7179_v7  ;;  %v12405_v59 = vpop.f32.mrb[101].mxu0 }
0x1089   :  { %v18311_v34 = vadd.f32 %v7353_v30, %v18240_v13 }
0x108a   :  { %v7391_v38 = vpop.f32.mrb[104].mxu0 }
0x108b   :  { %v7392_v11 = vadd.f32 %v7391_v38, %v17960_v43  ;;  %v12412_v2 = vpop.f32.mrb[105].mxu0 }
0x108c   :  { %v7394_v14 = vpop.f32.mrb[106].mxu0 }
0x108d   :  { %v7395_v54 = vadd.f32 %v7394_v14, %v17963_v0  ;;  %v12413_v37 = vpop.f32.mrb[107].mxu0  ;;  %v7414_v8 = vmul.f32 %v7392_v11, %v16119_v17 }
0x108f   :  { %v7415_v3 = vmul.f32 %v7395_v54, %v16124_v50 }
0x1091   :  { %v13051_v21 = vpack.c.bf16 %v7415_v3, %v7414_v8 }
0x1092   :  { %v7399_v22 = vpop.f32.mrb[108].mxu0 }
0x1093   :  { %v7400_v57 = vadd.f32 %v7399_v22, %v17969_v46  ;;  %v12416_v55 = vpop.f32.mrb[109].mxu0  ;;  %13052 = vmatprep.subr.bf16.mxu1 %v13051_v21 }
0x1094   :  { %v7402_v13 = vpop.f32.mrb[110].mxu0  ;;  %13054 = vmatpush3.bf16.msra.mxu1 %v13051_v21 }
0x1095   :  { %v7416_v36 = vmul.f32 %v7400_v57, %v16127_v35  ;;  %v12417_v41 = vpop.f32.mrb[111].mxu0 }
0x1097   :  { %12426 = vmatprep.subr.mxu1 %v7416_v36 }
0x1098   :  { %12427 = vmatpush3.msra.mxu1 %v7416_v36 }
0x1099   :  { %12429 = vmatmul.mubr.msk.f32.vlgmr.msra.gmra.mrb[98].mxu1 %vm105_vm7, %v18251_v45  ;;  %13055 = vmatprep.subr.bf16.mxu1 %v19300_v27 }
0x109a   :  { %v7407_v39 = vpop.f32.mrb[112].mxu0  ;;  %12435 = vmatprep.mubr.msk.f32.mxu1 %vm13416_vm10, %v19299_v20 }
0x109b   :  { %v12420_v9 = vpop.f32.mrb[113].mxu0 }
0x109c   :  { %v7410_v62 = vpop.f32.mrb[114].mxu0 }
0x109d   :  { %v12421_v33 = vpop.f32.mrb[115].mxu0  ;;  %v7411_v8 = vadd.f32 %v7410_v62, %v18075_v51 }
0x116c   :  { %v12430_v25 = vpop.f32.mrb[98].mxu1 }
0x116d   :  { %v7493_v24 = vsub.f32 %v12430_v25, %v17986_v29  ;;  %v7483_v52 = vpop.f32.mrb[99].mxu1 }
0x116e   :  { %v7492_v48 = vsub.f32 %v7483_v52, %v17988_v6 }
0x116f   :  { %v7496_v7 = vmul.f32 1.442695, %v7493_v24 }
0x1170   :  { %v7494_v28 = vmul.f32 1.442695, %v7492_v48 }
0x1171   :  { %13318 = vpow2.f32 %v7496_v7 }
0x1172   :  { %13320 = vpow2.f32 %v7494_v28 }
0x117b   :  { %v13319_v30 = vpop.eup %13318 }
0x117c   :  { %v13321_v59 = vpop.eup %13320  ;;  %v18327_v38 = vadd.f32 %v13319_v30, %v18261_v26 }
0x117d   :  { %v18330_v11 = vadd.f32 %v13321_v59, %v18264_v32  ;;  %v13056_v2 = vpack.c.bf16 %v13319_v30, %v13321_v59  ;;  %v7408_v32 = vadd.f32 %v7407_v39, %v18070_v16 }
0x117f   :  { %13058 = vmatpush3.bf16.msk.msra.mxu1 %vm17997_vm12, %v13056_v2 }
0x1180   :  { %12444 = vmatprep.subr.bf16.mxu1 %v19299_v20 }
0x1182   :  { %12436 = vmatmul.mubr.msk.f32.vlgmr.msra.gmra.mrb[112].mxu1 %vm6330_vm13, %v18008_v40 }
0x1183   :  { %12445 = vmatpush3.bf16.msra.mxu1 %v16415_v60  ;;  %12438 = vmatprep.mubr.msk.f32.mxu1 %vm13416_vm10, %v19299_v20  ;;  %v7403_v60 = vadd.f32 %v7402_v13, %v18064_v31 }
0x1184   :  { %12446 = vmatprep.subr.bf16.mxu1 %v19299_v20 }
0x1186   :  { %12439 = vmatmul.mubr.msk.f32.gmra.mrb[114].mxu1 %vm6330_vm13, %v18019_v10 }
0x1187   :  { %12447 = vmatpush3.bf16.msra.mxu1 %v16432_v4  ;;  %12441 = vmatprep.mubr.msk.f32.mxu1 %vm13416_vm10, %v19299_v20 }
0x118a   :  { %12442 = vmatmul.mubr.msk.f32.gmra.mrb[116].mxu1 %vm6330_vm13, %v18030_v61 }
0x118b   :  { %12448 = vmatprep.mubr.msk.bf16.mxu1 %vm13416_vm10, %v19299_v20 }
0x118e   :  { %12449 = vmatmul.mubr.msk.bf16.vlgmr.msra.gmra.mrb[120].mxu1 %vm105_vm7, %v17928_v19 }
0x118f   :  { %12452 = vmatprep.mubr.msk.bf16.mxu1 %vm13416_vm10, %v19299_v20 }
0x1196   :  { %12453 = vmatmul.mubr.msk.bf16.gmra.mrb[124].mxu1 %vm105_vm7, %v17938_v42 }
0x1197   :  { %12456 = vmatprep.mubr.msk.bf16.mxu1 %vm13416_vm10, %v19299_v20 }
0x119e   :  { %12457 = vmatmul.mubr.msk.bf16.gmra.mrb[128].mxu1 %vm105_vm7, %v17947_v5 }
0x119f   :  { %12504 = vmatprep.mubr.msk.f32.mxu1 %vm105_vm7, %v18297_v56 }
0x1255   :  { %v7569_v4 = vpop.f32.mrb[112].mxu1 }
0x1256   :  { %v7583_v26 = vmul.f32 %v7569_v4, %v7403_v60  ;;  %v12437_v19 = vpop.f32.mrb[113].mxu1 }
0x1258   :  { %v18365_v14 = vadd.f32 %v7583_v26, %v18304_v63 }
0x1259   :  { %v7574_v42 = vpop.f32.mrb[114].mxu1 }
0x125a   :  { %v7584_v54 = vmul.f32 %v7574_v42, %v7408_v32  ;;  %v12440_v37 = vpop.f32.mrb[115].mxu1 }
0x125c   :  { %v18369_v5 = vadd.f32 %v7584_v54, %v18308_v58 }
0x125d   :  { %v7579_v3 = vpop.f32.mrb[116].mxu1 }
0x125e   :  { %v7585_v21 = vmul.f32 %v7579_v3, %v7411_v8  ;;  %v12443_v22 = vpop.f32.mrb[117].mxu1 }
0x1260   :  { %v18372_v57 = vadd.f32 %v7585_v21, %v18311_v34  ;;  %v18432_v21 = vld [vmem:[%s19248_s7 + $0x10] sm:$0xff]  }
0x1261   :  { %v7623_v55 = vpop.f32.mrb[120].mxu1 }
0x1262   :  { %v7624_v13 = vadd.f32 %v7623_v55, %v17960_v43  ;;  %v12450_v36 = vpop.f32.mrb[121].mxu1 }
0x1263   :  { %v7626_v63 = vpop.f32.mrb[122].mxu1 }
0x1264   :  { %v7627_v41 = vadd.f32 %v7626_v63, %v17963_v0  ;;  %v12451_v39 = vpop.f32.mrb[123].mxu1  ;;  %v7646_v9 = vmul.f32 %v7624_v13, %v16119_v17 }
0x1266   :  { %v7647_v62 = vmul.f32 %v7627_v41, %v16124_v50 }
0x1268   :  { %v13059_v58 = vpack.c.bf16 %v7647_v62, %v7646_v9 }
0x1269   :  { %v7631_v33 = vpop.f32.mrb[124].mxu1 }
0x126a   :  { %v7632_v25 = vadd.f32 %v7631_v33, %v17969_v46  ;;  %v12454_v24 = vpop.f32.mrb[125].mxu1  ;;  %13060 = vmatprep.subr.bf16.mxu0 %v13059_v58 }
0x126b   :  { %v7634_v34 = vpop.f32.mrb[126].mxu1  ;;  %13062 = vmatpush3.bf16.msra.mxu0 %v13059_v58 }
0x126c   :  { %v7648_v52 = vmul.f32 %v7632_v25, %v16127_v35  ;;  %v12455_v48 = vpop.f32.mrb[127].mxu1  ;;  %v7635_v22 = vadd.f32 %v7634_v34, %v18064_v31 }
0x126e   :  { %12464 = vmatprep.subr.mxu0 %v7648_v52 }
0x126f   :  { %12465 = vmatpush3.msra.mxu0 %v7648_v52 }
0x1270   :  { %12467 = vmatmul.mubr.msk.f32.vlgmr.msra.gmra.mrb[102].mxu0 %vm105_vm7, %v18251_v45  ;;  %13063 = vmatprep.subr.bf16.mxu0 %v19300_v27 }
0x1271   :  { %v7639_v7 = vpop.f32.mrb[128].mxu1  ;;  %12473 = vmatprep.mubr.msk.f32.mxu0 %vm13416_vm10, %v19299_v20 }
0x1272   :  { %v12458_v28 = vpop.f32.mrb[129].mxu1  ;;  %v7640_v63 = vadd.f32 %v7639_v7, %v18070_v16 }
0x1273   :  { %v7642_v30 = vpop.f32.mrb[130].mxu1 }
0x1274   :  { %v12459_v59 = vpop.f32.mrb[131].mxu1  ;;  %v7643_v58 = vadd.f32 %v7642_v30, %v18075_v51 }
0x1343   :  { %v12468_v2 = vpop.f32.mrb[102].mxu0 }
0x1344   :  { %v7725_v60 = vsub.f32 %v12468_v2, %v17986_v29  ;;  %v7715_v4 = vpop.f32.mrb[103].mxu0 }
0x1345   :  { %v7724_v26 = vsub.f32 %v7715_v4, %v17988_v6 }
0x1346   :  { %v7728_v19 = vmul.f32 1.442695, %v7725_v60 }
0x1347   :  { %v7726_v32 = vmul.f32 1.442695, %v7724_v26 }
0x1348   :  { %13322 = vpow2.f32 %v7728_v19 }
0x1349   :  { %13324 = vpow2.f32 %v7726_v32 }
0x1352   :  { %v13323_v42 = vpop.eup %13322 }
0x1353   :  { %v13325_v54 = vpop.eup %13324  ;;  %v18388_v37 = vadd.f32 %v13323_v42, %v18327_v38  ;;  %v19301_v38 = vld [vmem:[#allocation2_spill] sm:$0xff] }
0x1354   :  { %v18391_v8 = vadd.f32 %v13325_v54, %v18330_v11  ;;  %v13064_v3 = vpack.c.bf16 %v13323_v42, %v13325_v54  ;;  %v18423_v11 = vld [vmem:[%s19248_s7 + $0x8] sm:$0xff]  }
0x1356   :  { %13066 = vmatpush3.bf16.msk.msra.mxu0 %vm17997_vm12, %v13064_v3 }
0x1357   :  { %12482 = vmatprep.subr.bf16.mxu0 %v19299_v20 }
0x1359   :  { %12474 = vmatmul.mubr.msk.f32.vlgmr.msra.gmra.mrb[116].mxu0 %vm6330_vm13, %v18008_v40 }
0x135a   :  { %12483 = vmatpush3.bf16.msra.mxu0 %v16660_v53  ;;  %12476 = vmatprep.mubr.msk.f32.mxu0 %vm13416_vm10, %v19299_v20  ;;  %v18414_v53 = vld [vmem:[%s19248_s7] sm:$0xff]  }
0x135b   :  { %12484 = vmatprep.subr.bf16.mxu0 %v19299_v20 }
0x135d   :  { %12477 = vmatmul.mubr.msk.f32.gmra.mrb[118].mxu0 %vm6330_vm13, %v18019_v10 }
0x135e   :  { %12485 = vmatpush3.bf16.msra.mxu0 %v19301_v38  ;;  %12479 = vmatprep.mubr.msk.f32.mxu0 %vm13416_vm10, %v19299_v20 }
0x1361   :  { %12480 = vmatmul.mubr.msk.f32.gmra.mrb[120].mxu0 %vm6330_vm13, %v18030_v61 }
0x1362   :  { %12486 = vmatprep.mubr.msk.bf16.mxu0 %vm13416_vm10, %v19299_v20 }
0x1365   :  { %12487 = vmatmul.mubr.msk.bf16.vlgmr.msra.gmra.mrb[124].mxu0 %vm105_vm7, %v18414_v53 }
0x1366   :  { %12490 = vmatprep.mubr.msk.bf16.mxu0 %vm13416_vm10, %v19299_v20 }
0x136d   :  { %12491 = vmatmul.mubr.msk.bf16.gmra.mrb[128].mxu0 %vm105_vm7, %v18423_v11 }
0x136e   :  { %12494 = vmatprep.mubr.msk.bf16.mxu0 %vm13416_vm10, %v19299_v20 }
0x1375   :  { %12495 = vmatmul.mubr.msk.bf16.gmra.mrb[132].mxu0 %vm105_vm7, %v18432_v21 }
0x1376   :  { %12542 = vmatprep.mubr.msk.f32.mxu0 %vm105_vm7, %v18297_v56 }
0x142c   :  { %v7801_v55 = vpop.f32.mrb[116].mxu0 }
0x142d   :  { %v7815_v13 = vmul.f32 %v7801_v55, %v7635_v22  ;;  %v12475_v36 = vpop.f32.mrb[117].mxu0 }
0x142f   :  { %v18441_v41 = vadd.f32 %v7815_v13, %v18365_v14 }
0x1430   :  { %v7806_v39 = vpop.f32.mrb[118].mxu0 }
0x1431   :  { %v7816_v9 = vmul.f32 %v7806_v39, %v7640_v63  ;;  %v12478_v62 = vpop.f32.mrb[119].mxu0 }
0x1433   :  { %v18445_v33 = vadd.f32 %v7816_v9, %v18369_v5 }
0x1434   :  { %v7811_v25 = vpop.f32.mrb[120].mxu0 }
0x1435   :  { %v7817_v24 = vmul.f32 %v7811_v25, %v7643_v58  ;;  %v12481_v52 = vpop.f32.mrb[121].mxu0 }
0x1437   :  { %v18448_v34 = vadd.f32 %v7817_v24, %v18372_v57 }
0x1438   :  { %v7855_v48 = vpop.f32.mrb[124].mxu0 }
0x1439   :  { %v7856_v7 = vadd.f32 %v7855_v48, %v17960_v43  ;;  %v12488_v28 = vpop.f32.mrb[125].mxu0  ;;  %v19302_v48 = vld [vmem:[#allocation3_spill] sm:$0xff] }
0x143a   :  { %v7858_v14 = vpop.f32.mrb[126].mxu0 }
0x143b   :  { %v7859_v59 = vadd.f32 %v7858_v14, %v17963_v0  ;;  %v12489_v2 = vpop.f32.mrb[127].mxu0  ;;  %v7878_v60 = vmul.f32 %v7856_v7, %v16119_v17 }
0x143d   :  { %v7879_v30 = vmul.f32 %v7859_v59, %v16124_v50 }
0x143f   :  { %v13067_v5 = vpack.c.bf16 %v7879_v30, %v7878_v60 }
0x1440   :  { %v7863_v4 = vpop.f32.mrb[128].mxu0 }
0x1441   :  { %v7864_v26 = vadd.f32 %v7863_v4, %v17969_v46  ;;  %v12492_v19 = vpop.f32.mrb[129].mxu0  ;;  %13068 = vmatprep.subr.bf16.mxu1 %v13067_v5 }
0x1442   :  { %v7866_v57 = vpop.f32.mrb[130].mxu0  ;;  %13070 = vmatpush3.bf16.msra.mxu1 %v13067_v5 }
0x1443   :  { %v7880_v32 = vmul.f32 %v7864_v26, %v16127_v35  ;;  %v12493_v42 = vpop.f32.mrb[131].mxu0 }
0x1445   :  { %12502 = vmatprep.subr.mxu1 %v7880_v32 }
0x1446   :  { %12503 = vmatpush3.msra.mxu1 %v7880_v32 }
0x1447   :  { %12505 = vmatmul.mubr.msk.f32.vlgmr.msra.gmra.mrb[118].mxu1 %vm105_vm7, %v18251_v45  ;;  %13071 = vmatprep.subr.bf16.mxu1 %v19300_v27 }
0x1448   :  { %v7871_v54 = vpop.f32.mrb[132].mxu0  ;;  %12511 = vmatprep.mubr.msk.f32.mxu1 %vm13416_vm10, %v19299_v20 }
0x1449   :  { %v12496_v3 = vpop.f32.mrb[133].mxu0  ;;  %v7872_v7 = vadd.f32 %v7871_v54, %v18070_v16 }
0x144a   :  { %v7874_v38 = vpop.f32.mrb[134].mxu0 }
0x144b   :  { %v12497_v22 = vpop.f32.mrb[135].mxu0  ;;  %v7875_v60 = vadd.f32 %v7874_v38, %v18075_v51 }
0x151a   :  { %v12506_v55 = vpop.f32.mrb[118].mxu1 }
0x151b   :  { %v7957_v13 = vsub.f32 %v12506_v55, %v17986_v29  ;;  %v7947_v36 = vpop.f32.mrb[119].mxu1 }
0x151c   :  { %v7956_v63 = vsub.f32 %v7947_v36, %v17988_v6 }
0x151d   :  { %v7960_v39 = vmul.f32 1.442695, %v7957_v13 }
0x151e   :  { %v7958_v9 = vmul.f32 1.442695, %v7956_v63 }
0x151f   :  { %13326 = vpow2.f32 %v7960_v39 }
0x1520   :  { %13328 = vpow2.f32 %v7958_v9 }
0x1529   :  { %v13327_v62 = vpop.eup %13326 }
0x152a   :  { %v13329_v58 = vpop.eup %13328  ;;  %v18464_v25 = vadd.f32 %v13327_v62, %v18388_v37  ;;  %v19303_v37 = vld [vmem:[#allocation4_spill] sm:$0xff] }
0x152b   :  { %v18467_v24 = vadd.f32 %v13329_v58, %v18391_v8  ;;  %v13072_v52 = vpack.c.bf16 %v13327_v62, %v13329_v58 }
0x152d   :  { %13074 = vmatpush3.bf16.msk.msra.mxu1 %vm17997_vm12, %v13072_v52 }
0x152e   :  { %12520 = vmatprep.subr.bf16.mxu1 %v19299_v20 }
0x1530   :  { %12512 = vmatmul.mubr.msk.f32.vlgmr.msra.gmra.mrb[132].mxu1 %vm6330_vm13, %v18008_v40  ;;  %v7867_v40 = vadd.f32 %v7866_v57, %v18064_v31 }
0x1531   :  { %12521 = vmatpush3.bf16.msra.mxu1 %v19302_v48  ;;  %12514 = vmatprep.mubr.msk.f32.mxu1 %vm13416_vm10, %v19299_v20 }
0x1532   :  { %12522 = vmatprep.subr.bf16.mxu1 %v19299_v20 }
0x1534   :  { %12515 = vmatmul.mubr.msk.f32.gmra.mrb[134].mxu1 %vm6330_vm13, %v18019_v10 }
0x1535   :  { %12523 = vmatpush3.bf16.msra.mxu1 %v19303_v37  ;;  %12517 = vmatprep.mubr.msk.f32.mxu1 %vm13416_vm10, %v19299_v20 }
0x1538   :  { %12518 = vmatmul.mubr.msk.f32.gmra.mrb[136].mxu1 %vm6330_vm13, %v18030_v61 }
0x1539   :  { %12524 = vmatprep.mubr.msk.bf16.mxu1 %vm13416_vm10, %v19299_v20 }
0x153c   :  { %12525 = vmatmul.mubr.msk.bf16.vlgmr.msra.gmra.mrb[140].mxu1 %vm105_vm7, %v18414_v53 }
0x153d   :  { %12528 = vmatprep.mubr.msk.bf16.mxu1 %vm13416_vm10, %v19299_v20 }
0x1544   :  { %12529 = vmatmul.mubr.msk.bf16.gmra.mrb[144].mxu1 %vm105_vm7, %v18423_v11 }
0x1545   :  { %12532 = vmatprep.mubr.msk.bf16.mxu1 %vm13416_vm10, %v19299_v20 }
0x154c   :  { %12533 = vmatmul.mubr.msk.bf16.gmra.mrb[148].mxu1 %vm105_vm7, %v18432_v21 }
0x154d   :  { %12580 = vmatprep.mubr.msk.f32.mxu1 %vm105_vm7, %v18297_v56 }
0x1603   :  { %v8033_v10 = vpop.f32.mrb[132].mxu1 }
0x1604   :  { %v8047_v61 = vmul.f32 %v8033_v10, %v7867_v40  ;;  %v12513_v8 = vpop.f32.mrb[133].mxu1 }
0x1606   :  { %v18502_v28 = vadd.f32 %v8047_v61, %v18441_v41 }
0x1607   :  { %v8038_v14 = vpop.f32.mrb[134].mxu1 }
0x1608   :  { %v8048_v59 = vmul.f32 %v8038_v14, %v7872_v7  ;;  %v12516_v2 = vpop.f32.mrb[135].mxu1 }
0x160a   :  { %v18506_v30 = vadd.f32 %v8048_v59, %v18445_v33 }
0x160b   :  { %v8043_v5 = vpop.f32.mrb[136].mxu1 }
0x160c   :  { %v8049_v4 = vmul.f32 %v8043_v5, %v7875_v60  ;;  %v12519_v26 = vpop.f32.mrb[137].mxu1  ;;  %v18536_v5 = vld [vmem:[%s19249_s10] sm:$0xff] }
0x160d   :  { %v18557_v26 = vld [vmem:[%s19249_s10 + $0x10] sm:$0xff] }
0x160e   :  { %v18509_v19 = vadd.f32 %v8049_v4, %v18448_v34  ;;  %v19304_v4 = vld [vmem:[#allocation5_spill] sm:$0xff] }
0x160f   :  { %v8087_v57 = vpop.f32.mrb[140].mxu1 }
0x1610   :  { %v8088_v32 = vadd.f32 %v8087_v57, %v17960_v43  ;;  %v12526_v42 = vpop.f32.mrb[141].mxu1 }
0x1611   :  { %v8090_v41 = vpop.f32.mrb[142].mxu1 }
0x1612   :  { %v8091_v54 = vadd.f32 %v8090_v41, %v17963_v0  ;;  %v12527_v3 = vpop.f32.mrb[143].mxu1  ;;  %v8110_v22 = vmul.f32 %v8088_v32, %v16119_v17 }
0x1614   :  { %v8111_v38 = vmul.f32 %v8091_v54, %v16124_v50 }
0x1616   :  { %v13075_v33 = vpack.c.bf16 %v8111_v38, %v8110_v22 }
0x1617   :  { %v8095_v55 = vpop.f32.mrb[144].mxu1 }
0x1618   :  { %v8096_v13 = vadd.f32 %v8095_v55, %v17969_v46  ;;  %v12530_v36 = vpop.f32.mrb[145].mxu1  ;;  %13076 = vmatprep.subr.bf16.mxu0 %v13075_v33 }
0x1619   :  { %v8098_v34 = vpop.f32.mrb[146].mxu1  ;;  %13078 = vmatpush3.bf16.msra.mxu0 %v13075_v33 }
0x161a   :  { %v8112_v63 = vmul.f32 %v8096_v13, %v16127_v35  ;;  %v12531_v39 = vpop.f32.mrb[147].mxu1  ;;  %v8099_v57 = vadd.f32 %v8098_v34, %v18064_v31 }
0x161c   :  { %12540 = vmatprep.subr.mxu0 %v8112_v63 }
0x161d   :  { %12541 = vmatpush3.msra.mxu0 %v8112_v63 }
0x161e   :  { %12543 = vmatmul.mubr.msk.f32.vlgmr.msra.gmra.mrb[122].mxu0 %vm105_vm7, %v18251_v45  ;;  %13079 = vmatprep.subr.bf16.mxu0 %v19300_v27 }
0x161f   :  { %v8103_v9 = vpop.f32.mrb[148].mxu1  ;;  %12549 = vmatprep.mubr.msk.f32.mxu0 %vm13416_vm10, %v19299_v20 }
0x1620   :  { %v12534_v62 = vpop.f32.mrb[149].mxu1  ;;  %v8104_v54 = vadd.f32 %v8103_v9, %v18070_v16 }
0x1621   :  { %v8106_v58 = vpop.f32.mrb[150].mxu1 }
0x1622   :  { %v12535_v52 = vpop.f32.mrb[151].mxu1  ;;  %v8107_v55 = vadd.f32 %v8106_v58, %v18075_v51 }
0x16f1   :  { %v12544_v48 = vpop.f32.mrb[122].mxu0 }
0x16f2   :  { %v8189_v37 = vsub.f32 %v12544_v48, %v17986_v29  ;;  %v8179_v40 = vpop.f32.mrb[123].mxu0 }
0x16f3   :  { %v8188_v10 = vsub.f32 %v8179_v40, %v17988_v6 }
0x16f4   :  { %v8192_v61 = vmul.f32 1.442695, %v8189_v37 }
0x16f5   :  { %v8190_v8 = vmul.f32 1.442695, %v8188_v10 }
0x16f6   :  { %13330 = vpow2.f32 %v8192_v61 }
0x16f7   :  { %13332 = vpow2.f32 %v8190_v8 }
0x1700   :  { %v13331_v7 = vpop.eup %13330 }
0x1701   :  { %v13333_v14 = vpop.eup %13332  ;;  %v18525_v59 = vadd.f32 %v13331_v7, %v18464_v25  ;;  %v18547_v25 = vld [vmem:[%s19249_s10 + $0x8] sm:$0xff] }
0x1702   :  { %v18528_v2 = vadd.f32 %v13333_v14, %v18467_v24  ;;  %v13080_v60 = vpack.c.bf16 %v13331_v7, %v13333_v14  ;;  %v19305_v24 = vld [vmem:[#allocation6_spill] sm:$0xff] }
0x1704   :  { %13082 = vmatpush3.bf16.msk.msra.mxu0 %vm17997_vm12, %v13080_v60 }
0x1705   :  { %12558 = vmatprep.subr.bf16.mxu0 %v19299_v20 }
0x1707   :  { %12550 = vmatmul.mubr.msk.f32.vlgmr.msra.gmra.mrb[136].mxu0 %vm6330_vm13, %v18536_v5 }
0x1708   :  { %12559 = vmatpush3.bf16.msra.mxu0 %v19304_v4  ;;  %12552 = vmatprep.mubr.msk.f32.mxu0 %vm13416_vm10, %v19299_v20 }
0x1709   :  { %12560 = vmatprep.subr.bf16.mxu0 %v19299_v20 }
0x170b   :  { %12553 = vmatmul.mubr.msk.f32.gmra.mrb[138].mxu0 %vm6330_vm13, %v18547_v25 }
0x170c   :  { %12561 = vmatpush3.bf16.msra.mxu0 %v19305_v24  ;;  %12555 = vmatprep.mubr.msk.f32.mxu0 %vm13416_vm10, %v19299_v20 }
0x170f   :  { %12556 = vmatmul.mubr.msk.f32.gmra.mrb[140].mxu0 %vm6330_vm13, %v18557_v26 }
0x1710   :  { %12562 = vmatprep.mubr.msk.bf16.mxu0 %vm13416_vm10, %v19299_v20 }
0x1713   :  { %12563 = vmatmul.mubr.msk.bf16.vlgmr.msra.gmra.mrb[144].mxu0 %vm105_vm7, %v18414_v53 }
0x1714   :  { %12566 = vmatprep.mubr.msk.bf16.mxu0 %vm13416_vm10, %v19299_v20 }
0x171b   :  { %12567 = vmatmul.mubr.msk.bf16.gmra.mrb[148].mxu0 %vm105_vm7, %v18423_v11 }
0x171c   :  { %12570 = vmatprep.mubr.msk.bf16.mxu0 %vm13416_vm10, %v19299_v20 }
0x1723   :  { %12571 = vmatmul.mubr.msk.bf16.gmra.mrb[152].mxu0 %vm105_vm7, %v18432_v21 }
0x1724   :  { %12618 = vmatprep.mubr.msk.f32.mxu0 %vm105_vm7, %v18297_v56 }
0x17da   :  { %v8265_v32 = vpop.f32.mrb[136].mxu0 }
0x17db   :  { %v8279_v42 = vmul.f32 %v8265_v32, %v8099_v57  ;;  %v12551_v41 = vpop.f32.mrb[137].mxu0 }
0x17dd   :  { %v18578_v3 = vadd.f32 %v8279_v42, %v18502_v28 }
0x17de   :  { %v8270_v22 = vpop.f32.mrb[138].mxu0 }
0x17df   :  { %v8280_v38 = vmul.f32 %v8270_v22, %v8104_v54  ;;  %v12554_v33 = vpop.f32.mrb[139].mxu0 }
0x17e1   :  { %v18582_v13 = vadd.f32 %v8280_v38, %v18506_v30 }
0x17e2   :  { %v8275_v36 = vpop.f32.mrb[140].mxu0 }
0x17e3   :  { %v8281_v63 = vmul.f32 %v8275_v36, %v8107_v55  ;;  %v12557_v39 = vpop.f32.mrb[141].mxu0 }
0x17e5   :  { %v18585_v34 = vadd.f32 %v8281_v63, %v18509_v19 }
0x17e6   :  { %v8319_v62 = vpop.f32.mrb[144].mxu0 }
0x17e7   :  { %v8320_v9 = vadd.f32 %v8319_v62, %v17960_v43  ;;  %v12564_v52 = vpop.f32.mrb[145].mxu0  ;;  %v19306_v62 = vld [vmem:[#allocation7_spill] sm:$0xff] }
0x17e8   :  { %v8322_v28 = vpop.f32.mrb[146].mxu0 }
0x17e9   :  { %v8323_v48 = vadd.f32 %v8322_v28, %v17963_v0  ;;  %v12565_v37 = vpop.f32.mrb[147].mxu0  ;;  %v8342_v40 = vmul.f32 %v8320_v9, %v16119_v17 }
0x17eb   :  { %v8343_v58 = vmul.f32 %v8323_v48, %v16124_v50 }
0x17ed   :  { %v13083_v30 = vpack.c.bf16 %v8343_v58, %v8342_v40 }
0x17ee   :  { %v8327_v10 = vpop.f32.mrb[148].mxu0 }
0x17ef   :  { %v8328_v61 = vadd.f32 %v8327_v10, %v17969_v46  ;;  %v12568_v8 = vpop.f32.mrb[149].mxu0  ;;  %13084 = vmatprep.subr.bf16.mxu1 %v13083_v30 }
0x17f0   :  { %v8330_v19 = vpop.f32.mrb[150].mxu0  ;;  %13086 = vmatpush3.bf16.msra.mxu1 %v13083_v30 }
0x17f1   :  { %v8344_v7 = vmul.f32 %v8328_v61, %v16127_v35  ;;  %v12569_v14 = vpop.f32.mrb[151].mxu0 }
0x17f3   :  { %12578 = vmatprep.subr.mxu1 %v8344_v7 }
0x17f4   :  { %12579 = vmatpush3.msra.mxu1 %v8344_v7 }
0x17f5   :  { %12581 = vmatmul.mubr.msk.f32.vlgmr.msra.gmra.mrb[138].mxu1 %vm105_vm7, %v18251_v45  ;;  %13087 = vmatprep.subr.bf16.mxu1 %v19300_v27 }
0x17f6   :  { %v8335_v60 = vpop.f32.mrb[152].mxu0  ;;  %12587 = vmatprep.mubr.msk.f32.mxu1 %vm13416_vm10, %v19299_v20 }
0x17f7   :  { %v12572_v4 = vpop.f32.mrb[153].mxu0  ;;  %v8336_v48 = vadd.f32 %v8335_v60, %v18070_v16 }
0x17f8   :  { %v8338_v24 = vpop.f32.mrb[154].mxu0 }
0x17f9   :  { %v12573_v57 = vpop.f32.mrb[155].mxu0  ;;  %v8339_v10 = vadd.f32 %v8338_v24, %v18075_v51 }
0x18c8   :  { %v12582_v32 = vpop.f32.mrb[138].mxu1 }
0x18c9   :  { %v8421_v42 = vsub.f32 %v12582_v32, %v17986_v29  ;;  %v8411_v41 = vpop.f32.mrb[139].mxu1 }
0x18ca   :  { %v8420_v54 = vsub.f32 %v8411_v41, %v17988_v6 }
0x18cb   :  { %v8424_v22 = vmul.f32 1.442695, %v8421_v42 }
0x18cc   :  { %v8422_v38 = vmul.f32 1.442695, %v8420_v54 }
0x18cd   :  { %13334 = vpow2.f32 %v8424_v22 }
0x18ce   :  { %13336 = vpow2.f32 %v8422_v38 }
0x18d7   :  { %v13335_v33 = vpop.eup %13334 }
0x18d8   :  { %v13337_v55 = vpop.eup %13336  ;;  %v18601_v36 = vadd.f32 %v13335_v33, %v18525_v59  ;;  %v19307_v59 = vld [vmem:[#allocation8_spill] sm:$0xff] }
0x18d9   :  { %v18604_v63 = vadd.f32 %v13337_v55, %v18528_v2  ;;  %v13088_v39 = vpack.c.bf16 %v13335_v33, %v13337_v55  ;;  %v8331_v2 = vadd.f32 %v8330_v19, %v18064_v31 }
0x18db   :  { %13090 = vmatpush3.bf16.msk.msra.mxu1 %vm17997_vm12, %v13088_v39 }
0x18dc   :  { %12596 = vmatprep.subr.bf16.mxu1 %v19299_v20 }
0x18de   :  { %12588 = vmatmul.mubr.msk.f32.vlgmr.msra.gmra.mrb[152].mxu1 %vm6330_vm13, %v18536_v5 }
0x18df   :  { %12597 = vmatpush3.bf16.msra.mxu1 %v19306_v62  ;;  %12590 = vmatprep.mubr.msk.f32.mxu1 %vm13416_vm10, %v19299_v20 }
0x18e0   :  { %12598 = vmatprep.subr.bf16.mxu1 %v19299_v20 }
0x18e2   :  { %12591 = vmatmul.mubr.msk.f32.gmra.mrb[154].mxu1 %vm6330_vm13, %v18547_v25 }
0x18e3   :  { %12599 = vmatpush3.bf16.msra.mxu1 %v19307_v59  ;;  %12593 = vmatprep.mubr.msk.f32.mxu1 %vm13416_vm10, %v19299_v20 }
0x18e6   :  { %12594 = vmatmul.mubr.msk.f32.gmra.mrb[156].mxu1 %vm6330_vm13, %v18557_v26 }
0x18e7   :  { %12600 = vmatprep.mubr.msk.bf16.mxu1 %vm13416_vm10, %v19299_v20 }
0x18ea   :  { %12601 = vmatmul.mubr.msk.bf16.vlgmr.msra.gmra.mrb[160].mxu1 %vm105_vm7, %v18414_v53 }
0x18eb   :  { %12604 = vmatprep.mubr.msk.bf16.mxu1 %vm13416_vm10, %v19299_v20 }
0x18f2   :  { %12605 = vmatmul.mubr.msk.bf16.gmra.mrb[164].mxu1 %vm105_vm7, %v18423_v11 }
0x18f3   :  { %12608 = vmatprep.mubr.msk.bf16.mxu1 %vm13416_vm10, %v19299_v20 }
0x18fa   :  { %12609 = vmatmul.mubr.msk.bf16.gmra.mrb[168].mxu1 %vm105_vm7, %v18432_v21 }
0x18fb   :  { %12656 = vmatprep.mubr.msk.f32.mxu1 %vm105_vm7, %v18297_v56 }
0x19b1   :  { %v8497_v9 = vpop.f32.mrb[152].mxu1 }
0x19b2   :  { %v8511_v52 = vmul.f32 %v8497_v9, %v8331_v2  ;;  %v12589_v28 = vpop.f32.mrb[153].mxu1 }
0x19b4   :  { %v18639_v37 = vadd.f32 %v8511_v52, %v18578_v3 }
0x19b5   :  { %v8502_v40 = vpop.f32.mrb[154].mxu1 }
0x19b6   :  { %v8512_v58 = vmul.f32 %v8502_v40, %v8336_v48  ;;  %v12592_v30 = vpop.f32.mrb[155].mxu1 }
0x19b8   :  { %v18643_v61 = vadd.f32 %v8512_v58, %v18582_v13 }
0x19b9   :  { %v8507_v8 = vpop.f32.mrb[156].mxu1 }
0x19ba   :  { %v8513_v7 = vmul.f32 %v8507_v8, %v8339_v10  ;;  %v12595_v14 = vpop.f32.mrb[157].mxu1 }
0x19bc   :  { %v18646_v19 = vadd.f32 %v8513_v7, %v18585_v34 }
0x19bd   :  { %v8551_v4 = vpop.f32.mrb[160].mxu1 }
0x19be   :  { %v8552_v60 = vadd.f32 %v8551_v4, %v17960_v43  ;;  %v12602_v57 = vpop.f32.mrb[161].mxu1  ;;  %v19308_v4 = vld [vmem:[#allocation9_spill] sm:$0xff] }
0x19bf   :  { %v8554_v3 = vpop.f32.mrb[162].mxu1 }
0x19c0   :  { %v8555_v32 = vadd.f32 %v8554_v3, %v17963_v0  ;;  %v12603_v42 = vpop.f32.mrb[163].mxu1  ;;  %v8574_v41 = vmul.f32 %v8552_v60, %v16119_v17 }
0x19c2   :  { %v8575_v24 = vmul.f32 %v8555_v32, %v16124_v50 }
0x19c4   :  { %v13091_v13 = vpack.c.bf16 %v8575_v24, %v8574_v41 }
0x19c5   :  { %v8559_v54 = vpop.f32.mrb[164].mxu1 }
0x19c6   :  { %v8560_v22 = vadd.f32 %v8559_v54, %v17969_v46  ;;  %v12606_v38 = vpop.f32.mrb[165].mxu1  ;;  %13092 = vmatprep.subr.bf16.mxu0 %v13091_v13 }
0x19c7   :  { %v8562_v34 = vpop.f32.mrb[166].mxu1  ;;  %13094 = vmatpush3.bf16.msra.mxu0 %v13091_v13 }
0x19c8   :  { %v8576_v33 = vmul.f32 %v8560_v22, %v16127_v35  ;;  %v12607_v55 = vpop.f32.mrb[167].mxu1 }
0x19ca   :  { %12616 = vmatprep.subr.mxu0 %v8576_v33 }
0x19cb   :  { %12617 = vmatpush3.msra.mxu0 %v8576_v33 }
0x19cc   :  { %12619 = vmatmul.mubr.msk.f32.vlgmr.msra.gmra.mrb[142].mxu0 %vm105_vm7, %v18251_v45  ;;  %13095 = vmatprep.subr.bf16.mxu0 %v19300_v27 }
0x19cd   :  { %v8567_v39 = vpop.f32.mrb[168].mxu1  ;;  %12625 = vmatprep.mubr.msk.f32.mxu0 %vm13416_vm10, %v19299_v20 }
0x19ce   :  { %v12610_v62 = vpop.f32.mrb[169].mxu1  ;;  %v8568_v32 = vadd.f32 %v8567_v39, %v18070_v16 }
0x19cf   :  { %v8570_v59 = vpop.f32.mrb[170].mxu1 }
0x19d0   :  { %v12611_v2 = vpop.f32.mrb[171].mxu1  ;;  %v8571_v54 = vadd.f32 %v8570_v59, %v18075_v51 }
0x1a9f   :  { %v12620_v9 = vpop.f32.mrb[142].mxu0 }
0x1aa0   :  { %v8653_v52 = vsub.f32 %v12620_v9, %v17986_v29  ;;  %v8643_v28 = vpop.f32.mrb[143].mxu0 }
0x1aa1   :  { %v8652_v48 = vsub.f32 %v8643_v28, %v17988_v6 }
0x1aa2   :  { %v8656_v40 = vmul.f32 1.442695, %v8653_v52 }
0x1aa3   :  { %v8654_v58 = vmul.f32 1.442695, %v8652_v48 }
0x1aa4   :  { %13338 = vpow2.f32 %v8656_v40 }
0x1aa5   :  { %13340 = vpow2.f32 %v8654_v58 }
0x1aae   :  { %v13339_v30 = vpop.eup %13338 }
0x1aaf   :  { %v13341_v10 = vpop.eup %13340  ;;  %v18662_v8 = vadd.f32 %v13339_v30, %v18601_v36  ;;  %v19309_v36 = vld [vmem:[#allocation10_spill] sm:$0xff] }
0x1ab0   :  { %v18665_v7 = vadd.f32 %v13341_v10, %v18604_v63  ;;  %v13096_v14 = vpack.c.bf16 %v13339_v30, %v13341_v10  ;;  %v8563_v63 = vadd.f32 %v8562_v34, %v18064_v31 }
0x1ab2   :  { %13098 = vmatpush3.bf16.msk.msra.mxu0 %vm17997_vm12, %v13096_v14 }
0x1ab3   :  { %12634 = vmatprep.subr.bf16.mxu0 %v19299_v20 }
0x1ab5   :  { %12626 = vmatmul.mubr.msk.f32.vlgmr.msra.gmra.mrb[156].mxu0 %vm6330_vm13, %v18536_v5 }
0x1ab6   :  { %12635 = vmatpush3.bf16.msra.mxu0 %v19308_v4  ;;  %12628 = vmatprep.mubr.msk.f32.mxu0 %vm13416_vm10, %v19299_v20 }
0x1ab7   :  { %12636 = vmatprep.subr.bf16.mxu0 %v19299_v20 }
0x1ab9   :  { %12629 = vmatmul.mubr.msk.f32.gmra.mrb[158].mxu0 %vm6330_vm13, %v18547_v25 }
0x1aba   :  { %12637 = vmatpush3.bf16.msra.mxu0 %v19309_v36  ;;  %12631 = vmatprep.mubr.msk.f32.mxu0 %vm13416_vm10, %v19299_v20 }
0x1abd   :  { %12632 = vmatmul.mubr.msk.f32.gmra.mrb[160].mxu0 %vm6330_vm13, %v18557_v26 }
0x1abe   :  { %12638 = vmatprep.mubr.msk.bf16.mxu0 %vm13416_vm10, %v19299_v20 }
0x1ac1   :  { %12639 = vmatmul.mubr.msk.bf16.vlgmr.msra.gmra.mrb[164].mxu0 %vm105_vm7, %v18414_v53 }
0x1ac2   :  { %12642 = vmatprep.mubr.msk.bf16.mxu0 %vm13416_vm10, %v19299_v20 }
0x1ac9   :  { %12643 = vmatmul.mubr.msk.bf16.gmra.mrb[168].mxu0 %vm105_vm7, %v18423_v11 }
0x1aca   :  { %12646 = vmatprep.mubr.msk.bf16.mxu0 %vm13416_vm10, %v19299_v20 }
0x1ad1   :  { %12647 = vmatmul.mubr.msk.bf16.gmra.mrb[172].mxu0 %vm105_vm7, %v18432_v21 }
0x1ad2   :  { %12694 = vmatprep.mubr.msk.f32.mxu0 %vm105_vm7, %v18297_v56 }
0x1b88   :  { %v8729_v60 = vpop.f32.mrb[156].mxu0 }
0x1b89   :  { %v8743_v57 = vmul.f32 %v8729_v60, %v8563_v63  ;;  %v12627_v3 = vpop.f32.mrb[157].mxu0 }
0x1b8b   :  { %v18700_v42 = vadd.f32 %v8743_v57, %v18639_v37 }
0x1b8c   :  { %v8734_v41 = vpop.f32.mrb[158].mxu0 }
0x1b8d   :  { %v8744_v24 = vmul.f32 %v8734_v41, %v8568_v32  ;;  %v12630_v13 = vpop.f32.mrb[159].mxu0 }
0x1b8f   :  { %v18704_v22 = vadd.f32 %v8744_v24, %v18643_v61 }
0x1b90   :  { %v8739_v38 = vpop.f32.mrb[160].mxu0 }
0x1b91   :  { %v8745_v33 = vmul.f32 %v8739_v38, %v8571_v54  ;;  %v12633_v55 = vpop.f32.mrb[161].mxu0 }
0x1b92   :  { %v19310_v55 = vld [vmem:[#allocation11_spill] sm:$0xff] }
0x1b93   :  { %v18707_v34 = vadd.f32 %v8745_v33, %v18646_v19 }
0x1b94   :  { %v8783_v62 = vpop.f32.mrb[164].mxu0 }
0x1b95   :  { %v8784_v39 = vadd.f32 %v8783_v62, %v17960_v43  ;;  %v12640_v2 = vpop.f32.mrb[165].mxu0 }
0x1b96   :  { %v8786_v37 = vpop.f32.mrb[166].mxu0 }
0x1b97   :  { %v8787_v9 = vadd.f32 %v8786_v37, %v17963_v0  ;;  %v12641_v52 = vpop.f32.mrb[167].mxu0  ;;  %v8806_v28 = vmul.f32 %v8784_v39, %v16119_v17 }
0x1b99   :  { %v8807_v59 = vmul.f32 %v8787_v9, %v16124_v50 }
0x1b9b   :  { %v13099_v61 = vpack.c.bf16 %v8807_v59, %v8806_v28 }
0x1b9c   :  { %v8791_v48 = vpop.f32.mrb[168].mxu0 }
0x1b9d   :  { %v8792_v40 = vadd.f32 %v8791_v48, %v17969_v46  ;;  %v12644_v58 = vpop.f32.mrb[169].mxu0  ;;  %13100 = vmatprep.subr.bf16.mxu1 %v13099_v61 }
0x1b9e   :  { %v8794_v19 = vpop.f32.mrb[170].mxu0  ;;  %13102 = vmatpush3.bf16.msra.mxu1 %v13099_v61 }
0x1b9f   :  { %v8808_v30 = vmul.f32 %v8792_v40, %v16127_v35  ;;  %v12645_v10 = vpop.f32.mrb[171].mxu0 }
0x1ba1   :  { %12654 = vmatprep.subr.mxu1 %v8808_v30 }
0x1ba2   :  { %12655 = vmatpush3.msra.mxu1 %v8808_v30 }
0x1ba3   :  { %12657 = vmatmul.mubr.msk.f32.vlgmr.msra.gmra.mrb[158].mxu1 %vm105_vm7, %v18251_v45  ;;  %13103 = vmatprep.subr.bf16.mxu1 %v19300_v27 }
0x1ba4   :  { %v8799_v14 = vpop.f32.mrb[172].mxu0  ;;  %12663 = vmatprep.mubr.msk.f32.mxu1 %vm13416_vm10, %v19299_v20 }
0x1ba5   :  { %v12648_v4 = vpop.f32.mrb[173].mxu0  ;;  %v8800_v37 = vadd.f32 %v8799_v14, %v18070_v16 }
0x1ba6   :  { %v8802_v36 = vpop.f32.mrb[174].mxu0 }
0x1ba7   :  { %v12649_v63 = vpop.f32.mrb[175].mxu0  ;;  %v8803_v61 = vadd.f32 %v8802_v36, %v18075_v51 }
0x1c76   :  { %v12658_v60 = vpop.f32.mrb[158].mxu1 }
0x1c77   :  { %v8885_v57 = vsub.f32 %v12658_v60, %v17986_v29  ;;  %v8875_v3 = vpop.f32.mrb[159].mxu1 }
0x1c78   :  { %v8884_v32 = vsub.f32 %v8875_v3, %v17988_v6 }
0x1c79   :  { %v8888_v41 = vmul.f32 1.442695, %v8885_v57 }
0x1c7a   :  { %v8886_v24 = vmul.f32 1.442695, %v8884_v32 }
0x1c7b   :  { %13342 = vpow2.f32 %v8888_v41 }
0x1c7c   :  { %13344 = vpow2.f32 %v8886_v24 }
0x1c85   :  { %v13343_v45 = vpop.eup %13342 }
0x1c86   :  { %v13345_v13 = vpop.eup %13344  ;;  %v18723_v54 = vadd.f32 %v13343_v45, %v18662_v8  ;;  %v19311_v8 = vld [vmem:[#allocation12_spill] sm:$0xff] }
0x1c87   :  { %v18726_v38 = vadd.f32 %v13345_v13, %v18665_v7  ;;  %v13104_v33 = vpack.c.bf16 %v13343_v45, %v13345_v13  ;;  %v8795_v7 = vadd.f32 %v8794_v19, %v18064_v31  ;;  %v18779_v45 = vld [vmem:[%s19247_s9 + $0x8] sm:$0xf] }
0x1c89   :  { %13106 = vmatpush3.bf16.msk.msra.mxu1 %vm17997_vm12, %v13104_v33 }
0x1c8a   :  { %12672 = vmatprep.subr.bf16.mxu1 %v19299_v20 }
0x1c8c   :  { %12664 = vmatmul.mubr.msk.f32.vlgmr.msra.gmra.mrb[172].mxu1 %vm6330_vm13, %v18536_v5 }
0x1c8d   :  { %12673 = vmatpush3.bf16.msra.mxu1 %v19310_v55  ;;  %12666 = vmatprep.mubr.msk.f32.mxu1 %vm13416_vm10, %v19299_v20 }
0x1c8e   :  { %12674 = vmatprep.subr.bf16.mxu1 %v19299_v20 }
0x1c90   :  { %12667 = vmatmul.mubr.msk.f32.gmra.mrb[174].mxu1 %vm6330_vm13, %v18547_v25 }
0x1c91   :  { %12675 = vmatpush3.bf16.msra.mxu1 %v19311_v8  ;;  %12669 = vmatprep.mubr.msk.f32.mxu1 %vm13416_vm10, %v19299_v20 }
0x1c94   :  { %12670 = vmatmul.mubr.msk.f32.gmra.mrb[176].mxu1 %vm6330_vm13, %v18557_v26 }
0x1c95   :  { %12676 = vmatprep.mubr.msk.bf16.mxu1 %vm13416_vm10, %v19299_v20 }
0x1c98   :  { %12677 = vmatmul.mubr.msk.bf16.vlgmr.msra.gmra.mrb[180].mxu1 %vm105_vm7, %v18414_v53 }
0x1c99   :  { %12680 = vmatprep.mubr.msk.bf16.mxu1 %vm13416_vm10, %v19299_v20 }
0x1ca0   :  { %12681 = vmatmul.mubr.msk.bf16.gmra.mrb[184].mxu1 %vm105_vm7, %v18423_v11 }
0x1ca1   :  { %12684 = vmatprep.mubr.msk.bf16.mxu1 %vm13416_vm10, %v19299_v20 }
0x1ca8   :  { %12685 = vmatmul.mubr.msk.bf16.gmra.mrb[188].mxu1 %vm105_vm7, %v18432_v21 }
0x1ca9   :  { %12732 = vmatprep.mubr.msk.f32.mxu1 %vm105_vm7, %v18297_v56 }
0x1d5f   :  { %v8961_v62 = vpop.f32.mrb[172].mxu1 }
0x1d60   :  { %v8975_v39 = vmul.f32 %v8961_v62, %v8795_v7  ;;  %v12665_v2 = vpop.f32.mrb[173].mxu1 }
0x1d62   :  { %v18761_v9 = vadd.f32 %v8975_v39, %v18700_v42 }
0x1d63   :  { %v8966_v52 = vpop.f32.mrb[174].mxu1 }
0x1d64   :  { %v8976_v28 = vmul.f32 %v8966_v52, %v8800_v37  ;;  %v12668_v59 = vpop.f32.mrb[175].mxu1 }
0x1d66   :  { %v18765_v48 = vadd.f32 %v8976_v28, %v18704_v22 }
0x1d67   :  { %v8971_v40 = vpop.f32.mrb[176].mxu1 }
0x1d68   :  { %v8977_v56 = vmul.f32 %v8971_v40, %v8803_v61  ;;  %v12671_v58 = vpop.f32.mrb[177].mxu1 }
0x1d6a   :  { %v18768_v19 = vadd.f32 %v8977_v56, %v18707_v34 }
0x1d6b   :  { %v9015_v30 = vpop.f32.mrb[180].mxu1 }
0x1d6c   :  { %v9016_v10 = vadd.f32 %v9015_v30, %v17960_v43  ;;  %v12678_v14 = vpop.f32.mrb[181].mxu1 }
0x1d6d   :  { %v9018_v42 = vpop.f32.mrb[182].mxu1 }
0x1d6e   :  { %v9019_v4 = vadd.f32 %v9018_v42, %v17963_v0  ;;  %v12679_v63 = vpop.f32.mrb[183].mxu1  ;;  %v9038_v60 = vmul.f32 %v9016_v10, %v16119_v17 }
0x1d70   :  { %v9039_v36 = vmul.f32 %v9019_v4, %v16124_v50 }
0x1d72   :  { %v13107_v22 = vpack.c.bf16 %v9039_v36, %v9038_v60 }
0x1d73   :  { %v9023_v57 = vpop.f32.mrb[184].mxu1 }
0x1d74   :  { %v9024_v3 = vadd.f32 %v9023_v57, %v17969_v46  ;;  %v12682_v32 = vpop.f32.mrb[185].mxu1  ;;  %13108 = vmatprep.subr.bf16.mxu0 %v13107_v22 }
0x1d75   :  { %v9026_v34 = vpop.f32.mrb[186].mxu1  ;;  %13110 = vmatpush3.bf16.msra.mxu0 %v13107_v22 }
0x1d76   :  { %v9040_v41 = vmul.f32 %v9024_v3, %v16127_v35  ;;  %v12683_v24 = vpop.f32.mrb[187].mxu1 }
0x1d78   :  { %12692 = vmatprep.subr.mxu0 %v9040_v41 }
0x1d79   :  { %12693 = vmatpush3.msra.mxu0 %v9040_v41 }
0x1d7a   :  { %12695 = vmatmul.mubr.msk.f32.vlgmr.msra.gmra.mrb[162].mxu0 %vm105_vm7, %v18779_v45  ;;  %13111 = vmatprep.subr.bf16.mxu0 %v19300_v27 }
0x1d7b   :  { %v9031_v13 = vpop.f32.mrb[188].mxu1  ;;  %12701 = vmatprep.mubr.msk.f32.mxu0 %vm13416_vm10, %v19299_v20 }
0x1d7c   :  { %v12686_v33 = vpop.f32.mrb[189].mxu1  ;;  %v9032_v30 = vadd.f32 %v9031_v13, %v18070_v16 }
0x1d7d   :  { %v9034_v55 = vpop.f32.mrb[190].mxu1 }
0x1d7e   :  { %v12687_v8 = vpop.f32.mrb[191].mxu1  ;;  %v9035_v63 = vadd.f32 %v9034_v55, %v18075_v51 }
0x1e4d   :  { %v12696_v7 = vpop.f32.mrb[162].mxu0 }
0x1e4e   :  { %v9117_v62 = vsub.f32 %v12696_v7, %v17986_v29  ;;  %v9107_v39 = vpop.f32.mrb[163].mxu0 }
0x1e4f   :  { %v9116_v2 = vsub.f32 %v9107_v39, %v17988_v6 }
0x1e50   :  { %v9120_v37 = vmul.f32 1.442695, %v9117_v62 }
0x1e51   :  { %v9118_v52 = vmul.f32 1.442695, %v9116_v2 }
0x1e52   :  { %13346 = vpow2.f32 %v9120_v37 }
0x1e53   :  { %13348 = vpow2.f32 %v9118_v52 }
0x1e5c   :  { %v13347_v28 = vpop.eup %13346 }
0x1e5d   :  { %v13349_v59 = vpop.eup %13348  ;;  %v18789_v61 = vadd.f32 %v13347_v28, %v18723_v54 }
0x1e5e   :  { %v18792_v40 = vadd.f32 %v13349_v59, %v18726_v38  ;;  %v13112_v56 = vpack.c.bf16 %v13347_v28, %v13349_v59 }
0x1e60   :  { %13114 = vmatpush3.bf16.msk.msra.mxu0 %vm17997_vm12, %v13112_v56 }
0x1e61   :  { %12710 = vmatprep.subr.bf16.mxu0 %v19299_v20 }
0x1e63   :  { %12702 = vmatmul.mubr.msk.f32.vlgmr.msra.gmra.mrb[176].mxu0 %vm6330_vm13, %v18536_v5 }
0x1e64   :  { %12711 = vmatpush3.bf16.msra.mxu0 %v17479_v49  ;;  %12704 = vmatprep.mubr.msk.f32.mxu0 %vm13416_vm10, %v19299_v20  ;;  %v18825_v49 = vld [vmem:[%s19247_s9] sm:$0xff] }
0x1e65   :  { %12712 = vmatprep.subr.bf16.mxu0 %v19299_v20 }
0x1e67   :  { %12705 = vmatmul.mubr.msk.f32.gmra.mrb[178].mxu0 %vm6330_vm13, %v18547_v25 }
0x1e68   :  { %12713 = vmatpush3.bf16.msra.mxu0 %v17495_v44  ;;  %12707 = vmatprep.mubr.msk.f32.mxu0 %vm13416_vm10, %v19299_v20  ;;  %v9027_v44 = vadd.f32 %v9026_v34, %v18064_v31 }
0x1e6b   :  { %12708 = vmatmul.mubr.msk.f32.gmra.mrb[180].mxu0 %vm6330_vm13, %v18557_v26 }
0x1e6c   :  { %12714 = vmatprep.mubr.msk.bf16.mxu0 %vm13416_vm10, %v19299_v20 }
0x1e6f   :  { %12715 = vmatmul.mubr.msk.bf16.vlgmr.msra.gmra.mrb[184].mxu0 %vm105_vm7, %v18414_v53 }
0x1e70   :  { %12718 = vmatprep.mubr.msk.bf16.mxu0 %vm13416_vm10, %v19299_v20 }
0x1e77   :  { %12719 = vmatmul.mubr.msk.bf16.gmra.mrb[188].mxu0 %vm105_vm7, %v18423_v11 }
0x1e78   :  { %12722 = vmatprep.mubr.msk.bf16.mxu0 %vm13416_vm10, %v19299_v20 }
0x1e7f   :  { %12723 = vmatmul.mubr.msk.bf16.gmra.mrb[192].mxu0 %vm105_vm7, %v18432_v21 }
0x1e80   :  { %12770 = vmatprep.mubr.msk.f32.mxu0 %vm105_vm7, %v18825_v49 }
0x1f36   :  { %v9193_v54 = vpop.f32.mrb[176].mxu0 }
0x1f37   :  { %v9207_v38 = vmul.f32 %v9193_v54, %v9027_v44  ;;  %v12703_v58 = vpop.f32.mrb[177].mxu0 }
0x1f39   :  { %v18832_v10 = vadd.f32 %v9207_v38, %v18761_v9 }
0x1f3a   :  { %v9198_v14 = vpop.f32.mrb[178].mxu0 }
0x1f3b   :  { %v9208_v42 = vmul.f32 %v9198_v14, %v9032_v30  ;;  %v12706_v4 = vpop.f32.mrb[179].mxu0 }
0x1f3d   :  { %v18836_v60 = vadd.f32 %v9208_v42, %v18765_v48 }
0x1f3e   :  { %v9203_v36 = vpop.f32.mrb[180].mxu0 }
0x1f3f   :  { %v9209_v22 = vmul.f32 %v9203_v36, %v9035_v63  ;;  %v12709_v57 = vpop.f32.mrb[181].mxu0 }
0x1f41   :  { %v18839_v3 = vadd.f32 %v9209_v22, %v18768_v19  ;;  %v19312_v22 = vld [vmem:[#allocation13_spill] sm:$0xff] }
0x1f42   :  { %v9247_v32 = vpop.f32.mrb[184].mxu0 }
0x1f43   :  { %v9248_v34 = vadd.f32 %v9247_v32, %v17960_v43  ;;  %v12716_v41 = vpop.f32.mrb[185].mxu0 }
0x1f44   :  { %v9250_v9 = vpop.f32.mrb[186].mxu0 }
0x1f45   :  { %v9251_v24 = vadd.f32 %v9250_v9, %v17963_v0  ;;  %v12717_v13 = vpop.f32.mrb[187].mxu0  ;;  %v9270_v33 = vmul.f32 %v9248_v34, %v16119_v17 }
0x1f47   :  { %v9271_v55 = vmul.f32 %v9251_v24, %v16124_v50 }
0x1f49   :  { %v13115_v48 = vpack.c.bf16 %v9271_v55, %v9270_v33 }
0x1f4a   :  { %v9255_v8 = vpop.f32.mrb[188].mxu0 }
0x1f4b   :  { %v9256_v7 = vadd.f32 %v9255_v8, %v17969_v46  ;;  %v12720_v62 = vpop.f32.mrb[189].mxu0  ;;  %13116 = vmatprep.subr.bf16.mxu1 %v13115_v48 }
0x1f4c   :  { %v9258_v19 = vpop.f32.mrb[190].mxu0  ;;  %13118 = vmatpush3.bf16.msra.mxu1 %v13115_v48 }
0x1f4d   :  { %v9272_v39 = vmul.f32 %v9256_v7, %v16127_v35  ;;  %v12721_v2 = vpop.f32.mrb[191].mxu0 }
0x1f4f   :  { %12730 = vmatprep.subr.mxu1 %v9272_v39 }
0x1f50   :  { %12731 = vmatpush3.msra.mxu1 %v9272_v39 }
0x1f51   :  { %12733 = vmatmul.mubr.msk.f32.vlgmr.msra.gmra.mrb[178].mxu1 %vm105_vm7, %v18779_v45  ;;  %13119 = vmatprep.subr.bf16.mxu1 %v19300_v27 }
0x1f52   :  { %v9263_v37 = vpop.f32.mrb[192].mxu0  ;;  %12739 = vmatprep.mubr.msk.f32.mxu1 %vm13416_vm10, %v19299_v20 }
0x1f53   :  { %v12724_v52 = vpop.f32.mrb[193].mxu0  ;;  %v9264_v34 = vadd.f32 %v9263_v37, %v18070_v16 }
0x1f54   :  { %v9266_v28 = vpop.f32.mrb[194].mxu0 }
0x1f55   :  { %v12725_v59 = vpop.f32.mrb[195].mxu0  ;;  %v9267_v13 = vadd.f32 %v9266_v28, %v18075_v51 }
0x2024   :  { %v12734_v56 = vpop.f32.mrb[178].mxu1 }
0x2025   :  { %v9349_v44 = vsub.f32 %v12734_v56, %v17986_v29  ;;  %v9339_v54 = vpop.f32.mrb[179].mxu1 }
0x2026   :  { %v9348_v38 = vsub.f32 %v9339_v54, %v17988_v6 }
0x2027   :  { %v9352_v58 = vmul.f32 1.442695, %v9349_v44 }
0x2028   :  { %v9350_v30 = vmul.f32 1.442695, %v9348_v38 }
0x2029   :  { %13350 = vpow2.f32 %v9352_v58 }
0x202a   :  { %13352 = vpow2.f32 %v9350_v30 }
0x2033   :  { %v13351_v14 = vpop.eup %13350 }
0x2034   :  { %v13353_v42 = vpop.eup %13352  ;;  %v18855_v4 = vadd.f32 %v13351_v14, %v18789_v61  ;;  %v19313_v61 = vld [vmem:[#allocation14_spill] sm:$0xff] }
0x2035   :  { %v18858_v63 = vadd.f32 %v13353_v42, %v18792_v40  ;;  %v13120_v36 = vpack.c.bf16 %v13351_v14, %v13353_v42  ;;  %v9259_v40 = vadd.f32 %v9258_v19, %v18064_v31 }
0x2037   :  { %13122 = vmatpush3.bf16.msk.msra.mxu1 %vm17997_vm12, %v13120_v36 }
0x2038   :  { %12748 = vmatprep.subr.bf16.mxu1 %v19299_v20 }
0x203a   :  { %12740 = vmatmul.mubr.msk.f32.vlgmr.msra.gmra.mrb[192].mxu1 %vm6330_vm13, %v18536_v5 }
0x203b   :  { %12749 = vmatpush3.bf16.msra.mxu1 %v19312_v22  ;;  %12742 = vmatprep.mubr.msk.f32.mxu1 %vm13416_vm10, %v19299_v20 }
0x203c   :  { %12750 = vmatprep.subr.bf16.mxu1 %v19299_v20 }
0x203e   :  { %12743 = vmatmul.mubr.msk.f32.gmra.mrb[194].mxu1 %vm6330_vm13, %v18547_v25 }
0x203f   :  { %12751 = vmatpush3.bf16.msra.mxu1 %v19313_v61  ;;  %12745 = vmatprep.mubr.msk.f32.mxu1 %vm13416_vm10, %v19299_v20 }
0x2042   :  { %12746 = vmatmul.mubr.msk.f32.gmra.mrb[196].mxu1 %vm6330_vm13, %v18557_v26 }
0x2043   :  { %12752 = vmatprep.mubr.msk.bf16.mxu1 %vm13416_vm10, %v19299_v20 }
0x2046   :  { %12753 = vmatmul.mubr.msk.bf16.vlgmr.msra.gmra.mrb[200].mxu1 %vm105_vm7, %v18414_v53 }
0x2047   :  { %12756 = vmatprep.mubr.msk.bf16.mxu1 %vm13416_vm10, %v19299_v20 }
0x204e   :  { %12757 = vmatmul.mubr.msk.bf16.gmra.mrb[204].mxu1 %vm105_vm7, %v18423_v11 }
0x204f   :  { %12760 = vmatprep.mubr.msk.bf16.mxu1 %vm13416_vm10, %v19299_v20 }
0x2056   :  { %12761 = vmatmul.mubr.msk.bf16.gmra.mrb[208].mxu1 %vm105_vm7, %v18432_v21 }
0x2057   :  { %12808 = vmatprep.mubr.msk.f32.mxu1 %vm105_vm7, %v18825_v49 }
0x210d   :  { %v9425_v57 = vpop.f32.mrb[192].mxu1 }
0x210e   :  { %v9439_v32 = vmul.f32 %v9425_v57, %v9259_v40  ;;  %v12741_v53 = vpop.f32.mrb[193].mxu1 }
0x2110   :  { %v18893_v41 = vadd.f32 %v9439_v32, %v18832_v10 }
0x2111   :  { %v9430_v11 = vpop.f32.mrb[194].mxu1 }
0x2112   :  { %v9440_v9 = vmul.f32 %v9430_v11, %v9264_v34  ;;  %v12744_v24 = vpop.f32.mrb[195].mxu1 }
0x2114   :  { %v18897_v21 = vadd.f32 %v9440_v9, %v18836_v60 }
0x2115   :  { %v9435_v33 = vpop.f32.mrb[196].mxu1 }
0x2116   :  { %v9441_v55 = vmul.f32 %v9435_v33, %v9267_v13  ;;  %v12747_v48 = vpop.f32.mrb[197].mxu1 }
0x2118   :  { %v18900_v8 = vadd.f32 %v9441_v55, %v18839_v3 }
0x2119   :  { %v9479_v7 = vpop.f32.mrb[200].mxu1 }
0x211a   :  { %v9480_v62 = vadd.f32 %v9479_v7, %v17960_v43  ;;  %v12754_v19 = vpop.f32.mrb[201].mxu1 }
0x211b   :  { %v9482_v10 = vpop.f32.mrb[202].mxu1 }
0x211c   :  { %v9483_v39 = vadd.f32 %v9482_v10, %v17963_v0  ;;  %v12755_v2 = vpop.f32.mrb[203].mxu1  ;;  %v9502_v37 = vmul.f32 %v9480_v62, %v16119_v17 }
0x211e   :  { %v9503_v52 = vmul.f32 %v9483_v39, %v16124_v50 }
0x2120   :  { %v13123_v60 = vpack.c.bf16 %v9503_v52, %v9502_v37 }
0x2121   :  { %v9487_v28 = vpop.f32.mrb[204].mxu1 }
0x2122   :  { %v9488_v59 = vadd.f32 %v9487_v28, %v17969_v46  ;;  %v12758_v56 = vpop.f32.mrb[205].mxu1  ;;  %13124 = vmatprep.subr.bf16.mxu0 %v13123_v60 }
0x2123   :  { %v9490_v3 = vpop.f32.mrb[206].mxu1  ;;  %13126 = vmatpush3.bf16.msra.mxu0 %v13123_v60 }
0x2124   :  { %v9504_v44 = vmul.f32 %v9488_v59, %v16127_v35  ;;  %v12759_v54 = vpop.f32.mrb[207].mxu1 }
0x2126   :  { %12768 = vmatprep.subr.mxu0 %v9504_v44 }
0x2127   :  { %12769 = vmatpush3.msra.mxu0 %v9504_v44 }
0x2128   :  { %12771 = vmatmul.mubr.msk.f32.vlgmr.msra.gmra.mrb[182].mxu0 %vm105_vm7, %v18779_v45  ;;  %13127 = vmatprep.subr.bf16.mxu0 %v19300_v27 }
0x2129   :  { %v9495_v38 = vpop.f32.mrb[208].mxu1  ;;  %12777 = vmatprep.mubr.msk.f32.mxu0 %vm13416_vm10, %v19299_v20 }
0x212a   :  { %v12762_v58 = vpop.f32.mrb[209].mxu1  ;;  %v9496_v55 = vadd.f32 %v9495_v38, %v18070_v16 }
0x212b   :  { %v9498_v30 = vpop.f32.mrb[210].mxu1 }
0x212c   :  { %v12763_v14 = vpop.f32.mrb[211].mxu1  ;;  %v9499_v10 = vadd.f32 %v9498_v30, %v18075_v51 }
0x21fb   :  { %v12772_v42 = vpop.f32.mrb[182].mxu0 }
0x21fc   :  { %v9581_v36 = vsub.f32 %v12772_v42, %v17986_v29  ;;  %v9571_v22 = vpop.f32.mrb[183].mxu0 }
0x21fd   :  { %v9580_v61 = vsub.f32 %v9571_v22, %v17988_v6 }
0x21fe   :  { %v9584_v40 = vmul.f32 1.442695, %v9581_v36 }
0x21ff   :  { %v9582_v57 = vmul.f32 1.442695, %v9580_v61 }
0x2200   :  { %13354 = vpow2.f32 %v9584_v40 }
0x2201   :  { %13356 = vpow2.f32 %v9582_v57 }
0x220a   :  { %v13355_v32 = vpop.eup %13354 }
0x220b   :  { %v13357_v53 = vpop.eup %13356  ;;  %v18916_v34 = vadd.f32 %v13355_v32, %v18855_v4  ;;  %v18960_v4 = vld [vmem:[%s19248_s7 + $0x10] sm:$0xff]  }
0x220c   :  { %v18919_v11 = vadd.f32 %v13357_v53, %v18858_v63  ;;  %v13128_v9 = vpack.c.bf16 %v13355_v32, %v13357_v53  ;;  %v9491_v63 = vadd.f32 %v9490_v3, %v18064_v31 }
0x220e   :  { %13130 = vmatpush3.bf16.msk.msra.mxu0 %vm17997_vm12, %v13128_v9 }
0x220f   :  { %12786 = vmatprep.subr.bf16.mxu0 %v19299_v20 }
0x2211   :  { %12778 = vmatmul.mubr.msk.f32.vlgmr.msra.gmra.mrb[196].mxu0 %vm6330_vm13, %v18536_v5 }
0x2212   :  { %12787 = vmatpush3.bf16.msra.mxu0 %v17746_v47  ;;  %12780 = vmatprep.mubr.msk.f32.mxu0 %vm13416_vm10, %v19299_v20  ;;  %v18942_v47 = vld [vmem:[%s19248_s7] sm:$0xff]  }
0x2213   :  { %12788 = vmatprep.subr.bf16.mxu0 %v19299_v20 }
0x2215   :  { %12781 = vmatmul.mubr.msk.f32.gmra.mrb[198].mxu0 %vm6330_vm13, %v18547_v25 }
0x2216   :  { %12789 = vmatpush3.bf16.msra.mxu0 %v17762_v12  ;;  %12783 = vmatprep.mubr.msk.f32.mxu0 %vm13416_vm10, %v19299_v20  ;;  %v18951_v12 = vld [vmem:[%s19248_s7 + $0x8] sm:$0xff]  }
0x2219   :  { %12784 = vmatmul.mubr.msk.f32.gmra.mrb[200].mxu0 %vm6330_vm13, %v18557_v26 }
0x221a   :  { %12790 = vmatprep.mubr.msk.bf16.mxu0 %vm13416_vm10, %v19299_v20 }
0x221d   :  { %12791 = vmatmul.mubr.msk.bf16.vlgmr.msra.gmra.mrb[204].mxu0 %vm105_vm7, %v18942_v47 }
0x221e   :  { %12794 = vmatprep.mubr.msk.bf16.mxu0 %vm13416_vm10, %v19299_v20 }
0x2225   :  { %12795 = vmatmul.mubr.msk.bf16.gmra.mrb[208].mxu0 %vm105_vm7, %v18951_v12 }
0x2226   :  { %12798 = vmatprep.mubr.msk.bf16.mxu0 %vm13416_vm10, %v19299_v20 }
0x222d   :  { %12799 = vmatmul.mubr.msk.bf16.gmra.mrb[212].mxu0 %vm105_vm7, %v18960_v4 }
0x222e   :  { %12846 = vmatprep.mubr.msk.f32.mxu0 %vm105_vm7, %v18825_v49 }
0x22e4   :  { %v9657_v24 = vpop.f32.mrb[196].mxu0 }
0x22e5   :  { %v9671_v13 = vmul.f32 %v9657_v24, %v9491_v63  ;;  %v12779_v33 = vpop.f32.mrb[197].mxu0 }
0x22e7   :  { %v18969_v48 = vadd.f32 %v9671_v13, %v18893_v41 }
0x22e8   :  { %v9662_v7 = vpop.f32.mrb[198].mxu0 }
0x22e9   :  { %v9672_v62 = vmul.f32 %v9662_v7, %v9496_v55  ;;  %v12782_v19 = vpop.f32.mrb[199].mxu0 }
0x22eb   :  { %v18973_v39 = vadd.f32 %v9672_v62, %v18897_v21 }
0x22ec   :  { %v9667_v2 = vpop.f32.mrb[200].mxu0 }
0x22ed   :  { %v9673_v37 = vmul.f32 %v9667_v2, %v9499_v10  ;;  %v12785_v52 = vpop.f32.mrb[201].mxu0 }
0x22ef   :  { %v18976_v60 = vadd.f32 %v9673_v37, %v18900_v8 }
0x22f0   :  { %v9711_v28 = vpop.f32.mrb[204].mxu0 }
0x22f1   :  { %v9712_v59 = vadd.f32 %v9711_v28, %v17960_v43  ;;  %v12792_v56 = vpop.f32.mrb[205].mxu0 }
0x22f2   :  { %v9714_v41 = vpop.f32.mrb[206].mxu0 }
0x22f3   :  { %v9715_v3 = vadd.f32 %v9714_v41, %v17963_v0  ;;  %v12793_v44 = vpop.f32.mrb[207].mxu0  ;;  %v9734_v54 = vmul.f32 %v9712_v59, %v16119_v17 }
0x22f5   :  { %v9735_v38 = vmul.f32 %v9715_v3, %v16124_v50 }
0x22f7   :  { %v13131_v21 = vpack.c.bf16 %v9735_v38, %v9734_v54 }
0x22f8   :  { %v9719_v58 = vpop.f32.mrb[208].mxu0 }
0x22f9   :  { %v9720_v30 = vadd.f32 %v9719_v58, %v17969_v46  ;;  %v12796_v14 = vpop.f32.mrb[209].mxu0  ;;  %13132 = vmatprep.subr.bf16.mxu1 %v13131_v21 }
0x22fa   :  { %v9722_v8 = vpop.f32.mrb[210].mxu0  ;;  %13134 = vmatpush3.bf16.msra.mxu1 %v13131_v21 }
0x22fb   :  { %v9736_v42 = vmul.f32 %v9720_v30, %v16127_v35  ;;  %v12797_v36 = vpop.f32.mrb[211].mxu0 }
0x22fd   :  { %12806 = vmatprep.subr.mxu1 %v9736_v42 }
0x22fe   :  { %12807 = vmatpush3.msra.mxu1 %v9736_v42 }
0x22ff   :  { %12809 = vmatmul.mubr.msk.f32.vlgmr.msra.gmra.mrb[198].mxu1 %vm105_vm7, %v18779_v45  ;;  %13135 = vmatprep.subr.bf16.mxu1 %v19300_v27 }
0x2300   :  { %v9727_v22 = vpop.f32.mrb[212].mxu0  ;;  %12815 = vmatprep.mubr.msk.f32.mxu1 %vm13416_vm10, %v19299_v20 }
0x2301   :  { %v12800_v61 = vpop.f32.mrb[213].mxu0 }
0x2302   :  { %v9730_v40 = vpop.f32.mrb[214].mxu0 }
0x2303   :  { %v12801_v57 = vpop.f32.mrb[215].mxu0  ;;  %v9731_v37 = vadd.f32 %v9730_v40, %v18075_v51 }
0x23d2   :  { %v12810_v32 = vpop.f32.mrb[198].mxu1 }
0x23d3   :  { %v9813_v53 = vsub.f32 %v12810_v32, %v17986_v29  ;;  %v9803_v9 = vpop.f32.mrb[199].mxu1 }
0x23d4   :  { %v9812_v63 = vsub.f32 %v9803_v9, %v17988_v6 }
0x23d5   :  { %v9816_v24 = vmul.f32 1.442695, %v9813_v53 }
0x23d6   :  { %v9814_v13 = vmul.f32 1.442695, %v9812_v63 }
0x23d7   :  { %13358 = vpow2.f32 %v9816_v24 }
0x23d8   :  { %13360 = vpow2.f32 %v9814_v13 }
0x23e1   :  { %v13359_v33 = vpop.eup %13358 }
0x23e2   :  { %v13361_v55 = vpop.eup %13360  ;;  %v18992_v7 = vadd.f32 %v13359_v33, %v18916_v34 }
0x23e3   :  { %v18995_v62 = vadd.f32 %v13361_v55, %v18919_v11  ;;  %v13136_v19 = vpack.c.bf16 %v13359_v33, %v13361_v55 }
0x23e5   :  { %13138 = vmatpush3.bf16.msk.msra.mxu1 %vm17997_vm12, %v13136_v19 }
0x23e6   :  { %12824 = vmatprep.subr.bf16.mxu1 %v19299_v20 }
0x23e8   :  { %12816 = vmatmul.mubr.msk.f32.vlgmr.msra.gmra.mrb[212].mxu1 %vm6330_vm13, %v18536_v5 }
0x23e9   :  { %12825 = vmatpush3.bf16.msra.mxu1 %v17764_v15  ;;  %12818 = vmatprep.mubr.msk.f32.mxu1 %vm13416_vm10, %v19299_v20  ;;  %v9723_v15 = vadd.f32 %v9722_v8, %v18064_v31 }
0x23ea   :  { %12826 = vmatprep.subr.bf16.mxu1 %v19299_v20 }
0x23ec   :  { %12819 = vmatmul.mubr.msk.f32.gmra.mrb[214].mxu1 %vm6330_vm13, %v18547_v25 }
0x23ed   :  { %12827 = vmatpush3.bf16.msra.mxu1 %v17776_v23  ;;  %12821 = vmatprep.mubr.msk.f32.mxu1 %vm13416_vm10, %v19299_v20 }
0x23f0   :  { %12822 = vmatmul.mubr.msk.f32.gmra.mrb[216].mxu1 %vm6330_vm13, %v18557_v26  ;;  %v9728_v26 = vadd.f32 %v9727_v22, %v18070_v16 }
0x23f1   :  { %12828 = vmatprep.mubr.msk.bf16.mxu1 %vm13416_vm10, %v19299_v20 }
0x23f4   :  { %12829 = vmatmul.mubr.msk.bf16.vlgmr.msra.gmra.mrb[220].mxu1 %vm105_vm7, %v18942_v47 }
0x23f5   :  { %12832 = vmatprep.mubr.msk.bf16.mxu1 %vm13416_vm10, %v19299_v20 }
0x23fc   :  { %12833 = vmatmul.mubr.msk.bf16.gmra.mrb[224].mxu1 %vm105_vm7, %v18951_v12 }
0x23fd   :  { %12836 = vmatprep.mubr.msk.bf16.mxu1 %vm13416_vm10, %v19299_v20 }
0x2404   :  { %12837 = vmatmul.mubr.msk.bf16.gmra.mrb[228].mxu1 %vm105_vm7, %v18960_v4 }
0x2405   :  { %12884 = vmatprep.mubr.msk.f32.mxu1 %vm105_vm7, %v18825_v49 }
0x24bb   :  { %v9889_v23 = vpop.f32.mrb[212].mxu1 }
0x24bc   :  { %v9903_v5 = vmul.f32 %v9889_v23, %v9723_v15  ;;  %v12817_v25 = vpop.f32.mrb[213].mxu1 }
0x24be   :  { %v19030_v34 = vadd.f32 %v9903_v5, %v18969_v48  ;;  %v19064_v5 = vld [vmem:[%s19249_s10] sm:$0xff] }
0x24bf   :  { %v9894_v11 = vpop.f32.mrb[214].mxu1 }
0x24c0   :  { %v9904_v10 = vmul.f32 %v9894_v11, %v9728_v26  ;;  %v12820_v2 = vpop.f32.mrb[215].mxu1 }
0x24c2   :  { %v19034_v52 = vadd.f32 %v9904_v10, %v18973_v39 }
0x24c3   :  { %v9899_v28 = vpop.f32.mrb[216].mxu1 }
0x24c4   :  { %v9905_v49 = vmul.f32 %v9899_v28, %v9731_v37  ;;  %v12823_v59 = vpop.f32.mrb[217].mxu1 }
0x24c6   :  { %v19037_v56 = vadd.f32 %v9905_v49, %v18976_v60 }
0x24c7   :  { %v9943_v41 = vpop.f32.mrb[220].mxu1 }
0x24c8   :  { %v9944_v3 = vadd.f32 %v9943_v41, %v17960_v43  ;;  %v12830_v44 = vpop.f32.mrb[221].mxu1 }
0x24c9   :  { %v9946_v48 = vpop.f32.mrb[222].mxu1 }
0x24ca   :  { %v9947_v54 = vadd.f32 %v9946_v48, %v17963_v0  ;;  %v12831_v38 = vpop.f32.mrb[223].mxu1  ;;  %v9966_v21 = vmul.f32 %v9944_v3, %v16119_v17 }
0x24cc   :  { %v9967_v58 = vmul.f32 %v9947_v54, %v16124_v50 }
0x24ce   :  { %v13139_v39 = vpack.c.bf16 %v9967_v58, %v9966_v21 }
0x24cf   :  { %v9951_v30 = vpop.f32.mrb[224].mxu1 }
0x24d0   :  { %v9952_v14 = vadd.f32 %v9951_v30, %v17969_v46  ;;  %v12834_v8 = vpop.f32.mrb[225].mxu1  ;;  %13140 = vmatprep.subr.bf16.mxu0 %v13139_v39 }
0x24d1   :  { %v9954_v60 = vpop.f32.mrb[226].mxu1  ;;  %13142 = vmatpush3.bf16.msra.mxu0 %v13139_v39 }
0x24d2   :  { %v9968_v42 = vmul.f32 %v9952_v14, %v16127_v35  ;;  %v12835_v36 = vpop.f32.mrb[227].mxu1  ;;  %v9955_v25 = vadd.f32 %v9954_v60, %v18064_v31 }
0x24d4   :  { %12844 = vmatprep.subr.mxu0 %v9968_v42 }
0x24d5   :  { %12845 = vmatpush3.msra.mxu0 %v9968_v42 }
0x24d6   :  { %12847 = vmatmul.mubr.msk.f32.vlgmr.msra.gmra.mrb[202].mxu0 %vm105_vm7, %v18779_v45  ;;  %13143 = vmatprep.subr.bf16.mxu0 %v19300_v27 }
0x24d7   :  { %v9959_v22 = vpop.f32.mrb[228].mxu1  ;;  %12853 = vmatprep.mubr.msk.f32.mxu0 %vm13416_vm10, %v19299_v20 }
0x24d8   :  { %v12838_v61 = vpop.f32.mrb[229].mxu1  ;;  %v9960_v10 = vadd.f32 %v9959_v22, %v18070_v16 }
0x24d9   :  { %v9962_v40 = vpop.f32.mrb[230].mxu1 }
0x24da   :  { %v12839_v57 = vpop.f32.mrb[231].mxu1  ;;  %v9963_v49 = vadd.f32 %v9962_v40, %v18075_v51 }
0x25a9   :  { %v12848_v32 = vpop.f32.mrb[202].mxu0 }
0x25aa   :  { %v10045_v53 = vsub.f32 %v12848_v32, %v17986_v29  ;;  %v10035_v9 = vpop.f32.mrb[203].mxu0 }
0x25ab   :  { %v10044_v63 = vsub.f32 %v10035_v9, %v17988_v6 }
0x25ac   :  { %v10048_v24 = vmul.f32 1.442695, %v10045_v53 }
0x25ad   :  { %v10046_v13 = vmul.f32 1.442695, %v10044_v63 }
0x25ae   :  { %13362 = vpow2.f32 %v10048_v24 }
0x25af   :  { %13364 = vpow2.f32 %v10046_v13 }
0x25b8   :  { %v13363_v33 = vpop.eup %13362 }
0x25b9   :  { %v13365_v55 = vpop.eup %13364  ;;  %v19053_v19 = vadd.f32 %v13363_v33, %v18992_v7  ;;  %v19075_v7 = vld [vmem:[%s19249_s10 + $0x8] sm:$0xff] }
0x25ba   :  { %v19056_v15 = vadd.f32 %v13365_v55, %v18995_v62  ;;  %v13144_v23 = vpack.c.bf16 %v13363_v33, %v13365_v55  ;;  %v19314_v62 = vld [vmem:[#allocation15_spill] sm:$0xff] }
0x25bc   :  { %13146 = vmatpush3.bf16.msk.msra.mxu0 %vm17997_vm12, %v13144_v23 }
0x25bd   :  { %12862 = vmatprep.subr.bf16.mxu0 %v19299_v20 }
0x25bf   :  { %12854 = vmatmul.mubr.msk.f32.vlgmr.msra.gmra.mrb[216].mxu0 %vm6330_vm13, %v19064_v5 }
0x25c0   :  { %12863 = vmatpush3.bf16.msra.mxu0 %v17901_v18  ;;  %12856 = vmatprep.mubr.msk.f32.mxu0 %vm13416_vm10, %v19299_v20  ;;  %v19086_v18 = vld [vmem:[%s19249_s10 + $0x10] sm:$0xff] }
0x25c1   :  { %12864 = vmatprep.subr.bf16.mxu0 %v19299_v20 }
0x25c3   :  { %12857 = vmatmul.mubr.msk.f32.gmra.mrb[218].mxu0 %vm6330_vm13, %v19075_v7 }
0x25c4   :  { %12865 = vmatpush3.bf16.msra.mxu0 %v19314_v62  ;;  %12859 = vmatprep.mubr.msk.f32.mxu0 %vm13416_vm10, %v19299_v20 }
0x25c5   :  { %12913 = vmatprep.subr.bf16.mxu0 %v19299_v20 }
0x25c7   :  { %12860 = vmatmul.mubr.msk.f32.gmra.mrb[220].mxu0 %vm6330_vm13, %v19086_v18 }
0x25c8   :  { %12866 = vmatprep.mubr.msk.bf16.mxu0 %vm13416_vm10, %v19299_v20 }
0x25cb   :  { %12867 = vmatmul.mubr.msk.bf16.vlgmr.msra.gmra.mrb[224].mxu0 %vm105_vm7, %v18942_v47 }
0x25cc   :  { %12870 = vmatprep.mubr.msk.bf16.mxu0 %vm13416_vm10, %v19299_v20 }
0x25d3   :  { %12871 = vmatmul.mubr.msk.bf16.gmra.mrb[228].mxu0 %vm105_vm7, %v18951_v12 }
0x25d4   :  { %12874 = vmatprep.mubr.msk.bf16.mxu0 %vm13416_vm10, %v19299_v20 }
0x25db   :  { %12875 = vmatmul.mubr.msk.bf16.gmra.mrb[232].mxu0 %vm105_vm7, %v18960_v4 }
0x25dc   :  { %12917 = vmatprep.mubr.msk.bf16.mxu0 %vm13416_vm10, %v19299_v20 }
0x2692   :  { %v10121_v26 = vpop.f32.mrb[216].mxu0 }
0x2693   :  { %v10135_v11 = vmul.f32 %v10121_v26, %v9955_v25  ;;  %v12855_v47 = vpop.f32.mrb[217].mxu0 }
0x2695   :  { %v19107_v2 = vadd.f32 %v10135_v11, %v19030_v34 }
0x2696   :  { %v10126_v12 = vpop.f32.mrb[218].mxu0 }
0x2697   :  { %v10136_v37 = vmul.f32 %v10126_v12, %v9960_v10  ;;  %v12858_v28 = vpop.f32.mrb[219].mxu0 }
0x2699   :  { %v19111_v4 = vadd.f32 %v10136_v37, %v19034_v52 }
0x269a   :  { %v10131_v59 = vpop.f32.mrb[220].mxu0 }
0x269b   :  { %v10137_v41 = vmul.f32 %v10131_v59, %v9963_v49  ;;  %v12861_v3 = vpop.f32.mrb[221].mxu0 }
0x269c   :  { %v13294_v3 = vld [vmem:[%s19250_s11 + $0x8] sm:$0xff]  }
0x269d   :  { %v19114_v44 = vadd.f32 %v10137_v41, %v19037_v56  ;;  %v13293_v41 = vld [vmem:[%s19250_s11] sm:$0xff]  }
0x269e   :  { %v10175_v48 = vpop.f32.mrb[224].mxu0 }
0x269f   :  { %v10176_v54 = vadd.f32 %v10175_v48, %v17960_v43  ;;  %v12868_v38 = vpop.f32.mrb[225].mxu0  ;;  %v13296_v48 = vld [vmem:[%s19251_s13] sm:$0xff]  }
0x26a0   :  { %v10178_v34 = vpop.f32.mrb[226].mxu0 }
0x26a1   :  { %v10179_v21 = vadd.f32 %v10178_v34, %v17963_v0  ;;  %v12869_v58 = vpop.f32.mrb[227].mxu0  ;;  %v10198_v39 = vmul.f32 %v10176_v54, %v16119_v17  ;;  %v10478_v54 = vpop.permute.xlu0 %10477 }
0x26a2   :  { %v10483_v58 = vpop.permute.xlu1 %10482 }
0x26a3   :  { %v10199_v30 = vmul.f32 %v10179_v21, %v16124_v50 }
0x26a5   :  { %v13147_v52 = vpack.c.bf16 %v10199_v30, %v10198_v39 }
0x26a6   :  { %v10183_v14 = vpop.f32.mrb[228].mxu0 }
0x26a7   :  { %v10184_v8 = vadd.f32 %v10183_v14, %v17969_v46  ;;  %v12872_v60 = vpop.f32.mrb[229].mxu0  ;;  %13148 = vmatprep.subr.bf16.mxu1 %v13147_v52 }
0x26a8   :  { %v10186_v56 = vpop.f32.mrb[230].mxu0  ;;  %13150 = vmatpush3.bf16.msra.mxu1 %v13147_v52 }
0x26a9   :  { %v10200_v42 = vmul.f32 %v10184_v8, %v16127_v35  ;;  %v12873_v43 = vpop.f32.mrb[231].mxu0 }
0x26ab   :  { %12882 = vmatprep.subr.mxu1 %v10200_v42 }
0x26ac   :  { %12883 = vmatpush3.msra.mxu1 %v10200_v42  ;;  %v10488_v42 = vpop.permute.xlu0 %10487 }
0x26ad   :  { %12885 = vmatmul.mubr.msk.f32.vlgmr.msra.gmra.mrb[218].mxu1 %vm105_vm7, %v18779_v45  ;;  %13151 = vmatprep.subr.bf16.mxu1 %v19300_v27 }
0x26ae   :  { %v10191_v17 = vpop.f32.mrb[232].mxu0  ;;  %12891 = vmatprep.mubr.msk.f32.mxu1 %vm13416_vm10, %v19299_v20 }
0x26af   :  { %v12876_v50 = vpop.f32.mrb[233].mxu0  ;;  %v10192_v55 = vadd.f32 %v10191_v17, %v18070_v16 }
0x26b0   :  { %v10194_v0 = vpop.f32.mrb[234].mxu0 }
0x26b1   :  { %v12877_v46 = vpop.f32.mrb[235].mxu0 }
0x2780   :  { %v12886_v36 = vpop.f32.mrb[218].mxu1 }
0x2781   :  { %v10277_v22 = vsub.f32 %v12886_v36, %v17986_v29  ;;  %v10267_v61 = vpop.f32.mrb[219].mxu1  ;;  %v10493_v36 = vpop.permute.xlu1 %10492 }
0x2782   :  { %v10276_v35 = vsub.f32 %v10267_v61, %v17988_v6 }
0x2783   :  { %v10280_v40 = vmul.f32 1.442695, %v10277_v22 }
0x2784   :  { %v10278_v57 = vmul.f32 1.442695, %v10276_v35 }
0x2785   :  { %13366 = vpow2.f32 %v10280_v40 }
0x2786   :  { %13368 = vpow2.f32 %v10278_v57 }
0x278f   :  { %v13367_v45 = vpop.eup %13366 }
0x2790   :  { %v13369_v32 = vpop.eup %13368  ;;  %v10283_v53 = vadd.f32 %v13367_v45, %v19053_v19 }
0x2791   :  { %v10282_v9 = vadd.f32 %v13369_v32, %v19056_v15  ;;  %v13152_v63 = vpack.c.bf16 %v13367_v45, %v13369_v32 }
0x2792   :  { %13370 = vrcp.f32 %v10283_v53 }
0x2793   :  { %13372 = vrcp.f32 %v10282_v9  ;;  %13154 = vmatpush3.bf16.msk.msra.mxu1 %vm17997_vm12, %v13152_v63 }
0x2794   :  { %13155 = vmatprep.subr.bf16.mxu1 %v19300_v27  ;;  %v10187_v27 = vadd.f32 %v10186_v56, %v18064_v31 }
0x2796   :  { %12892 = vmatmul.mubr.msk.f32.vlgmr.msra.gmra.mrb[232].mxu1 %vm6330_vm13, %v19064_v5 }
0x2797   :  { %12894 = vmatprep.mubr.msk.f32.mxu1 %vm13416_vm10, %v19299_v20 }
0x279a   :  { %12895 = vmatmul.mubr.msk.f32.gmra.mrb[234].mxu1 %vm6330_vm13, %v19075_v7 }
0x279b   :  { %12897 = vmatprep.mubr.msk.f32.mxu1 %vm13416_vm10, %v19299_v20 }
0x279c   :  { %v13371_v29 = vpop.eup %13370 }
0x279d   :  { %v13373_v6 = vpop.eup %13372 }
0x279e   :  { %12898 = vmatmul.mubr.msk.f32.gmra.mrb[236].mxu1 %vm6330_vm13, %v19086_v18  ;;  %v13156_v24 = vpack.c.bf16 %v13371_v29, %v13373_v6  ;;  %v10498_v6 = vpop.permute.xlu0 %10497 }
0x279f   :  { %12904 = vmatprep.mubr.msk.f32.mxu1 %vm13416_vm10, %v19299_v20 }
0x27a0   :  { %13158 = vmatpush3.bf16.msk.msra.mxu1 %vm17997_vm12, %v13156_v24 }
0x27a3   :  { %12905 = vmatmul.mubr.msk.f32.vlgmr.msra.gmra.mrb[238].mxu1 %vm6330_vm13, %v19064_v5 }
0x27a4   :  { %12907 = vmatprep.mubr.msk.f32.mxu1 %vm13416_vm10, %v19299_v20 }
0x27a7   :  { %12908 = vmatmul.mubr.msk.f32.gmra.mrb[240].mxu1 %vm6330_vm13, %v19075_v7  ;;  %v10195_v7 = vadd.f32 %v10194_v0, %v18075_v51 }
0x27a8   :  { %12910 = vmatprep.mubr.msk.f32.mxu1 %vm13416_vm10, %v19299_v20 }
0x27ab   :  { %12911 = vmatmul.mubr.msk.f32.gmra.mrb[242].mxu1 %vm6330_vm13, %v19086_v18 }
0x27ac   :  { %12935 = vmatprep.mubr.msk.bf16.mxu1 %vm10675_vm14, %v13296_v48 }
0x2869   :  { %v10353_v13 = vpop.f32.mrb[232].mxu1 }
0x286a   :  { %v10367_v1 = vmul.f32 %v10353_v13, %v10187_v27  ;;  %v12893_v33 = vpop.f32.mrb[233].mxu1 }
0x286c   :  { %v10370_v19 = vadd.f32 %v10367_v1, %v19107_v2 }
0x286d   :  { %v10358_v15 = vpop.f32.mrb[234].mxu1 }
0x286e   :  { %v10368_v23 = vmul.f32 %v10358_v15, %v10192_v55  ;;  %v12896_v5 = vpop.f32.mrb[235].mxu1  ;;  %v10503_v55 = vpop.permute.xlu1 %10502 }
0x2870   :  { %v10371_v62 = vadd.f32 %v10368_v23, %v19111_v4 }
0x2871   :  { %v10363_v25 = vpop.f32.mrb[236].mxu1 }
0x2872   :  { %v10369_v26 = vmul.f32 %v10363_v25, %v10195_v7  ;;  %v12899_v11 = vpop.f32.mrb[237].mxu1 }
0x2874   :  { %v10372_v18 = vadd.f32 %v10369_v26, %v19114_v44  ;;  %v13295_v44 = vld [vmem:[%s19250_s11 + $0x10] sm:$0xff]  }
0x2876   :  { %v10444_v31 = vpop.f32.mrb[238].mxu1 }
0x2877   :  { %v19164_v47 = vmul.f32 %v10444_v31, %v10370_v19  ;;  %v12906_v10 = vpop.f32.mrb[239].mxu1 }
0x287a   :  { %v10449_v12 = vpop.f32.mrb[240].mxu1 }
0x287b   :  { %v19166_v16 = vmul.f32 %v10449_v12, %v10371_v62  ;;  %v12909_v2 = vpop.f32.mrb[241].mxu1 }
0x287d   :  { %v10467_v37 = vpack.c.bf16 %v19166_v16, %v19164_v47 }
0x287e   :  { %v10454_v28 = vpop.f32.mrb[242].mxu1 }
0x287f   :  { %v19170_v51 = vmul.f32 %v10454_v28, %v10372_v18  ;;  %12914 = vmatpush3.bf16.msra.mxu0 %v10467_v37  ;;  %v12912_v49 = vpop.f32.mrb[243].mxu1 }
0x2880   :  { %12915 = vmatprep.subr.bf16.mxu0 %v19299_v20 }
0x2881   :  { %v10468_v4 = vpack.c.bf16 %v19170_v51, %v19170_v51 }
0x2883   :  { %v10530_v59 = vsel %vm112_vm9, %v10468_v4, 0 }
0x2884   :  { %12916 = vmatpush3.bf16.msra.mxu0 %v10530_v59 }
0x2887   :  { %12918 = vmatmul.mubr.msk.bf16.vlgmr.msra.gmra.mrb[236].mxu0 %vm105_vm7, %v13293_v41 }
0x2888   :  { %12921 = vmatprep.mubr.msk.bf16.mxu0 %vm13416_vm10, %v19299_v20 }
0x288f   :  { %12922 = vmatmul.mubr.msk.bf16.gmra.mrb[240].mxu0 %vm105_vm7, %v13294_v3 }
0x2890   :  { %12925 = vmatprep.mubr.msk.bf16.mxu0 %vm13416_vm10, %v19299_v20 }
0x2897   :  { %12926 = vmatmul.mubr.msk.bf16.gmra.mrb[244].mxu0 %vm105_vm7, %v13295_v44 }
0x295a   :  { %v10566_v38 = vpop.f32.mrb[236].mxu0 }
0x295b   :  { %v19196_v34 = vadd.f32 %v10566_v38, %v10478_v54  ;;  %v12919_v21 = vpop.f32.mrb[237].mxu0 }
0x295c   :  { %v10569_v20 = vpop.f32.mrb[238].mxu0 }
0x295d   :  { %v10589_v39 = vmul.f32 %v19196_v34, %v19196_v34  ;;  %v10570_v30 = vadd.f32 %v10569_v20, %v10483_v58  ;;  %v12920_v52 = vpop.f32.mrb[239].mxu0 }
0x295f   :  { %v10595_v14 = vmul.f32 %v10589_v39, %v19196_v34  ;;  %v10590_v8 = vmul.f32 %v10570_v30, %v10570_v30 }
0x2961   :  { %v10601_v60 = vmul.f32 0.044715, %v10595_v14  ;;  %v10596_v56 = vmul.f32 %v10590_v8, %v10570_v30 }
0x2962   :  { %v10574_v43 = vpop.f32.mrb[240].mxu0 }
0x2963   :  { %v10607_v17 = vadd.f32 %v10601_v60, %v19196_v34  ;;  %v10602_v50 = vmul.f32 0.044715, %v10596_v56  ;;  %v10575_v0 = vadd.f32 %v10574_v43, %v10488_v42  ;;  %v12923_v46 = vpop.f32.mrb[241].mxu0 }
0x2964   :  { %v10577_v22 = vpop.f32.mrb[242].mxu0 }
0x2965   :  { %v10613_v61 = vmul.f32 0.7978846, %v10607_v17  ;;  %v10608_v35 = vadd.f32 %v10602_v50, %v10570_v30  ;;  %v10591_v40 = vmul.f32 %v10575_v0, %v10575_v0  ;;  %v10578_v57 = vadd.f32 %v10577_v22, %v10493_v36  ;;  %v12924_v45 = vpop.f32.mrb[243].mxu0 }
0x2967   :  { %13374 = vtanh.f32 %v10613_v61  ;;  %v10614_v32 = vmul.f32 0.7978846, %v10608_v35  ;;  %v10597_v53 = vmul.f32 %v10591_v40, %v10575_v0  ;;  %v10592_v9 = vmul.f32 %v10578_v57, %v10578_v57  ;;  %v13297_v61 = vld [vmem:[%s19251_s13 + $0x8] ss:$0 sps:$4 sm:$0xff]  }
0x2969   :  { %13376 = vtanh.f32 %v10614_v32  ;;  %v10603_v63 = vmul.f32 0.044715, %v10597_v53  ;;  %v10598_v29 = vmul.f32 %v10592_v9, %v10578_v57  ;;  %v10660_v9 = vpop.permute.xlu1 %10659 }
0x296a   :  { %v10582_v24 = vpop.f32.mrb[244].mxu0 }
0x296b   :  { %v10609_v27 = vadd.f32 %v10603_v63, %v10575_v0  ;;  %v10604_v13 = vmul.f32 0.044715, %v10598_v29  ;;  %v10583_v1 = vadd.f32 %v10582_v24, %v10498_v6  ;;  %v12927_v33 = vpop.f32.mrb[245].mxu0 }
0x296c   :  { %v10585_v19 = vpop.f32.mrb[246].mxu0 }
0x296d   :  { %v10615_v15 = vmul.f32 0.7978846, %v10609_v27  ;;  %v10610_v23 = vadd.f32 %v10604_v13, %v10578_v57  ;;  %v10593_v5 = vmul.f32 %v10583_v1, %v10583_v1  ;;  %v10586_v7 = vadd.f32 %v10585_v19, %v10503_v55  ;;  %v12928_v62 = vpop.f32.mrb[247].mxu0 }
0x296f   :  { %13378 = vtanh.f32 %v10615_v15  ;;  %v10616_v25 = vmul.f32 0.7978846, %v10610_v23  ;;  %v10599_v26 = vmul.f32 %v10593_v5, %v10583_v1  ;;  %v10594_v11 = vmul.f32 %v10586_v7, %v10586_v7 }
0x2971   :  { %v13375_v18 = vpop.eup %13374  ;;  %13380 = vtanh.f32 %v10616_v25  ;;  %v10605_v31 = vmul.f32 0.044715, %v10599_v26  ;;  %v10600_v10 = vmul.f32 %v10594_v11, %v10586_v7 }
0x2972   :  { %v10625_v12 = vadd.f32 1.0, %v13375_v18 }
0x2973   :  { %v13377_v2 = vpop.eup %13376  ;;  %v10611_v37 = vadd.f32 %v10605_v31, %v10583_v1  ;;  %v10606_v28 = vmul.f32 0.044715, %v10600_v10 }
0x2974   :  { %v10626_v49 = vadd.f32 1.0, %v13377_v2  ;;  %v10631_v4 = vmul.f32 0.5, %v10625_v12 }
0x2975   :  { %v10617_v59 = vmul.f32 0.7978846, %v10611_v37  ;;  %v10612_v41 = vadd.f32 %v10606_v28, %v10586_v7 }
0x2976   :  { %v10632_v3 = vmul.f32 0.5, %v10626_v49  ;;  %v10637_v48 = vmul.f32 %v10631_v4, %v19196_v34 }
0x2977   :  { %13382 = vtanh.f32 %v10617_v59  ;;  %v10618_v44 = vmul.f32 0.7978846, %v10612_v41 }
0x2978   :  { %v10638_v54 = vmul.f32 %v10632_v3, %v10570_v30 }
0x2979   :  { %v13379_v38 = vpop.eup %13378  ;;  %13384 = vtanh.f32 %v10618_v44 }
0x297a   :  { %v10646_v21 = vpack.c.bf16 %v10638_v54, %v10637_v48  ;;  %v10627_v58 = vadd.f32 1.0, %v13379_v38 }
0x297b   :  { %v13381_v20 = vpop.eup %13380 }
0x297c   :  { %12929 = vmatprep.subr.bf16.mxu1 %v10646_v21  ;;  %v10628_v39 = vadd.f32 1.0, %v13381_v20  ;;  %v10633_v52 = vmul.f32 0.5, %v10627_v58 }
0x297d   :  { %12930 = vmatpush3.bf16.msra.mxu1 %v10646_v21 }
0x297e   :  { %v10634_v14 = vmul.f32 0.5, %v10628_v39  ;;  %v10639_v8 = vmul.f32 %v10633_v52, %v10575_v0  ;;  %v10655_v0 = vpop.permute.xlu0 %10654 }
0x2980   :  { %v10640_v60 = vmul.f32 %v10634_v14, %v10578_v57 }
0x2981   :  { %v13383_v56 = vpop.eup %13382 }
0x2982   :  { %v10647_v42 = vpack.c.bf16 %v10640_v60, %v10639_v8  ;;  %v10629_v43 = vadd.f32 1.0, %v13383_v56  ;;  %v10665_v35 = vpop.permute.xlu0 %10664 }
0x2983   :  { %v13385_v17 = vpop.eup %13384 }
0x2984   :  { %12931 = vmatprep.subr.bf16.mxu1 %v10647_v42  ;;  %v10630_v50 = vadd.f32 1.0, %v13385_v17  ;;  %v10635_v34 = vmul.f32 0.5, %v10629_v43 }
0x2985   :  { %12932 = vmatpush3.bf16.msra.mxu1 %v10647_v42 }
0x2986   :  { %v10636_v30 = vmul.f32 0.5, %v10630_v50  ;;  %v10641_v46 = vmul.f32 %v10635_v34, %v10583_v1 }
0x2988   :  { %v10642_v36 = vmul.f32 %v10636_v30, %v10586_v7 }
0x298a   :  { %v10648_v22 = vpack.c.bf16 %v10642_v36, %v10641_v46 }
0x298c   :  { %12933 = vmatprep.subr.bf16.mxu1 %v10648_v22 }
0x298d   :  { %12934 = vmatpush3.bf16.msra.mxu1 %v10648_v22 }
0x2990   :  { %12936 = vmatmul.mubr.msk.bf16.vlgmr.msra.gmra.mrb[244].mxu1 %vm10675_vm14, %v13297_v61 }
0x2a63   :  { %v12937_v40 = vpop.f32.mrb[244].mxu1 }
0x2a64   :  { %v10725_v57 = vadd.f32 %v12937_v40, %v10665_v35  ;;  %v10716_v45 = vpop.f32.mrb[245].mxu1 }
0x2a65   :  { %v10717_v32 = vadd.f32 %v10716_v45, %v10655_v0  ;;  %v12938_v53 = vpop.f32.mrb[246].mxu1 }
0x2a66   :  { %v10732_v63 = vadd.f32 %v10725_v57, %v19170_v51  ;;  %v10719_v29 = vpop.f32.mrb[247].mxu1 }
0x2a67   :  { %v10730_v6 = vadd.f32 %v10717_v32, %v19164_v47  ;;  %v10720_v24 = vadd.f32 %v10719_v29, %v10660_v9 }
0x2a68   :  { %10735 = vst.msk [vmem:[%s19252_s15 + $0x10] sm:$0xff] %vm70_vm8, %v10732_v63 }
0x2a69   :  { %10733 = vst.msk [vmem:[%s19252_s15] sm:$0xff] %vm70_vm8, %v10730_v6  ;;  %v10731_v27 = vadd.f32 %v10720_v24, %v19166_v16  ;;  %10739 = vrot.lane.b32.xlu1 %v10730_v6, %s13413_s17 }
0x2a6b   :  { %10734 = vst.msk [vmem:[%s19252_s15 + $0x8] sm:$0xff] %vm70_vm8, %v10731_v27  ;;  %10741 = vrot.lane.b32.xlu0 %v10731_v27, %s13413_s17 }
0x2a6d   :  { %10743 = vrot.lane.b32.xlu1 %v10732_v63, %s13413_s17 }
0x2adb   :  { %v10740_v47 = vpop.permute.xlu1 %10739 }
0x2adc   :  { %11448 = vst.msk [vmem:[%s19252_s15 + $0x18] sm:$0xff] %vm70_vm8, %v10740_v47 }
0x2add   :  { %v10742_v51 = vpop.permute.xlu0 %10741 }
0x2ade   :  { %11449 = vst.msk [vmem:[%s19252_s15 + $0x20] sm:$0xff] %vm70_vm8, %v10742_v51 }
0x2adf   :  { %v10744_v16 = vpop.permute.xlu1 %10743 }
0x2ae0   :  { %11450 = vst.msk [vmem:[%s19252_s15 + $0x28] sm:$0xff] %vm70_vm8, %v10744_v16 }

</bundles_post_ra>
